<compile_context>
chip_gen: v6e
topology: v6e:2x2x1
jax: 0.10.0
libtpu: 0.0.40
codegen_flags: <defaults>
</compile_context>

<pallas_src>
import functools

import jax
import jax.numpy as jnp
from jax import lax
from jax.experimental import pallas as pl
from jax.experimental.pallas import tpu as pltpu


def _gam_kernel(K, Wsp,
                x_ref,                      # (C, HW)   concatenated input (residual)
                wl1_ref, bl1_ref,           # (Cr, C), (Cr, 1)   channel-attention Linear1
                wl2_ref, bl2_ref,           # (C, Cr), (C, 1)    channel-attention Linear2
                wc1_ref, bc1_ref,           # (Cm, K*K*C), (Cm, 1)   conv1 (+BN1 folded)
                wc2_ref, bc2_ref,           # (C2, K*K*Cm), (C2, 1)  conv2 (+BN2+shuffle folded)
                wd_ref, bd_ref,             # (Co, 2C), (Co, 1)      fused downsample1|downsample2
                y_ref,                      # (Co, HW)
                pad_scr, col1_scr, col2_scr):
    x = x_ref[...]                          # (C, HW) f32
    C, HW = x.shape
    Cm = wc1_ref.shape[0]
    P = K // 2
    PADL = P * Wsp + P                      # max |flattened shift| of a 7x7 tap

    # ---- channel attention: per-pixel 2-layer MLP over channels (no sigmoid in GAM) ----
    h = jnp.maximum(
        jnp.dot(wl1_ref[...], x, preferred_element_type=jnp.float32) + bl1_ref[...], 0.0)
    att = jnp.dot(wl2_ref[...], h, preferred_element_type=jnp.float32) + bl2_ref[...]
    xca = x * att                           # (C, HW)

    # column-index map (lane position within a spatial row), hoisted once
    lane = lax.broadcasted_iota(jnp.int32, (C, HW), 1)
    if Wsp & (Wsp - 1) == 0:
        colx = jnp.bitwise_and(lane, Wsp - 1)
    else:
        colx = lane % Wsp

    # zero the padded staging buffer once (scratch persists across grid steps)
    pad_scr[...] = jnp.zeros_like(pad_scr)

    def build_cols(val, col_scr):
        """Scatter the K*K spatially-shifted (and column-masked) copies of `val`
        into the im2col scratch `col_scr` (rows ordered tap-major, channel-minor)."""
        nrow = val.shape[0]
        pad_scr[0:nrow, PADL:PADL + HW] = val
        cmask = colx[0:nrow]
        oks = [((cmask + (dx - P)) >= 0) & ((cmask + (dx - P)) < Wsp) for dx in range(K)]
        for dy in range(K):
            for dx in range(K):
                t = dy * K + dx
                s = (dy - P) * Wsp + (dx - P)
                sl = pad_scr[0:nrow, PADL + s:PADL + s + HW]
                col_scr[t * nrow:(t + 1) * nrow, :] = jnp.where(oks[dx], sl, 0.0)

    # ---- spatial attention conv1 (7x7, BN folded) -> ReLU ----
    build_cols(xca, col1_scr)
    s1 = (jnp.dot(wc1_ref[...], col1_scr[...], preferred_element_type=jnp.float32)
          + bc1_ref[...])                   # (Cm, HW)
    hsp = jnp.maximum(s1, 0.0)

    # ---- spatial attention conv2 (7x7, BN + channel-shuffle folded) -> sigmoid ----
    build_cols(hsp, col2_scr)
    s2 = (jnp.dot(wc2_ref[...], col2_scr[...], preferred_element_type=jnp.float32)
          + bc2_ref[...])                   # (C2, HW), already channel-shuffled
    sat = jax.nn.sigmoid(s2)

    xsa = xca * sat                         # (C, HW)

    # ---- fused downsample1(residual) + downsample2(x) as one matmul ----
    z = jnp.concatenate([x, xsa], axis=0)   # (2C, HW) = [residual ; attended]
    y_ref[...] = (jnp.dot(wd_ref[...], z, preferred_element_type=jnp.float32)
                  + bd_ref[...])            # (Co, HW) -- lane-dense output


def _expand_grouped(w, groups, cin):
    """Grouped-conv weight (Cout, Cin/groups, K, K) -> block-diagonal dense (Cout, Cin, K, K)."""
    cout, cin_g, kh, kw = w.shape
    og = cout // groups
    dense = jnp.zeros((cout, cin, kh, kw), jnp.float32)
    for g in range(groups):
        dense = dense.at[g * og:(g + 1) * og, g * cin_g:(g + 1) * cin_g].set(
            w[g * og:(g + 1) * og].astype(jnp.float32))
    return dense


def gam_forward(x1, x2, params, groups=4, eps=1e-5):
    """GAM.forward((x1, x2)) with a per-batch Pallas kernel (inference-mode BatchNorm)."""
    x = jnp.concatenate([x1, x2], axis=1).astype(jnp.float32)     # (B, C, H, W)
    B, C, H, W = x.shape
    HW = H * W
    Cr = params["wl1"].shape[0]
    Cm = params["wconv1"].shape[0]
    C2 = params["wconv2"].shape[0]
    Co = params["wd1"].shape[0]
    K = params["wconv1"].shape[2]
    P = K // 2

    x_flat = x.reshape(B, C, HW)

    # ---- channel-attention Linear weights (y = x @ W^T + b  ->  W @ X + b in (C,HW)) ----
    wl1 = params["wl1"].astype(jnp.float32)                       # (Cr, C)
    bl1 = params["bl1"].astype(jnp.float32).reshape(Cr, 1)
    wl2 = params["wl2"].astype(jnp.float32)                       # (C, Cr)
    bl2 = params["bl2"].astype(jnp.float32).reshape(C, 1)

    def fold_bn(w_dense, b, gamma, beta, mean, var):
        scale = gamma.astype(jnp.float32) / jnp.sqrt(var.astype(jnp.float32) + eps)
        w_f = w_dense * scale[:, None, None, None]
        b_f = scale * (b.astype(jnp.float32) - mean.astype(jnp.float32)) + beta.astype(jnp.float32)
        return w_f, b_f

    # ---- conv1: expand groups, fold BN1, flatten for im2col (rows = tap*C + cin) ----
    w1d = _expand_grouped(params["wconv1"], groups, C)            # (Cm, C, K, K)
    w1d, b1f = fold_bn(w1d, params["bconv1"], params["g1"], params["be1"],
                       params["m1"], params["v1"])
    wc1 = jnp.transpose(w1d, (0, 2, 3, 1)).reshape(Cm, K * K * C)
    bc1 = b1f.reshape(Cm, 1)

    # ---- conv2: expand groups, fold BN2, fold channel_shuffle(., 4), flatten ----
    w2d = _expand_grouped(params["wconv2"], groups, Cm)           # (C2, Cm, K, K)
    w2d, b2f = fold_bn(w2d, params["bconv2"], params["g2"], params["be2"],
                       params["m2"], params["v2"])
    # channel_shuffle with groups=4: out[o] = in[(o % 4) * (C2 // 4) + o // 4]
    perm = jnp.array([(o % 4) * (C2 // 4) + o // 4 for o in range(C2)], dtype=jnp.int32)
    w2d = w2d[perm]
    b2f = b2f[perm]
    wc2 = jnp.transpose(w2d, (0, 2, 3, 1)).reshape(C2, K * K * Cm)
    bc2 = b2f.reshape(C2, 1)

    # ---- fused 1x1 downsample convs: y = [Wd1 | Wd2] @ [residual ; x] + (bd1 + bd2) ----
    wd = jnp.concatenate([params["wd1"].reshape(Co, C), params["wd2"].reshape(Co, C)],
                         axis=1).astype(jnp.float32)              # (Co, 2C)
    bd = (params["bd1"] + params["bd2"]).astype(jnp.float32).reshape(Co, 1)

    kernel = functools.partial(_gam_kernel, K, W)
    PADL = P * W + P

    y_flat = pl.pallas_call(
        kernel,
        out_shape=jax.ShapeDtypeStruct((B, Co, HW), jnp.float32),
        grid=(B,),
        in_specs=[
            pl.BlockSpec((None, C, HW), lambda b: (b, 0, 0)),     # x (per batch, (C, HW))
            pl.BlockSpec((Cr, C), lambda b: (0, 0)),              # Linear1 W
            pl.BlockSpec((Cr, 1), lambda b: (0, 0)),              # Linear1 b
            pl.BlockSpec((C, Cr), lambda b: (0, 0)),              # Linear2 W
            pl.BlockSpec((C, 1), lambda b: (0, 0)),               # Linear2 b
            pl.BlockSpec((Cm, K * K * C), lambda b: (0, 0)),      # conv1 (BN folded)
            pl.BlockSpec((Cm, 1), lambda b: (0, 0)),
            pl.BlockSpec((C2, K * K * Cm), lambda b: (0, 0)),     # conv2 (BN+shuffle folded)
            pl.BlockSpec((C2, 1), lambda b: (0, 0)),
            pl.BlockSpec((Co, 2 * C), lambda b: (0, 0)),          # fused downsample weights
            pl.BlockSpec((Co, 1), lambda b: (0, 0)),
        ],
        out_specs=pl.BlockSpec((None, Co, HW), lambda b: (b, 0, 0)),
        scratch_shapes=[
            pltpu.VMEM((C, HW + 2 * PADL), jnp.float32),          # lane-padded staging buffer
            pltpu.VMEM((K * K * C, HW), jnp.float32),             # im2col for conv1
            pltpu.VMEM((K * K * Cm, HW), jnp.float32),            # im2col for conv2
        ],
        compiler_params=pltpu.CompilerParams(
            dimension_semantics=("parallel",)),
    )(x_flat, wl1, bl1, wl2, bl2, wc1, bc1, wc2, bc2, wd, bd)

    return y_flat.reshape(B, Co, H, W)


def gam_ref(x1, x2, params, groups=4, eps=1e-5):
    """Pure-JAX reference mirroring the PyTorch GAM forward (NCHW, inference-mode BN)."""
    x = jnp.concatenate([x1, x2], axis=1).astype(jnp.float32)
    residual = x
    B, C, H, W = x.shape
    Co = params["wd1"].shape[0]
    K = params["wconv1"].shape[2]
    P = K // 2

    # channel attention (per-pixel Linear -> ReLU -> Linear, no sigmoid)
    xp = jnp.transpose(x, (0, 2, 3, 1)).reshape(B, H * W, C)
    h = jnp.maximum(jnp.einsum("bpc,rc->bpr", xp, params["wl1"]) + params["bl1"], 0.0)
    att = jnp.einsum("bpr,cr->bpc", h, params["wl2"]) + params["bl2"]
    att = jnp.transpose(att.reshape(B, H, W, C), (0, 3, 1, 2))
    x = x * att

    def bn(z, g, b, m, v):
        return (g.reshape(1, -1, 1, 1) * (z - m.reshape(1, -1, 1, 1))
                / jnp.sqrt(v.reshape(1, -1, 1, 1) + eps) + b.reshape(1, -1, 1, 1))

    s = lax.conv_general_dilated(x, params["wconv1"], (1, 1), ((P, P), (P, P)),
                                 dimension_numbers=("NCHW", "OIHW", "NCHW"),
                                 feature_group_count=groups)
    s = s + params["bconv1"].reshape(1, -1, 1, 1)
    s = jnp.maximum(bn(s, params["g1"], params["be1"], params["m1"], params["v1"]), 0.0)
    s = lax.conv_general_dilated(s, params["wconv2"], (1, 1), ((P, P), (P, P)),
                                 dimension_numbers=("NCHW", "OIHW", "NCHW"),
                                 feature_group_count=groups)
    s = s + params["bconv2"].reshape(1, -1, 1, 1)
    s = bn(s, params["g2"], params["be2"], params["m2"], params["v2"])
    sat = jax.nn.sigmoid(s)
    # channel_shuffle(sat, 4)
    c2 = sat.shape[1]
    sat = sat.reshape(B, 4, c2 // 4, H, W).transpose(0, 2, 1, 3, 4).reshape(B, c2, H, W)
    x = x * sat

    res = (jnp.einsum("bchw,oc->bohw", residual, params["wd1"].reshape(Co, C))
           + params["bd1"].reshape(1, -1, 1, 1))
    out = (jnp.einsum("bchw,oc->bohw", x, params["wd2"].reshape(Co, C))
           + params["bd2"].reshape(1, -1, 1, 1))
    return out + res


if __name__ == "__main__":
    # GAM(c1, c2, group=True, rate=4): x1, x2 each with c1/2 channels; c2 must equal c1
    # so the spatial-attention multiply broadcasts (as in typical GAM usage).
    c1, c2 = 16, 16
    rate, groups, K = 4, 4, 7
    B, H, W = 2, 16, 16
    ch_in = c1 // 2          # channels of each input branch = 8
    Cr = c1 // rate          # channel-attention hidden = 4
    Cm = c1 // rate          # spatial-attention mid channels = 4
    Co = c1 // 2             # downsample output channels = 8

    key = jax.random.PRNGKey(0)
    ks = jax.random.split(key, 24)

    def rnd(i, shape, scale):
        return scale * jax.random.normal(ks[i], shape, jnp.float32)

    x1 = jax.random.normal(ks[0], (B, ch_in, H, W), jnp.float32)
    x2 = jax.random.normal(ks[1], (B, ch_in, H, W), jnp.float32)

    params = {
        # channel attention: Linear(c1 -> c1/rate), Linear(c1/rate -> c1)
        "wl1": rnd(2, (Cr, c1), 0.3), "bl1": rnd(3, (Cr,), 0.1),
        "wl2": rnd(4, (c1, Cr), 0.3), "bl2": rnd(5, (c1,), 0.1),
        # spatial attention conv1: Conv2d(c1, c1/rate, 7, pad=3, groups=4) + BN
        "wconv1": rnd(6, (Cm, c1 // groups, K, K), 0.05), "bconv1": rnd(7, (Cm,), 0.1),
        "g1": 1.0 + rnd(8, (Cm,), 0.1), "be1": rnd(9, (Cm,), 0.1),
        "m1": rnd(10, (Cm,), 0.1),
        "v1": 1.0 + 0.1 * jnp.abs(jax.random.normal(ks[11], (Cm,), jnp.float32)),
        # spatial attention conv2: Conv2d(c1/rate, c2, 7, pad=3, groups=4) + BN
        "wconv2": rnd(12, (c2, Cm // groups, K, K), 0.05), "bconv2": rnd(13, (c2,), 0.1),
        "g2": 1.0 + rnd(14, (c2,), 0.1), "be2": rnd(15, (c2,), 0.1),
        "m2": rnd(16, (c2,), 0.1),
        "v2": 1.0 + 0.1 * jnp.abs(jax.random.normal(ks[17], (c2,), jnp.float32)),
        # downsample 1x1 convs: c1 -> c1/2
        "wd1": rnd(18, (Co, c1, 1, 1), 0.3), "bd1": rnd(19, (Co,), 0.1),
        "wd2": rnd(20, (Co, c1, 1, 1), 0.3), "bd2": rnd(21, (Co,), 0.1),
    }

    y = gam_forward(x1, x2, params, groups=groups)
    y = jax.block_until_ready(y)

    y_ref = gam_ref(x1, x2, params, groups=groups)
    assert y.shape == (B, Co, H, W)
    max_err = float(jnp.max(jnp.abs(y - y_ref)))
    if not jnp.allclose(y, y_ref, atol=2e-3, rtol=2e-3):
        raise RuntimeError(f"Pallas kernel does not match JAX reference (max abs err {max_err})")
    print("KERNEL_OK")
</pallas_src>

<mosaic_0001>
module attributes {stable_mosaic.version = 11 : i64} {
  func.func @_gam_kernel(%arg0: i32, %arg1: memref<1x16x256xf32, #tpu.memory_space<vmem>>, %arg2: memref<4x16xf32, #tpu.memory_space<vmem>>, %arg3: memref<4x1xf32, #tpu.memory_space<vmem>>, %arg4: memref<16x4xf32, #tpu.memory_space<vmem>>, %arg5: memref<16x1xf32, #tpu.memory_space<vmem>>, %arg6: memref<4x784xf32, #tpu.memory_space<vmem>>, %arg7: memref<4x1xf32, #tpu.memory_space<vmem>>, %arg8: memref<16x196xf32, #tpu.memory_space<vmem>>, %arg9: memref<16x1xf32, #tpu.memory_space<vmem>>, %arg10: memref<8x32xf32, #tpu.memory_space<vmem>>, %arg11: memref<8x1xf32, #tpu.memory_space<vmem>>, %arg12: memref<1x8x256xf32, #tpu.memory_space<vmem>>, %arg13: memref<16x358xf32, #tpu.memory_space<vmem>>, %arg14: memref<784x256xf32, #tpu.memory_space<vmem>>, %arg15: memref<196x256xf32, #tpu.memory_space<vmem>>) attributes {dimension_semantics = [#tpu.dimension_semantics<parallel>], iteration_bounds = array<i64: 2>, scalar_prefetch = 0 : i64, scratch_operands = 3 : i64, tpu.core_type = #tpu.core_type<tc>, window_params = [{transform_indices = @transform_0, window_bounds = array<i64: 1, 16, 256>}, {pipeline_mode = #tpu.pipeline_mode<synchronous>, transform_indices = @transform_1, window_bounds = array<i64: 4, 16>}, {pipeline_mode = #tpu.pipeline_mode<synchronous>, transform_indices = @transform_2, window_bounds = array<i64: 4, 1>}, {pipeline_mode = #tpu.pipeline_mode<synchronous>, transform_indices = @transform_3, window_bounds = array<i64: 16, 4>}, {pipeline_mode = #tpu.pipeline_mode<synchronous>, transform_indices = @transform_4, window_bounds = array<i64: 16, 1>}, {pipeline_mode = #tpu.pipeline_mode<synchronous>, transform_indices = @transform_5, window_bounds = array<i64: 4, 784>}, {pipeline_mode = #tpu.pipeline_mode<synchronous>, transform_indices = @transform_6, window_bounds = array<i64: 4, 1>}, {pipeline_mode = #tpu.pipeline_mode<synchronous>, transform_indices = @transform_7, window_bounds = array<i64: 16, 196>}, {pipeline_mode = #tpu.pipeline_mode<synchronous>, transform_indices = @transform_8, window_bounds = array<i64: 16, 1>}, {pipeline_mode = #tpu.pipeline_mode<synchronous>, transform_indices = @transform_9, window_bounds = array<i64: 8, 32>}, {pipeline_mode = #tpu.pipeline_mode<synchronous>, transform_indices = @transform_10, window_bounds = array<i64: 8, 1>}, {transform_indices = @transform_11, window_bounds = array<i64: 1, 8, 256>}]} {
    %c0 = arith.constant 0 : index
    %c0_0 = arith.constant 0 : index
    %c0_1 = arith.constant 0 : index
    %0 = vector.load %arg1[%c0, %c0_0, %c0_1] : memref<1x16x256xf32, #tpu.memory_space<vmem>>, vector<1x16x256xf32>
    %1 = vector.shape_cast %0 : vector<1x16x256xf32> to vector<16x256xf32>
    %c0_2 = arith.constant 0 : index
    %c0_3 = arith.constant 0 : index
    %2 = vector.load %arg2[%c0_2, %c0_3] : memref<4x16xf32, #tpu.memory_space<vmem>>, vector<4x16xf32>
    %cst = arith.constant dense<0.000000e+00> : vector<4x256xf32>
    %3 = tpu.matmul %2, %1, %cst {dimension_numbers = #tpu.dot_dimension_numbers<[1], [0], [0], [1], [0, 0, 1, 1], [], []>} : vector<4x16xf32>, vector<16x256xf32>, vector<4x256xf32> -> vector<4x256xf32>
    %c0_4 = arith.constant 0 : index
    %c0_5 = arith.constant 0 : index
    %4 = vector.load %arg3[%c0_4, %c0_5] : memref<4x1xf32, #tpu.memory_space<vmem>>, vector<4x1xf32>
    %5 = vector.broadcast %4 : vector<4x1xf32> to vector<4x256xf32>
    %6 = arith.addf %3, %5 : vector<4x256xf32>
    %cst_6 = arith.constant 0.000000e+00 : f32
    %7 = vector.broadcast %cst_6 : f32 to vector<4x256xf32>
    %8 = arith.maximumf %6, %7 : vector<4x256xf32>
    %c0_7 = arith.constant 0 : index
    %c0_8 = arith.constant 0 : index
    %9 = vector.load %arg4[%c0_7, %c0_8] : memref<16x4xf32, #tpu.memory_space<vmem>>, vector<16x4xf32>
    %cst_9 = arith.constant dense<0.000000e+00> : vector<16x256xf32>
    %10 = tpu.matmul %9, %8, %cst_9 {dimension_numbers = #tpu.dot_dimension_numbers<[1], [0], [0], [1], [0, 0, 1, 1], [], []>} : vector<16x4xf32>, vector<4x256xf32>, vector<16x256xf32> -> vector<16x256xf32>
    %c0_10 = arith.constant 0 : index
    %c0_11 = arith.constant 0 : index
    %11 = vector.load %arg5[%c0_10, %c0_11] : memref<16x1xf32, #tpu.memory_space<vmem>>, vector<16x1xf32>
    %12 = vector.broadcast %11 : vector<16x1xf32> to vector<16x256xf32>
    %13 = arith.addf %10, %12 : vector<16x256xf32>
    %14 = arith.mulf %1, %13 : vector<16x256xf32>
    %15 = tpu.iota {dimensions = array<i32: 1>} : vector<16x256xi32>
    %c15_i32 = arith.constant 15 : i32
    %16 = vector.broadcast %c15_i32 : i32 to vector<16x256xi32>
    %17 = arith.andi %15, %16 : vector<16x256xi32>
    %cst_12 = arith.constant 0.000000e+00 : f32
    %18 = vector.broadcast %cst_12 : f32 to vector<16x358xf32>
    %c0_13 = arith.constant 0 : index
    %c0_14 = arith.constant 0 : index
    %19 = vector.load %arg13[%c0_13, %c0_14] : memref<16x358xf32, #tpu.memory_space<vmem>>, vector<16x358xf32>
    tpu.vector_store %arg13[%c0_13, %c0_14], %18 {strides = array<i32>} : memref<16x358xf32, #tpu.memory_space<vmem>>, vector<16x358xf32>,
    %c0_15 = arith.constant 0 : index
    %c51 = arith.constant 51 : index
    %20 = vector.load %arg13[%c0_15, %c51] : memref<16x358xf32, #tpu.memory_space<vmem>>, vector<16x256xf32>
    tpu.vector_store %arg13[%c0_15, %c51], %14 {strides = array<i32>} : memref<16x358xf32, #tpu.memory_space<vmem>>, vector<16x256xf32>,
    %c-3_i32 = arith.constant -3 : i32
    %21 = vector.broadcast %c-3_i32 : i32 to vector<16x256xi32>
    %22 = arith.addi %17, %21 : vector<16x256xi32>
    %c0_i32 = arith.constant 0 : i32
    %23 = vector.broadcast %c0_i32 : i32 to vector<16x256xi32>
    %24 = arith.cmpi sge, %22, %23 : vector<16x256xi32>
    %c-3_i32_16 = arith.constant -3 : i32
    %25 = vector.broadcast %c-3_i32_16 : i32 to vector<16x256xi32>
    %26 = arith.addi %17, %25 : vector<16x256xi32>
    %c16_i32 = arith.constant 16 : i32
    %27 = vector.broadcast %c16_i32 : i32 to vector<16x256xi32>
    %28 = arith.cmpi slt, %26, %27 : vector<16x256xi32>
    %29 = arith.andi %24, %28 : vector<16x256xi1>
    %c-2_i32 = arith.constant -2 : i32
    %30 = vector.broadcast %c-2_i32 : i32 to vector<16x256xi32>
    %31 = arith.addi %17, %30 : vector<16x256xi32>
    %c0_i32_17 = arith.constant 0 : i32
    %32 = vector.broadcast %c0_i32_17 : i32 to vector<16x256xi32>
    %33 = arith.cmpi sge, %31, %32 : vector<16x256xi32>
    %c-2_i32_18 = arith.constant -2 : i32
    %34 = vector.broadcast %c-2_i32_18 : i32 to vector<16x256xi32>
    %35 = arith.addi %17, %34 : vector<16x256xi32>
    %c16_i32_19 = arith.constant 16 : i32
    %36 = vector.broadcast %c16_i32_19 : i32 to vector<16x256xi32>
    %37 = arith.cmpi slt, %35, %36 : vector<16x256xi32>
    %38 = arith.andi %33, %37 : vector<16x256xi1>
    %c-1_i32 = arith.constant -1 : i32
    %39 = vector.broadcast %c-1_i32 : i32 to vector<16x256xi32>
    %40 = arith.addi %17, %39 : vector<16x256xi32>
    %c0_i32_20 = arith.constant 0 : i32
    %41 = vector.broadcast %c0_i32_20 : i32 to vector<16x256xi32>
    %42 = arith.cmpi sge, %40, %41 : vector<16x256xi32>
    %c-1_i32_21 = arith.constant -1 : i32
    %43 = vector.broadcast %c-1_i32_21 : i32 to vector<16x256xi32>
    %44 = arith.addi %17, %43 : vector<16x256xi32>
    %c16_i32_22 = arith.constant 16 : i32
    %45 = vector.broadcast %c16_i32_22 : i32 to vector<16x256xi32>
    %46 = arith.cmpi slt, %44, %45 : vector<16x256xi32>
    %47 = arith.andi %42, %46 : vector<16x256xi1>
    %c0_i32_23 = arith.constant 0 : i32
    %48 = vector.broadcast %c0_i32_23 : i32 to vector<16x256xi32>
    %49 = arith.addi %17, %48 : vector<16x256xi32>
    %c0_i32_24 = arith.constant 0 : i32
    %50 = vector.broadcast %c0_i32_24 : i32 to vector<16x256xi32>
    %51 = arith.cmpi sge, %49, %50 : vector<16x256xi32>
    %c0_i32_25 = arith.constant 0 : i32
    %52 = vector.broadcast %c0_i32_25 : i32 to vector<16x256xi32>
    %53 = arith.addi %17, %52 : vector<16x256xi32>
    %c16_i32_26 = arith.constant 16 : i32
    %54 = vector.broadcast %c16_i32_26 : i32 to vector<16x256xi32>
    %55 = arith.cmpi slt, %53, %54 : vector<16x256xi32>
    %56 = arith.andi %51, %55 : vector<16x256xi1>
    %c1_i32 = arith.constant 1 : i32
    %57 = vector.broadcast %c1_i32 : i32 to vector<16x256xi32>
    %58 = arith.addi %17, %57 : vector<16x256xi32>
    %c0_i32_27 = arith.constant 0 : i32
    %59 = vector.broadcast %c0_i32_27 : i32 to vector<16x256xi32>
    %60 = arith.cmpi sge, %58, %59 : vector<16x256xi32>
    %c1_i32_28 = arith.constant 1 : i32
    %61 = vector.broadcast %c1_i32_28 : i32 to vector<16x256xi32>
    %62 = arith.addi %17, %61 : vector<16x256xi32>
    %c16_i32_29 = arith.constant 16 : i32
    %63 = vector.broadcast %c16_i32_29 : i32 to vector<16x256xi32>
    %64 = arith.cmpi slt, %62, %63 : vector<16x256xi32>
    %65 = arith.andi %60, %64 : vector<16x256xi1>
    %c2_i32 = arith.constant 2 : i32
    %66 = vector.broadcast %c2_i32 : i32 to vector<16x256xi32>
    %67 = arith.addi %17, %66 : vector<16x256xi32>
    %c0_i32_30 = arith.constant 0 : i32
    %68 = vector.broadcast %c0_i32_30 : i32 to vector<16x256xi32>
    %69 = arith.cmpi sge, %67, %68 : vector<16x256xi32>
    %c2_i32_31 = arith.constant 2 : i32
    %70 = vector.broadcast %c2_i32_31 : i32 to vector<16x256xi32>
    %71 = arith.addi %17, %70 : vector<16x256xi32>
    %c16_i32_32 = arith.constant 16 : i32
    %72 = vector.broadcast %c16_i32_32 : i32 to vector<16x256xi32>
    %73 = arith.cmpi slt, %71, %72 : vector<16x256xi32>
    %74 = arith.andi %69, %73 : vector<16x256xi1>
    %c3_i32 = arith.constant 3 : i32
    %75 = vector.broadcast %c3_i32 : i32 to vector<16x256xi32>
    %76 = arith.addi %17, %75 : vector<16x256xi32>
    %c0_i32_33 = arith.constant 0 : i32
    %77 = vector.broadcast %c0_i32_33 : i32 to vector<16x256xi32>
    %78 = arith.cmpi sge, %76, %77 : vector<16x256xi32>
    %c3_i32_34 = arith.constant 3 : i32
    %79 = vector.broadcast %c3_i32_34 : i32 to vector<16x256xi32>
    %80 = arith.addi %17, %79 : vector<16x256xi32>
    %c16_i32_35 = arith.constant 16 : i32
    %81 = vector.broadcast %c16_i32_35 : i32 to vector<16x256xi32>
    %82 = arith.cmpi slt, %80, %81 : vector<16x256xi32>
    %83 = arith.andi %78, %82 : vector<16x256xi1>
    %c0_36 = arith.constant 0 : index
    %c0_37 = arith.constant 0 : index
    %84 = vector.load %arg13[%c0_36, %c0_37] : memref<16x358xf32, #tpu.memory_space<vmem>>, vector<16x256xf32>
    %cst_38 = arith.constant 0.000000e+00 : f32
    %85 = vector.broadcast %cst_38 : f32 to vector<16x256xf32>
    %86 = arith.select %29, %84, %85 : vector<16x256xi1>, vector<16x256xf32>
    %c0_39 = arith.constant 0 : index
    %c0_40 = arith.constant 0 : index
    %87 = vector.load %arg14[%c0_39, %c0_40] : memref<784x256xf32, #tpu.memory_space<vmem>>, vector<16x256xf32>
    tpu.vector_store %arg14[%c0_39, %c0_40], %86 {strides = array<i32>} : memref<784x256xf32, #tpu.memory_space<vmem>>, vector<16x256xf32>,
    %c0_41 = arith.constant 0 : index
    %c1 = arith.constant 1 : index
    %88 = vector.load %arg13[%c0_41, %c1] : memref<16x358xf32, #tpu.memory_space<vmem>>, vector<16x256xf32>
    %cst_42 = arith.constant 0.000000e+00 : f32
    %89 = vector.broadcast %cst_42 : f32 to vector<16x256xf32>
    %90 = arith.select %38, %88, %89 : vector<16x256xi1>, vector<16x256xf32>
    %c16 = arith.constant 16 : index
    %c0_43 = arith.constant 0 : index
    %91 = vector.load %arg14[%c16, %c0_43] : memref<784x256xf32, #tpu.memory_space<vmem>>, vector<16x256xf32>
    tpu.vector_store %arg14[%c16, %c0_43], %90 {strides = array<i32>} : memref<784x256xf32, #tpu.memory_space<vmem>>, vector<16x256xf32>,
    %c0_44 = arith.constant 0 : index
    %c2 = arith.constant 2 : index
    %92 = vector.load %arg13[%c0_44, %c2] : memref<16x358xf32, #tpu.memory_space<vmem>>, vector<16x256xf32>
    %cst_45 = arith.constant 0.000000e+00 : f32
    %93 = vector.broadcast %cst_45 : f32 to vector<16x256xf32>
    %94 = arith.select %47, %92, %93 : vector<16x256xi1>, vector<16x256xf32>
    %c32 = arith.constant 32 : index
    %c0_46 = arith.constant 0 : index
    %95 = vector.load %arg14[%c32, %c0_46] : memref<784x256xf32, #tpu.memory_space<vmem>>, vector<16x256xf32>
    tpu.vector_store %arg14[%c32, %c0_46], %94 {strides = array<i32>} : memref<784x256xf32, #tpu.memory_space<vmem>>, vector<16x256xf32>,
    %c0_47 = arith.constant 0 : index
    %c3 = arith.constant 3 : index
    %96 = vector.load %arg13[%c0_47, %c3] : memref<16x358xf32, #tpu.memory_space<vmem>>, vector<16x256xf32>
    %cst_48 = arith.constant 0.000000e+00 : f32
    %97 = vector.broadcast %cst_48 : f32 to vector<16x256xf32>
    %98 = arith.select %56, %96, %97 : vector<16x256xi1>, vector<16x256xf32>
    %c48 = arith.constant 48 : index
    %c0_49 = arith.constant 0 : index
    %99 = vector.load %arg14[%c48, %c0_49] : memref<784x256xf32, #tpu.memory_space<vmem>>, vector<16x256xf32>
    tpu.vector_store %arg14[%c48, %c0_49], %98 {strides = array<i32>} : memref<784x256xf32, #tpu.memory_space<vmem>>, vector<16x256xf32>,
    %c0_50 = arith.constant 0 : index
    %c4 = arith.constant 4 : index
    %100 = vector.load %arg13[%c0_50, %c4] : memref<16x358xf32, #tpu.memory_space<vmem>>, vector<16x256xf32>
    %cst_51 = arith.constant 0.000000e+00 : f32
    %101 = vector.broadcast %cst_51 : f32 to vector<16x256xf32>
    %102 = arith.select %65, %100, %101 : vector<16x256xi1>, vector<16x256xf32>
    %c64 = arith.constant 64 : index
    %c0_52 = arith.constant 0 : index
    %103 = vector.load %arg14[%c64, %c0_52] : memref<784x256xf32, #tpu.memory_space<vmem>>, vector<16x256xf32>
    tpu.vector_store %arg14[%c64, %c0_52], %102 {strides = array<i32>} : memref<784x256xf32, #tpu.memory_space<vmem>>, vector<16x256xf32>,
    %c0_53 = arith.constant 0 : index
    %c5 = arith.constant 5 : index
    %104 = vector.load %arg13[%c0_53, %c5] : memref<16x358xf32, #tpu.memory_space<vmem>>, vector<16x256xf32>
    %cst_54 = arith.constant 0.000000e+00 : f32
    %105 = vector.broadcast %cst_54 : f32 to vector<16x256xf32>
    %106 = arith.select %74, %104, %105 : vector<16x256xi1>, vector<16x256xf32>
    %c80 = arith.constant 80 : index
    %c0_55 = arith.constant 0 : index
    %107 = vector.load %arg14[%c80, %c0_55] : memref<784x256xf32, #tpu.memory_space<vmem>>, vector<16x256xf32>
    tpu.vector_store %arg14[%c80, %c0_55], %106 {strides = array<i32>} : memref<784x256xf32, #tpu.memory_space<vmem>>, vector<16x256xf32>,
    %c0_56 = arith.constant 0 : index
    %c6 = arith.constant 6 : index
    %108 = vector.load %arg13[%c0_56, %c6] : memref<16x358xf32, #tpu.memory_space<vmem>>, vector<16x256xf32>
    %cst_57 = arith.constant 0.000000e+00 : f32
    %109 = vector.broadcast %cst_57 : f32 to vector<16x256xf32>
    %110 = arith.select %83, %108, %109 : vector<16x256xi1>, vector<16x256xf32>
    %c96 = arith.constant 96 : index
    %c0_58 = arith.constant 0 : index
    %111 = vector.load %arg14[%c96, %c0_58] : memref<784x256xf32, #tpu.memory_space<vmem>>, vector<16x256xf32>
    tpu.vector_store %arg14[%c96, %c0_58], %110 {strides = array<i32>} : memref<784x256xf32, #tpu.memory_space<vmem>>, vector<16x256xf32>,
    %c0_59 = arith.constant 0 : index
    %c16_60 = arith.constant 16 : index
    %112 = vector.load %arg13[%c0_59, %c16_60] : memref<16x358xf32, #tpu.memory_space<vmem>>, vector<16x256xf32>
    %cst_61 = arith.constant 0.000000e+00 : f32
    %113 = vector.broadcast %cst_61 : f32 to vector<16x256xf32>
    %114 = arith.select %29, %112, %113 : vector<16x256xi1>, vector<16x256xf32>
    %c112 = arith.constant 112 : index
    %c0_62 = arith.constant 0 : index
    %115 = vector.load %arg14[%c112, %c0_62] : memref<784x256xf32, #tpu.memory_space<vmem>>, vector<16x256xf32>
    tpu.vector_store %arg14[%c112, %c0_62], %114 {strides = array<i32>} : memref<784x256xf32, #tpu.memory_space<vmem>>, vector<16x256xf32>,
    %c0_63 = arith.constant 0 : index
    %c17 = arith.constant 17 : index
    %116 = vector.load %arg13[%c0_63, %c17] : memref<16x358xf32, #tpu.memory_space<vmem>>, vector<16x256xf32>
    %cst_64 = arith.constant 0.000000e+00 : f32
    %117 = vector.broadcast %cst_64 : f32 to vector<16x256xf32>
    %118 = arith.select %38, %116, %117 : vector<16x256xi1>, vector<16x256xf32>
    %c128 = arith.constant 128 : index
    %c0_65 = arith.constant 0 : index
    %119 = vector.load %arg14[%c128, %c0_65] : memref<784x256xf32, #tpu.memory_space<vmem>>, vector<16x256xf32>
    tpu.vector_store %arg14[%c128, %c0_65], %118 {strides = array<i32>} : memref<784x256xf32, #tpu.memory_space<vmem>>, vector<16x256xf32>,
    %c0_66 = arith.constant 0 : index
    %c18 = arith.constant 18 : index
    %120 = vector.load %arg13[%c0_66, %c18] : memref<16x358xf32, #tpu.memory_space<vmem>>, vector<16x256xf32>
    %cst_67 = arith.constant 0.000000e+00 : f32
    %121 = vector.broadcast %cst_67 : f32 to vector<16x256xf32>
    %122 = arith.select %47, %120, %121 : vector<16x256xi1>, vector<16x256xf32>
    %c144 = arith.constant 144 : index
    %c0_68 = arith.constant 0 : index
    %123 = vector.load %arg14[%c144, %c0_68] : memref<784x256xf32, #tpu.memory_space<vmem>>, vector<16x256xf32>
    tpu.vector_store %arg14[%c144, %c0_68], %122 {strides = array<i32>} : memref<784x256xf32, #tpu.memory_space<vmem>>, vector<16x256xf32>,
    %c0_69 = arith.constant 0 : index
    %c19 = arith.constant 19 : index
    %124 = vector.load %arg13[%c0_69, %c19] : memref<16x358xf32, #tpu.memory_space<vmem>>, vector<16x256xf32>
    %cst_70 = arith.constant 0.000000e+00 : f32
    %125 = vector.broadcast %cst_70 : f32 to vector<16x256xf32>
    %126 = arith.select %56, %124, %125 : vector<16x256xi1>, vector<16x256xf32>
    %c160 = arith.constant 160 : index
    %c0_71 = arith.constant 0 : index
    %127 = vector.load %arg14[%c160, %c0_71] : memref<784x256xf32, #tpu.memory_space<vmem>>, vector<16x256xf32>
    tpu.vector_store %arg14[%c160, %c0_71], %126 {strides = array<i32>} : memref<784x256xf32, #tpu.memory_space<vmem>>, vector<16x256xf32>,
    %c0_72 = arith.constant 0 : index
    %c20 = arith.constant 20 : index
    %128 = vector.load %arg13[%c0_72, %c20] : memref<16x358xf32, #tpu.memory_space<vmem>>, vector<16x256xf32>
    %cst_73 = arith.constant 0.000000e+00 : f32
    %129 = vector.broadcast %cst_73 : f32 to vector<16x256xf32>
    %130 = arith.select %65, %128, %129 : vector<16x256xi1>, vector<16x256xf32>
    %c176 = arith.constant 176 : index
    %c0_74 = arith.constant 0 : index
    %131 = vector.load %arg14[%c176, %c0_74] : memref<784x256xf32, #tpu.memory_space<vmem>>, vector<16x256xf32>
    tpu.vector_store %arg14[%c176, %c0_74], %130 {strides = array<i32>} : memref<784x256xf32, #tpu.memory_space<vmem>>, vector<16x256xf32>,
    %c0_75 = arith.constant 0 : index
    %c21 = arith.constant 21 : index
    %132 = vector.load %arg13[%c0_75, %c21] : memref<16x358xf32, #tpu.memory_space<vmem>>, vector<16x256xf32>
    %cst_76 = arith.constant 0.000000e+00 : f32
    %133 = vector.broadcast %cst_76 : f32 to vector<16x256xf32>
    %134 = arith.select %74, %132, %133 : vector<16x256xi1>, vector<16x256xf32>
    %c192 = arith.constant 192 : index
    %c0_77 = arith.constant 0 : index
    %135 = vector.load %arg14[%c192, %c0_77] : memref<784x256xf32, #tpu.memory_space<vmem>>, vector<16x256xf32>
    tpu.vector_store %arg14[%c192, %c0_77], %134 {strides = array<i32>} : memref<784x256xf32, #tpu.memory_space<vmem>>, vector<16x256xf32>,
    %c0_78 = arith.constant 0 : index
    %c22 = arith.constant 22 : index
    %136 = vector.load %arg13[%c0_78, %c22] : memref<16x358xf32, #tpu.memory_space<vmem>>, vector<16x256xf32>
    %cst_79 = arith.constant 0.000000e+00 : f32
    %137 = vector.broadcast %cst_79 : f32 to vector<16x256xf32>
    %138 = arith.select %83, %136, %137 : vector<16x256xi1>, vector<16x256xf32>
    %c208 = arith.constant 208 : index
    %c0_80 = arith.constant 0 : index
    %139 = vector.load %arg14[%c208, %c0_80] : memref<784x256xf32, #tpu.memory_space<vmem>>, vector<16x256xf32>
    tpu.vector_store %arg14[%c208, %c0_80], %138 {strides = array<i32>} : memref<784x256xf32, #tpu.memory_space<vmem>>, vector<16x256xf32>,
    %c0_81 = arith.constant 0 : index
    %c32_82 = arith.constant 32 : index
    %140 = vector.load %arg13[%c0_81, %c32_82] : memref<16x358xf32, #tpu.memory_space<vmem>>, vector<16x256xf32>
    %cst_83 = arith.constant 0.000000e+00 : f32
    %141 = vector.broadcast %cst_83 : f32 to vector<16x256xf32>
    %142 = arith.select %29, %140, %141 : vector<16x256xi1>, vector<16x256xf32>
    %c224 = arith.constant 224 : index
    %c0_84 = arith.constant 0 : index
    %143 = vector.load %arg14[%c224, %c0_84] : memref<784x256xf32, #tpu.memory_space<vmem>>, vector<16x256xf32>
    tpu.vector_store %arg14[%c224, %c0_84], %142 {strides = array<i32>} : memref<784x256xf32, #tpu.memory_space<vmem>>, vector<16x256xf32>,
    %c0_85 = arith.constant 0 : index
    %c33 = arith.constant 33 : index
    %144 = vector.load %arg13[%c0_85, %c33] : memref<16x358xf32, #tpu.memory_space<vmem>>, vector<16x256xf32>
    %cst_86 = arith.constant 0.000000e+00 : f32
    %145 = vector.broadcast %cst_86 : f32 to vector<16x256xf32>
    %146 = arith.select %38, %144, %145 : vector<16x256xi1>, vector<16x256xf32>
    %c240 = arith.constant 240 : index
    %c0_87 = arith.constant 0 : index
    %147 = vector.load %arg14[%c240, %c0_87] : memref<784x256xf32, #tpu.memory_space<vmem>>, vector<16x256xf32>
    tpu.vector_store %arg14[%c240, %c0_87], %146 {strides = array<i32>} : memref<784x256xf32, #tpu.memory_space<vmem>>, vector<16x256xf32>,
    %c0_88 = arith.constant 0 : index
    %c34 = arith.constant 34 : index
    %148 = vector.load %arg13[%c0_88, %c34] : memref<16x358xf32, #tpu.memory_space<vmem>>, vector<16x256xf32>
    %cst_89 = arith.constant 0.000000e+00 : f32
    %149 = vector.broadcast %cst_89 : f32 to vector<16x256xf32>
    %150 = arith.select %47, %148, %149 : vector<16x256xi1>, vector<16x256xf32>
    %c256 = arith.constant 256 : index
    %c0_90 = arith.constant 0 : index
    %151 = vector.load %arg14[%c256, %c0_90] : memref<784x256xf32, #tpu.memory_space<vmem>>, vector<16x256xf32>
    tpu.vector_store %arg14[%c256, %c0_90], %150 {strides = array<i32>} : memref<784x256xf32, #tpu.memory_space<vmem>>, vector<16x256xf32>,
    %c0_91 = arith.constant 0 : index
    %c35 = arith.constant 35 : index
    %152 = vector.load %arg13[%c0_91, %c35] : memref<16x358xf32, #tpu.memory_space<vmem>>, vector<16x256xf32>
    %cst_92 = arith.constant 0.000000e+00 : f32
    %153 = vector.broadcast %cst_92 : f32 to vector<16x256xf32>
    %154 = arith.select %56, %152, %153 : vector<16x256xi1>, vector<16x256xf32>
    %c272 = arith.constant 272 : index
    %c0_93 = arith.constant 0 : index
    %155 = vector.load %arg14[%c272, %c0_93] : memref<784x256xf32, #tpu.memory_space<vmem>>, vector<16x256xf32>
    tpu.vector_store %arg14[%c272, %c0_93], %154 {strides = array<i32>} : memref<784x256xf32, #tpu.memory_space<vmem>>, vector<16x256xf32>,
    %c0_94 = arith.constant 0 : index
    %c36 = arith.constant 36 : index
    %156 = vector.load %arg13[%c0_94, %c36] : memref<16x358xf32, #tpu.memory_space<vmem>>, vector<16x256xf32>
    %cst_95 = arith.constant 0.000000e+00 : f32
    %157 = vector.broadcast %cst_95 : f32 to vector<16x256xf32>
    %158 = arith.select %65, %156, %157 : vector<16x256xi1>, vector<16x256xf32>
    %c288 = arith.constant 288 : index
    %c0_96 = arith.constant 0 : index
    %159 = vector.load %arg14[%c288, %c0_96] : memref<784x256xf32, #tpu.memory_space<vmem>>, vector<16x256xf32>
    tpu.vector_store %arg14[%c288, %c0_96], %158 {strides = array<i32>} : memref<784x256xf32, #tpu.memory_space<vmem>>, vector<16x256xf32>,
    %c0_97 = arith.constant 0 : index
    %c37 = arith.constant 37 : index
    %160 = vector.load %arg13[%c0_97, %c37] : memref<16x358xf32, #tpu.memory_space<vmem>>, vector<16x256xf32>
    %cst_98 = arith.constant 0.000000e+00 : f32
    %161 = vector.broadcast %cst_98 : f32 to vector<16x256xf32>
    %162 = arith.select %74, %160, %161 : vector<16x256xi1>, vector<16x256xf32>
    %c304 = arith.constant 304 : index
    %c0_99 = arith.constant 0 : index
    %163 = vector.load %arg14[%c304, %c0_99] : memref<784x256xf32, #tpu.memory_space<vmem>>, vector<16x256xf32>
    tpu.vector_store %arg14[%c304, %c0_99], %162 {strides = array<i32>} : memref<784x256xf32, #tpu.memory_space<vmem>>, vector<16x256xf32>,
    %c0_100 = arith.constant 0 : index
    %c38 = arith.constant 38 : index
    %164 = vector.load %arg13[%c0_100, %c38] : memref<16x358xf32, #tpu.memory_space<vmem>>, vector<16x256xf32>
    %cst_101 = arith.constant 0.000000e+00 : f32
    %165 = vector.broadcast %cst_101 : f32 to vector<16x256xf32>
    %166 = arith.select %83, %164, %165 : vector<16x256xi1>, vector<16x256xf32>
    %c320 = arith.constant 320 : index
    %c0_102 = arith.constant 0 : index
    %167 = vector.load %arg14[%c320, %c0_102] : memref<784x256xf32, #tpu.memory_space<vmem>>, vector<16x256xf32>
    tpu.vector_store %arg14[%c320, %c0_102], %166 {strides = array<i32>} : memref<784x256xf32, #tpu.memory_space<vmem>>, vector<16x256xf32>,
    %c0_103 = arith.constant 0 : index
    %c48_104 = arith.constant 48 : index
    %168 = vector.load %arg13[%c0_103, %c48_104] : memref<16x358xf32, #tpu.memory_space<vmem>>, vector<16x256xf32>
    %cst_105 = arith.constant 0.000000e+00 : f32
    %169 = vector.broadcast %cst_105 : f32 to vector<16x256xf32>
    %170 = arith.select %29, %168, %169 : vector<16x256xi1>, vector<16x256xf32>
    %c336 = arith.constant 336 : index
    %c0_106 = arith.constant 0 : index
    %171 = vector.load %arg14[%c336, %c0_106] : memref<784x256xf32, #tpu.memory_space<vmem>>, vector<16x256xf32>
    tpu.vector_store %arg14[%c336, %c0_106], %170 {strides = array<i32>} : memref<784x256xf32, #tpu.memory_space<vmem>>, vector<16x256xf32>,
    %c0_107 = arith.constant 0 : index
    %c49 = arith.constant 49 : index
    %172 = vector.load %arg13[%c0_107, %c49] : memref<16x358xf32, #tpu.memory_space<vmem>>, vector<16x256xf32>
    %cst_108 = arith.constant 0.000000e+00 : f32
    %173 = vector.broadcast %cst_108 : f32 to vector<16x256xf32>
    %174 = arith.select %38, %172, %173 : vector<16x256xi1>, vector<16x256xf32>
    %c352 = arith.constant 352 : index
    %c0_109 = arith.constant 0 : index
    %175 = vector.load %arg14[%c352, %c0_109] : memref<784x256xf32, #tpu.memory_space<vmem>>, vector<16x256xf32>
    tpu.vector_store %arg14[%c352, %c0_109], %174 {strides = array<i32>} : memref<784x256xf32, #tpu.memory_space<vmem>>, vector<16x256xf32>,
    %c0_110 = arith.constant 0 : index
    %c50 = arith.constant 50 : index
    %176 = vector.load %arg13[%c0_110, %c50] : memref<16x358xf32, #tpu.memory_space<vmem>>, vector<16x256xf32>
    %cst_111 = arith.constant 0.000000e+00 : f32
    %177 = vector.broadcast %cst_111 : f32 to vector<16x256xf32>
    %178 = arith.select %47, %176, %177 : vector<16x256xi1>, vector<16x256xf32>
    %c368 = arith.constant 368 : index
    %c0_112 = arith.constant 0 : index
    %179 = vector.load %arg14[%c368, %c0_112] : memref<784x256xf32, #tpu.memory_space<vmem>>, vector<16x256xf32>
    tpu.vector_store %arg14[%c368, %c0_112], %178 {strides = array<i32>} : memref<784x256xf32, #tpu.memory_space<vmem>>, vector<16x256xf32>,
    %c0_113 = arith.constant 0 : index
    %c51_114 = arith.constant 51 : index
    %180 = vector.load %arg13[%c0_113, %c51_114] : memref<16x358xf32, #tpu.memory_space<vmem>>, vector<16x256xf32>
    %cst_115 = arith.constant 0.000000e+00 : f32
    %181 = vector.broadcast %cst_115 : f32 to vector<16x256xf32>
    %182 = arith.select %56, %180, %181 : vector<16x256xi1>, vector<16x256xf32>
    %c384 = arith.constant 384 : index
    %c0_116 = arith.constant 0 : index
    %183 = vector.load %arg14[%c384, %c0_116] : memref<784x256xf32, #tpu.memory_space<vmem>>, vector<16x256xf32>
    tpu.vector_store %arg14[%c384, %c0_116], %182 {strides = array<i32>} : memref<784x256xf32, #tpu.memory_space<vmem>>, vector<16x256xf32>,
    %c0_117 = arith.constant 0 : index
    %c52 = arith.constant 52 : index
    %184 = vector.load %arg13[%c0_117, %c52] : memref<16x358xf32, #tpu.memory_space<vmem>>, vector<16x256xf32>
    %cst_118 = arith.constant 0.000000e+00 : f32
    %185 = vector.broadcast %cst_118 : f32 to vector<16x256xf32>
    %186 = arith.select %65, %184, %185 : vector<16x256xi1>, vector<16x256xf32>
    %c400 = arith.constant 400 : index
    %c0_119 = arith.constant 0 : index
    %187 = vector.load %arg14[%c400, %c0_119] : memref<784x256xf32, #tpu.memory_space<vmem>>, vector<16x256xf32>
    tpu.vector_store %arg14[%c400, %c0_119], %186 {strides = array<i32>} : memref<784x256xf32, #tpu.memory_space<vmem>>, vector<16x256xf32>,
    %c0_120 = arith.constant 0 : index
    %c53 = arith.constant 53 : index
    %188 = vector.load %arg13[%c0_120, %c53] : memref<16x358xf32, #tpu.memory_space<vmem>>, vector<16x256xf32>
    %cst_121 = arith.constant 0.000000e+00 : f32
    %189 = vector.broadcast %cst_121 : f32 to vector<16x256xf32>
    %190 = arith.select %74, %188, %189 : vector<16x256xi1>, vector<16x256xf32>
    %c416 = arith.constant 416 : index
    %c0_122 = arith.constant 0 : index
    %191 = vector.load %arg14[%c416, %c0_122] : memref<784x256xf32, #tpu.memory_space<vmem>>, vector<16x256xf32>
    tpu.vector_store %arg14[%c416, %c0_122], %190 {strides = array<i32>} : memref<784x256xf32, #tpu.memory_space<vmem>>, vector<16x256xf32>,
    %c0_123 = arith.constant 0 : index
    %c54 = arith.constant 54 : index
    %192 = vector.load %arg13[%c0_123, %c54] : memref<16x358xf32, #tpu.memory_space<vmem>>, vector<16x256xf32>
    %cst_124 = arith.constant 0.000000e+00 : f32
    %193 = vector.broadcast %cst_124 : f32 to vector<16x256xf32>
    %194 = arith.select %83, %192, %193 : vector<16x256xi1>, vector<16x256xf32>
    %c432 = arith.constant 432 : index
    %c0_125 = arith.constant 0 : index
    %195 = vector.load %arg14[%c432, %c0_125] : memref<784x256xf32, #tpu.memory_space<vmem>>, vector<16x256xf32>
    tpu.vector_store %arg14[%c432, %c0_125], %194 {strides = array<i32>} : memref<784x256xf32, #tpu.memory_space<vmem>>, vector<16x256xf32>,
    %c0_126 = arith.constant 0 : index
    %c64_127 = arith.constant 64 : index
    %196 = vector.load %arg13[%c0_126, %c64_127] : memref<16x358xf32, #tpu.memory_space<vmem>>, vector<16x256xf32>
    %cst_128 = arith.constant 0.000000e+00 : f32
    %197 = vector.broadcast %cst_128 : f32 to vector<16x256xf32>
    %198 = arith.select %29, %196, %197 : vector<16x256xi1>, vector<16x256xf32>
    %c448 = arith.constant 448 : index
    %c0_129 = arith.constant 0 : index
    %199 = vector.load %arg14[%c448, %c0_129] : memref<784x256xf32, #tpu.memory_space<vmem>>, vector<16x256xf32>
    tpu.vector_store %arg14[%c448, %c0_129], %198 {strides = array<i32>} : memref<784x256xf32, #tpu.memory_space<vmem>>, vector<16x256xf32>,
    %c0_130 = arith.constant 0 : index
    %c65 = arith.constant 65 : index
    %200 = vector.load %arg13[%c0_130, %c65] : memref<16x358xf32, #tpu.memory_space<vmem>>, vector<16x256xf32>
    %cst_131 = arith.constant 0.000000e+00 : f32
    %201 = vector.broadcast %cst_131 : f32 to vector<16x256xf32>
    %202 = arith.select %38, %200, %201 : vector<16x256xi1>, vector<16x256xf32>
    %c464 = arith.constant 464 : index
    %c0_132 = arith.constant 0 : index
    %203 = vector.load %arg14[%c464, %c0_132] : memref<784x256xf32, #tpu.memory_space<vmem>>, vector<16x256xf32>
    tpu.vector_store %arg14[%c464, %c0_132], %202 {strides = array<i32>} : memref<784x256xf32, #tpu.memory_space<vmem>>, vector<16x256xf32>,
    %c0_133 = arith.constant 0 : index
    %c66 = arith.constant 66 : index
    %204 = vector.load %arg13[%c0_133, %c66] : memref<16x358xf32, #tpu.memory_space<vmem>>, vector<16x256xf32>
    %cst_134 = arith.constant 0.000000e+00 : f32
    %205 = vector.broadcast %cst_134 : f32 to vector<16x256xf32>
    %206 = arith.select %47, %204, %205 : vector<16x256xi1>, vector<16x256xf32>
    %c480 = arith.constant 480 : index
    %c0_135 = arith.constant 0 : index
    %207 = vector.load %arg14[%c480, %c0_135] : memref<784x256xf32, #tpu.memory_space<vmem>>, vector<16x256xf32>
    tpu.vector_store %arg14[%c480, %c0_135], %206 {strides = array<i32>} : memref<784x256xf32, #tpu.memory_space<vmem>>, vector<16x256xf32>,
    %c0_136 = arith.constant 0 : index
    %c67 = arith.constant 67 : index
    %208 = vector.load %arg13[%c0_136, %c67] : memref<16x358xf32, #tpu.memory_space<vmem>>, vector<16x256xf32>
    %cst_137 = arith.constant 0.000000e+00 : f32
    %209 = vector.broadcast %cst_137 : f32 to vector<16x256xf32>
    %210 = arith.select %56, %208, %209 : vector<16x256xi1>, vector<16x256xf32>
    %c496 = arith.constant 496 : index
    %c0_138 = arith.constant 0 : index
    %211 = vector.load %arg14[%c496, %c0_138] : memref<784x256xf32, #tpu.memory_space<vmem>>, vector<16x256xf32>
    tpu.vector_store %arg14[%c496, %c0_138], %210 {strides = array<i32>} : memref<784x256xf32, #tpu.memory_space<vmem>>, vector<16x256xf32>,
    %c0_139 = arith.constant 0 : index
    %c68 = arith.constant 68 : index
    %212 = vector.load %arg13[%c0_139, %c68] : memref<16x358xf32, #tpu.memory_space<vmem>>, vector<16x256xf32>
    %cst_140 = arith.constant 0.000000e+00 : f32
    %213 = vector.broadcast %cst_140 : f32 to vector<16x256xf32>
    %214 = arith.select %65, %212, %213 : vector<16x256xi1>, vector<16x256xf32>
    %c512 = arith.constant 512 : index
    %c0_141 = arith.constant 0 : index
    %215 = vector.load %arg14[%c512, %c0_141] : memref<784x256xf32, #tpu.memory_space<vmem>>, vector<16x256xf32>
    tpu.vector_store %arg14[%c512, %c0_141], %214 {strides = array<i32>} : memref<784x256xf32, #tpu.memory_space<vmem>>, vector<16x256xf32>,
    %c0_142 = arith.constant 0 : index
    %c69 = arith.constant 69 : index
    %216 = vector.load %arg13[%c0_142, %c69] : memref<16x358xf32, #tpu.memory_space<vmem>>, vector<16x256xf32>
    %cst_143 = arith.constant 0.000000e+00 : f32
    %217 = vector.broadcast %cst_143 : f32 to vector<16x256xf32>
    %218 = arith.select %74, %216, %217 : vector<16x256xi1>, vector<16x256xf32>
    %c528 = arith.constant 528 : index
    %c0_144 = arith.constant 0 : index
    %219 = vector.load %arg14[%c528, %c0_144] : memref<784x256xf32, #tpu.memory_space<vmem>>, vector<16x256xf32>
    tpu.vector_store %arg14[%c528, %c0_144], %218 {strides = array<i32>} : memref<784x256xf32, #tpu.memory_space<vmem>>, vector<16x256xf32>,
    %c0_145 = arith.constant 0 : index
    %c70 = arith.constant 70 : index
    %220 = vector.load %arg13[%c0_145, %c70] : memref<16x358xf32, #tpu.memory_space<vmem>>, vector<16x256xf32>
    %cst_146 = arith.constant 0.000000e+00 : f32
    %221 = vector.broadcast %cst_146 : f32 to vector<16x256xf32>
    %222 = arith.select %83, %220, %221 : vector<16x256xi1>, vector<16x256xf32>
    %c544 = arith.constant 544 : index
    %c0_147 = arith.constant 0 : index
    %223 = vector.load %arg14[%c544, %c0_147] : memref<784x256xf32, #tpu.memory_space<vmem>>, vector<16x256xf32>
    tpu.vector_store %arg14[%c544, %c0_147], %222 {strides = array<i32>} : memref<784x256xf32, #tpu.memory_space<vmem>>, vector<16x256xf32>,
    %c0_148 = arith.constant 0 : index
    %c80_149 = arith.constant 80 : index
    %224 = vector.load %arg13[%c0_148, %c80_149] : memref<16x358xf32, #tpu.memory_space<vmem>>, vector<16x256xf32>
    %cst_150 = arith.constant 0.000000e+00 : f32
    %225 = vector.broadcast %cst_150 : f32 to vector<16x256xf32>
    %226 = arith.select %29, %224, %225 : vector<16x256xi1>, vector<16x256xf32>
    %c560 = arith.constant 560 : index
    %c0_151 = arith.constant 0 : index
    %227 = vector.load %arg14[%c560, %c0_151] : memref<784x256xf32, #tpu.memory_space<vmem>>, vector<16x256xf32>
    tpu.vector_store %arg14[%c560, %c0_151], %226 {strides = array<i32>} : memref<784x256xf32, #tpu.memory_space<vmem>>, vector<16x256xf32>,
    %c0_152 = arith.constant 0 : index
    %c81 = arith.constant 81 : index
    %228 = vector.load %arg13[%c0_152, %c81] : memref<16x358xf32, #tpu.memory_space<vmem>>, vector<16x256xf32>
    %cst_153 = arith.constant 0.000000e+00 : f32
    %229 = vector.broadcast %cst_153 : f32 to vector<16x256xf32>
    %230 = arith.select %38, %228, %229 : vector<16x256xi1>, vector<16x256xf32>
    %c576 = arith.constant 576 : index
    %c0_154 = arith.constant 0 : index
    %231 = vector.load %arg14[%c576, %c0_154] : memref<784x256xf32, #tpu.memory_space<vmem>>, vector<16x256xf32>
    tpu.vector_store %arg14[%c576, %c0_154], %230 {strides = array<i32>} : memref<784x256xf32, #tpu.memory_space<vmem>>, vector<16x256xf32>,
    %c0_155 = arith.constant 0 : index
    %c82 = arith.constant 82 : index
    %232 = vector.load %arg13[%c0_155, %c82] : memref<16x358xf32, #tpu.memory_space<vmem>>, vector<16x256xf32>
    %cst_156 = arith.constant 0.000000e+00 : f32
    %233 = vector.broadcast %cst_156 : f32 to vector<16x256xf32>
    %234 = arith.select %47, %232, %233 : vector<16x256xi1>, vector<16x256xf32>
    %c592 = arith.constant 592 : index
    %c0_157 = arith.constant 0 : index
    %235 = vector.load %arg14[%c592, %c0_157] : memref<784x256xf32, #tpu.memory_space<vmem>>, vector<16x256xf32>
    tpu.vector_store %arg14[%c592, %c0_157], %234 {strides = array<i32>} : memref<784x256xf32, #tpu.memory_space<vmem>>, vector<16x256xf32>,
    %c0_158 = arith.constant 0 : index
    %c83 = arith.constant 83 : index
    %236 = vector.load %arg13[%c0_158, %c83] : memref<16x358xf32, #tpu.memory_space<vmem>>, vector<16x256xf32>
    %cst_159 = arith.constant 0.000000e+00 : f32
    %237 = vector.broadcast %cst_159 : f32 to vector<16x256xf32>
    %238 = arith.select %56, %236, %237 : vector<16x256xi1>, vector<16x256xf32>
    %c608 = arith.constant 608 : index
    %c0_160 = arith.constant 0 : index
    %239 = vector.load %arg14[%c608, %c0_160] : memref<784x256xf32, #tpu.memory_space<vmem>>, vector<16x256xf32>
    tpu.vector_store %arg14[%c608, %c0_160], %238 {strides = array<i32>} : memref<784x256xf32, #tpu.memory_space<vmem>>, vector<16x256xf32>,
    %c0_161 = arith.constant 0 : index
    %c84 = arith.constant 84 : index
    %240 = vector.load %arg13[%c0_161, %c84] : memref<16x358xf32, #tpu.memory_space<vmem>>, vector<16x256xf32>
    %cst_162 = arith.constant 0.000000e+00 : f32
    %241 = vector.broadcast %cst_162 : f32 to vector<16x256xf32>
    %242 = arith.select %65, %240, %241 : vector<16x256xi1>, vector<16x256xf32>
    %c624 = arith.constant 624 : index
    %c0_163 = arith.constant 0 : index
    %243 = vector.load %arg14[%c624, %c0_163] : memref<784x256xf32, #tpu.memory_space<vmem>>, vector<16x256xf32>
    tpu.vector_store %arg14[%c624, %c0_163], %242 {strides = array<i32>} : memref<784x256xf32, #tpu.memory_space<vmem>>, vector<16x256xf32>,
    %c0_164 = arith.constant 0 : index
    %c85 = arith.constant 85 : index
    %244 = vector.load %arg13[%c0_164, %c85] : memref<16x358xf32, #tpu.memory_space<vmem>>, vector<16x256xf32>
    %cst_165 = arith.constant 0.000000e+00 : f32
    %245 = vector.broadcast %cst_165 : f32 to vector<16x256xf32>
    %246 = arith.select %74, %244, %245 : vector<16x256xi1>, vector<16x256xf32>
    %c640 = arith.constant 640 : index
    %c0_166 = arith.constant 0 : index
    %247 = vector.load %arg14[%c640, %c0_166] : memref<784x256xf32, #tpu.memory_space<vmem>>, vector<16x256xf32>
    tpu.vector_store %arg14[%c640, %c0_166], %246 {strides = array<i32>} : memref<784x256xf32, #tpu.memory_space<vmem>>, vector<16x256xf32>,
    %c0_167 = arith.constant 0 : index
    %c86 = arith.constant 86 : index
    %248 = vector.load %arg13[%c0_167, %c86] : memref<16x358xf32, #tpu.memory_space<vmem>>, vector<16x256xf32>
    %cst_168 = arith.constant 0.000000e+00 : f32
    %249 = vector.broadcast %cst_168 : f32 to vector<16x256xf32>
    %250 = arith.select %83, %248, %249 : vector<16x256xi1>, vector<16x256xf32>
    %c656 = arith.constant 656 : index
    %c0_169 = arith.constant 0 : index
    %251 = vector.load %arg14[%c656, %c0_169] : memref<784x256xf32, #tpu.memory_space<vmem>>, vector<16x256xf32>
    tpu.vector_store %arg14[%c656, %c0_169], %250 {strides = array<i32>} : memref<784x256xf32, #tpu.memory_space<vmem>>, vector<16x256xf32>,
    %c0_170 = arith.constant 0 : index
    %c96_171 = arith.constant 96 : index
    %252 = vector.load %arg13[%c0_170, %c96_171] : memref<16x358xf32, #tpu.memory_space<vmem>>, vector<16x256xf32>
    %cst_172 = arith.constant 0.000000e+00 : f32
    %253 = vector.broadcast %cst_172 : f32 to vector<16x256xf32>
    %254 = arith.select %29, %252, %253 : vector<16x256xi1>, vector<16x256xf32>
    %c672 = arith.constant 672 : index
    %c0_173 = arith.constant 0 : index
    %255 = vector.load %arg14[%c672, %c0_173] : memref<784x256xf32, #tpu.memory_space<vmem>>, vector<16x256xf32>
    tpu.vector_store %arg14[%c672, %c0_173], %254 {strides = array<i32>} : memref<784x256xf32, #tpu.memory_space<vmem>>, vector<16x256xf32>,
    %c0_174 = arith.constant 0 : index
    %c97 = arith.constant 97 : index
    %256 = vector.load %arg13[%c0_174, %c97] : memref<16x358xf32, #tpu.memory_space<vmem>>, vector<16x256xf32>
    %cst_175 = arith.constant 0.000000e+00 : f32
    %257 = vector.broadcast %cst_175 : f32 to vector<16x256xf32>
    %258 = arith.select %38, %256, %257 : vector<16x256xi1>, vector<16x256xf32>
    %c688 = arith.constant 688 : index
    %c0_176 = arith.constant 0 : index
    %259 = vector.load %arg14[%c688, %c0_176] : memref<784x256xf32, #tpu.memory_space<vmem>>, vector<16x256xf32>
    tpu.vector_store %arg14[%c688, %c0_176], %258 {strides = array<i32>} : memref<784x256xf32, #tpu.memory_space<vmem>>, vector<16x256xf32>,
    %c0_177 = arith.constant 0 : index
    %c98 = arith.constant 98 : index
    %260 = vector.load %arg13[%c0_177, %c98] : memref<16x358xf32, #tpu.memory_space<vmem>>, vector<16x256xf32>
    %cst_178 = arith.constant 0.000000e+00 : f32
    %261 = vector.broadcast %cst_178 : f32 to vector<16x256xf32>
    %262 = arith.select %47, %260, %261 : vector<16x256xi1>, vector<16x256xf32>
    %c704 = arith.constant 704 : index
    %c0_179 = arith.constant 0 : index
    %263 = vector.load %arg14[%c704, %c0_179] : memref<784x256xf32, #tpu.memory_space<vmem>>, vector<16x256xf32>
    tpu.vector_store %arg14[%c704, %c0_179], %262 {strides = array<i32>} : memref<784x256xf32, #tpu.memory_space<vmem>>, vector<16x256xf32>,
    %c0_180 = arith.constant 0 : index
    %c99 = arith.constant 99 : index
    %264 = vector.load %arg13[%c0_180, %c99] : memref<16x358xf32, #tpu.memory_space<vmem>>, vector<16x256xf32>
    %cst_181 = arith.constant 0.000000e+00 : f32
    %265 = vector.broadcast %cst_181 : f32 to vector<16x256xf32>
    %266 = arith.select %56, %264, %265 : vector<16x256xi1>, vector<16x256xf32>
    %c720 = arith.constant 720 : index
    %c0_182 = arith.constant 0 : index
    %267 = vector.load %arg14[%c720, %c0_182] : memref<784x256xf32, #tpu.memory_space<vmem>>, vector<16x256xf32>
    tpu.vector_store %arg14[%c720, %c0_182], %266 {strides = array<i32>} : memref<784x256xf32, #tpu.memory_space<vmem>>, vector<16x256xf32>,
    %c0_183 = arith.constant 0 : index
    %c100 = arith.constant 100 : index
    %268 = vector.load %arg13[%c0_183, %c100] : memref<16x358xf32, #tpu.memory_space<vmem>>, vector<16x256xf32>
    %cst_184 = arith.constant 0.000000e+00 : f32
    %269 = vector.broadcast %cst_184 : f32 to vector<16x256xf32>
    %270 = arith.select %65, %268, %269 : vector<16x256xi1>, vector<16x256xf32>
    %c736 = arith.constant 736 : index
    %c0_185 = arith.constant 0 : index
    %271 = vector.load %arg14[%c736, %c0_185] : memref<784x256xf32, #tpu.memory_space<vmem>>, vector<16x256xf32>
    tpu.vector_store %arg14[%c736, %c0_185], %270 {strides = array<i32>} : memref<784x256xf32, #tpu.memory_space<vmem>>, vector<16x256xf32>,
    %c0_186 = arith.constant 0 : index
    %c101 = arith.constant 101 : index
    %272 = vector.load %arg13[%c0_186, %c101] : memref<16x358xf32, #tpu.memory_space<vmem>>, vector<16x256xf32>
    %cst_187 = arith.constant 0.000000e+00 : f32
    %273 = vector.broadcast %cst_187 : f32 to vector<16x256xf32>
    %274 = arith.select %74, %272, %273 : vector<16x256xi1>, vector<16x256xf32>
    %c752 = arith.constant 752 : index
    %c0_188 = arith.constant 0 : index
    %275 = vector.load %arg14[%c752, %c0_188] : memref<784x256xf32, #tpu.memory_space<vmem>>, vector<16x256xf32>
    tpu.vector_store %arg14[%c752, %c0_188], %274 {strides = array<i32>} : memref<784x256xf32, #tpu.memory_space<vmem>>, vector<16x256xf32>,
    %c0_189 = arith.constant 0 : index
    %c102 = arith.constant 102 : index
    %276 = vector.load %arg13[%c0_189, %c102] : memref<16x358xf32, #tpu.memory_space<vmem>>, vector<16x256xf32>
    %cst_190 = arith.constant 0.000000e+00 : f32
    %277 = vector.broadcast %cst_190 : f32 to vector<16x256xf32>
    %278 = arith.select %83, %276, %277 : vector<16x256xi1>, vector<16x256xf32>
    %c768 = arith.constant 768 : index
    %c0_191 = arith.constant 0 : index
    %279 = vector.load %arg14[%c768, %c0_191] : memref<784x256xf32, #tpu.memory_space<vmem>>, vector<16x256xf32>
    tpu.vector_store %arg14[%c768, %c0_191], %278 {strides = array<i32>} : memref<784x256xf32, #tpu.memory_space<vmem>>, vector<16x256xf32>,
    %c0_192 = arith.constant 0 : index
    %c0_193 = arith.constant 0 : index
    %280 = vector.load %arg6[%c0_192, %c0_193] : memref<4x784xf32, #tpu.memory_space<vmem>>, vector<4x784xf32>
    %c0_194 = arith.constant 0 : index
    %c0_195 = arith.constant 0 : index
    %281 = vector.load %arg14[%c0_194, %c0_195] : memref<784x256xf32, #tpu.memory_space<vmem>>, vector<784x256xf32>
    %cst_196 = arith.constant dense<0.000000e+00> : vector<4x256xf32>
    %282 = tpu.matmul %280, %281, %cst_196 {dimension_numbers = #tpu.dot_dimension_numbers<[1], [0], [0], [1], [0, 0, 1, 1], [], []>} : vector<4x784xf32>, vector<784x256xf32>, vector<4x256xf32> -> vector<4x256xf32>
    %c0_197 = arith.constant 0 : index
    %c0_198 = arith.constant 0 : index
    %283 = vector.load %arg7[%c0_197, %c0_198] : memref<4x1xf32, #tpu.memory_space<vmem>>, vector<4x1xf32>
    %284 = vector.broadcast %283 : vector<4x1xf32> to vector<4x256xf32>
    %285 = arith.addf %282, %284 : vector<4x256xf32>
    %cst_199 = arith.constant 0.000000e+00 : f32
    %286 = vector.broadcast %cst_199 : f32 to vector<4x256xf32>
    %287 = arith.maximumf %285, %286 : vector<4x256xf32>
    %c0_200 = arith.constant 0 : index
    %c51_201 = arith.constant 51 : index
    %288 = vector.load %arg13[%c0_200, %c51_201] : memref<16x358xf32, #tpu.memory_space<vmem>>, vector<4x256xf32>
    tpu.vector_store %arg13[%c0_200, %c51_201], %287 {strides = array<i32>} : memref<16x358xf32, #tpu.memory_space<vmem>>, vector<4x256xf32>,
    %289 = vector.extract_strided_slice %17 {offsets = [0, 0], sizes = [4, 256], strides = [1, 1]} : vector<16x256xi32> to vector<4x256xi32>
    %c-3_i32_202 = arith.constant -3 : i32
    %290 = vector.broadcast %c-3_i32_202 : i32 to vector<4x256xi32>
    %291 = arith.addi %289, %290 : vector<4x256xi32>
    %c0_i32_203 = arith.constant 0 : i32
    %292 = vector.broadcast %c0_i32_203 : i32 to vector<4x256xi32>
    %293 = arith.cmpi sge, %291, %292 : vector<4x256xi32>
    %c-3_i32_204 = arith.constant -3 : i32
    %294 = vector.broadcast %c-3_i32_204 : i32 to vector<4x256xi32>
    %295 = arith.addi %289, %294 : vector<4x256xi32>
    %c16_i32_205 = arith.constant 16 : i32
    %296 = vector.broadcast %c16_i32_205 : i32 to vector<4x256xi32>
    %297 = arith.cmpi slt, %295, %296 : vector<4x256xi32>
    %298 = arith.andi %293, %297 : vector<4x256xi1>
    %c-2_i32_206 = arith.constant -2 : i32
    %299 = vector.broadcast %c-2_i32_206 : i32 to vector<4x256xi32>
    %300 = arith.addi %289, %299 : vector<4x256xi32>
    %c0_i32_207 = arith.constant 0 : i32
    %301 = vector.broadcast %c0_i32_207 : i32 to vector<4x256xi32>
    %302 = arith.cmpi sge, %300, %301 : vector<4x256xi32>
    %c-2_i32_208 = arith.constant -2 : i32
    %303 = vector.broadcast %c-2_i32_208 : i32 to vector<4x256xi32>
    %304 = arith.addi %289, %303 : vector<4x256xi32>
    %c16_i32_209 = arith.constant 16 : i32
    %305 = vector.broadcast %c16_i32_209 : i32 to vector<4x256xi32>
    %306 = arith.cmpi slt, %304, %305 : vector<4x256xi32>
    %307 = arith.andi %302, %306 : vector<4x256xi1>
    %c-1_i32_210 = arith.constant -1 : i32
    %308 = vector.broadcast %c-1_i32_210 : i32 to vector<4x256xi32>
    %309 = arith.addi %289, %308 : vector<4x256xi32>
    %c0_i32_211 = arith.constant 0 : i32
    %310 = vector.broadcast %c0_i32_211 : i32 to vector<4x256xi32>
    %311 = arith.cmpi sge, %309, %310 : vector<4x256xi32>
    %c-1_i32_212 = arith.constant -1 : i32
    %312 = vector.broadcast %c-1_i32_212 : i32 to vector<4x256xi32>
    %313 = arith.addi %289, %312 : vector<4x256xi32>
    %c16_i32_213 = arith.constant 16 : i32
    %314 = vector.broadcast %c16_i32_213 : i32 to vector<4x256xi32>
    %315 = arith.cmpi slt, %313, %314 : vector<4x256xi32>
    %316 = arith.andi %311, %315 : vector<4x256xi1>
    %c0_i32_214 = arith.constant 0 : i32
    %317 = vector.broadcast %c0_i32_214 : i32 to vector<4x256xi32>
    %318 = arith.addi %289, %317 : vector<4x256xi32>
    %c0_i32_215 = arith.constant 0 : i32
    %319 = vector.broadcast %c0_i32_215 : i32 to vector<4x256xi32>
    %320 = arith.cmpi sge, %318, %319 : vector<4x256xi32>
    %c0_i32_216 = arith.constant 0 : i32
    %321 = vector.broadcast %c0_i32_216 : i32 to vector<4x256xi32>
    %322 = arith.addi %289, %321 : vector<4x256xi32>
    %c16_i32_217 = arith.constant 16 : i32
    %323 = vector.broadcast %c16_i32_217 : i32 to vector<4x256xi32>
    %324 = arith.cmpi slt, %322, %323 : vector<4x256xi32>
    %325 = arith.andi %320, %324 : vector<4x256xi1>
    %c1_i32_218 = arith.constant 1 : i32
    %326 = vector.broadcast %c1_i32_218 : i32 to vector<4x256xi32>
    %327 = arith.addi %289, %326 : vector<4x256xi32>
    %c0_i32_219 = arith.constant 0 : i32
    %328 = vector.broadcast %c0_i32_219 : i32 to vector<4x256xi32>
    %329 = arith.cmpi sge, %327, %328 : vector<4x256xi32>
    %c1_i32_220 = arith.constant 1 : i32
    %330 = vector.broadcast %c1_i32_220 : i32 to vector<4x256xi32>
    %331 = arith.addi %289, %330 : vector<4x256xi32>
    %c16_i32_221 = arith.constant 16 : i32
    %332 = vector.broadcast %c16_i32_221 : i32 to vector<4x256xi32>
    %333 = arith.cmpi slt, %331, %332 : vector<4x256xi32>
    %334 = arith.andi %329, %333 : vector<4x256xi1>
    %c2_i32_222 = arith.constant 2 : i32
    %335 = vector.broadcast %c2_i32_222 : i32 to vector<4x256xi32>
    %336 = arith.addi %289, %335 : vector<4x256xi32>
    %c0_i32_223 = arith.constant 0 : i32
    %337 = vector.broadcast %c0_i32_223 : i32 to vector<4x256xi32>
    %338 = arith.cmpi sge, %336, %337 : vector<4x256xi32>
    %c2_i32_224 = arith.constant 2 : i32
    %339 = vector.broadcast %c2_i32_224 : i32 to vector<4x256xi32>
    %340 = arith.addi %289, %339 : vector<4x256xi32>
    %c16_i32_225 = arith.constant 16 : i32
    %341 = vector.broadcast %c16_i32_225 : i32 to vector<4x256xi32>
    %342 = arith.cmpi slt, %340, %341 : vector<4x256xi32>
    %343 = arith.andi %338, %342 : vector<4x256xi1>
    %c3_i32_226 = arith.constant 3 : i32
    %344 = vector.broadcast %c3_i32_226 : i32 to vector<4x256xi32>
    %345 = arith.addi %289, %344 : vector<4x256xi32>
    %c0_i32_227 = arith.constant 0 : i32
    %346 = vector.broadcast %c0_i32_227 : i32 to vector<4x256xi32>
    %347 = arith.cmpi sge, %345, %346 : vector<4x256xi32>
    %c3_i32_228 = arith.constant 3 : i32
    %348 = vector.broadcast %c3_i32_228 : i32 to vector<4x256xi32>
    %349 = arith.addi %289, %348 : vector<4x256xi32>
    %c16_i32_229 = arith.constant 16 : i32
    %350 = vector.broadcast %c16_i32_229 : i32 to vector<4x256xi32>
    %351 = arith.cmpi slt, %349, %350 : vector<4x256xi32>
    %352 = arith.andi %347, %351 : vector<4x256xi1>
    %c0_230 = arith.constant 0 : index
    %c0_231 = arith.constant 0 : index
    %353 = vector.load %arg13[%c0_230, %c0_231] : memref<16x358xf32, #tpu.memory_space<vmem>>, vector<4x256xf32>
    %cst_232 = arith.constant 0.000000e+00 : f32
    %354 = vector.broadcast %cst_232 : f32 to vector<4x256xf32>
    %355 = arith.select %298, %353, %354 : vector<4x256xi1>, vector<4x256xf32>
    %c0_233 = arith.constant 0 : index
    %c0_234 = arith.constant 0 : index
    %356 = vector.load %arg15[%c0_233, %c0_234] : memref<196x256xf32, #tpu.memory_space<vmem>>, vector<4x256xf32>
    tpu.vector_store %arg15[%c0_233, %c0_234], %355 {strides = array<i32>} : memref<196x256xf32, #tpu.memory_space<vmem>>, vector<4x256xf32>,
    %c0_235 = arith.constant 0 : index
    %c1_236 = arith.constant 1 : index
    %357 = vector.load %arg13[%c0_235, %c1_236] : memref<16x358xf32, #tpu.memory_space<vmem>>, vector<4x256xf32>
    %cst_237 = arith.constant 0.000000e+00 : f32
    %358 = vector.broadcast %cst_237 : f32 to vector<4x256xf32>
    %359 = arith.select %307, %357, %358 : vector<4x256xi1>, vector<4x256xf32>
    %c4_238 = arith.constant 4 : index
    %c0_239 = arith.constant 0 : index
    %360 = vector.load %arg15[%c4_238, %c0_239] : memref<196x256xf32, #tpu.memory_space<vmem>>, vector<4x256xf32>
    tpu.vector_store %arg15[%c4_238, %c0_239], %359 {strides = array<i32>} : memref<196x256xf32, #tpu.memory_space<vmem>>, vector<4x256xf32>,
    %c0_240 = arith.constant 0 : index
    %c2_241 = arith.constant 2 : index
    %361 = vector.load %arg13[%c0_240, %c2_241] : memref<16x358xf32, #tpu.memory_space<vmem>>, vector<4x256xf32>
    %cst_242 = arith.constant 0.000000e+00 : f32
    %362 = vector.broadcast %cst_242 : f32 to vector<4x256xf32>
    %363 = arith.select %316, %361, %362 : vector<4x256xi1>, vector<4x256xf32>
    %c8 = arith.constant 8 : index
    %c0_243 = arith.constant 0 : index
    %364 = vector.load %arg15[%c8, %c0_243] : memref<196x256xf32, #tpu.memory_space<vmem>>, vector<4x256xf32>
    tpu.vector_store %arg15[%c8, %c0_243], %363 {strides = array<i32>} : memref<196x256xf32, #tpu.memory_space<vmem>>, vector<4x256xf32>,
    %c0_244 = arith.constant 0 : index
    %c3_245 = arith.constant 3 : index
    %365 = vector.load %arg13[%c0_244, %c3_245] : memref<16x358xf32, #tpu.memory_space<vmem>>, vector<4x256xf32>
    %cst_246 = arith.constant 0.000000e+00 : f32
    %366 = vector.broadcast %cst_246 : f32 to vector<4x256xf32>
    %367 = arith.select %325, %365, %366 : vector<4x256xi1>, vector<4x256xf32>
    %c12 = arith.constant 12 : index
    %c0_247 = arith.constant 0 : index
    %368 = vector.load %arg15[%c12, %c0_247] : memref<196x256xf32, #tpu.memory_space<vmem>>, vector<4x256xf32>
    tpu.vector_store %arg15[%c12, %c0_247], %367 {strides = array<i32>} : memref<196x256xf32, #tpu.memory_space<vmem>>, vector<4x256xf32>,
    %c0_248 = arith.constant 0 : index
    %c4_249 = arith.constant 4 : index
    %369 = vector.load %arg13[%c0_248, %c4_249] : memref<16x358xf32, #tpu.memory_space<vmem>>, vector<4x256xf32>
    %cst_250 = arith.constant 0.000000e+00 : f32
    %370 = vector.broadcast %cst_250 : f32 to vector<4x256xf32>
    %371 = arith.select %334, %369, %370 : vector<4x256xi1>, vector<4x256xf32>
    %c16_251 = arith.constant 16 : index
    %c0_252 = arith.constant 0 : index
    %372 = vector.load %arg15[%c16_251, %c0_252] : memref<196x256xf32, #tpu.memory_space<vmem>>, vector<4x256xf32>
    tpu.vector_store %arg15[%c16_251, %c0_252], %371 {strides = array<i32>} : memref<196x256xf32, #tpu.memory_space<vmem>>, vector<4x256xf32>,
    %c0_253 = arith.constant 0 : index
    %c5_254 = arith.constant 5 : index
    %373 = vector.load %arg13[%c0_253, %c5_254] : memref<16x358xf32, #tpu.memory_space<vmem>>, vector<4x256xf32>
    %cst_255 = arith.constant 0.000000e+00 : f32
    %374 = vector.broadcast %cst_255 : f32 to vector<4x256xf32>
    %375 = arith.select %343, %373, %374 : vector<4x256xi1>, vector<4x256xf32>
    %c20_256 = arith.constant 20 : index
    %c0_257 = arith.constant 0 : index
    %376 = vector.load %arg15[%c20_256, %c0_257] : memref<196x256xf32, #tpu.memory_space<vmem>>, vector<4x256xf32>
    tpu.vector_store %arg15[%c20_256, %c0_257], %375 {strides = array<i32>} : memref<196x256xf32, #tpu.memory_space<vmem>>, vector<4x256xf32>,
    %c0_258 = arith.constant 0 : index
    %c6_259 = arith.constant 6 : index
    %377 = vector.load %arg13[%c0_258, %c6_259] : memref<16x358xf32, #tpu.memory_space<vmem>>, vector<4x256xf32>
    %cst_260 = arith.constant 0.000000e+00 : f32
    %378 = vector.broadcast %cst_260 : f32 to vector<4x256xf32>
    %379 = arith.select %352, %377, %378 : vector<4x256xi1>, vector<4x256xf32>
    %c24 = arith.constant 24 : index
    %c0_261 = arith.constant 0 : index
    %380 = vector.load %arg15[%c24, %c0_261] : memref<196x256xf32, #tpu.memory_space<vmem>>, vector<4x256xf32>
    tpu.vector_store %arg15[%c24, %c0_261], %379 {strides = array<i32>} : memref<196x256xf32, #tpu.memory_space<vmem>>, vector<4x256xf32>,
    %c0_262 = arith.constant 0 : index
    %c16_263 = arith.constant 16 : index
    %381 = vector.load %arg13[%c0_262, %c16_263] : memref<16x358xf32, #tpu.memory_space<vmem>>, vector<4x256xf32>
    %cst_264 = arith.constant 0.000000e+00 : f32
    %382 = vector.broadcast %cst_264 : f32 to vector<4x256xf32>
    %383 = arith.select %298, %381, %382 : vector<4x256xi1>, vector<4x256xf32>
    %c28 = arith.constant 28 : index
    %c0_265 = arith.constant 0 : index
    %384 = vector.load %arg15[%c28, %c0_265] : memref<196x256xf32, #tpu.memory_space<vmem>>, vector<4x256xf32>
    tpu.vector_store %arg15[%c28, %c0_265], %383 {strides = array<i32>} : memref<196x256xf32, #tpu.memory_space<vmem>>, vector<4x256xf32>,
    %c0_266 = arith.constant 0 : index
    %c17_267 = arith.constant 17 : index
    %385 = vector.load %arg13[%c0_266, %c17_267] : memref<16x358xf32, #tpu.memory_space<vmem>>, vector<4x256xf32>
    %cst_268 = arith.constant 0.000000e+00 : f32
    %386 = vector.broadcast %cst_268 : f32 to vector<4x256xf32>
    %387 = arith.select %307, %385, %386 : vector<4x256xi1>, vector<4x256xf32>
    %c32_269 = arith.constant 32 : index
    %c0_270 = arith.constant 0 : index
    %388 = vector.load %arg15[%c32_269, %c0_270] : memref<196x256xf32, #tpu.memory_space<vmem>>, vector<4x256xf32>
    tpu.vector_store %arg15[%c32_269, %c0_270], %387 {strides = array<i32>} : memref<196x256xf32, #tpu.memory_space<vmem>>, vector<4x256xf32>,
    %c0_271 = arith.constant 0 : index
    %c18_272 = arith.constant 18 : index
    %389 = vector.load %arg13[%c0_271, %c18_272] : memref<16x358xf32, #tpu.memory_space<vmem>>, vector<4x256xf32>
    %cst_273 = arith.constant 0.000000e+00 : f32
    %390 = vector.broadcast %cst_273 : f32 to vector<4x256xf32>
    %391 = arith.select %316, %389, %390 : vector<4x256xi1>, vector<4x256xf32>
    %c36_274 = arith.constant 36 : index
    %c0_275 = arith.constant 0 : index
    %392 = vector.load %arg15[%c36_274, %c0_275] : memref<196x256xf32, #tpu.memory_space<vmem>>, vector<4x256xf32>
    tpu.vector_store %arg15[%c36_274, %c0_275], %391 {strides = array<i32>} : memref<196x256xf32, #tpu.memory_space<vmem>>, vector<4x256xf32>,
    %c0_276 = arith.constant 0 : index
    %c19_277 = arith.constant 19 : index
    %393 = vector.load %arg13[%c0_276, %c19_277] : memref<16x358xf32, #tpu.memory_space<vmem>>, vector<4x256xf32>
    %cst_278 = arith.constant 0.000000e+00 : f32
    %394 = vector.broadcast %cst_278 : f32 to vector<4x256xf32>
    %395 = arith.select %325, %393, %394 : vector<4x256xi1>, vector<4x256xf32>
    %c40 = arith.constant 40 : index
    %c0_279 = arith.constant 0 : index
    %396 = vector.load %arg15[%c40, %c0_279] : memref<196x256xf32, #tpu.memory_space<vmem>>, vector<4x256xf32>
    tpu.vector_store %arg15[%c40, %c0_279], %395 {strides = array<i32>} : memref<196x256xf32, #tpu.memory_space<vmem>>, vector<4x256xf32>,
    %c0_280 = arith.constant 0 : index
    %c20_281 = arith.constant 20 : index
    %397 = vector.load %arg13[%c0_280, %c20_281] : memref<16x358xf32, #tpu.memory_space<vmem>>, vector<4x256xf32>
    %cst_282 = arith.constant 0.000000e+00 : f32
    %398 = vector.broadcast %cst_282 : f32 to vector<4x256xf32>
    %399 = arith.select %334, %397, %398 : vector<4x256xi1>, vector<4x256xf32>
    %c44 = arith.constant 44 : index
    %c0_283 = arith.constant 0 : index
    %400 = vector.load %arg15[%c44, %c0_283] : memref<196x256xf32, #tpu.memory_space<vmem>>, vector<4x256xf32>
    tpu.vector_store %arg15[%c44, %c0_283], %399 {strides = array<i32>} : memref<196x256xf32, #tpu.memory_space<vmem>>, vector<4x256xf32>,
    %c0_284 = arith.constant 0 : index
    %c21_285 = arith.constant 21 : index
    %401 = vector.load %arg13[%c0_284, %c21_285] : memref<16x358xf32, #tpu.memory_space<vmem>>, vector<4x256xf32>
    %cst_286 = arith.constant 0.000000e+00 : f32
    %402 = vector.broadcast %cst_286 : f32 to vector<4x256xf32>
    %403 = arith.select %343, %401, %402 : vector<4x256xi1>, vector<4x256xf32>
    %c48_287 = arith.constant 48 : index
    %c0_288 = arith.constant 0 : index
    %404 = vector.load %arg15[%c48_287, %c0_288] : memref<196x256xf32, #tpu.memory_space<vmem>>, vector<4x256xf32>
    tpu.vector_store %arg15[%c48_287, %c0_288], %403 {strides = array<i32>} : memref<196x256xf32, #tpu.memory_space<vmem>>, vector<4x256xf32>,
    %c0_289 = arith.constant 0 : index
    %c22_290 = arith.constant 22 : index
    %405 = vector.load %arg13[%c0_289, %c22_290] : memref<16x358xf32, #tpu.memory_space<vmem>>, vector<4x256xf32>
    %cst_291 = arith.constant 0.000000e+00 : f32
    %406 = vector.broadcast %cst_291 : f32 to vector<4x256xf32>
    %407 = arith.select %352, %405, %406 : vector<4x256xi1>, vector<4x256xf32>
    %c52_292 = arith.constant 52 : index
    %c0_293 = arith.constant 0 : index
    %408 = vector.load %arg15[%c52_292, %c0_293] : memref<196x256xf32, #tpu.memory_space<vmem>>, vector<4x256xf32>
    tpu.vector_store %arg15[%c52_292, %c0_293], %407 {strides = array<i32>} : memref<196x256xf32, #tpu.memory_space<vmem>>, vector<4x256xf32>,
    %c0_294 = arith.constant 0 : index
    %c32_295 = arith.constant 32 : index
    %409 = vector.load %arg13[%c0_294, %c32_295] : memref<16x358xf32, #tpu.memory_space<vmem>>, vector<4x256xf32>
    %cst_296 = arith.constant 0.000000e+00 : f32
    %410 = vector.broadcast %cst_296 : f32 to vector<4x256xf32>
    %411 = arith.select %298, %409, %410 : vector<4x256xi1>, vector<4x256xf32>
    %c56 = arith.constant 56 : index
    %c0_297 = arith.constant 0 : index
    %412 = vector.load %arg15[%c56, %c0_297] : memref<196x256xf32, #tpu.memory_space<vmem>>, vector<4x256xf32>
    tpu.vector_store %arg15[%c56, %c0_297], %411 {strides = array<i32>} : memref<196x256xf32, #tpu.memory_space<vmem>>, vector<4x256xf32>,
    %c0_298 = arith.constant 0 : index
    %c33_299 = arith.constant 33 : index
    %413 = vector.load %arg13[%c0_298, %c33_299] : memref<16x358xf32, #tpu.memory_space<vmem>>, vector<4x256xf32>
    %cst_300 = arith.constant 0.000000e+00 : f32
    %414 = vector.broadcast %cst_300 : f32 to vector<4x256xf32>
    %415 = arith.select %307, %413, %414 : vector<4x256xi1>, vector<4x256xf32>
    %c60 = arith.constant 60 : index
    %c0_301 = arith.constant 0 : index
    %416 = vector.load %arg15[%c60, %c0_301] : memref<196x256xf32, #tpu.memory_space<vmem>>, vector<4x256xf32>
    tpu.vector_store %arg15[%c60, %c0_301], %415 {strides = array<i32>} : memref<196x256xf32, #tpu.memory_space<vmem>>, vector<4x256xf32>,
    %c0_302 = arith.constant 0 : index
    %c34_303 = arith.constant 34 : index
    %417 = vector.load %arg13[%c0_302, %c34_303] : memref<16x358xf32, #tpu.memory_space<vmem>>, vector<4x256xf32>
    %cst_304 = arith.constant 0.000000e+00 : f32
    %418 = vector.broadcast %cst_304 : f32 to vector<4x256xf32>
    %419 = arith.select %316, %417, %418 : vector<4x256xi1>, vector<4x256xf32>
    %c64_305 = arith.constant 64 : index
    %c0_306 = arith.constant 0 : index
    %420 = vector.load %arg15[%c64_305, %c0_306] : memref<196x256xf32, #tpu.memory_space<vmem>>, vector<4x256xf32>
    tpu.vector_store %arg15[%c64_305, %c0_306], %419 {strides = array<i32>} : memref<196x256xf32, #tpu.memory_space<vmem>>, vector<4x256xf32>,
    %c0_307 = arith.constant 0 : index
    %c35_308 = arith.constant 35 : index
    %421 = vector.load %arg13[%c0_307, %c35_308] : memref<16x358xf32, #tpu.memory_space<vmem>>, vector<4x256xf32>
    %cst_309 = arith.constant 0.000000e+00 : f32
    %422 = vector.broadcast %cst_309 : f32 to vector<4x256xf32>
    %423 = arith.select %325, %421, %422 : vector<4x256xi1>, vector<4x256xf32>
    %c68_310 = arith.constant 68 : index
    %c0_311 = arith.constant 0 : index
    %424 = vector.load %arg15[%c68_310, %c0_311] : memref<196x256xf32, #tpu.memory_space<vmem>>, vector<4x256xf32>
    tpu.vector_store %arg15[%c68_310, %c0_311], %423 {strides = array<i32>} : memref<196x256xf32, #tpu.memory_space<vmem>>, vector<4x256xf32>,
    %c0_312 = arith.constant 0 : index
    %c36_313 = arith.constant 36 : index
    %425 = vector.load %arg13[%c0_312, %c36_313] : memref<16x358xf32, #tpu.memory_space<vmem>>, vector<4x256xf32>
    %cst_314 = arith.constant 0.000000e+00 : f32
    %426 = vector.broadcast %cst_314 : f32 to vector<4x256xf32>
    %427 = arith.select %334, %425, %426 : vector<4x256xi1>, vector<4x256xf32>
    %c72 = arith.constant 72 : index
    %c0_315 = arith.constant 0 : index
    %428 = vector.load %arg15[%c72, %c0_315] : memref<196x256xf32, #tpu.memory_space<vmem>>, vector<4x256xf32>
    tpu.vector_store %arg15[%c72, %c0_315], %427 {strides = array<i32>} : memref<196x256xf32, #tpu.memory_space<vmem>>, vector<4x256xf32>,
    %c0_316 = arith.constant 0 : index
    %c37_317 = arith.constant 37 : index
    %429 = vector.load %arg13[%c0_316, %c37_317] : memref<16x358xf32, #tpu.memory_space<vmem>>, vector<4x256xf32>
    %cst_318 = arith.constant 0.000000e+00 : f32
    %430 = vector.broadcast %cst_318 : f32 to vector<4x256xf32>
    %431 = arith.select %343, %429, %430 : vector<4x256xi1>, vector<4x256xf32>
    %c76 = arith.constant 76 : index
    %c0_319 = arith.constant 0 : index
    %432 = vector.load %arg15[%c76, %c0_319] : memref<196x256xf32, #tpu.memory_space<vmem>>, vector<4x256xf32>
    tpu.vector_store %arg15[%c76, %c0_319], %431 {strides = array<i32>} : memref<196x256xf32, #tpu.memory_space<vmem>>, vector<4x256xf32>,
    %c0_320 = arith.constant 0 : index
    %c38_321 = arith.constant 38 : index
    %433 = vector.load %arg13[%c0_320, %c38_321] : memref<16x358xf32, #tpu.memory_space<vmem>>, vector<4x256xf32>
    %cst_322 = arith.constant 0.000000e+00 : f32
    %434 = vector.broadcast %cst_322 : f32 to vector<4x256xf32>
    %435 = arith.select %352, %433, %434 : vector<4x256xi1>, vector<4x256xf32>
    %c80_323 = arith.constant 80 : index
    %c0_324 = arith.constant 0 : index
    %436 = vector.load %arg15[%c80_323, %c0_324] : memref<196x256xf32, #tpu.memory_space<vmem>>, vector<4x256xf32>
    tpu.vector_store %arg15[%c80_323, %c0_324], %435 {strides = array<i32>} : memref<196x256xf32, #tpu.memory_space<vmem>>, vector<4x256xf32>,
    %c0_325 = arith.constant 0 : index
    %c48_326 = arith.constant 48 : index
    %437 = vector.load %arg13[%c0_325, %c48_326] : memref<16x358xf32, #tpu.memory_space<vmem>>, vector<4x256xf32>
    %cst_327 = arith.constant 0.000000e+00 : f32
    %438 = vector.broadcast %cst_327 : f32 to vector<4x256xf32>
    %439 = arith.select %298, %437, %438 : vector<4x256xi1>, vector<4x256xf32>
    %c84_328 = arith.constant 84 : index
    %c0_329 = arith.constant 0 : index
    %440 = vector.load %arg15[%c84_328, %c0_329] : memref<196x256xf32, #tpu.memory_space<vmem>>, vector<4x256xf32>
    tpu.vector_store %arg15[%c84_328, %c0_329], %439 {strides = array<i32>} : memref<196x256xf32, #tpu.memory_space<vmem>>, vector<4x256xf32>,
    %c0_330 = arith.constant 0 : index
    %c49_331 = arith.constant 49 : index
    %441 = vector.load %arg13[%c0_330, %c49_331] : memref<16x358xf32, #tpu.memory_space<vmem>>, vector<4x256xf32>
    %cst_332 = arith.constant 0.000000e+00 : f32
    %442 = vector.broadcast %cst_332 : f32 to vector<4x256xf32>
    %443 = arith.select %307, %441, %442 : vector<4x256xi1>, vector<4x256xf32>
    %c88 = arith.constant 88 : index
    %c0_333 = arith.constant 0 : index
    %444 = vector.load %arg15[%c88, %c0_333] : memref<196x256xf32, #tpu.memory_space<vmem>>, vector<4x256xf32>
    tpu.vector_store %arg15[%c88, %c0_333], %443 {strides = array<i32>} : memref<196x256xf32, #tpu.memory_space<vmem>>, vector<4x256xf32>,
    %c0_334 = arith.constant 0 : index
    %c50_335 = arith.constant 50 : index
    %445 = vector.load %arg13[%c0_334, %c50_335] : memref<16x358xf32, #tpu.memory_space<vmem>>, vector<4x256xf32>
    %cst_336 = arith.constant 0.000000e+00 : f32
    %446 = vector.broadcast %cst_336 : f32 to vector<4x256xf32>
    %447 = arith.select %316, %445, %446 : vector<4x256xi1>, vector<4x256xf32>
    %c92 = arith.constant 92 : index
    %c0_337 = arith.constant 0 : index
    %448 = vector.load %arg15[%c92, %c0_337] : memref<196x256xf32, #tpu.memory_space<vmem>>, vector<4x256xf32>
    tpu.vector_store %arg15[%c92, %c0_337], %447 {strides = array<i32>} : memref<196x256xf32, #tpu.memory_space<vmem>>, vector<4x256xf32>,
    %c0_338 = arith.constant 0 : index
    %c51_339 = arith.constant 51 : index
    %449 = vector.load %arg13[%c0_338, %c51_339] : memref<16x358xf32, #tpu.memory_space<vmem>>, vector<4x256xf32>
    %cst_340 = arith.constant 0.000000e+00 : f32
    %450 = vector.broadcast %cst_340 : f32 to vector<4x256xf32>
    %451 = arith.select %325, %449, %450 : vector<4x256xi1>, vector<4x256xf32>
    %c96_341 = arith.constant 96 : index
    %c0_342 = arith.constant 0 : index
    %452 = vector.load %arg15[%c96_341, %c0_342] : memref<196x256xf32, #tpu.memory_space<vmem>>, vector<4x256xf32>
    tpu.vector_store %arg15[%c96_341, %c0_342], %451 {strides = array<i32>} : memref<196x256xf32, #tpu.memory_space<vmem>>, vector<4x256xf32>,
    %c0_343 = arith.constant 0 : index
    %c52_344 = arith.constant 52 : index
    %453 = vector.load %arg13[%c0_343, %c52_344] : memref<16x358xf32, #tpu.memory_space<vmem>>, vector<4x256xf32>
    %cst_345 = arith.constant 0.000000e+00 : f32
    %454 = vector.broadcast %cst_345 : f32 to vector<4x256xf32>
    %455 = arith.select %334, %453, %454 : vector<4x256xi1>, vector<4x256xf32>
    %c100_346 = arith.constant 100 : index
    %c0_347 = arith.constant 0 : index
    %456 = vector.load %arg15[%c100_346, %c0_347] : memref<196x256xf32, #tpu.memory_space<vmem>>, vector<4x256xf32>
    tpu.vector_store %arg15[%c100_346, %c0_347], %455 {strides = array<i32>} : memref<196x256xf32, #tpu.memory_space<vmem>>, vector<4x256xf32>,
    %c0_348 = arith.constant 0 : index
    %c53_349 = arith.constant 53 : index
    %457 = vector.load %arg13[%c0_348, %c53_349] : memref<16x358xf32, #tpu.memory_space<vmem>>, vector<4x256xf32>
    %cst_350 = arith.constant 0.000000e+00 : f32
    %458 = vector.broadcast %cst_350 : f32 to vector<4x256xf32>
    %459 = arith.select %343, %457, %458 : vector<4x256xi1>, vector<4x256xf32>
    %c104 = arith.constant 104 : index
    %c0_351 = arith.constant 0 : index
    %460 = vector.load %arg15[%c104, %c0_351] : memref<196x256xf32, #tpu.memory_space<vmem>>, vector<4x256xf32>
    tpu.vector_store %arg15[%c104, %c0_351], %459 {strides = array<i32>} : memref<196x256xf32, #tpu.memory_space<vmem>>, vector<4x256xf32>,
    %c0_352 = arith.constant 0 : index
    %c54_353 = arith.constant 54 : index
    %461 = vector.load %arg13[%c0_352, %c54_353] : memref<16x358xf32, #tpu.memory_space<vmem>>, vector<4x256xf32>
    %cst_354 = arith.constant 0.000000e+00 : f32
    %462 = vector.broadcast %cst_354 : f32 to vector<4x256xf32>
    %463 = arith.select %352, %461, %462 : vector<4x256xi1>, vector<4x256xf32>
    %c108 = arith.constant 108 : index
    %c0_355 = arith.constant 0 : index
    %464 = vector.load %arg15[%c108, %c0_355] : memref<196x256xf32, #tpu.memory_space<vmem>>, vector<4x256xf32>
    tpu.vector_store %arg15[%c108, %c0_355], %463 {strides = array<i32>} : memref<196x256xf32, #tpu.memory_space<vmem>>, vector<4x256xf32>,
    %c0_356 = arith.constant 0 : index
    %c64_357 = arith.constant 64 : index
    %465 = vector.load %arg13[%c0_356, %c64_357] : memref<16x358xf32, #tpu.memory_space<vmem>>, vector<4x256xf32>
    %cst_358 = arith.constant 0.000000e+00 : f32
    %466 = vector.broadcast %cst_358 : f32 to vector<4x256xf32>
    %467 = arith.select %298, %465, %466 : vector<4x256xi1>, vector<4x256xf32>
    %c112_359 = arith.constant 112 : index
    %c0_360 = arith.constant 0 : index
    %468 = vector.load %arg15[%c112_359, %c0_360] : memref<196x256xf32, #tpu.memory_space<vmem>>, vector<4x256xf32>
    tpu.vector_store %arg15[%c112_359, %c0_360], %467 {strides = array<i32>} : memref<196x256xf32, #tpu.memory_space<vmem>>, vector<4x256xf32>,
    %c0_361 = arith.constant 0 : index
    %c65_362 = arith.constant 65 : index
    %469 = vector.load %arg13[%c0_361, %c65_362] : memref<16x358xf32, #tpu.memory_space<vmem>>, vector<4x256xf32>
    %cst_363 = arith.constant 0.000000e+00 : f32
    %470 = vector.broadcast %cst_363 : f32 to vector<4x256xf32>
    %471 = arith.select %307, %469, %470 : vector<4x256xi1>, vector<4x256xf32>
    %c116 = arith.constant 116 : index
    %c0_364 = arith.constant 0 : index
    %472 = vector.load %arg15[%c116, %c0_364] : memref<196x256xf32, #tpu.memory_space<vmem>>, vector<4x256xf32>
    tpu.vector_store %arg15[%c116, %c0_364], %471 {strides = array<i32>} : memref<196x256xf32, #tpu.memory_space<vmem>>, vector<4x256xf32>,
    %c0_365 = arith.constant 0 : index
    %c66_366 = arith.constant 66 : index
    %473 = vector.load %arg13[%c0_365, %c66_366] : memref<16x358xf32, #tpu.memory_space<vmem>>, vector<4x256xf32>
    %cst_367 = arith.constant 0.000000e+00 : f32
    %474 = vector.broadcast %cst_367 : f32 to vector<4x256xf32>
    %475 = arith.select %316, %473, %474 : vector<4x256xi1>, vector<4x256xf32>
    %c120 = arith.constant 120 : index
    %c0_368 = arith.constant 0 : index
    %476 = vector.load %arg15[%c120, %c0_368] : memref<196x256xf32, #tpu.memory_space<vmem>>, vector<4x256xf32>
    tpu.vector_store %arg15[%c120, %c0_368], %475 {strides = array<i32>} : memref<196x256xf32, #tpu.memory_space<vmem>>, vector<4x256xf32>,
    %c0_369 = arith.constant 0 : index
    %c67_370 = arith.constant 67 : index
    %477 = vector.load %arg13[%c0_369, %c67_370] : memref<16x358xf32, #tpu.memory_space<vmem>>, vector<4x256xf32>
    %cst_371 = arith.constant 0.000000e+00 : f32
    %478 = vector.broadcast %cst_371 : f32 to vector<4x256xf32>
    %479 = arith.select %325, %477, %478 : vector<4x256xi1>, vector<4x256xf32>
    %c124 = arith.constant 124 : index
    %c0_372 = arith.constant 0 : index
    %480 = vector.load %arg15[%c124, %c0_372] : memref<196x256xf32, #tpu.memory_space<vmem>>, vector<4x256xf32>
    tpu.vector_store %arg15[%c124, %c0_372], %479 {strides = array<i32>} : memref<196x256xf32, #tpu.memory_space<vmem>>, vector<4x256xf32>,
    %c0_373 = arith.constant 0 : index
    %c68_374 = arith.constant 68 : index
    %481 = vector.load %arg13[%c0_373, %c68_374] : memref<16x358xf32, #tpu.memory_space<vmem>>, vector<4x256xf32>
    %cst_375 = arith.constant 0.000000e+00 : f32
    %482 = vector.broadcast %cst_375 : f32 to vector<4x256xf32>
    %483 = arith.select %334, %481, %482 : vector<4x256xi1>, vector<4x256xf32>
    %c128_376 = arith.constant 128 : index
    %c0_377 = arith.constant 0 : index
    %484 = vector.load %arg15[%c128_376, %c0_377] : memref<196x256xf32, #tpu.memory_space<vmem>>, vector<4x256xf32>
    tpu.vector_store %arg15[%c128_376, %c0_377], %483 {strides = array<i32>} : memref<196x256xf32, #tpu.memory_space<vmem>>, vector<4x256xf32>,
    %c0_378 = arith.constant 0 : index
    %c69_379 = arith.constant 69 : index
    %485 = vector.load %arg13[%c0_378, %c69_379] : memref<16x358xf32, #tpu.memory_space<vmem>>, vector<4x256xf32>
    %cst_380 = arith.constant 0.000000e+00 : f32
    %486 = vector.broadcast %cst_380 : f32 to vector<4x256xf32>
    %487 = arith.select %343, %485, %486 : vector<4x256xi1>, vector<4x256xf32>
    %c132 = arith.constant 132 : index
    %c0_381 = arith.constant 0 : index
    %488 = vector.load %arg15[%c132, %c0_381] : memref<196x256xf32, #tpu.memory_space<vmem>>, vector<4x256xf32>
    tpu.vector_store %arg15[%c132, %c0_381], %487 {strides = array<i32>} : memref<196x256xf32, #tpu.memory_space<vmem>>, vector<4x256xf32>,
    %c0_382 = arith.constant 0 : index
    %c70_383 = arith.constant 70 : index
    %489 = vector.load %arg13[%c0_382, %c70_383] : memref<16x358xf32, #tpu.memory_space<vmem>>, vector<4x256xf32>
    %cst_384 = arith.constant 0.000000e+00 : f32
    %490 = vector.broadcast %cst_384 : f32 to vector<4x256xf32>
    %491 = arith.select %352, %489, %490 : vector<4x256xi1>, vector<4x256xf32>
    %c136 = arith.constant 136 : index
    %c0_385 = arith.constant 0 : index
    %492 = vector.load %arg15[%c136, %c0_385] : memref<196x256xf32, #tpu.memory_space<vmem>>, vector<4x256xf32>
    tpu.vector_store %arg15[%c136, %c0_385], %491 {strides = array<i32>} : memref<196x256xf32, #tpu.memory_space<vmem>>, vector<4x256xf32>,
    %c0_386 = arith.constant 0 : index
    %c80_387 = arith.constant 80 : index
    %493 = vector.load %arg13[%c0_386, %c80_387] : memref<16x358xf32, #tpu.memory_space<vmem>>, vector<4x256xf32>
    %cst_388 = arith.constant 0.000000e+00 : f32
    %494 = vector.broadcast %cst_388 : f32 to vector<4x256xf32>
    %495 = arith.select %298, %493, %494 : vector<4x256xi1>, vector<4x256xf32>
    %c140 = arith.constant 140 : index
    %c0_389 = arith.constant 0 : index
    %496 = vector.load %arg15[%c140, %c0_389] : memref<196x256xf32, #tpu.memory_space<vmem>>, vector<4x256xf32>
    tpu.vector_store %arg15[%c140, %c0_389], %495 {strides = array<i32>} : memref<196x256xf32, #tpu.memory_space<vmem>>, vector<4x256xf32>,
    %c0_390 = arith.constant 0 : index
    %c81_391 = arith.constant 81 : index
    %497 = vector.load %arg13[%c0_390, %c81_391] : memref<16x358xf32, #tpu.memory_space<vmem>>, vector<4x256xf32>
    %cst_392 = arith.constant 0.000000e+00 : f32
    %498 = vector.broadcast %cst_392 : f32 to vector<4x256xf32>
    %499 = arith.select %307, %497, %498 : vector<4x256xi1>, vector<4x256xf32>
    %c144_393 = arith.constant 144 : index
    %c0_394 = arith.constant 0 : index
    %500 = vector.load %arg15[%c144_393, %c0_394] : memref<196x256xf32, #tpu.memory_space<vmem>>, vector<4x256xf32>
    tpu.vector_store %arg15[%c144_393, %c0_394], %499 {strides = array<i32>} : memref<196x256xf32, #tpu.memory_space<vmem>>, vector<4x256xf32>,
    %c0_395 = arith.constant 0 : index
    %c82_396 = arith.constant 82 : index
    %501 = vector.load %arg13[%c0_395, %c82_396] : memref<16x358xf32, #tpu.memory_space<vmem>>, vector<4x256xf32>
    %cst_397 = arith.constant 0.000000e+00 : f32
    %502 = vector.broadcast %cst_397 : f32 to vector<4x256xf32>
    %503 = arith.select %316, %501, %502 : vector<4x256xi1>, vector<4x256xf32>
    %c148 = arith.constant 148 : index
    %c0_398 = arith.constant 0 : index
    %504 = vector.load %arg15[%c148, %c0_398] : memref<196x256xf32, #tpu.memory_space<vmem>>, vector<4x256xf32>
    tpu.vector_store %arg15[%c148, %c0_398], %503 {strides = array<i32>} : memref<196x256xf32, #tpu.memory_space<vmem>>, vector<4x256xf32>,
    %c0_399 = arith.constant 0 : index
    %c83_400 = arith.constant 83 : index
    %505 = vector.load %arg13[%c0_399, %c83_400] : memref<16x358xf32, #tpu.memory_space<vmem>>, vector<4x256xf32>
    %cst_401 = arith.constant 0.000000e+00 : f32
    %506 = vector.broadcast %cst_401 : f32 to vector<4x256xf32>
    %507 = arith.select %325, %505, %506 : vector<4x256xi1>, vector<4x256xf32>
    %c152 = arith.constant 152 : index
    %c0_402 = arith.constant 0 : index
    %508 = vector.load %arg15[%c152, %c0_402] : memref<196x256xf32, #tpu.memory_space<vmem>>, vector<4x256xf32>
    tpu.vector_store %arg15[%c152, %c0_402], %507 {strides = array<i32>} : memref<196x256xf32, #tpu.memory_space<vmem>>, vector<4x256xf32>,
    %c0_403 = arith.constant 0 : index
    %c84_404 = arith.constant 84 : index
    %509 = vector.load %arg13[%c0_403, %c84_404] : memref<16x358xf32, #tpu.memory_space<vmem>>, vector<4x256xf32>
    %cst_405 = arith.constant 0.000000e+00 : f32
    %510 = vector.broadcast %cst_405 : f32 to vector<4x256xf32>
    %511 = arith.select %334, %509, %510 : vector<4x256xi1>, vector<4x256xf32>
    %c156 = arith.constant 156 : index
    %c0_406 = arith.constant 0 : index
    %512 = vector.load %arg15[%c156, %c0_406] : memref<196x256xf32, #tpu.memory_space<vmem>>, vector<4x256xf32>
    tpu.vector_store %arg15[%c156, %c0_406], %511 {strides = array<i32>} : memref<196x256xf32, #tpu.memory_space<vmem>>, vector<4x256xf32>,
    %c0_407 = arith.constant 0 : index
    %c85_408 = arith.constant 85 : index
    %513 = vector.load %arg13[%c0_407, %c85_408] : memref<16x358xf32, #tpu.memory_space<vmem>>, vector<4x256xf32>
    %cst_409 = arith.constant 0.000000e+00 : f32
    %514 = vector.broadcast %cst_409 : f32 to vector<4x256xf32>
    %515 = arith.select %343, %513, %514 : vector<4x256xi1>, vector<4x256xf32>
    %c160_410 = arith.constant 160 : index
    %c0_411 = arith.constant 0 : index
    %516 = vector.load %arg15[%c160_410, %c0_411] : memref<196x256xf32, #tpu.memory_space<vmem>>, vector<4x256xf32>
    tpu.vector_store %arg15[%c160_410, %c0_411], %515 {strides = array<i32>} : memref<196x256xf32, #tpu.memory_space<vmem>>, vector<4x256xf32>,
    %c0_412 = arith.constant 0 : index
    %c86_413 = arith.constant 86 : index
    %517 = vector.load %arg13[%c0_412, %c86_413] : memref<16x358xf32, #tpu.memory_space<vmem>>, vector<4x256xf32>
    %cst_414 = arith.constant 0.000000e+00 : f32
    %518 = vector.broadcast %cst_414 : f32 to vector<4x256xf32>
    %519 = arith.select %352, %517, %518 : vector<4x256xi1>, vector<4x256xf32>
    %c164 = arith.constant 164 : index
    %c0_415 = arith.constant 0 : index
    %520 = vector.load %arg15[%c164, %c0_415] : memref<196x256xf32, #tpu.memory_space<vmem>>, vector<4x256xf32>
    tpu.vector_store %arg15[%c164, %c0_415], %519 {strides = array<i32>} : memref<196x256xf32, #tpu.memory_space<vmem>>, vector<4x256xf32>,
    %c0_416 = arith.constant 0 : index
    %c96_417 = arith.constant 96 : index
    %521 = vector.load %arg13[%c0_416, %c96_417] : memref<16x358xf32, #tpu.memory_space<vmem>>, vector<4x256xf32>
    %cst_418 = arith.constant 0.000000e+00 : f32
    %522 = vector.broadcast %cst_418 : f32 to vector<4x256xf32>
    %523 = arith.select %298, %521, %522 : vector<4x256xi1>, vector<4x256xf32>
    %c168 = arith.constant 168 : index
    %c0_419 = arith.constant 0 : index
    %524 = vector.load %arg15[%c168, %c0_419] : memref<196x256xf32, #tpu.memory_space<vmem>>, vector<4x256xf32>
    tpu.vector_store %arg15[%c168, %c0_419], %523 {strides = array<i32>} : memref<196x256xf32, #tpu.memory_space<vmem>>, vector<4x256xf32>,
    %c0_420 = arith.constant 0 : index
    %c97_421 = arith.constant 97 : index
    %525 = vector.load %arg13[%c0_420, %c97_421] : memref<16x358xf32, #tpu.memory_space<vmem>>, vector<4x256xf32>
    %cst_422 = arith.constant 0.000000e+00 : f32
    %526 = vector.broadcast %cst_422 : f32 to vector<4x256xf32>
    %527 = arith.select %307, %525, %526 : vector<4x256xi1>, vector<4x256xf32>
    %c172 = arith.constant 172 : index
    %c0_423 = arith.constant 0 : index
    %528 = vector.load %arg15[%c172, %c0_423] : memref<196x256xf32, #tpu.memory_space<vmem>>, vector<4x256xf32>
    tpu.vector_store %arg15[%c172, %c0_423], %527 {strides = array<i32>} : memref<196x256xf32, #tpu.memory_space<vmem>>, vector<4x256xf32>,
    %c0_424 = arith.constant 0 : index
    %c98_425 = arith.constant 98 : index
    %529 = vector.load %arg13[%c0_424, %c98_425] : memref<16x358xf32, #tpu.memory_space<vmem>>, vector<4x256xf32>
    %cst_426 = arith.constant 0.000000e+00 : f32
    %530 = vector.broadcast %cst_426 : f32 to vector<4x256xf32>
    %531 = arith.select %316, %529, %530 : vector<4x256xi1>, vector<4x256xf32>
    %c176_427 = arith.constant 176 : index
    %c0_428 = arith.constant 0 : index
    %532 = vector.load %arg15[%c176_427, %c0_428] : memref<196x256xf32, #tpu.memory_space<vmem>>, vector<4x256xf32>
    tpu.vector_store %arg15[%c176_427, %c0_428], %531 {strides = array<i32>} : memref<196x256xf32, #tpu.memory_space<vmem>>, vector<4x256xf32>,
    %c0_429 = arith.constant 0 : index
    %c99_430 = arith.constant 99 : index
    %533 = vector.load %arg13[%c0_429, %c99_430] : memref<16x358xf32, #tpu.memory_space<vmem>>, vector<4x256xf32>
    %cst_431 = arith.constant 0.000000e+00 : f32
    %534 = vector.broadcast %cst_431 : f32 to vector<4x256xf32>
    %535 = arith.select %325, %533, %534 : vector<4x256xi1>, vector<4x256xf32>
    %c180 = arith.constant 180 : index
    %c0_432 = arith.constant 0 : index
    %536 = vector.load %arg15[%c180, %c0_432] : memref<196x256xf32, #tpu.memory_space<vmem>>, vector<4x256xf32>
    tpu.vector_store %arg15[%c180, %c0_432], %535 {strides = array<i32>} : memref<196x256xf32, #tpu.memory_space<vmem>>, vector<4x256xf32>,
    %c0_433 = arith.constant 0 : index
    %c100_434 = arith.constant 100 : index
    %537 = vector.load %arg13[%c0_433, %c100_434] : memref<16x358xf32, #tpu.memory_space<vmem>>, vector<4x256xf32>
    %cst_435 = arith.constant 0.000000e+00 : f32
    %538 = vector.broadcast %cst_435 : f32 to vector<4x256xf32>
    %539 = arith.select %334, %537, %538 : vector<4x256xi1>, vector<4x256xf32>
    %c184 = arith.constant 184 : index
    %c0_436 = arith.constant 0 : index
    %540 = vector.load %arg15[%c184, %c0_436] : memref<196x256xf32, #tpu.memory_space<vmem>>, vector<4x256xf32>
    tpu.vector_store %arg15[%c184, %c0_436], %539 {strides = array<i32>} : memref<196x256xf32, #tpu.memory_space<vmem>>, vector<4x256xf32>,
    %c0_437 = arith.constant 0 : index
    %c101_438 = arith.constant 101 : index
    %541 = vector.load %arg13[%c0_437, %c101_438] : memref<16x358xf32, #tpu.memory_space<vmem>>, vector<4x256xf32>
    %cst_439 = arith.constant 0.000000e+00 : f32
    %542 = vector.broadcast %cst_439 : f32 to vector<4x256xf32>
    %543 = arith.select %343, %541, %542 : vector<4x256xi1>, vector<4x256xf32>
    %c188 = arith.constant 188 : index
    %c0_440 = arith.constant 0 : index
    %544 = vector.load %arg15[%c188, %c0_440] : memref<196x256xf32, #tpu.memory_space<vmem>>, vector<4x256xf32>
    tpu.vector_store %arg15[%c188, %c0_440], %543 {strides = array<i32>} : memref<196x256xf32, #tpu.memory_space<vmem>>, vector<4x256xf32>,
    %c0_441 = arith.constant 0 : index
    %c102_442 = arith.constant 102 : index
    %545 = vector.load %arg13[%c0_441, %c102_442] : memref<16x358xf32, #tpu.memory_space<vmem>>, vector<4x256xf32>
    %cst_443 = arith.constant 0.000000e+00 : f32
    %546 = vector.broadcast %cst_443 : f32 to vector<4x256xf32>
    %547 = arith.select %352, %545, %546 : vector<4x256xi1>, vector<4x256xf32>
    %c192_444 = arith.constant 192 : index
    %c0_445 = arith.constant 0 : index
    %548 = vector.load %arg15[%c192_444, %c0_445] : memref<196x256xf32, #tpu.memory_space<vmem>>, vector<4x256xf32>
    tpu.vector_store %arg15[%c192_444, %c0_445], %547 {strides = array<i32>} : memref<196x256xf32, #tpu.memory_space<vmem>>, vector<4x256xf32>,
    %c0_446 = arith.constant 0 : index
    %c0_447 = arith.constant 0 : index
    %549 = vector.load %arg8[%c0_446, %c0_447] : memref<16x196xf32, #tpu.memory_space<vmem>>, vector<16x196xf32>
    %c0_448 = arith.constant 0 : index
    %c0_449 = arith.constant 0 : index
    %550 = vector.load %arg15[%c0_448, %c0_449] : memref<196x256xf32, #tpu.memory_space<vmem>>, vector<196x256xf32>
    %cst_450 = arith.constant dense<0.000000e+00> : vector<16x256xf32>
    %551 = tpu.matmul %549, %550, %cst_450 {dimension_numbers = #tpu.dot_dimension_numbers<[1], [0], [0], [1], [0, 0, 1, 1], [], []>} : vector<16x196xf32>, vector<196x256xf32>, vector<16x256xf32> -> vector<16x256xf32>
    %c0_451 = arith.constant 0 : index
    %c0_452 = arith.constant 0 : index
    %552 = vector.load %arg9[%c0_451, %c0_452] : memref<16x1xf32, #tpu.memory_space<vmem>>, vector<16x1xf32>
    %553 = vector.broadcast %552 : vector<16x1xf32> to vector<16x256xf32>
    %554 = arith.addf %551, %553 : vector<16x256xf32>
    %555 = arith.negf %554 : vector<16x256xf32>
    %556 = math.exp %555 : vector<16x256xf32>
    %cst_453 = arith.constant 1.000000e+00 : f32
    %557 = vector.broadcast %cst_453 : f32 to vector<16x256xf32>
    %558 = arith.addf %557, %556 : vector<16x256xf32>
    %559 = arith.divf %557, %558 : vector<16x256xf32>
    %560 = arith.mulf %14, %559 : vector<16x256xf32>
    %561 = tpu.concatenate %1, %560 in 0 : vector<16x256xf32>, vector<16x256xf32> -> vector<32x256xf32>
    %c0_454 = arith.constant 0 : index
    %c0_455 = arith.constant 0 : index
    %562 = vector.load %arg10[%c0_454, %c0_455] : memref<8x32xf32, #tpu.memory_space<vmem>>, vector<8x32xf32>
    %cst_456 = arith.constant dense<0.000000e+00> : vector<8x256xf32>
    %563 = tpu.matmul %562, %561, %cst_456 {dimension_numbers = #tpu.dot_dimension_numbers<[1], [0], [0], [1], [0, 0, 1, 1], [], []>} : vector<8x32xf32>, vector<32x256xf32>, vector<8x256xf32> -> vector<8x256xf32>
    %c0_457 = arith.constant 0 : index
    %c0_458 = arith.constant 0 : index
    %564 = vector.load %arg11[%c0_457, %c0_458] : memref<8x1xf32, #tpu.memory_space<vmem>>, vector<8x1xf32>
    %565 = vector.broadcast %564 : vector<8x1xf32> to vector<8x256xf32>
    %566 = arith.addf %563, %565 : vector<8x256xf32>
    %c0_459 = arith.constant 0 : index
    %c0_460 = arith.constant 0 : index
    %c0_461 = arith.constant 0 : index
    %567 = vector.load %arg12[%c0_459, %c0_460, %c0_461] : memref<1x8x256xf32, #tpu.memory_space<vmem>>, vector<1x8x256xf32>
    %568 = vector.shape_cast %567 : vector<1x8x256xf32> to vector<8x256xf32>
    %569 = vector.shape_cast %566 : vector<8x256xf32> to vector<1x8x256xf32>
    tpu.vector_store %arg12[%c0_459, %c0_460, %c0_461], %569 {strides = array<i32>} : memref<1x8x256xf32, #tpu.memory_space<vmem>>, vector<1x8x256xf32>,
    return
  }
  func.func @transform_0(%arg0: i32) -> (i32, i32, i32) {
    %c0_i32 = arith.constant 0 : i32
    %c0_i32_0 = arith.constant 0 : i32
    %c0_i32_1 = arith.constant 0 : i32
    return %arg0, %c0_i32, %c0_i32_0 : i32, i32, i32
  }
  func.func @transform_1(%arg0: i32) -> (i32, i32) {
    %c0_i32 = arith.constant 0 : i32
    %c0_i32_0 = arith.constant 0 : i32
    %c0_i32_1 = arith.constant 0 : i32
    return %c0_i32, %c0_i32_0 : i32, i32
  }
  func.func @transform_2(%arg0: i32) -> (i32, i32) {
    %c0_i32 = arith.constant 0 : i32
    %c0_i32_0 = arith.constant 0 : i32
    %c0_i32_1 = arith.constant 0 : i32
    return %c0_i32, %c0_i32_0 : i32, i32
  }
  func.func @transform_3(%arg0: i32) -> (i32, i32) {
    %c0_i32 = arith.constant 0 : i32
    %c0_i32_0 = arith.constant 0 : i32
    %c0_i32_1 = arith.constant 0 : i32
    return %c0_i32, %c0_i32_0 : i32, i32
  }
  func.func @transform_4(%arg0: i32) -> (i32, i32) {
    %c0_i32 = arith.constant 0 : i32
    %c0_i32_0 = arith.constant 0 : i32
    %c0_i32_1 = arith.constant 0 : i32
    return %c0_i32, %c0_i32_0 : i32, i32
  }
  func.func @transform_5(%arg0: i32) -> (i32, i32) {
    %c0_i32 = arith.constant 0 : i32
    %c0_i32_0 = arith.constant 0 : i32
    %c0_i32_1 = arith.constant 0 : i32
    return %c0_i32, %c0_i32_0 : i32, i32
  }
  func.func @transform_6(%arg0: i32) -> (i32, i32) {
    %c0_i32 = arith.constant 0 : i32
    %c0_i32_0 = arith.constant 0 : i32
    %c0_i32_1 = arith.constant 0 : i32
    return %c0_i32, %c0_i32_0 : i32, i32
  }
  func.func @transform_7(%arg0: i32) -> (i32, i32) {
    %c0_i32 = arith.constant 0 : i32
    %c0_i32_0 = arith.constant 0 : i32
    %c0_i32_1 = arith.constant 0 : i32
    return %c0_i32, %c0_i32_0 : i32, i32
  }
  func.func @transform_8(%arg0: i32) -> (i32, i32) {
    %c0_i32 = arith.constant 0 : i32
    %c0_i32_0 = arith.constant 0 : i32
    %c0_i32_1 = arith.constant 0 : i32
    return %c0_i32, %c0_i32_0 : i32, i32
  }
  func.func @transform_9(%arg0: i32) -> (i32, i32) {
    %c0_i32 = arith.constant 0 : i32
    %c0_i32_0 = arith.constant 0 : i32
    %c0_i32_1 = arith.constant 0 : i32
    return %c0_i32, %c0_i32_0 : i32, i32
  }
  func.func @transform_10(%arg0: i32) -> (i32, i32) {
    %c0_i32 = arith.constant 0 : i32
    %c0_i32_0 = arith.constant 0 : i32
    %c0_i32_1 = arith.constant 0 : i32
    return %c0_i32, %c0_i32_0 : i32, i32
  }
  func.func @transform_11(%arg0: i32) -> (i32, i32, i32) {
    %c0_i32 = arith.constant 0 : i32
    %c0_i32_0 = arith.constant 0 : i32
    %c0_i32_1 = arith.constant 0 : i32
    return %arg0, %c0_i32, %c0_i32_0 : i32, i32, i32
  }
}

</mosaic_0001>

<bundles_post_ra>
// kernel: tpu_custom_call.1
= control target key start
LH: loop header
LB: loop body
LE: loop exit
PB: predicated region body
PF: predicated region fallthrough
CT: control target
= control target key end

     0   :  { %s8202_s0 = inlined_call_operand.vmem [shape: f32[2,16,256], index: 0, kind: input, shape index: {}]   ;;  %s8203_s1 = inlined_call_operand.hbm [shape: f32[4,16], index: 1, kind: input, shape index: {}]   ;;  %s8204_s2 = inlined_call_operand.vmem [shape: f32[4,1], index: 2, kind: input, shape index: {}]   ;;  %s8205_s3 = inlined_call_operand.vmem [shape: f32[16,4], index: 3, kind: input, shape index: {}]   ;;  %s8206_s4 = inlined_call_operand.vmem [shape: f32[16,1], index: 4, kind: input, shape index: {}]   ;;  %s8207_s5 = inlined_call_operand.hbm [shape: f32[4,784], index: 5, kind: input, shape index: {}]   ;;  %s8208_s6 = inlined_call_operand.vmem [shape: f32[4,1], index: 6, kind: input, shape index: {}]   ;;  %s8209_s7 = inlined_call_operand.hbm [shape: f32[16,196], index: 7, kind: input, shape index: {}]   ;;  %s8210_s8 = inlined_call_operand.vmem [shape: f32[16,1], index: 8, kind: input, shape index: {}]   ;;  %s8211_s9 = inlined_call_operand.vmem [shape: f32[8,32], index: 9, kind: input, shape index: {}]   ;;  %s8212_s10 = inlined_call_operand.vmem [shape: f32[8,1], index: 10, kind: input, shape index: {}]   ;;  %s8213_s11 = inlined_call_operand.hbm [shape: f32[2,8,256], index: 11, kind: output, shape index: {}]  }
   0x1   :  { %8478 = sst [smem:[#allocation187_spill]] %s8202_s0 }
   0x2   :  { %8479 = sst [smem:[#allocation188_spill]] %s8203_s1 }
   0x3   :  { %8480 = sst [smem:[#allocation189_spill]] %s8204_s2 }
   0x4   :  { %8481 = sst [smem:[#allocation190_spill]] %s8205_s3 }
   0x5   :  { %8482 = sst [smem:[#allocation191_spill]] %s8206_s4 }
   0x6   :  { %8483 = sst [smem:[#allocation192_spill]] %s8207_s5 }
   0x7   :  { %8484 = sst [smem:[#allocation193_spill]] %s8208_s6 }
   0x8   :  { %8485 = sst [smem:[#allocation194_spill]] %s8209_s7 }
   0x9   :  { %8486 = sst [smem:[#allocation195_spill]] %s8210_s8 }
   0xa   :  { %8487 = sst [smem:[#allocation196_spill]] %s8211_s9 }
   0xb   :  { %8488 = sst [smem:[#allocation197_spill]] %s8212_s10 }
   0xc   :  { %8489 = sst [smem:[#allocation198_spill]] %s8213_s11 }
   0xd   :  { %16 = vsyncpa [#allocation6], 0 }
   0xe   :  { %17 = vsyncpa [#allocation9], 0 }
   0xf   :  { %18 = vsyncpa [#allocation7], 0 }
  0x10   :  { %20 = vsyncpa [#allocation7 + $0x1], 0  ;;  %s5313_s17 = smov 0   ;;  %s5315_s18 = smov 0  }
  0x11   :  { %s5317_s19 = smov 0   ;;  %s5319_s20 = smov 0  }
  0x12 LB: > { %8490 = sst [smem:[#allocation15_spill]] %s5182_s17  ;;  %s5334_s21 = sadd.s32 4294967295, %s5194_s20   ;;  %s5194_s20 = sphi %s5319_s20, %s9186_s20   ;;  %s5190_s19 = sphi %s5317_s19, %s9189_s19   ;;  %s5186_s18 = sphi %s5315_s18, %s9188_s18   ;;  %s5182_s17 = sphi %s5313_s17, %s9187_s17  }
  0x13   : > { %8491 = sst [smem:[#allocation16_spill]] %s5186_s18  ;;  %s4697_s22 = sadd.s32 4294967294, %s5194_s20  }
  0x14   : > { %8492 = sst [smem:[#allocation17_spill]] %s5190_s19  ;;  %s5338_s23 = sadd.s32 1, %s5194_s20  }
  0x15   : > { %8493 = sst [smem:[#allocation18_spill]] %s5194_s20  ;;  %s269_s24 = sadd.s32 1, %s5190_s19 }
  0x16   : > { %8494 = sst [smem:[#allocation19_spill]] %s5334_s21  ;;  %s266_s25 = ssub.s32 %s5194_s20, %s5338_s23 }
  0x17   : > { %8495 = sst [smem:[#allocation20_spill]] %s5338_s23  ;;  %p279_p0 = scmp.ne.s32.totalorder %s5190_s19, %s5186_s18 }
  0x18   : > { %p267_p1 = scmp.eq.s32.totalorder %s266_s25, 0  ;;  %p280_p2 = scmp.eq.s32.totalorder %s5334_s21, 1 }
  0x19   : > { %p285_p3 = scmp.ne.s32.totalorder %s5186_s18, %s5182_s17  ;;  %p286_p4 = scmp.eq.s32.totalorder %s4697_s22, 1 }
  0x1a   : > { %s5349_s26 = scalar_select %p267_p1, %s5190_s19, %s269_s24  }
  0x1b   : > { %p5351_p5 = por %p280_p2, %p279_p0  ;;  %p5355_p6 = por %p286_p4, %p285_p3 }
  0x1c   : > { %8496 = sst [smem:[#allocation21_spill]] %s5349_s26  ;;  %p4698_p7 = scmp.ge.s32.totalorder %s5194_s20, 1 }
  0x1d   : > { %s8497_s27 = scalar_select %p5351_p5, 1, 0 }
  0x1e   : > { %s8499_s28 = scalar_select %p5355_p6, 1, 0 }
  0x1f   : > { %8498 = sst [smem:[#allocation22_spill]] %s8497_s27  ;;  %p293_p8 = scmp.lt.s32.totalorder %s5194_s20, 3 }
  0x20   : > { %8500 = sst [smem:[#allocation23_spill]] %s8499_s28  ;;  %p8214_p9 = scmp.eq.s32.totalorder %s5334_s21, 0 }
  0x21   : > { %p5362_p10 = pnand %p4698_p7, %p293_p8  ;;  %s5196_s30 = smov [#allocation8]  }
  0x22   : > { %s326_s12 = sshll.u32 %s5196_s30, 4  ;;  %s5197_s13 = smov [#allocation5]   ;;  %s327_s12 = int_to_ptr.vmem [resolvable:$true] %s326_s12 }
  0x23   : > { %s8501_s29 = scalar_select %p5362_p10, 1, 0 }
  0x24   : > { %p4914_p11 = pneg %p5362_p10  ;;  %s306_s14 = sshll.u32 %s5197_s13, 4  ;;  %s307_s14 = int_to_ptr.vmem [resolvable:$true] %s306_s14 }
  0x25   : > { %s5198_s16 = smov [#allocation10]   ;;  %s5059_s24 = scalar_lea.vmem %s327_s12, 448 }
  0x26   : > { %p5370_p12 = pnand %p8214_p9, %p4914_p11  ;;  %s339_s22 = sshll.u32 %s5198_s16, 4  ;;  %s5374_s22 = int_to_ptr.vmem [resolvable:$true] %s339_s22 }
  0x27   : > { %p5060_p0 = scmp.ne.s32.totalorder %s327_s12, %s5059_s24  ;;  %p5067_p3 = scmp.lt.s32.totalorder %s327_s12, %s327_s12 }
  0x28   : > { %p5050_p13 = pneg %p5370_p12  ;;  %p5068_p4 = scmp.lt.s32.totalorder %s5059_s24, %s5059_s24 }
  0x2a   : > { %p5062_p1 = pnand %p5060_p0, %p5050_p13  ;;  %p5069_p7 = por %p5068_p4, %p5067_p3 }
  0x2c   : > { %p5063_p2 = pneg %p5062_p1 }
  0x2e   : > { %p5070_p8 = pnand %p5069_p7, %p5063_p2 }
  0x30   : > { %5073 = shalt.err (!%p5070_p8)
}
  0x31   : > { %s8503_s5 = sld [smem:[#allocation192_spill]]  ;;  %s5085_s13 = scalar_lea.vmem %s307_s14, 64 }
  0x32   : > { %p5086_p11 = scmp.ne.s32.totalorder %s307_s14, %s5085_s13  ;;  %p5093_p0 = scmp.lt.s32.totalorder %s307_s14, %s307_s14 }
  0x33   : > { %p5094_p1 = scmp.lt.s32.totalorder %s5085_s13, %s5085_s13 }
  0x34   : > { %p5088_p9 = pnand %p5086_p11, %p5050_p13 }
  0x35   : > { %p5095_p5 = por %p5094_p1, %p5093_p0 }
  0x36   : > { %p5089_p6 = pneg %p5088_p9 }
  0x37   : > { %4920 = dma.hbm_to_vmem [thread:$0]  (!%p5370_p12), %s8503_s5, 448, %s327_s12, [#allocation9]  }
  0x38   : > { %p5096_p10 = pnand %p5095_p5, %p5089_p6 }
  0x3a   : > { %5099 = shalt.err (!%p5096_p10)
}
  0x3b   : > { %s8504_s1 = sld [smem:[#allocation188_spill]]  ;;  %s5111_s12 = scalar_lea.vmem %s5374_s22, 512 }
  0x3c   : > { %p5112_p2 = scmp.ne.s32.totalorder %s5374_s22, %s5111_s12  ;;  %p5119_p4 = scmp.lt.s32.totalorder %s5374_s22, %s5374_s22 }
  0x3d   : > { %p5120_p5 = scmp.lt.s32.totalorder %s5111_s12, %s5111_s12 }
  0x3e   : > { %p5114_p9 = pnand %p5112_p2, %p5050_p13 }
  0x3f   : > { %p5121_p6 = por %p5120_p5, %p5119_p4 }
  0x40   : > { %p5115_p3 = pneg %p5114_p9 }
  0x41   : > { %4917 = dma.hbm_to_vmem [thread:$0]  (!%p5370_p12), %s8504_s1, 64, %s307_s14, [#allocation6]  }
  0x42   : > { %p5122_p10 = pnand %p5121_p6, %p5115_p3 }
  0x44   : > { %5125 = shalt.err (!%p5122_p10)
}
  0x45   : > { %s5199_s25 = smov 256   ;;  %s5200_s30 = smov 16  }
  0x46   : > { %s8505_s7 = sld [smem:[#allocation194_spill]]  ;;  %p8506_p7 = scmp.ne.s32.totalorder %s8501_s29, 0 }
  0x48   : > { %372 = sbr.rel (%p8506_p7) target bundleno = 2494 (0x9be), region = 64 }
  0x4c   : > { %4923 = dma.hbm_to_vmem [thread:$0]  (!%p5370_p12), %s8505_s7, 512, %s5374_s22, [#allocation9], %s5199_s25, %s5199_s25, %s5200_s30  }
  0x4d   : > { %p8507_p13 = scmp.eq.s32.totalorder %s5334_s21, 0 }
  0x4f   : > { %5169 = dma.done.wait (%p8507_p13), [#allocation6], 64   ;;  %p8508_p8 = pmov %p8507_p13 }
  0x51   : > { %5171 = vsyncadd (%p8508_p8), [#allocation6], 4294967232  ;;  %p8509_p11 = pmov %p8508_p8 }
  0x52   : > { %p8510_p0 = pmov %p8508_p8 }
  0x53   : > { %5173 = dma.done.wait (%p8509_p11), [#allocation9], 960  }
  0x54   : > { %5175 = vsyncadd (%p8510_p0), [#allocation9], 4294966336  ;;  %p420_p1 = scmp.lt.s32.totalorder %s5334_s21, 1  ;;  %v8326_v0 = vmov 0.0   ;;  %v5202_v1 = vmov 0   ;;  %s8511_s0 = sld [smem:[#allocation187_spill]] }
  0x55   : > { %504 = vmatprep.mubr.f32.mxu0 %v8326_v0  ;;  %627 = vst [vmem:[#allocation2] sm:$0xff] %v8326_v0  ;;  %631 = vst [vmem:[#allocation2 + $0x18] sm:$0xff] %v8326_v0  ;;  %5023 = vset.pattern.permute.xlu0 %v5202_v1  ;;  %s8513_s2 = sld [smem:[#allocation189_spill]]  ;;  %v429_v7 = vld [vmem:[#allocation5] sm:$0xf]  ;;  %vm8420_vm0 = vcmask 130048  }
  0x56   : > { %s421_s29 = scalar_select %p420_p1, %s5334_s21, 1  ;;  %605 = vmatprep.mubr.f32.mxu1 %v8326_v0  ;;  %5024 = vset.pattern.permute.xlu1 %v5202_v1  ;;  %vm8401_vm1 = vcmask 1043456   ;;  %vm527_vm2 = vcmask 31744   ;;  %vm629_vm3 = vcmask 834560   ;;  %vm655_vm4 = vcmask 1047960  }
  0x57   : > { %s8514_s4 = sld [smem:[#allocation191_spill]]  ;;  %630 = vst.msk [vmem:[#allocation2 + $0x10] sm:$0xff] %vm629_vm3, %v8326_v0  ;;  %633 = vst.msk [vmem:[#allocation2 + $0x28] sm:$0xff] %vm629_vm3, %v8326_v0  ;;  %s8217_s25 = smov 51   ;;  %vm8409_vm5 = vcmask 416768   ;;  %vm8408_vm6 = vcmask 637952  }
  0x58   : > { %s4730_s14 = sshll.u32 %s421_s29, 5  ;;  %s8515_s3 = sld [smem:[#allocation190_spill]]  ;;  %vm8402_vm10 = vcmask 646144   ;;  %vm8403_vm13 = vcmask 654336  }
  0x59   : > { %s8223_s30 = smov 44   ;;  %s8261_s13 = smov 112  }
  0x5a   : > { %s5426_s24 = scalar_lea.vmem %s8511_s0, %s4730_s14  ;;  %s8219_s16 = smov 45  }
  0x5b   : > { %8512 = sst [smem:[#allocation24_spill]] %s5426_s24  ;;  %v428_v2 = vld [vmem:[%s5426_s24 + $0x18] sm:$0xff]  ;;  %v427_v3 = vld [vmem:[%s5426_s24 + $0x10] sm:$0xff]  ;;  %v426_v4 = vld [vmem:[%s5426_s24 + $0x8] sm:$0xff]  ;;  %s8265_s29 = smov 122  }
  0x5c   : > { %468 = vmatprep.subr.mxu0 %v428_v2  ;;  %v425_v5 = vld [vmem:[%s5426_s24] sm:$0xff]  ;;  %s8221_s14 = smov 46   ;;  %s8269_s15 = smov 123  }
  0x5d   : > { %v430_v6 = vld [vmem:[%s8513_s2] sm:$0xf]  ;;  %469 = vmatpush1.msra.mxu0 %v427_v3  ;;  %v516_v8 = vld [vmem:[%s8514_s4 + $0x8] sm:$0xff]  ;;  %s8225_s22 = smov 47   ;;  %s8227_s12 = smov 124  }
  0x5e   : > { %433 = vperm.xlu0 %5023, %v430_v6   ;;  %470 = vmatprep.subr.mxu0 %v426_v4  ;;  %v515_v9 = vld [vmem:[%s8514_s4] sm:$0xff]  ;;  %v514_v18 = vld [vmem:[%s8515_s3 + $0x8] sm:$0xff]  ;;  %s8287_s0 = smov 93   ;;  %s8289_s1 = smov 94  }
  0x5f   : > { %471 = vmatpush1.msra.mxu0 %v425_v5  ;;  %519 = vperm.xlu1 %5024, %v515_v9   ;;  %v513_v17 = vld [vmem:[%s8515_s3] sm:$0xff]  ;;  %s8291_s2 = smov 61   ;;  %s8293_s3 = smov 62  }
  0x60   : > { %4710 = vmatmul.mubr.msk.f32.vlgmr.msra.gmra.mxu0 %vm8420_vm0, %v429_v7  ;;  %s8295_s4 = smov 63   ;;  %s8297_s5 = smov 64   ;;  %vm8424_vm0 = vcmask 1031168  }
  0x61   : > { %s8299_s7 = smov 74   ;;  %s8533_s26 = smov 112  }
  0x62   : > { %524 = vperm.xlu0 %5023, %v516_v8   ;;  %s8539_s19 = smov 123   ;;  %s8541_s23 = smov 45  }
  0x63   : > { %s8544_s28 = smov 80   ;;  %s8547_s17 = smov 46  }
  0x64   : > { %s8550_s20 = smov 90   ;;  %s8553_s11 = smov 47  }
  0x65   : > { %s8556_s27 = smov 91   ;;  %s8559_s9 = smov 48  }
  0x66   : > { %s8562_s21 = smov 92   ;;  %s8565_s18 = smov 58  }
  0x67   : > { %s8568_s24 = smov 93   ;;  %s8571_s10 = smov 59  }
  0x68   : > { %s8573_s8 = smov 94   ;;  %s8575_s6 = smov 60  }
  0xd9   : > { %v434_v11 = vpop.permute.xlu0 %433 }
  0xda   : > { %v520_v19 = vpop.permute.xlu1 %519 }
  0xdd   : > { %v525_v25 = vpop.permute.xlu0 %524 }
 0x120   : > { %v506_v10 = vpop.f32.mrf.mxu0 }
 0x121   : > { %v507_v12 = vadd.f32 %v506_v10, %v434_v11 }
 0x122   : > { %v508_v13 = vpop.f32.mrf.mxu0 }
 0x123   : > { %v509_v14 = vadd.f32 %v508_v13, %v434_v11  ;;  %v511_v16 = vmax.f32 %v507_v12, 0.0 }
 0x125   : > { %v512_v15 = vmax.f32 %v509_v14, 0.0 }
 0x127   : > { %4711 = vmatprep.subr.msk.mxu1 %vm8401_vm1, %v512_v15 }
 0x128   : > { %4712 = vmatpush1.msk.msra.mxu1 %vm8401_vm1, %v511_v16  ;;  %vm8407_vm1 = vcmask 744448  }
 0x129   : > { %4713 = vmatmul.mubr.msk.f32.vlgmr.msra.gmra.mxu1 %vm527_vm2, %v513_v17 }
 0x12a   : > { %611 = vmatprep.mubr.f32.mxu1 %v8326_v0 }
 0x12d   : > { %4714 = vmatmul.mubr.msk.f32.gmra.mxu1 %vm527_vm2, %v514_v18  ;;  %vm8406_vm2 = vcmask 736256  }
 0x1e9   : > { %v607_v20 = vpop.f32.mrf.mxu1 }
 0x1ea   : > { %v608_v21 = vadd.f32 %v607_v20, %v520_v19 }
 0x1eb   : > { %v609_v22 = vpop.f32.mrf.mxu1 }
 0x1ec   : > { %v5453_v23 = vmul.f32 %v608_v21, %v425_v5  ;;  %v610_v24 = vadd.f32 %v609_v22, %v520_v19 }
 0x1ed   : > { %v613_v26 = vpop.f32.mrf.mxu1 }
 0x1ee   : > { %8516 = vst [vmem:[#allocation25_spill] sm:$0xff] %v5453_v23  ;;  %v5455_v27 = vmul.f32 %v610_v24, %v426_v4  ;;  %v614_v28 = vadd.f32 %v613_v26, %v525_v25  ;;  %638 = vrot.lane.b32.xlu1 %v5453_v23, %s8217_s25 }
 0x1ef   : > { %v615_v29 = vpop.f32.mrf.mxu1 }
 0x1f0   : > { %8517 = vst [vmem:[#allocation26_spill] sm:$0xff] %v5455_v27  ;;  %v5459_v30 = vmul.f32 %v614_v28, %v427_v3  ;;  %v616_v31 = vadd.f32 %v615_v29, %v525_v25  ;;  %640 = vrot.lane.b32.xlu0 %v5455_v27, %s8217_s25 }
 0x1f2   : > { %8518 = vst [vmem:[#allocation27_spill] sm:$0xff] %v5459_v30  ;;  %v5463_v32 = vmul.f32 %v616_v31, %v428_v2  ;;  %642 = vrot.lane.b32.xlu1 %v5459_v30, %s8217_s25 }
 0x1f4   : > { %8519 = vst [vmem:[#allocation28_spill] sm:$0xff] %v5463_v32  ;;  %644 = vrot.lane.b32.xlu0 %v5463_v32, %s8217_s25  ;;  %s8229_s25 = smov 48  }
 0x260   : > { %v639_v33 = vpop.permute.xlu1 %638 }
 0x261   : > { %656 = vst.msk [vmem:[#allocation2] sm:$0xff] %vm655_vm4, %v639_v33 }
 0x262   : > { %v641_v34 = vpop.permute.xlu0 %640 }
 0x263   : > { %v5470_v35 = vsel %vm8409_vm5, %v639_v33, %v641_v34  ;;  %658 = vst.msk [vmem:[#allocation2 + $0x10] sm:$0xff] %vm8409_vm5, %v641_v34 }
 0x264   : > { %657 = vst [vmem:[#allocation2 + $0x8] sm:$0xff] %v5470_v35  ;;  %v643_v36 = vpop.permute.xlu1 %642 }
 0x265   : > { %659 = vst.msk [vmem:[#allocation2 + $0x18] sm:$0xff] %vm655_vm4, %v643_v36 }
 0x266   : > { %v645_v37 = vpop.permute.xlu0 %644 }
 0x267   : > { %v648_v38 = vsel %vm8409_vm5, %v643_v36, %v645_v37  ;;  %661 = vst.msk [vmem:[#allocation2 + $0x28] sm:$0xff] %vm8409_vm5, %v645_v37 }
 0x268   : > { %660 = vst [vmem:[#allocation2 + $0x20] sm:$0xff] %v648_v38  ;;  %v5476_v39 = vld [vmem:[#allocation2] sm:$0xff] }
 0x269   : > { %2298 = vrot.lane.b32.xlu1 %v5476_v39, %s8223_s30  ;;  %986 = vrot.lane.b32.xlu0 %v5476_v39, %s8261_s13  ;;  %s8235_s30 = smov 126  }
 0x26a   : > { %v5530_v40 = vld [vmem:[#allocation2 + $0x10] sm:$0xff] }
 0x26c   : > { %v5808_v37 = vld [vmem:[#allocation2 + $0x18] sm:$0xff] }
 0x26d   : > { %2257 = vrot.lane.b32.xlu1 %v5476_v39, %s8219_s16  ;;  %945 = vrot.lane.b32.xlu0 %v5476_v39, %s8265_s29  ;;  %s8231_s16 = smov 125  }
 0x271   : > { %2216 = vrot.lane.b32.xlu1 %v5476_v39, %s8221_s14  ;;  %904 = vrot.lane.b32.xlu0 %v5476_v39, %s8269_s15  ;;  %s8233_s14 = smov 58  }
 0x275   : > { %2175 = vrot.lane.b32.xlu1 %v5476_v39, %s8225_s22  ;;  %863 = vrot.lane.b32.xlu0 %v5476_v39, %s8227_s12  ;;  %s8237_s22 = smov 59   ;;  %s8239_s12 = smov 127  }
 0x279   : > { %2134 = vrot.lane.b32.xlu1 %v5476_v39, %s8229_s25  ;;  %822 = vrot.lane.b32.xlu0 %v5476_v39, %s8231_s16  ;;  %s8241_s25 = smov 60   ;;  %s8243_s16 = smov 95  }
 0x27d   : > { %2093 = vrot.lane.b32.xlu1 %v5476_v39, %s8233_s14  ;;  %781 = vrot.lane.b32.xlu0 %v5476_v39, %s8235_s30  ;;  %s8245_s14 = smov 27   ;;  %s8247_s30 = smov 96  }
 0x281   : > { %2052 = vrot.lane.b32.xlu1 %v5476_v39, %s8237_s22  ;;  %740 = vrot.lane.b32.xlu0 %v5476_v39, %s8239_s12  ;;  %s8249_s22 = smov 28   ;;  %s8251_s12 = smov 106  }
 0x285   : > { %2011 = vrot.lane.b32.xlu1 %v5476_v39, %s8241_s25  ;;  %1314 = vrot.lane.b32.xlu0 %v5476_v39, %s8243_s16  ;;  %s8253_s25 = smov 29   ;;  %s8277_s16 = smov 107  }
 0x289   : > { %2626 = vrot.lane.b32.xlu1 %v5476_v39, %s8245_s14  ;;  %1273 = vrot.lane.b32.xlu0 %v5476_v39, %s8247_s30  ;;  %s8255_s14 = smov 30   ;;  %s8273_s30 = smov 108  }
 0x28d   : > { %2585 = vrot.lane.b32.xlu1 %v5476_v39, %s8249_s22  ;;  %1232 = vrot.lane.b32.xlu0 %v5476_v39, %s8251_s12  ;;  %s8257_s22 = smov 31   ;;  %s8259_s12 = smov 109  }
 0x291   : > { %2544 = vrot.lane.b32.xlu1 %v5476_v39, %s8253_s25  ;;  %1191 = vrot.lane.b32.xlu0 %v5476_v39, %s8277_s16  ;;  %s8263_s25 = smov 110   ;;  %s8285_s16 = smov 92  }
 0x295   : > { %2503 = vrot.lane.b32.xlu1 %v5476_v39, %s8255_s14  ;;  %1150 = vrot.lane.b32.xlu0 %v5476_v39, %s8273_s30  ;;  %s8267_s14 = smov 111   ;;  %s8283_s30 = smov 91  }
 0x299   : > { %2462 = vrot.lane.b32.xlu1 %v5476_v39, %s8257_s22  ;;  %1109 = vrot.lane.b32.xlu0 %v5476_v39, %s8259_s12  ;;  %s8271_s22 = smov 78   ;;  %s8520_s12 = smov 124  }
 0x29d   : > { %990 = vrot.lane.b32.xlu1 %v5530_v40, %s8261_s13  ;;  %1068 = vrot.lane.b32.xlu0 %v5476_v39, %s8263_s25  ;;  %s8275_s13 = smov 79   ;;  %s8521_s25 = smov 125  }
 0x2a1   : > { %949 = vrot.lane.b32.xlu1 %v5530_v40, %s8265_s29  ;;  %1027 = vrot.lane.b32.xlu0 %v5476_v39, %s8267_s14  ;;  %s8279_s29 = smov 80   ;;  %s8522_s14 = smov 126  }
 0x2a5   : > { %908 = vrot.lane.b32.xlu1 %v5530_v40, %s8269_s15  ;;  %1642 = vrot.lane.b32.xlu0 %v5476_v39, %s8271_s22  ;;  %s8281_s15 = smov 90   ;;  %s8523_s22 = smov 127  }
 0x2a9   : > { %867 = vrot.lane.b32.xlu1 %v5530_v40, %s8520_s12  ;;  %1601 = vrot.lane.b32.xlu0 %v5476_v39, %s8275_s13  ;;  %s8524_s13 = smov 95  }
 0x2ad   : > { %826 = vrot.lane.b32.xlu1 %v5530_v40, %s8521_s25  ;;  %1560 = vrot.lane.b32.xlu0 %v5476_v39, %s8279_s29  ;;  %s8525_s29 = smov 96  }
 0x2b1   : > { %785 = vrot.lane.b32.xlu1 %v5530_v40, %s8522_s14  ;;  %1519 = vrot.lane.b32.xlu0 %v5476_v39, %s8281_s15  ;;  %s8526_s15 = smov 106  }
 0x2b5   : > { %744 = vrot.lane.b32.xlu1 %v5530_v40, %s8523_s22  ;;  %1478 = vrot.lane.b32.xlu0 %v5476_v39, %s8283_s30  ;;  %s8527_s30 = smov 107  }
 0x2b9   : > { %1318 = vrot.lane.b32.xlu1 %v5530_v40, %s8524_s13  ;;  %1437 = vrot.lane.b32.xlu0 %v5476_v39, %s8285_s16  ;;  %s8528_s16 = smov 108  }
 0x2bd   : > { %1277 = vrot.lane.b32.xlu1 %v5530_v40, %s8525_s29  ;;  %1396 = vrot.lane.b32.xlu0 %v5476_v39, %s8287_s0  ;;  %s8529_s0 = smov 109  }
 0x2c1   : > { %1236 = vrot.lane.b32.xlu1 %v5530_v40, %s8526_s15  ;;  %1355 = vrot.lane.b32.xlu0 %v5476_v39, %s8289_s1  ;;  %s8530_s1 = smov 110  }
 0x2c5   : > { %1195 = vrot.lane.b32.xlu1 %v5530_v40, %s8527_s30  ;;  %1970 = vrot.lane.b32.xlu0 %v5476_v39, %s8291_s2  ;;  %s8531_s2 = smov 111  }
 0x2c9   : > { %1154 = vrot.lane.b32.xlu1 %v5530_v40, %s8528_s16  ;;  %1929 = vrot.lane.b32.xlu0 %v5476_v39, %s8293_s3  ;;  %s8532_s3 = smov 78  }
 0x2cd   : > { %1113 = vrot.lane.b32.xlu1 %v5530_v40, %s8529_s0  ;;  %1888 = vrot.lane.b32.xlu0 %v5476_v39, %s8295_s4  ;;  %s8535_s4 = smov 44  }
 0x2d1   : > { %1072 = vrot.lane.b32.xlu1 %v5530_v40, %s8530_s1  ;;  %1847 = vrot.lane.b32.xlu0 %v5476_v39, %s8297_s5  ;;  %s8536_s5 = smov 122  }
 0x2d5   : > { %1031 = vrot.lane.b32.xlu1 %v5530_v40, %s8531_s2  ;;  %1806 = vrot.lane.b32.xlu0 %v5476_v39, %s8299_s7  ;;  %s8538_s7 = smov 79  }
 0x2d9   : > { %1646 = vrot.lane.b32.xlu1 %v5530_v40, %s8532_s3  ;;  %988 = vrot.lane.b32.xlu0 %v5470_v35, %s8533_s26 }
 0x2db   : > { %v5596_v41 = vpop.permute.xlu0 %986  ;;  %v5598_v42 = vpop.permute.xlu1 %2298 }
 0x2dc   : > { %8534 = vst [vmem:[#allocation29_spill] sm:$0xff] %v5598_v42 }
 0x2dd   : > { %2302 = vrot.lane.b32.xlu1 %v5530_v40, %s8535_s4  ;;  %947 = vrot.lane.b32.xlu0 %v5470_v35, %s8536_s5 }
 0x2df   : > { %v5604_v43 = vpop.permute.xlu0 %945  ;;  %v5606_v44 = vpop.permute.xlu1 %2257 }
 0x2e0   : > { %8537 = vst [vmem:[#allocation30_spill] sm:$0xff] %v5606_v44 }
 0x2e1   : > { %1605 = vrot.lane.b32.xlu1 %v5530_v40, %s8538_s7  ;;  %906 = vrot.lane.b32.xlu0 %v5470_v35, %s8539_s19 }
 0x2e3   : > { %v5612_v45 = vpop.permute.xlu0 %904  ;;  %v5614_v46 = vpop.permute.xlu1 %2216 }
 0x2e4   : > { %8540 = vst [vmem:[#allocation31_spill] sm:$0xff] %v5614_v46 }
 0x2e5   : > { %2261 = vrot.lane.b32.xlu1 %v5530_v40, %s8541_s23  ;;  %865 = vrot.lane.b32.xlu0 %v5470_v35, %s8520_s12 }
 0x2e7   : > { %v5620_v47 = vpop.permute.xlu0 %863  ;;  %v5622_v48 = vpop.permute.xlu1 %2175 }
 0x2e8   : > { %8542 = vst [vmem:[#allocation32_spill] sm:$0xff] %v5620_v47  ;;  %8543 = vst [vmem:[#allocation33_spill] sm:$0xff] %v5622_v48 }
 0x2e9   : > { %1564 = vrot.lane.b32.xlu1 %v5530_v40, %s8544_s28  ;;  %824 = vrot.lane.b32.xlu0 %v5470_v35, %s8521_s25 }
 0x2eb   : > { %v5628_v49 = vpop.permute.xlu0 %822  ;;  %v5630_v50 = vpop.permute.xlu1 %2134 }
 0x2ec   : > { %8545 = vst [vmem:[#allocation34_spill] sm:$0xff] %v5628_v49  ;;  %8546 = vst [vmem:[#allocation35_spill] sm:$0xff] %v5630_v50 }
 0x2ed   : > { %2220 = vrot.lane.b32.xlu1 %v5530_v40, %s8547_s17  ;;  %783 = vrot.lane.b32.xlu0 %v5470_v35, %s8522_s14 }
 0x2ef   : > { %v5636_v51 = vpop.permute.xlu0 %781  ;;  %v5638_v52 = vpop.permute.xlu1 %2093 }
 0x2f0   : > { %8548 = vst [vmem:[#allocation36_spill] sm:$0xff] %v5636_v51  ;;  %8549 = vst [vmem:[#allocation37_spill] sm:$0xff] %v5638_v52 }
 0x2f1   : > { %1523 = vrot.lane.b32.xlu1 %v5530_v40, %s8550_s20  ;;  %742 = vrot.lane.b32.xlu0 %v5470_v35, %s8523_s22 }
 0x2f3   : > { %v5644_v53 = vpop.permute.xlu0 %740  ;;  %v5646_v54 = vpop.permute.xlu1 %2052 }
 0x2f4   : > { %8551 = vst [vmem:[#allocation38_spill] sm:$0xff] %v5644_v53  ;;  %8552 = vst [vmem:[#allocation39_spill] sm:$0xff] %v5646_v54 }
 0x2f5   : > { %2179 = vrot.lane.b32.xlu1 %v5530_v40, %s8553_s11  ;;  %1316 = vrot.lane.b32.xlu0 %v5470_v35, %s8524_s13 }
 0x2f7   : > { %v5652_v55 = vpop.permute.xlu0 %1314  ;;  %v5654_v56 = vpop.permute.xlu1 %2011 }
 0x2f8   : > { %8554 = vst [vmem:[#allocation40_spill] sm:$0xff] %v5652_v55  ;;  %8555 = vst [vmem:[#allocation41_spill] sm:$0xff] %v5654_v56 }
 0x2f9   : > { %1482 = vrot.lane.b32.xlu1 %v5530_v40, %s8556_s27  ;;  %1275 = vrot.lane.b32.xlu0 %v5470_v35, %s8525_s29 }
 0x2fb   : > { %v5660_v57 = vpop.permute.xlu0 %1273  ;;  %v5662_v58 = vpop.permute.xlu1 %2626 }
 0x2fc   : > { %8557 = vst [vmem:[#allocation42_spill] sm:$0xff] %v5660_v57  ;;  %8558 = vst [vmem:[#allocation43_spill] sm:$0xff] %v5662_v58 }
 0x2fd   : > { %2138 = vrot.lane.b32.xlu1 %v5530_v40, %s8559_s9  ;;  %1234 = vrot.lane.b32.xlu0 %v5470_v35, %s8526_s15 }
 0x2ff   : > { %v5668_v59 = vpop.permute.xlu0 %1232  ;;  %v5670_v60 = vpop.permute.xlu1 %2585 }
 0x300   : > { %8560 = vst [vmem:[#allocation44_spill] sm:$0xff] %v5668_v59  ;;  %8561 = vst [vmem:[#allocation45_spill] sm:$0xff] %v5670_v60 }
 0x301   : > { %1441 = vrot.lane.b32.xlu1 %v5530_v40, %s8562_s21  ;;  %1193 = vrot.lane.b32.xlu0 %v5470_v35, %s8527_s30 }
 0x303   : > { %v5676_v61 = vpop.permute.xlu0 %1191  ;;  %v5678_v62 = vpop.permute.xlu1 %2544 }
 0x304   : > { %8563 = vst [vmem:[#allocation46_spill] sm:$0xff] %v5676_v61  ;;  %8564 = vst [vmem:[#allocation47_spill] sm:$0xff] %v5678_v62 }
 0x305   : > { %2097 = vrot.lane.b32.xlu1 %v5530_v40, %s8565_s18  ;;  %1152 = vrot.lane.b32.xlu0 %v5470_v35, %s8528_s16 }
 0x307   : > { %v5684_v63 = vpop.permute.xlu0 %1150  ;;  %v5686_v1 = vpop.permute.xlu1 %2503 }
 0x308   : > { %8566 = vst [vmem:[#allocation48_spill] sm:$0xff] %v5684_v63  ;;  %8567 = vst [vmem:[#allocation49_spill] sm:$0xff] %v5686_v1 }
 0x309   : > { %1400 = vrot.lane.b32.xlu1 %v5530_v40, %s8568_s24  ;;  %1111 = vrot.lane.b32.xlu0 %v5470_v35, %s8529_s0 }
 0x30b   : > { %v5692_v2 = vpop.permute.xlu0 %1109  ;;  %v5694_v3 = vpop.permute.xlu1 %2462 }
 0x30c   : > { %8569 = vst [vmem:[#allocation50_spill] sm:$0xff] %v5692_v2  ;;  %8570 = vst [vmem:[#allocation51_spill] sm:$0xff] %v5694_v3 }
 0x30d   : > { %2056 = vrot.lane.b32.xlu1 %v5530_v40, %s8571_s10  ;;  %1070 = vrot.lane.b32.xlu0 %v5470_v35, %s8530_s1  ;;  %s8576_s1 = smov 61  }
 0x30f   : > { %v5700_v4 = vpop.permute.xlu0 %1068  ;;  %v5702_v5 = vpop.permute.xlu1 %990 }
 0x310   : > { %8572 = vst [vmem:[#allocation52_spill] sm:$0xff] %v5700_v4 }
 0x311   : > { %1359 = vrot.lane.b32.xlu1 %v5530_v40, %s8573_s8  ;;  %1029 = vrot.lane.b32.xlu0 %v5470_v35, %s8531_s2  ;;  %s8577_s2 = smov 27  }
 0x313   : > { %v5708_v6 = vpop.permute.xlu0 %1027  ;;  %v5710_v7 = vpop.permute.xlu1 %949 }
 0x314   : > { %8574 = vst [vmem:[#allocation53_spill] sm:$0xff] %v5708_v6 }
 0x315   : > { %2015 = vrot.lane.b32.xlu1 %v5530_v40, %s8575_s6  ;;  %1644 = vrot.lane.b32.xlu0 %v5470_v35, %s8532_s3  ;;  %s8579_s3 = smov 62  }
 0x317   : > { %v5716_v8 = vpop.permute.xlu0 %1642  ;;  %v5718_v9 = vpop.permute.xlu1 %908 }
 0x319   : > { %1974 = vrot.lane.b32.xlu1 %v5530_v40, %s8576_s1  ;;  %2300 = vrot.lane.b32.xlu0 %v5470_v35, %s8535_s4  ;;  %s8581_s4 = smov 28  }
 0x31b   : > { %v5724_v10 = vpop.permute.xlu0 %1601  ;;  %v5726_v11 = vpop.permute.xlu1 %867 }
 0x31d   : > { %2630 = vrot.lane.b32.xlu1 %v5530_v40, %s8577_s2  ;;  %1603 = vrot.lane.b32.xlu0 %v5470_v35, %s8538_s7  ;;  %s8583_s7 = smov 63  }
 0x31f   : > { %v5732_v12 = vpop.permute.xlu0 %1560  ;;  %v5734_v13 = vpop.permute.xlu1 %826 }
 0x320   : > { %8578 = vst [vmem:[#allocation54_spill] sm:$0xff] %v5734_v13 }
 0x321   : > { %1933 = vrot.lane.b32.xlu1 %v5530_v40, %s8579_s3  ;;  %2259 = vrot.lane.b32.xlu0 %v5470_v35, %s8541_s23  ;;  %s8585_s23 = smov 29  }
 0x323   : > { %v5740_v14 = vpop.permute.xlu0 %1519  ;;  %v5742_v15 = vpop.permute.xlu1 %785 }
 0x324   : > { %8580 = vst [vmem:[#allocation55_spill] sm:$0xff] %v5742_v15 }
 0x325   : > { %2589 = vrot.lane.b32.xlu1 %v5530_v40, %s8581_s4  ;;  %1562 = vrot.lane.b32.xlu0 %v5470_v35, %s8544_s28 }
 0x327   : > { %v5748_v16 = vpop.permute.xlu0 %1478  ;;  %v5750_v17 = vpop.permute.xlu1 %744 }
 0x328   : > { %8582 = vst [vmem:[#allocation56_spill] sm:$0xff] %v5750_v17 }
 0x329   : > { %2218 = vrot.lane.b32.xlu0 %v5470_v35, %s8547_s17  ;;  %1892 = vrot.lane.b32.xlu1 %v5530_v40, %s8583_s7  ;;  %s8588_s17 = smov 64  }
 0x32b   : > { %v5756_v18 = vpop.permute.xlu0 %1437  ;;  %v5758_v19 = vpop.permute.xlu1 %1318 }
 0x32c   : > { %8584 = vst [vmem:[#allocation57_spill] sm:$0xff] %v5758_v19  ;;  %v6166_v19 = vld [vmem:[#allocation2 + $0x8] sm:$0xff] }
 0x32d   : > { %1521 = vrot.lane.b32.xlu0 %v5470_v35, %s8550_s20  ;;  %2548 = vrot.lane.b32.xlu1 %v5530_v40, %s8585_s23  ;;  %s8591_s20 = smov 30  }
 0x32f   : > { %v5764_v20 = vpop.permute.xlu0 %1396  ;;  %v5766_v21 = vpop.permute.xlu1 %1277 }
 0x330   : > { %8586 = vst [vmem:[#allocation58_spill] sm:$0xff] %v5764_v20  ;;  %8587 = vst [vmem:[#allocation59_spill] sm:$0xff] %v5766_v21 }
 0x331   : > { %2177 = vrot.lane.b32.xlu0 %v5470_v35, %s8553_s11  ;;  %1851 = vrot.lane.b32.xlu1 %v5530_v40, %s8588_s17  ;;  %s8594_s11 = smov 74  }
 0x333   : > { %v5772_v22 = vpop.permute.xlu0 %1355  ;;  %v5774_v24 = vpop.permute.xlu1 %1236 }
 0x334   : > { %8589 = vst [vmem:[#allocation60_spill] sm:$0xff] %v5772_v22  ;;  %8590 = vst [vmem:[#allocation61_spill] sm:$0xff] %v5774_v24 }
 0x335   : > { %1480 = vrot.lane.b32.xlu0 %v5470_v35, %s8556_s27  ;;  %2507 = vrot.lane.b32.xlu1 %v5530_v40, %s8591_s20  ;;  %s8597_s27 = smov 31  }
 0x337   : > { %v5780_v25 = vpop.permute.xlu0 %1970  ;;  %v5782_v26 = vpop.permute.xlu1 %1195 }
 0x338   : > { %8592 = vst [vmem:[#allocation62_spill] sm:$0xff] %v5780_v25  ;;  %8593 = vst [vmem:[#allocation63_spill] sm:$0xff] %v5782_v26 }
 0x339   : > { %2136 = vrot.lane.b32.xlu0 %v5470_v35, %s8559_s9  ;;  %1810 = vrot.lane.b32.xlu1 %v5530_v40, %s8594_s11  ;;  %s8332_s9 = smov 75  }
 0x33b   : > { %v5788_v28 = vpop.permute.xlu0 %1929  ;;  %v5790_v29 = vpop.permute.xlu1 %1154 }
 0x33c   : > { %8595 = vst [vmem:[#allocation64_spill] sm:$0xff] %v5788_v28  ;;  %8596 = vst [vmem:[#allocation65_spill] sm:$0xff] %v5790_v29 }
 0x33d   : > { %1439 = vrot.lane.b32.xlu0 %v5470_v35, %s8562_s21  ;;  %2466 = vrot.lane.b32.xlu1 %v5530_v40, %s8597_s27 }
 0x33f   : > { %v5796_v31 = vpop.permute.xlu0 %1888  ;;  %v5798_v33 = vpop.permute.xlu1 %1113 }
 0x340   : > { %8598 = vst [vmem:[#allocation66_spill] sm:$0xff] %v5796_v31  ;;  %8599 = vst [vmem:[#allocation67_spill] sm:$0xff] %v5798_v33 }
 0x341   : > { %2095 = vrot.lane.b32.xlu0 %v5470_v35, %s8565_s18  ;;  %1769 = vrot.lane.b32.xlu1 %v5530_v40, %s8332_s9  ;;  %s8619_s9 = smov 110  }
 0x343   : > { %v5804_v34 = vpop.permute.xlu0 %1847  ;;  %v5806_v36 = vpop.permute.xlu1 %1072 }
 0x344   : > { %8600 = vst [vmem:[#allocation68_spill] sm:$0xff] %v5804_v34  ;;  %8601 = vst [vmem:[#allocation69_spill] sm:$0xff] %v5806_v36 }
 0x345   : > { %1398 = vrot.lane.b32.xlu0 %v5470_v35, %s8568_s24  ;;  %992 = vrot.lane.b32.xlu1 %v5808_v37, %s8533_s26 }
 0x347   : > { %v5814_v38 = vpop.permute.xlu0 %1806  ;;  %v5816_v39 = vpop.permute.xlu1 %1031 }
 0x348   : > { %8602 = vst [vmem:[#allocation70_spill] sm:$0xff] %v5814_v38  ;;  %8603 = vst [vmem:[#allocation71_spill] sm:$0xff] %v5816_v39 }
 0x349   : > { %2054 = vrot.lane.b32.xlu0 %v5470_v35, %s8571_s10  ;;  %951 = vrot.lane.b32.xlu1 %v5808_v37, %s8536_s5 }
 0x34b   : > { %v5822_v40 = vpop.permute.xlu0 %988  ;;  %v5824_v0 = vpop.permute.xlu1 %1646 }
 0x34d   : > { %1357 = vrot.lane.b32.xlu0 %v5470_v35, %s8573_s8  ;;  %910 = vrot.lane.b32.xlu1 %v5808_v37, %s8539_s19 }
 0x34f   : > { %v5830_v23 = vpop.permute.xlu0 %947  ;;  %v5832_v27 = vpop.permute.xlu1 %2302 }
 0x350   : > { %8604 = vst [vmem:[#allocation72_spill] sm:$0xff] %v5832_v27 }
 0x351   : > { %2013 = vrot.lane.b32.xlu0 %v5470_v35, %s8575_s6  ;;  %869 = vrot.lane.b32.xlu1 %v5808_v37, %s8520_s12 }
 0x353   : > { %v5838_v30 = vpop.permute.xlu0 %906  ;;  %v5840_v32 = vpop.permute.xlu1 %1605 }
 0x355   : > { %1972 = vrot.lane.b32.xlu0 %v5470_v35, %s8576_s1  ;;  %828 = vrot.lane.b32.xlu1 %v5808_v37, %s8521_s25 }
 0x357   : > { %v5846_v3 = vpop.permute.xlu0 %865  ;;  %v5848_v1 = vpop.permute.xlu1 %2261 }
 0x358   : > { %8605 = vst [vmem:[#allocation73_spill] sm:$0xff] %v5846_v3  ;;  %8606 = vst [vmem:[#allocation74_spill] sm:$0xff] %v5848_v1 }
 0x359   : > { %2628 = vrot.lane.b32.xlu0 %v5470_v35, %s8577_s2  ;;  %787 = vrot.lane.b32.xlu1 %v5808_v37, %s8522_s14 }
 0x35b   : > { %v5854_v62 = vpop.permute.xlu0 %824  ;;  %v5856_v60 = vpop.permute.xlu1 %1564 }
 0x35c   : > { %8607 = vst [vmem:[#allocation75_spill] sm:$0xff] %v5854_v62 }
 0x35d   : > { %1931 = vrot.lane.b32.xlu0 %v5470_v35, %s8579_s3  ;;  %746 = vrot.lane.b32.xlu1 %v5808_v37, %s8523_s22  ;;  %s8637_s22 = smov 46  }
 0x35f   : > { %v5862_v58 = vpop.permute.xlu0 %783  ;;  %v5864_v56 = vpop.permute.xlu1 %2220 }
 0x360   : > { %8608 = vst [vmem:[#allocation76_spill] sm:$0xff] %v5862_v58  ;;  %8609 = vst [vmem:[#allocation77_spill] sm:$0xff] %v5864_v56 }
 0x361   : > { %2587 = vrot.lane.b32.xlu0 %v5470_v35, %s8581_s4  ;;  %1320 = vrot.lane.b32.xlu1 %v5808_v37, %s8524_s13  ;;  %s8636_s13 = smov 91  }
 0x363   : > { %v5870_v54 = vpop.permute.xlu0 %742  ;;  %v5872_v52 = vpop.permute.xlu1 %1523 }
 0x364   : > { %8610 = vst [vmem:[#allocation78_spill] sm:$0xff] %v5870_v54 }
 0x365   : > { %1890 = vrot.lane.b32.xlu0 %v5470_v35, %s8583_s7  ;;  %1279 = vrot.lane.b32.xlu1 %v5808_v37, %s8525_s29  ;;  %s8633_s29 = smov 45  }
 0x367   : > { %v5878_v50 = vpop.permute.xlu0 %1316  ;;  %v5880_v48 = vpop.permute.xlu1 %2179 }
 0x368   : > { %8611 = vst [vmem:[#allocation79_spill] sm:$0xff] %v5878_v50  ;;  %8612 = vst [vmem:[#allocation80_spill] sm:$0xff] %v5880_v48 }
 0x369   : > { %2546 = vrot.lane.b32.xlu0 %v5470_v35, %s8585_s23  ;;  %1238 = vrot.lane.b32.xlu1 %v5808_v37, %s8526_s15  ;;  %s8627_s15 = smov 78  }
 0x36b   : > { %v5886_v46 = vpop.permute.xlu0 %1275  ;;  %v5888_v56 = vpop.permute.xlu1 %1482 }
 0x36c   : > { %8613 = vst [vmem:[#allocation81_spill] sm:$0xff] %v5886_v46 }
 0x36d   : > { %1849 = vrot.lane.b32.xlu0 %v5470_v35, %s8588_s17  ;;  %1197 = vrot.lane.b32.xlu1 %v5808_v37, %s8527_s30  ;;  %s8623_s30 = smov 111  }
 0x36f   : > { %v5894_v44 = vpop.permute.xlu0 %1234  ;;  %v5896_v1 = vpop.permute.xlu1 %2138 }
 0x370   : > { %8614 = vst [vmem:[#allocation82_spill] sm:$0xff] %v5894_v44  ;;  %8615 = vst [vmem:[#allocation83_spill] sm:$0xff] %v5896_v1 }
 0x371   : > { %2505 = vrot.lane.b32.xlu0 %v5470_v35, %s8591_s20  ;;  %1156 = vrot.lane.b32.xlu1 %v5808_v37, %s8528_s16  ;;  %s8622_s16 = smov 75  }
 0x373   : > { %v5902_v48 = vpop.permute.xlu0 %1193  ;;  %v5904_v42 = vpop.permute.xlu1 %1441 }
 0x374   : > { %8616 = vst [vmem:[#allocation84_spill] sm:$0xff] %v5902_v48 }
 0x375   : > { %1808 = vrot.lane.b32.xlu0 %v5470_v35, %s8594_s11  ;;  %1115 = vrot.lane.b32.xlu1 %v5808_v37, %s8529_s0  ;;  %s8626_s0 = smov 79  }
 0x377   : > { %v5910_v27 = vpop.permute.xlu0 %1152  ;;  %v5912_v6 = vpop.permute.xlu1 %2097 }
 0x378   : > { %8617 = vst [vmem:[#allocation85_spill] sm:$0xff] %v5910_v27  ;;  %8618 = vst [vmem:[#allocation86_spill] sm:$0xff] %v5912_v6 }
 0x379   : > { %2464 = vrot.lane.b32.xlu0 %v5470_v35, %s8597_s27  ;;  %1074 = vrot.lane.b32.xlu1 %v5808_v37, %s8619_s9  ;;  %s8630_s9 = smov 44  }
 0x37b   : > { %v5918_v1 = vpop.permute.xlu0 %1111  ;;  %v5920_v39 = vpop.permute.xlu1 %1400 }
 0x37c   : > { %8620 = vst [vmem:[#allocation87_spill] sm:$0xff] %v5918_v1  ;;  %8621 = vst [vmem:[#allocation88_spill] sm:$0xff] %v5920_v39  ;;  %v6416_v39 = vld [vmem:[#allocation2 + $0x10] sm:$0xff] }
 0x37d   : > { %1767 = vrot.lane.b32.xlu0 %v5470_v35, %s8622_s16  ;;  %1033 = vrot.lane.b32.xlu1 %v5808_v37, %s8623_s30  ;;  %s8632_s30 = smov 90  }
 0x37f   : > { %v5926_v38 = vpop.permute.xlu0 %1070  ;;  %v5928_v4 = vpop.permute.xlu1 %2056 }
 0x380   : > { %8624 = vst [vmem:[#allocation89_spill] sm:$0xff] %v5926_v38  ;;  %8625 = vst [vmem:[#allocation90_spill] sm:$0xff] %v5928_v4 }
 0x381   : > { %1607 = vrot.lane.b32.xlu0 %v5808_v37, %s8626_s0  ;;  %1648 = vrot.lane.b32.xlu1 %v5808_v37, %s8627_s15 }
 0x383   : > { %v5934_v6 = vpop.permute.xlu0 %1029  ;;  %v5936_v36 = vpop.permute.xlu1 %1359 }
 0x384   : > { %8628 = vst [vmem:[#allocation91_spill] sm:$0xff] %v5934_v6  ;;  %8629 = vst [vmem:[#allocation92_spill] sm:$0xff] %v5936_v36 }
 0x385   : > { %1566 = vrot.lane.b32.xlu0 %v5808_v37, %s8544_s28  ;;  %2304 = vrot.lane.b32.xlu1 %v5808_v37, %s8630_s9 }
 0x387   : > { %v5942_v35 = vpop.permute.xlu0 %1644  ;;  %v5944_v38 = vpop.permute.xlu1 %2015 }
 0x388   : > { %8631 = vst [vmem:[#allocation93_spill] sm:$0xff] %v5944_v38 }
 0x389   : > { %1525 = vrot.lane.b32.xlu0 %v5808_v37, %s8632_s30  ;;  %2263 = vrot.lane.b32.xlu1 %v5808_v37, %s8633_s29  ;;  %s8639_s30 = smov 47  }
 0x38b   : > { %v5950_v4 = vpop.permute.xlu0 %2300  ;;  %v5952_v6 = vpop.permute.xlu1 %1974 }
 0x38c   : > { %8634 = vst [vmem:[#allocation94_spill] sm:$0xff] %v5950_v4  ;;  %8635 = vst [vmem:[#allocation95_spill] sm:$0xff] %v5952_v6  ;;  %v6192_v6 = vld [vmem:[#allocation2 + $0x20] sm:$0xff] }
 0x38d   : > { %1484 = vrot.lane.b32.xlu0 %v5808_v37, %s8636_s13  ;;  %2222 = vrot.lane.b32.xlu1 %v5808_v37, %s8637_s22  ;;  %s8642_s13 = smov 48  }
 0x38f   : > { %v5958_v2 = vpop.permute.xlu0 %1603  ;;  %v5960_v1 = vpop.permute.xlu1 %2630 }
 0x390   : > { %8638 = vst [vmem:[#allocation96_spill] sm:$0xff] %v5960_v1 }
 0x391   : > { %1443 = vrot.lane.b32.xlu0 %v5808_v37, %s8562_s21  ;;  %2181 = vrot.lane.b32.xlu1 %v5808_v37, %s8639_s30 }
 0x393   : > { %v5966_v38 = vpop.permute.xlu0 %2259  ;;  %v5968_v4 = vpop.permute.xlu1 %1933 }
 0x394   : > { %8640 = vst [vmem:[#allocation97_spill] sm:$0xff] %v5966_v38  ;;  %8641 = vst [vmem:[#allocation98_spill] sm:$0xff] %v5968_v4 }
 0x395   : > { %1402 = vrot.lane.b32.xlu0 %v5808_v37, %s8568_s24  ;;  %2140 = vrot.lane.b32.xlu1 %v5808_v37, %s8642_s13 }
 0x397   : > { %v5974_v33 = vpop.permute.xlu0 %1562  ;;  %v5976_v34 = vpop.permute.xlu1 %2589 }
 0x398   : > { %8643 = vst [vmem:[#allocation99_spill] sm:$0xff] %v5976_v34 }
 0x399   : > { %1361 = vrot.lane.b32.xlu0 %v5808_v37, %s8573_s8  ;;  %2099 = vrot.lane.b32.xlu1 %v5808_v37, %s8565_s18 }
 0x39b   : > { %v5982_v1 = vpop.permute.xlu0 %2218  ;;  %v5984_v38 = vpop.permute.xlu1 %1892 }
 0x39c   : > { %8644 = vst [vmem:[#allocation100_spill] sm:$0xff] %v5982_v1  ;;  %8645 = vst [vmem:[#allocation101_spill] sm:$0xff] %v5984_v38 }
 0x39d   : > { %1976 = vrot.lane.b32.xlu0 %v5808_v37, %s8576_s1  ;;  %2058 = vrot.lane.b32.xlu1 %v5808_v37, %s8571_s10 }
 0x39f   : > { %v5990_v63 = vpop.permute.xlu0 %1521  ;;  %v5992_v27 = vpop.permute.xlu1 %2548 }
 0x3a0   : > { %8646 = vst [vmem:[#allocation102_spill] sm:$0xff] %v5992_v27 }
 0x3a1   : > { %1935 = vrot.lane.b32.xlu0 %v5808_v37, %s8579_s3  ;;  %2017 = vrot.lane.b32.xlu1 %v5808_v37, %s8575_s6 }
 0x3a3   : > { %v5998_v34 = vpop.permute.xlu0 %2177  ;;  %v6000_v1 = vpop.permute.xlu1 %1851 }
 0x3a4   : > { %8647 = vst [vmem:[#allocation103_spill] sm:$0xff] %v5998_v34  ;;  %8648 = vst [vmem:[#allocation104_spill] sm:$0xff] %v6000_v1 }
 0x3a5   : > { %1894 = vrot.lane.b32.xlu0 %v5808_v37, %s8583_s7  ;;  %2632 = vrot.lane.b32.xlu1 %v5808_v37, %s8577_s2 }
 0x3a7   : > { %v6006_v29 = vpop.permute.xlu0 %1480  ;;  %v6008_v61 = vpop.permute.xlu1 %2507 }
 0x3a8   : > { %8649 = vst [vmem:[#allocation105_spill] sm:$0xff] %v6008_v61 }
 0x3a9   : > { %1853 = vrot.lane.b32.xlu0 %v5808_v37, %s8588_s17  ;;  %2591 = vrot.lane.b32.xlu1 %v5808_v37, %s8581_s4 }
 0x3ab   : > { %v6014_v27 = vpop.permute.xlu0 %2136  ;;  %v6016_v34 = vpop.permute.xlu1 %1810 }
 0x3ac   : > { %8650 = vst [vmem:[#allocation106_spill] sm:$0xff] %v6014_v27  ;;  %8651 = vst [vmem:[#allocation107_spill] sm:$0xff] %v6016_v34  ;;  %v6034_v34 = vld [vmem:[#allocation2 + $0x28] sm:$0xff] }
 0x3ad   : > { %1812 = vrot.lane.b32.xlu0 %v5808_v37, %s8594_s11  ;;  %2550 = vrot.lane.b32.xlu1 %v5808_v37, %s8585_s23 }
 0x3af   : > { %v6022_v1 = vpop.permute.xlu0 %1439  ;;  %v6024_v48 = vpop.permute.xlu1 %2466 }
 0x3b0   : > { %8652 = vst [vmem:[#allocation108_spill] sm:$0xff] %v6024_v48 }
 0x3b1   : > { %1771 = vrot.lane.b32.xlu0 %v5808_v37, %s8622_s16  ;;  %2509 = vrot.lane.b32.xlu1 %v5808_v37, %s8591_s20 }
 0x3b3   : > { %v6030_v61 = vpop.permute.xlu0 %2095  ;;  %v6032_v27 = vpop.permute.xlu1 %1769 }
 0x3b4   : > { %8653 = vst [vmem:[#allocation109_spill] sm:$0xff] %v6030_v61  ;;  %8654 = vst [vmem:[#allocation110_spill] sm:$0xff] %v6032_v27 }
 0x3b5   : > { %996 = vrot.lane.b32.xlu0 %v6034_v34, %s8533_s26  ;;  %2468 = vrot.lane.b32.xlu1 %v5808_v37, %s8597_s27 }
 0x3b7   : > { %v6040_v26 = vpop.permute.xlu0 %1398  ;;  %v6042_v48 = vpop.permute.xlu1 %992 }
 0x3b8   : > { %8655 = vst [vmem:[#allocation111_spill] sm:$0xff] %v6040_v26 }
 0x3b9   : > { %955 = vrot.lane.b32.xlu0 %v6034_v34, %s8536_s5  ;;  %1652 = vrot.lane.b32.xlu1 %v6034_v34, %s8627_s15  ;;  %s8677_s5 = smov 107  }
 0x3bb   : > { %v6048_v61 = vpop.permute.xlu0 %2054  ;;  %v6050_v27 = vpop.permute.xlu1 %951 }
 0x3bc   : > { %8656 = vst [vmem:[#allocation112_spill] sm:$0xff] %v6048_v61 }
 0x3bd   : > { %914 = vrot.lane.b32.xlu0 %v6034_v34, %s8539_s19  ;;  %2308 = vrot.lane.b32.xlu1 %v6034_v34, %s8630_s9  ;;  %s8670_s19 = smov 96  }
 0x3bf   : > { %v6056_v31 = vpop.permute.xlu0 %1357  ;;  %v6058_v38 = vpop.permute.xlu1 %910 }
 0x3c0   : > { %8657 = vst [vmem:[#allocation113_spill] sm:$0xff] %v6056_v31 }
 0x3c1   : > { %873 = vrot.lane.b32.xlu0 %v6034_v34, %s8520_s12  ;;  %1611 = vrot.lane.b32.xlu1 %v6034_v34, %s8626_s0  ;;  %s8663_s12 = smov 127  }
 0x3c3   : > { %v6064_v59 = vpop.permute.xlu0 %2013  ;;  %v6066_v61 = vpop.permute.xlu1 %869 }
 0x3c4   : > { %8658 = vst [vmem:[#allocation114_spill] sm:$0xff] %v6064_v59 }
 0x3c5   : > { %832 = vrot.lane.b32.xlu0 %v6034_v34, %s8521_s25  ;;  %2267 = vrot.lane.b32.xlu1 %v6034_v34, %s8633_s29  ;;  %s8666_s25 = smov 95  }
 0x3c7   : > { %v6072_v44 = vpop.permute.xlu0 %1972  ;;  %v6074_v24 = vpop.permute.xlu1 %828 }
 0x3c8   : > { %8659 = vst [vmem:[#allocation115_spill] sm:$0xff] %v6072_v44  ;;  %8660 = vst [vmem:[#allocation116_spill] sm:$0xff] %v6074_v24 }
 0x3c9   : > { %791 = vrot.lane.b32.xlu0 %v6034_v34, %s8522_s14  ;;  %1570 = vrot.lane.b32.xlu1 %v6034_v34, %s8544_s28  ;;  %s8667_s14 = smov 90  }
 0x3cb   : > { %v6080_v57 = vpop.permute.xlu0 %2628  ;;  %v6082_v59 = vpop.permute.xlu1 %787 }
 0x3cc   : > { %8661 = vst [vmem:[#allocation117_spill] sm:$0xff] %v6080_v57  ;;  %8662 = vst [vmem:[#allocation118_spill] sm:$0xff] %v6082_v59 }
 0x3cd   : > { %750 = vrot.lane.b32.xlu0 %v6034_v34, %s8663_s12  ;;  %2226 = vrot.lane.b32.xlu1 %v6034_v34, %s8637_s22  ;;  %s8673_s12 = smov 106  }
 0x3cf   : > { %v6088_v46 = vpop.permute.xlu0 %1931  ;;  %v6090_v21 = vpop.permute.xlu1 %746 }
 0x3d0   : > { %8664 = vst [vmem:[#allocation119_spill] sm:$0xff] %v6088_v46  ;;  %8665 = vst [vmem:[#allocation120_spill] sm:$0xff] %v6090_v21 }
 0x3d1   : > { %1324 = vrot.lane.b32.xlu0 %v6034_v34, %s8666_s25  ;;  %1529 = vrot.lane.b32.xlu1 %v6034_v34, %s8667_s14  ;;  %s8674_s25 = smov 91  }
 0x3d3   : > { %v6096_v28 = vpop.permute.xlu0 %2587  ;;  %v6098_v57 = vpop.permute.xlu1 %1320 }
 0x3d4   : > { %8668 = vst [vmem:[#allocation121_spill] sm:$0xff] %v6096_v28  ;;  %8669 = vst [vmem:[#allocation122_spill] sm:$0xff] %v6098_v57 }
 0x3d5   : > { %1283 = vrot.lane.b32.xlu0 %v6034_v34, %s8670_s19  ;;  %2185 = vrot.lane.b32.xlu1 %v6034_v34, %s8639_s30  ;;  %s8680_s19 = smov 108  }
 0x3d7   : > { %v6104_v4 = vpop.permute.xlu0 %1890  ;;  %v6106_v46 = vpop.permute.xlu1 %1279 }
 0x3d8   : > { %8671 = vst [vmem:[#allocation123_spill] sm:$0xff] %v6104_v4  ;;  %8672 = vst [vmem:[#allocation124_spill] sm:$0xff] %v6106_v46 }
 0x3d9   : > { %1242 = vrot.lane.b32.xlu0 %v6034_v34, %s8673_s12  ;;  %1488 = vrot.lane.b32.xlu1 %v6034_v34, %s8674_s25  ;;  %s8683_s12 = smov 109  }
 0x3db   : > { %v6112_v55 = vpop.permute.xlu0 %2546  ;;  %v6114_v28 = vpop.permute.xlu1 %1238 }
 0x3dc   : > { %8675 = vst [vmem:[#allocation125_spill] sm:$0xff] %v6112_v55  ;;  %8676 = vst [vmem:[#allocation126_spill] sm:$0xff] %v6114_v28 }
 0x3dd   : > { %1201 = vrot.lane.b32.xlu0 %v6034_v34, %s8677_s5  ;;  %2144 = vrot.lane.b32.xlu1 %v6034_v34, %s8642_s13  ;;  %s8686_s5 = smov 110  }
 0x3df   : > { %v6120_v50 = vpop.permute.xlu0 %1849  ;;  %v6122_v4 = vpop.permute.xlu1 %1197 }
 0x3e0   : > { %8678 = vst [vmem:[#allocation127_spill] sm:$0xff] %v6120_v50  ;;  %8679 = vst [vmem:[#allocation128_spill] sm:$0xff] %v6122_v4 }
 0x3e1   : > { %1160 = vrot.lane.b32.xlu0 %v6034_v34, %s8680_s19  ;;  %1447 = vrot.lane.b32.xlu1 %v6034_v34, %s8562_s21  ;;  %s8689_s19 = smov 111  }
 0x3e3   : > { %v6128_v46 = vpop.permute.xlu0 %2505  ;;  %v6130_v55 = vpop.permute.xlu1 %1156 }
 0x3e4   : > { %8681 = vst [vmem:[#allocation129_spill] sm:$0xff] %v6128_v46  ;;  %8682 = vst [vmem:[#allocation130_spill] sm:$0xff] %v6130_v55 }
 0x3e5   : > { %1119 = vrot.lane.b32.xlu0 %v6034_v34, %s8683_s12  ;;  %2103 = vrot.lane.b32.xlu1 %v6034_v34, %s8565_s18 }
 0x3e7   : > { %v6136_v28 = vpop.permute.xlu0 %1808  ;;  %v6138_v50 = vpop.permute.xlu1 %1115 }
 0x3e8   : > { %8684 = vst [vmem:[#allocation131_spill] sm:$0xff] %v6136_v28  ;;  %8685 = vst [vmem:[#allocation132_spill] sm:$0xff] %v6138_v50  ;;  %v6156_v50 = vld [vmem:[#allocation2] sm:$0xff] }
 0x3e9   : > { %1078 = vrot.lane.b32.xlu0 %v6034_v34, %s8686_s5  ;;  %1406 = vrot.lane.b32.xlu1 %v6034_v34, %s8568_s24  ;;  %s8375_s5 = smov 76  }
 0x3eb   : > { %v6144_v4 = vpop.permute.xlu0 %2464  ;;  %v6146_v46 = vpop.permute.xlu1 %1074 }
 0x3ec   : > { %8687 = vst [vmem:[#allocation133_spill] sm:$0xff] %v6144_v4  ;;  %8688 = vst [vmem:[#allocation134_spill] sm:$0xff] %v6146_v46 }
 0x3ed   : > { %1037 = vrot.lane.b32.xlu0 %v6034_v34, %s8689_s19  ;;  %2062 = vrot.lane.b32.xlu1 %v6034_v34, %s8571_s10  ;;  %s8377_s19 = smov 32  }
 0x3ef   : > { %v6152_v55 = vpop.permute.xlu0 %1767  ;;  %v6154_v28 = vpop.permute.xlu1 %1033 }
 0x3f0   : > { %8690 = vst [vmem:[#allocation135_spill] sm:$0xff] %v6152_v55  ;;  %8691 = vst [vmem:[#allocation136_spill] sm:$0xff] %v6154_v28 }
 0x3f1   : > { %1765 = vrot.lane.b32.xlu0 %v6156_v50, %s8622_s16  ;;  %1365 = vrot.lane.b32.xlu1 %v6034_v34, %s8573_s8 }
 0x3f3   : > { %v6162_v4 = vpop.permute.xlu0 %1607  ;;  %v6164_v46 = vpop.permute.xlu1 %1648 }
 0x3f5   : > { %2423 = vrot.lane.b32.xlu0 %v6166_v19, %s8377_s19  ;;  %2021 = vrot.lane.b32.xlu1 %v6034_v34, %s8575_s6  ;;  %s8713_s19 = smov 123  }
 0x3f7   : > { %v6172_v55 = vpop.permute.xlu0 %1566  ;;  %v6174_v28 = vpop.permute.xlu1 %2304 }
 0x3f8   : > { %8692 = vst [vmem:[#allocation137_spill] sm:$0xff] %v6174_v28 }
 0x3f9   : > { %1730 = vrot.lane.b32.xlu0 %v5808_v37, %s8375_s5  ;;  %1980 = vrot.lane.b32.xlu1 %v6034_v34, %s8576_s1 }
 0x3fb   : > { %v6180_v57 = vpop.permute.xlu0 %1525  ;;  %v6182_v25 = vpop.permute.xlu1 %2263 }
 0x3fc   : > { %8693 = vst [vmem:[#allocation138_spill] sm:$0xff] %v6182_v25 }
 0x3fd   : > { %1726 = vrot.lane.b32.xlu0 %v6166_v19, %s8375_s5  ;;  %2636 = vrot.lane.b32.xlu1 %v6034_v34, %s8577_s2  ;;  %s8712_s5 = smov 122  }
 0x3ff   : > { %v6188_v44 = vpop.permute.xlu0 %1484  ;;  %v6190_v28 = vpop.permute.xlu1 %2222 }
 0x400   : > { %8694 = vst [vmem:[#allocation139_spill] sm:$0xff] %v6190_v28 }
 0x401   : > { %1650 = vrot.lane.b32.xlu0 %v6192_v6, %s8627_s15  ;;  %1939 = vrot.lane.b32.xlu1 %v6034_v34, %s8579_s3 }
 0x403   : > { %v6198_v53 = vpop.permute.xlu0 %1443  ;;  %v6200_v25 = vpop.permute.xlu1 %2181 }
 0x404   : > { %8695 = vst [vmem:[#allocation140_spill] sm:$0xff] %v6200_v25 }
 0x405   : > { %2306 = vrot.lane.b32.xlu0 %v6192_v6, %s8630_s9  ;;  %2595 = vrot.lane.b32.xlu1 %v6034_v34, %s8581_s4  ;;  %s8731_s9 = smov 106  }
 0x407   : > { %v6206_v54 = vpop.permute.xlu0 %1402  ;;  %v6208_v28 = vpop.permute.xlu1 %2140 }
 0x408   : > { %8696 = vst [vmem:[#allocation141_spill] sm:$0xff] %v6208_v28 }
 0x409   : > { %1609 = vrot.lane.b32.xlu0 %v6192_v6, %s8626_s0  ;;  %1898 = vrot.lane.b32.xlu1 %v6034_v34, %s8583_s7 }
 0x40b   : > { %v6214_v17 = vpop.permute.xlu0 %1361  ;;  %v6216_v21 = vpop.permute.xlu1 %2099 }
 0x40c   : > { %8697 = vst [vmem:[#allocation142_spill] sm:$0xff] %v6214_v17  ;;  %8698 = vst [vmem:[#allocation143_spill] sm:$0xff] %v6216_v21 }
 0x40d   : > { %2265 = vrot.lane.b32.xlu0 %v6192_v6, %s8633_s29  ;;  %2554 = vrot.lane.b32.xlu1 %v6034_v34, %s8585_s23  ;;  %s8724_s29 = smov 32  }
 0x40f   : > { %v6222_v25 = vpop.permute.xlu0 %1976  ;;  %v6224_v51 = vpop.permute.xlu1 %2058 }
 0x410   : > { %8699 = vst [vmem:[#allocation144_spill] sm:$0xff] %v6222_v25  ;;  %8700 = vst [vmem:[#allocation145_spill] sm:$0xff] %v6224_v51 }
 0x411   : > { %1568 = vrot.lane.b32.xlu0 %v6192_v6, %s8544_s28  ;;  %1857 = vrot.lane.b32.xlu1 %v6034_v34, %s8588_s17 }
 0x413   : > { %v6230_v28 = vpop.permute.xlu0 %1935  ;;  %v6232_v58 = vpop.permute.xlu1 %2017 }
 0x414   : > { %8701 = vst [vmem:[#allocation146_spill] sm:$0xff] %v6230_v28  ;;  %8702 = vst [vmem:[#allocation147_spill] sm:$0xff] %v6232_v58 }
 0x415   : > { %2224 = vrot.lane.b32.xlu0 %v6192_v6, %s8637_s22  ;;  %2513 = vrot.lane.b32.xlu1 %v6034_v34, %s8591_s20  ;;  %s8729_s22 = smov 96  }
 0x417   : > { %v6238_v21 = vpop.permute.xlu0 %1894  ;;  %v6240_v25 = vpop.permute.xlu1 %2632 }
 0x418   : > { %8703 = vst [vmem:[#allocation148_spill] sm:$0xff] %v6238_v21  ;;  %8704 = vst [vmem:[#allocation149_spill] sm:$0xff] %v6240_v25 }
 0x419   : > { %1527 = vrot.lane.b32.xlu0 %v6192_v6, %s8667_s14  ;;  %1816 = vrot.lane.b32.xlu1 %v6034_v34, %s8594_s11 }
 0x41b   : > { %v6246_v51 = vpop.permute.xlu0 %1853  ;;  %v6248_v28 = vpop.permute.xlu1 %2591 }
 0x41c   : > { %8705 = vst [vmem:[#allocation150_spill] sm:$0xff] %v6246_v51  ;;  %8706 = vst [vmem:[#allocation151_spill] sm:$0xff] %v6248_v28 }
 0x41d   : > { %2183 = vrot.lane.b32.xlu0 %v6192_v6, %s8639_s30  ;;  %2472 = vrot.lane.b32.xlu1 %v6034_v34, %s8597_s27  ;;  %s8715_s30 = smov 124  }
 0x41f   : > { %v6254_v58 = vpop.permute.xlu0 %1812  ;;  %v6256_v21 = vpop.permute.xlu1 %2550 }
 0x420   : > { %8707 = vst [vmem:[#allocation152_spill] sm:$0xff] %v6254_v58  ;;  %8708 = vst [vmem:[#allocation153_spill] sm:$0xff] %v6256_v21 }
 0x421   : > { %1486 = vrot.lane.b32.xlu0 %v6192_v6, %s8674_s25  ;;  %1775 = vrot.lane.b32.xlu1 %v6034_v34, %s8622_s16 }
 0x423   : > { %v6262_v25 = vpop.permute.xlu0 %1771  ;;  %v6264_v51 = vpop.permute.xlu1 %2509 }
 0x424   : > { %8709 = vst [vmem:[#allocation154_spill] sm:$0xff] %v6262_v25  ;;  %8710 = vst [vmem:[#allocation155_spill] sm:$0xff] %v6264_v51 }
 0x425   : > { %2142 = vrot.lane.b32.xlu0 %v6192_v6, %s8642_s13  ;;  %994 = vrot.lane.b32.xlu1 %v6192_v6, %s8533_s26  ;;  %s8719_s13 = smov 126  }
 0x427   : > { %v6270_v28 = vpop.permute.xlu0 %996  ;;  %v6272_v58 = vpop.permute.xlu1 %2468 }
 0x428   : > { %8711 = vst [vmem:[#allocation156_spill] sm:$0xff] %v6272_v58 }
 0x429   : > { %1445 = vrot.lane.b32.xlu0 %v6192_v6, %s8562_s21  ;;  %953 = vrot.lane.b32.xlu1 %v6192_v6, %s8712_s5 }
 0x42b   : > { %v6278_v21 = vpop.permute.xlu0 %955  ;;  %v6280_v25 = vpop.permute.xlu1 %1652 }
 0x42d   : > { %2101 = vrot.lane.b32.xlu0 %v6192_v6, %s8565_s18  ;;  %912 = vrot.lane.b32.xlu1 %v6192_v6, %s8713_s19  ;;  %s8716_s18 = smov 125  }
 0x42f   : > { %v6286_v51 = vpop.permute.xlu0 %914  ;;  %v6288_v15 = vpop.permute.xlu1 %2308 }
 0x430   : > { %8714 = vst [vmem:[#allocation157_spill] sm:$0xff] %v6288_v15 }
 0x431   : > { %1404 = vrot.lane.b32.xlu0 %v6192_v6, %s8568_s24  ;;  %871 = vrot.lane.b32.xlu1 %v6192_v6, %s8715_s30 }
 0x433   : > { %v6294_v58 = vpop.permute.xlu0 %873  ;;  %v6296_v22 = vpop.permute.xlu1 %1611 }
 0x435   : > { %2060 = vrot.lane.b32.xlu0 %v6192_v6, %s8571_s10  ;;  %830 = vrot.lane.b32.xlu1 %v6192_v6, %s8716_s18  ;;  %s8721_s10 = smov 127  }
 0x437   : > { %v6302_v31 = vpop.permute.xlu0 %832  ;;  %v6304_v36 = vpop.permute.xlu1 %2267 }
 0x438   : > { %8717 = vst [vmem:[#allocation158_spill] sm:$0xff] %v6302_v31  ;;  %8718 = vst [vmem:[#allocation159_spill] sm:$0xff] %v6304_v36 }
 0x439   : > { %1363 = vrot.lane.b32.xlu0 %v6192_v6, %s8573_s8  ;;  %789 = vrot.lane.b32.xlu1 %v6192_v6, %s8719_s13  ;;  %s8744_s13 = smov 111  }
 0x43b   : > { %v6310_v15 = vpop.permute.xlu0 %791  ;;  %v6312_v49 = vpop.permute.xlu1 %1570 }
 0x43c   : > { %8720 = vst [vmem:[#allocation160_spill] sm:$0xff] %v6310_v15 }
 0x43d   : > { %2019 = vrot.lane.b32.xlu0 %v6192_v6, %s8575_s6  ;;  %748 = vrot.lane.b32.xlu1 %v6192_v6, %s8721_s10  ;;  %s8726_s6 = smov 95   ;;  %s8414_s10 = smov 43  }
 0x43f   : > { %v6318_v59 = vpop.permute.xlu0 %750  ;;  %v6320_v62 = vpop.permute.xlu1 %2226 }
 0x440   : > { %8722 = vst [vmem:[#allocation161_spill] sm:$0xff] %v6318_v59  ;;  %8723 = vst [vmem:[#allocation162_spill] sm:$0xff] %v6320_v62 }
 0x441   : > { %1978 = vrot.lane.b32.xlu0 %v6192_v6, %s8576_s1  ;;  %2431 = vrot.lane.b32.xlu1 %v6034_v34, %s8724_s29 }
 0x443   : > { %v6326_v36 = vpop.permute.xlu0 %1324  ;;  %v6328_v15 = vpop.permute.xlu1 %1529 }
 0x444   : > { %8725 = vst [vmem:[#allocation163_spill] sm:$0xff] %v6326_v36 }
 0x445   : > { %2634 = vrot.lane.b32.xlu0 %v6192_v6, %s8577_s2  ;;  %1322 = vrot.lane.b32.xlu1 %v6192_v6, %s8726_s6  ;;  %s8734_s2 = smov 107  }
 0x447   : > { %v6334_v13 = vpop.permute.xlu0 %1283  ;;  %v6336_v59 = vpop.permute.xlu1 %2185 }
 0x448   : > { %8727 = vst [vmem:[#allocation164_spill] sm:$0xff] %v6334_v13  ;;  %8728 = vst [vmem:[#allocation165_spill] sm:$0xff] %v6336_v59 }
 0x449   : > { %1937 = vrot.lane.b32.xlu0 %v6192_v6, %s8579_s3  ;;  %1281 = vrot.lane.b32.xlu1 %v6192_v6, %s8729_s22 }
 0x44b   : > { %v6342_v62 = vpop.permute.xlu0 %1242  ;;  %v6344_v36 = vpop.permute.xlu1 %1488 }
 0x44c   : > { %8730 = vst [vmem:[#allocation166_spill] sm:$0xff] %v6342_v62 }
 0x44d   : > { %2593 = vrot.lane.b32.xlu0 %v6192_v6, %s8581_s4  ;;  %1240 = vrot.lane.b32.xlu1 %v6192_v6, %s8731_s9  ;;  %s8736_s4 = smov 108  }
 0x44f   : > { %v6350_v17 = vpop.permute.xlu0 %1201  ;;  %v6352_v13 = vpop.permute.xlu1 %2144 }
 0x450   : > { %8732 = vst [vmem:[#allocation167_spill] sm:$0xff] %v6350_v17  ;;  %8733 = vst [vmem:[#allocation168_spill] sm:$0xff] %v6352_v13  ;;  %v6370_v13 = vld [vmem:[#allocation8] sm:$0xff] }
 0x451   : > { %1896 = vrot.lane.b32.xlu0 %v6192_v6, %s8583_s7  ;;  %1199 = vrot.lane.b32.xlu1 %v6192_v6, %s8734_s2  ;;  %8739 = vst [vmem:[#allocation172_spill] sm:$0xff] %v6370_v13  ;;  %v2906_v20 = vcombine.high %v6370_v13, %v6370_v13 }
 0x453   : > { %v6358_v59 = vpop.permute.xlu0 %1160  ;;  %v6360_v62 = vpop.permute.xlu1 %1447  ;;  %2978 = vmatprep.mubr.f32.mxu1 %v2906_v20 }
 0x454   : > { %8735 = vst [vmem:[#allocation169_spill] sm:$0xff] %v6358_v59 }
 0x455   : > { %2552 = vrot.lane.b32.xlu0 %v6192_v6, %s8585_s23  ;;  %1158 = vrot.lane.b32.xlu1 %v6192_v6, %s8736_s4  ;;  %s8741_s23 = smov 110  }
 0x457   : > { %v6366_v24 = vpop.permute.xlu0 %1119  ;;  %v6368_v17 = vpop.permute.xlu1 %2103 }
 0x458   : > { %8737 = vst [vmem:[#allocation170_spill] sm:$0xff] %v6366_v24  ;;  %8738 = vst [vmem:[#allocation171_spill] sm:$0xff] %v6368_v17  ;;  %v622_v24 = vlaneseq }
 0x459   : > { %1855 = vrot.lane.b32.xlu0 %v6192_v6, %s8588_s17  ;;  %1117 = vrot.lane.b32.xlu1 %v6192_v6, %s8683_s12 }
 0x45a   : > { %v623_v31 = vand.u32 127, %v622_v24 }
 0x45b   : > { %v6378_v59 = vpop.permute.xlu0 %1078  ;;  %v6380_v47 = vpop.permute.xlu1 %1406 }
 0x45c   : > { %8740 = vst [vmem:[#allocation173_spill] sm:$0xff] %v6378_v59  ;;  %v624_v26 = vadd.s32 128, %v623_v31 }
 0x45d   : > { %2511 = vrot.lane.b32.xlu0 %v6192_v6, %s8591_s20  ;;  %1076 = vrot.lane.b32.xlu1 %v6192_v6, %s8741_s23  ;;  %s8749_s20 = smov 76  }
 0x45f   : > { %v6386_v17 = vpop.permute.xlu0 %1037  ;;  %v6388_v13 = vpop.permute.xlu1 %2062 }
 0x460   : > { %8742 = vst [vmem:[#allocation174_spill] sm:$0xff] %v6386_v17  ;;  %8743 = vst [vmem:[#allocation175_spill] sm:$0xff] %v6388_v13 }
 0x461   : > { %1814 = vrot.lane.b32.xlu0 %v6192_v6, %s8594_s11  ;;  %1035 = vrot.lane.b32.xlu1 %v6192_v6, %s8744_s13 }
 0x463   : > { %v6394_v20 = vpop.permute.xlu0 %1765  ;;  %v6396_v59 = vpop.permute.xlu1 %1365 }
 0x464   : > { %8745 = vst [vmem:[#allocation176_spill] sm:$0xff] %v6394_v20  ;;  %8746 = vst [vmem:[#allocation177_spill] sm:$0xff] %v6396_v59  ;;  %v6414_v59 = vand.u32 15, %v624_v26 }
 0x465   : > { %2470 = vrot.lane.b32.xlu0 %v6192_v6, %s8597_s27  ;;  %2427 = vrot.lane.b32.xlu1 %v5808_v37, %s8724_s29  ;;  %v6418_v37 = vand.u32 15, %v623_v31  ;;  %s8404_s27 = smov 42  }
 0x467   : > { %v6402_v17 = vpop.permute.xlu0 %2423  ;;  %v6404_v13 = vpop.permute.xlu1 %2021  ;;  %v6432_v26 = vadd.s32 4294967295, %v6418_v37  ;;  %v6465_v3 = vadd.s32 4294967294, %v6418_v37 }
 0x468   : > { %8747 = vst [vmem:[#allocation178_spill] sm:$0xff] %v6402_v17  ;;  %8748 = vst [vmem:[#allocation179_spill] sm:$0xff] %v6404_v13 }
 0x469   : > { %1773 = vrot.lane.b32.xlu0 %v6192_v6, %s8622_s16  ;;  %1734 = vrot.lane.b32.xlu1 %v6034_v34, %s8749_s20  ;;  %vm680_vm8 = vcmp.ge.s32.totalorder %v6432_v26, 0  ;;  %vm672_vm11 = vcmp.ge.s32.totalorder %v6465_v3, 0 }
 0x46b   : > { %v6410_v20 = vpop.permute.xlu0 %1730  ;;  %v6412_v24 = vpop.permute.xlu1 %1980 }
 0x46c   : > { %8750 = vst [vmem:[#allocation180_spill] sm:$0xff] %v6410_v20  ;;  %8751 = vst [vmem:[#allocation181_spill] sm:$0xff] %v6412_v24  ;;  %v6429_v20 = vadd.s32 4294967295, %v6414_v59 }
 0x46d   : > { %2429 = vrot.lane.b32.xlu0 %v6192_v6, %s8724_s29  ;;  %2425 = vrot.lane.b32.xlu1 %v6416_v39, %s8724_s29 }
 0x46e   : > { %vm681_vm7 = vcmp.ge.s32.totalorder %v6429_v20, 0 }
 0x46f   : > { %v6424_v17 = vpop.permute.xlu0 %1726  ;;  %v6426_v13 = vpop.permute.xlu1 %2636 }
 0x470   : > { %8752 = vst [vmem:[#allocation182_spill] sm:$0xff] %v6424_v17  ;;  %8753 = vst [vmem:[#allocation183_spill] sm:$0xff] %v6426_v13 }
 0x471   : > { %1732 = vrot.lane.b32.xlu0 %v6192_v6, %s8749_s20  ;;  %2421 = vrot.lane.b32.xlu1 %v6156_v50, %s8724_s29  ;;  %s8418_s29 = smov 77  }
 0x473   : > { %v1651_v31 = vpop.permute.xlu0 %1650  ;;  %v6438_v24 = vpop.permute.xlu1 %1939 }
 0x474   : > { %8754 = vst [vmem:[#allocation184_spill] sm:$0xff] %v6438_v24  ;;  %v1657_v13 = vsel %vm8408_vm6, %v6164_v46, %v1651_v31  ;;  %v1658_v17 = vsel %vm8408_vm6, %v1651_v31, %v6280_v25  ;;  %v6453_v24 = vadd.s32 4294967294, %v6414_v59  ;;  %v1656_v25 = vsel %vm8408_vm6, %v5942_v35, %v5824_v0 }
 0x475   : > { %2388 = vrot.lane.b32.xlu0 %v6192_v6, %s8404_s27  ;;  %1728 = vrot.lane.b32.xlu1 %v6416_v39, %s8749_s20 }
 0x476   : > { %4788 = vmatprep.subr.msk.mxu0 %vm681_vm7, %v1658_v17  ;;  %v1655_v17 = vsel %vm8408_vm6, %v5716_v8, %v5942_v35  ;;  %vm673_vm9 = vcmp.ge.s32.totalorder %v6453_v24, 0 }
 0x477   : > { %4789 = vmatpush1.msk.msra.mxu0 %vm680_vm8, %v1657_v13  ;;  %v6457_v46 = vpop.permute.xlu0 %2306  ;;  %v6462_v31 = vpop.permute.xlu1 %2595 }
 0x478   : > { %4790 = vmatprep.subr.msk.mxu0 %vm681_vm7, %v1656_v25  ;;  %v6488_v25 = vld [vmem:[#allocation2 + $0x18] sm:$0xff] }
 0x479   : > { %4791 = vmatpush1.msk.msra.mxu0 %vm680_vm8, %v1655_v17  ;;  %1724 = vrot.lane.b32.xlu0 %v6156_v50, %s8749_s20  ;;  %v1614_v17 = vsel %vm8402_vm10, %v5724_v10, %v5958_v2 }
 0x47a   : > { %2390 = vrot.lane.b32.xlu1 %v6034_v34, %s8404_s27 }
 0x47b   : > { %v1610_v0 = vpop.permute.xlu0 %1609  ;;  %v6479_v13 = vpop.permute.xlu1 %1898 }
 0x47c   : > { %v1616_v8 = vsel %vm8402_vm10, %v6162_v4, %v1610_v0  ;;  %v1617_v35 = vsel %vm8402_vm10, %v1610_v0, %v6296_v22  ;;  %v1615_v4 = vsel %vm8402_vm10, %v5958_v2, %v5840_v32  ;;  %v6500_v22 = vadd.s32 4294967293, %v6414_v59 }
 0x47d   : > { %1691 = vrot.lane.b32.xlu0 %v6192_v6, %s8418_s29  ;;  %4792 = vmatprep.subr.msk.mxu0 %vm673_vm9, %v1617_v35 }
 0x47e   : > { %2386 = vrot.lane.b32.xlu1 %v6488_v25, %s8404_s27  ;;  %4793 = vmatpush1.msk.msra.mxu0 %vm672_vm11, %v1616_v8  ;;  %v6512_v8 = vadd.s32 4294967293, %v6418_v37  ;;  %vm665_vm12 = vcmp.ge.s32.totalorder %v6500_v22, 0 }
 0x47f   : > { %v6505_v0 = vpop.permute.xlu0 %2265  ;;  %4794 = vmatprep.subr.msk.mxu0 %vm673_vm9, %v1615_v4  ;;  %v6509_v35 = vpop.permute.xlu1 %2554 }
 0x480   : > { %8755 = vst [vmem:[#allocation185_spill] sm:$0xff] %v6509_v35  ;;  %4795 = vmatpush1.msk.msra.mxu0 %vm672_vm11, %v1614_v17  ;;  %vm664_vm14 = vcmp.ge.s32.totalorder %v6512_v8, 0  ;;  %v6528_v17 = vld [vmem:[#allocation8 + $0x8] sm:$0xff] }
 0x481   : > { %2382 = vrot.lane.b32.xlu0 %v6166_v19, %s8404_s27  ;;  %8756 = vst [vmem:[#allocation186_spill] sm:$0xff] %v6528_v17  ;;  %v2907_v35 = vcombine.high %v6528_v17, %v6528_v17 }
 0x482   : > { %1693 = vrot.lane.b32.xlu1 %v6034_v34, %s8418_s29 }
 0x483   : > { %v1569_v32 = vpop.permute.xlu0 %1568  ;;  %v6521_v2 = vpop.permute.xlu1 %1857  ;;  %3049 = vmatprep.mubr.f32.mxu0 %v2907_v35 }
 0x484   : > { %v1575_v10 = vsel %vm8403_vm13, %v6172_v55, %v1569_v32  ;;  %v1576_v4 = vsel %vm8403_vm13, %v1569_v32, %v6312_v49  ;;  %v1574_v49 = vsel %vm8403_vm13, %v5974_v33, %v5856_v60  ;;  %v6544_v55 = vadd.s32 3, %v6414_v59 }
 0x485   : > { %1689 = vrot.lane.b32.xlu0 %v6488_v25, %s8418_s29  ;;  %4796 = vmatprep.subr.msk.mxu0 %vm665_vm12, %v1576_v4  ;;  %v1573_v32 = vsel %vm8403_vm13, %v5732_v12, %v5974_v33  ;;  %vm8410_vm13 = vcmask 916480  }
 0x486   : > { %2384 = vrot.lane.b32.xlu1 %v6416_v39, %s8404_s27  ;;  %4797 = vmatpush1.msk.msra.mxu0 %vm664_vm14, %v1575_v10  ;;  %v6556_v10 = vadd.s32 3, %v6418_v37  ;;  %vm713_vm15 = vcmp.lt.s32.totalorder %v6544_v55, 16 }
 0x487   : > { %v6549_v4 = vpop.permute.xlu0 %2224  ;;  %4798 = vmatprep.subr.msk.mxu0 %vm665_vm12, %v1574_v49  ;;  %v6553_v17 = vpop.permute.xlu1 %2513  ;;  %v6584_v49 = vadd.s32 2, %v6414_v59 }
 0x488   : > { %4799 = vmatpush1.msk.msra.mxu0 %vm664_vm14, %v1573_v32  ;;  %vm712_vm3 = vcmp.lt.s32.totalorder %v6556_v10, 16 }
 0x489   : > { %1685 = vrot.lane.b32.xlu0 %v6166_v19, %s8418_s29  ;;  %vm705_vm4 = vcmp.lt.s32.totalorder %v6584_v49, 16 }
 0x48a   : > { %2380 = vrot.lane.b32.xlu1 %v6156_v50, %s8404_s27  ;;  %s8416_s27 = smov 26  }
 0x48b   : > { %v1528_v60 = vpop.permute.xlu0 %1527  ;;  %v6565_v12 = vpop.permute.xlu1 %1816 }
 0x48c   : > { %v1534_v33 = vsel %vm8406_vm2, %v6180_v57, %v1528_v60  ;;  %v1535_v35 = vsel %vm8406_vm2, %v1528_v60, %v6328_v15  ;;  %v1533_v57 = vsel %vm8406_vm2, %v5990_v63, %v5872_v52  ;;  %v1532_v15 = vsel %vm8406_vm2, %v5740_v14, %v5990_v63 }
 0x48d   : > { %2347 = vrot.lane.b32.xlu0 %v6192_v6, %s8414_s10  ;;  %4800 = vmatprep.subr.msk.mxu0 %vm713_vm15, %v1535_v35  ;;  %vm8411_vm2 = vcmask 998400  }
 0x48e   : > { %1687 = vrot.lane.b32.xlu1 %v6416_v39, %s8418_s29  ;;  %4801 = vmatpush1.msk.msra.mxu0 %vm712_vm3, %v1534_v33  ;;  %v6596_v33 = vadd.s32 2, %v6418_v37 }
 0x48f   : > { %v6589_v32 = vpop.permute.xlu0 %2183  ;;  %4802 = vmatprep.subr.msk.mxu0 %vm713_vm15, %v1533_v57  ;;  %v6593_v60 = vpop.permute.xlu1 %2472  ;;  %v1492_v57 = vsel %vm8407_vm1, %v6006_v29, %v5888_v56 }
 0x490   : > { %4803 = vmatpush1.msk.msra.mxu0 %vm712_vm3, %v1532_v15  ;;  %vm8421_vm10 = vcmp.lt.s32.totalorder %v6596_v33, 16 }
 0x491   : > { %1683 = vrot.lane.b32.xlu0 %v6156_v50, %s8418_s29  ;;  %s8760_s29 = sld [smem:[#allocation193_spill]] }
 0x492   : > { %2349 = vrot.lane.b32.xlu1 %v6034_v34, %s8414_s10 }
 0x493   : > { %v1487_v52 = vpop.permute.xlu0 %1486  ;;  %v6605_v63 = vpop.permute.xlu1 %1775 }
 0x494   : > { %v1493_v14 = vsel %vm8407_vm1, %v6188_v44, %v1487_v52  ;;  %v1494_v35 = vsel %vm8407_vm1, %v1487_v52, %v6344_v36  ;;  %v1491_v44 = vsel %vm8407_vm1, %v5748_v16, %v6006_v29  ;;  %v6631_v52 = vadd.s32 1, %v6414_v59 }
 0x495   : > { %2341 = vrot.lane.b32.xlu0 %v6166_v19, %s8414_s10  ;;  %4804 = vmatprep.subr.msk.mxu0 %vm705_vm4, %v1494_v35  ;;  %v999_v59 = vsel %vm8410_vm13, %v5596_v41, %v5822_v40  ;;  %vm8412_vm1 = vcmask 752640  }
 0x496   : > { %2345 = vrot.lane.b32.xlu1 %v6488_v25, %s8414_s10  ;;  %4805 = vmatpush1.msk.msra.mxu0 %vm8421_vm10, %v1493_v14  ;;  %v6634_v14 = vadd.s32 1, %v6418_v37  ;;  %vm8477_vm6 = vcmp.lt.s32.totalorder %v6631_v52, 16  ;;  %v1450_v35 = vsel %vm8412_vm1, %v5756_v18, %v6022_v1 }
 0x497   : > { %v6626_v36 = vpop.permute.xlu0 %2142  ;;  %4806 = vmatprep.subr.msk.mxu0 %vm705_vm4, %v1492_v57  ;;  %v995_v15 = vpop.permute.xlu1 %994 }
 0x498   : > { %v1001_v56 = vsel %vm8410_vm13, %v6042_v48, %v995_v15  ;;  %4807 = vmatpush1.msk.msra.mxu0 %vm8421_vm10, %v1491_v44  ;;  %v1002_v16 = vsel %vm8410_vm13, %v995_v15, %v6270_v28  ;;  %v1000_v48 = vsel %vm8410_vm13, %v5822_v40, %v5702_v5  ;;  %vm696_vm5 = vcmp.lt.s32.totalorder %v6634_v14, 16  ;;  %v8761_v15 = vld [vmem:[#allocation158_spill] sm:$0xff]  ;;  %v4328_v14 = vld [vmem:[#allocation10 + $0x18] sm:$0xff] }
 0x499   : > { %2675 = vrot.lane.b32.xlu0 %v6192_v6, %s8416_s27  ;;  %4732 = vmatprep.subr.msk.mxu1 %vm665_vm12, %v1002_v16  ;;  %vm8413_vm13 = vcmask 1006592   ;;  %v8762_v16 = vld [vmem:[#allocation32_spill] sm:$0xff] }
 0x49a   : > { %2343 = vrot.lane.b32.xlu1 %v6416_v39, %s8414_s10  ;;  %4733 = vmatpush1.msk.msra.mxu1 %vm664_vm14, %v1001_v56 }
 0x49b   : > { %v1446_v28 = vpop.permute.xlu0 %1445  ;;  %4734 = vmatprep.subr.msk.mxu1 %vm665_vm12, %v1000_v48  ;;  %v954_v29 = vpop.permute.xlu1 %953 }
 0x49c   : > { %v1452_v37 = vsel %vm8412_vm1, %v6198_v53, %v1446_v28  ;;  %v960_v5 = vsel %vm8411_vm2, %v6050_v27, %v954_v29  ;;  %4735 = vmatpush1.msk.msra.mxu1 %vm664_vm14, %v999_v59  ;;  %v961_v41 = vsel %vm8411_vm2, %v954_v29, %v6278_v21  ;;  %v1453_v40 = vsel %vm8412_vm1, %v1446_v28, %v6360_v62  ;;  %v8764_v28 = vld [vmem:[#allocation116_spill] sm:$0xff] }
 0x49d   : > { %2339 = vrot.lane.b32.xlu0 %v6156_v50, %s8414_s10  ;;  %4736 = vmatprep.subr.msk.mxu1 %vm713_vm15, %v961_v41  ;;  %v959_v53 = vsel %vm8411_vm2, %v5830_v23, %v5710_v7  ;;  %v1451_v62 = vsel %vm8412_vm1, %v6022_v1, %v5904_v42  ;;  %vm8433_vm1 = vcmask 760832   ;;  %v8765_v41 = vld [vmem:[#allocation142_spill] sm:$0xff]  ;;  %s8925_s10 = smov 51  }
 0x49e   : > { %2677 = vrot.lane.b32.xlu1 %v6034_v34, %s8416_s27  ;;  %4808 = vmatprep.subr.msk.mxu0 %vm8477_vm6, %v1453_v40  ;;  %v958_v34 = vsel %vm8411_vm2, %v5604_v43, %v5830_v23  ;;  %vm8422_vm2 = vcmask 1014784  }
 0x49f   : > { %4737 = vmatpush1.msk.msra.mxu1 %vm712_vm3, %v960_v5  ;;  %4809 = vmatpush1.msk.msra.mxu0 %vm696_vm5, %v1452_v37  ;;  %v6682_v27 = vpop.permute.xlu0 %2101  ;;  %v913_v21 = vpop.permute.xlu1 %912 }
 0x4a0   : > { %4738 = vmatprep.subr.msk.mxu1 %vm713_vm15, %v959_v53  ;;  %4810 = vmatprep.subr.msk.mxu0 %vm8477_vm6, %v1451_v62  ;;  %v920_v7 = vsel %vm8413_vm13, %v913_v21, %v6286_v51  ;;  %v919_v42 = vsel %vm8413_vm13, %v6058_v38, %v913_v21  ;;  %v918_v51 = vsel %vm8413_vm13, %v5838_v30, %v5718_v9  ;;  %v8766_v53 = vld [vmem:[#allocation54_spill] sm:$0xff]  ;;  %v8767_v62 = vld [vmem:[#allocation75_spill] sm:$0xff] }
 0x4a1   : > { %4739 = vmatpush1.msk.msra.mxu1 %vm712_vm3, %v958_v34  ;;  %4811 = vmatpush1.msk.msra.mxu0 %vm696_vm5, %v1450_v35  ;;  %v917_v38 = vsel %vm8413_vm13, %v5612_v45, %v5838_v30  ;;  %vm8426_vm13 = vcmask 1022976   ;;  %v8768_v34 = vld [vmem:[#allocation160_spill] sm:$0xff] }
 0x4a2   : > { %2669 = vrot.lane.b32.xlu0 %v6166_v19, %s8416_s27  ;;  %2673 = vrot.lane.b32.xlu1 %v6488_v25, %s8416_s27  ;;  %v836_v21 = vsel %vm8426_vm13, %v8767_v62, %v8766_v53  ;;  %v8783_v53 = vld [vmem:[#allocation144_spill] sm:$0xff] }
 0x4a3   : > { %4740 = vmatprep.subr.msk.mxu1 %vm705_vm4, %v920_v7  ;;  %v1405_v23 = vpop.permute.xlu0 %1404  ;;  %v872_v43 = vpop.permute.xlu1 %871  ;;  %v8769_v7 = vld [vmem:[#allocation177_spill] sm:$0xff] }
 0x4a4   : > { %4741 = vmatpush1.msk.msra.mxu1 %vm8421_vm10, %v919_v42  ;;  %v879_v1 = vsel %vm8422_vm2, %v872_v43, %v6294_v58  ;;  %v1412_v18 = vsel %vm8433_vm1, %v1405_v23, %v6380_v47  ;;  %v878_v57 = vsel %vm8422_vm2, %v6066_v61, %v872_v43  ;;  %v1411_v9 = vsel %vm8433_vm1, %v6206_v54, %v1405_v23  ;;  %v8757_v47 = vld [vmem:[#allocation73_spill] sm:$0xff]  ;;  %v8758_v58 = vld [vmem:[#allocation88_spill] sm:$0xff]  ;;  %v8759_v61 = vld [vmem:[#allocation111_spill] sm:$0xff] }
 0x4a5   : > { %4742 = vmatprep.subr.msk.mxu1 %vm705_vm4, %v918_v51  ;;  %3009 = vmatprep.subr.mxu0 %v1412_v18  ;;  %v877_v54 = vsel %vm8422_vm2, %v8757_v47, %v5726_v11  ;;  %v1410_v44 = vsel %vm8433_vm1, %v8759_v61, %v8758_v58  ;;  %v876_v48 = vsel %vm8422_vm2, %v8762_v16, %v8757_v47  ;;  %v8763_v11 = vld [vmem:[#allocation58_spill] sm:$0xff]  ;;  %v8772_v18 = vld [vmem:[#allocation92_spill] sm:$0xff]  ;;  %vm8425_vm2 = vcmask 1039360   ;;  %v8775_v58 = vld [vmem:[#allocation55_spill] sm:$0xff] }
 0x4a6   : > { %4743 = vmatpush1.msk.msra.mxu1 %vm8421_vm10, %v917_v38  ;;  %2667 = vrot.lane.b32.xlu0 %v6156_v50, %s8416_s27  ;;  %v1409_v59 = vsel %vm8433_vm1, %v8763_v11, %v8759_v61  ;;  %vm8423_vm10 = vcmask 769024   ;;  %v8770_v23 = vld [vmem:[#allocation118_spill] sm:$0xff]  ;;  %v8773_v38 = vld [vmem:[#allocation113_spill] sm:$0xff]  ;;  %v8776_v61 = vld [vmem:[#allocation76_spill] sm:$0xff]  ;;  %vm8436_vm1 = vcmask 891904  }
 0x4a7   : > { %2671 = vrot.lane.b32.xlu1 %v6416_v39, %s8416_s27  ;;  %4744 = vmatprep.subr.msk.mxu1 %vm8477_vm6, %v879_v1  ;;  %v6740_v30 = vpop.permute.xlu0 %2060  ;;  %v831_v45 = vpop.permute.xlu1 %830  ;;  %v2896_v39 = vld [vmem:[%s8760_s29] sm:$0xf]  ;;  %v8771_v51 = vld [vmem:[#allocation34_spill] sm:$0xff]  ;;  %s8927_s27 = smov 77   ;;  %s8928_s29 = smov 127  }
 0x4a8   : > { %4745 = vmatpush1.msk.msra.mxu1 %vm696_vm5, %v878_v57  ;;  %3010 = vmatpush1.msra.mxu0 %v1411_v9  ;;  %v838_v56 = vsel %vm8426_vm13, %v831_v45, %v8761_v15  ;;  %v837_v29 = vsel %vm8426_vm13, %v8764_v28, %v831_v45  ;;  %v835_v1 = vsel %vm8426_vm13, %v8771_v51, %v8767_v62  ;;  %v8774_v9 = vld [vmem:[#allocation60_spill] sm:$0xff]  ;;  %v8787_v51 = vld [vmem:[#allocation62_spill] sm:$0xff]  ;;  %vm8428_vm13 = vcmask 506880  }
 0x4a9   : > { %4746 = vmatprep.subr.msk.mxu1 %vm8477_vm6, %v877_v54  ;;  %3011 = vmatprep.subr.mxu0 %v1410_v44  ;;  %v1369_v57 = vsel %vm8423_vm10, %v8773_v38, %v8772_v18  ;;  %v1368_v45 = vsel %vm8423_vm10, %v8774_v9, %v8773_v38  ;;  %v795_v44 = vsel %vm8424_vm0, %v8776_v61, %v8775_v58  ;;  %v8788_v18 = vld [vmem:[#allocation163_spill] sm:$0xff] }
 0x4aa   : > { %4747 = vmatpush1.msk.msra.mxu1 %vm696_vm5, %v876_v48  ;;  %3012 = vmatpush1.msra.mxu0 %v1409_v59  ;;  %v8779_v48 = vld [vmem:[#allocation120_spill] sm:$0xff]  ;;  %v8792_v58 = vld [vmem:[#allocation79_spill] sm:$0xff] }
 0x4ab   : > { %2899 = vperm.xlu1 %5024, %v2896_v39   ;;  %2930 = vmatprep.subr.mxu1 %v838_v56  ;;  %v1364_v37 = vpop.permute.xlu0 %1363  ;;  %v790_v5 = vpop.permute.xlu1 %789  ;;  %v8777_v39 = vld [vmem:[#allocation161_spill] sm:$0xff]  ;;  %v8778_v56 = vld [vmem:[#allocation36_spill] sm:$0xff] }
 0x4ac   : > { %2931 = vmatpush1.msra.mxu1 %v837_v29  ;;  %v1370_v40 = vsel %vm8423_vm10, %v8765_v41, %v1364_v37  ;;  %v797_v35 = vsel %vm8424_vm0, %v790_v5, %v8768_v34  ;;  %v1371_v42 = vsel %vm8423_vm10, %v1364_v37, %v8769_v7  ;;  %v796_v43 = vsel %vm8424_vm0, %v8770_v23, %v790_v5  ;;  %v8780_v29 = vld [vmem:[#allocation56_spill] sm:$0xff]  ;;  %v8781_v37 = vld [vmem:[#allocation78_spill] sm:$0xff]  ;;  %v8782_v41 = vld [vmem:[#allocation181_spill] sm:$0xff] }
 0x4ad   : > { %2932 = vmatprep.subr.mxu1 %v836_v21  ;;  %4812 = vmatprep.subr.msk.mxu0 %vm681_vm7, %v1371_v42  ;;  %v794_v16 = vsel %vm8424_vm0, %v8778_v56, %v8776_v61  ;;  %vm8429_vm10 = vcmask 498688   ;;  %v754_v5 = vsel %vm8425_vm2, %v8781_v37, %v8780_v29  ;;  %v8784_v21 = vld [vmem:[#allocation38_spill] sm:$0xff]  ;;  %v8786_v7 = vld [vmem:[#allocation115_spill] sm:$0xff]  ;;  %vm8427_vm0 = vcmask 777216   ;;  %v8795_v56 = vld [vmem:[#allocation40_spill] sm:$0xff] }
 0x4ae   : > { %2933 = vmatpush1.msra.mxu1 %v835_v1  ;;  %4813 = vmatpush1.msk.msra.mxu0 %vm680_vm8, %v1370_v40  ;;  %v753_v34 = vsel %vm8425_vm2, %v8784_v21, %v8781_v37  ;;  %v1983_v1 = vsel %vm8429_vm10, %v8787_v51, %v8786_v7  ;;  %v8798_v29 = vld [vmem:[#allocation119_spill] sm:$0xff]  ;;  %v8801_v21 = vld [vmem:[#allocation81_spill] sm:$0xff]  ;;  %v8804_v51 = vld [vmem:[#allocation126_spill] sm:$0xff] }
 0x4af   : > { %4748 = vmatprep.subr.msk.mxu1 %vm681_vm7, %v797_v35  ;;  %v6793_v47 = vpop.permute.xlu0 %2019  ;;  %4814 = vmatprep.subr.msk.mxu0 %vm681_vm7, %v1369_v57  ;;  %v749_v54 = vpop.permute.xlu1 %748  ;;  %v8785_v35 = vld [vmem:[#allocation95_spill] sm:$0xff] }
 0x4b0   : > { %4749 = vmatpush1.msk.msra.mxu1 %vm680_vm8, %v796_v43  ;;  %4815 = vmatpush1.msk.msra.mxu0 %vm680_vm8, %v1368_v45  ;;  %v756_v15 = vsel %vm8425_vm2, %v749_v54, %v8777_v39  ;;  %v755_v11 = vsel %vm8425_vm2, %v8779_v48, %v749_v54  ;;  %v1984_v42 = vsel %vm8429_vm10, %v8786_v7, %v8785_v35  ;;  %vm8430_vm2 = vcmask 785408   ;;  %v8790_v45 = vld [vmem:[#allocation146_spill] sm:$0xff]  ;;  %v8791_v54 = vld [vmem:[#allocation57_spill] sm:$0xff]  ;;  %v8794_v39 = vld [vmem:[#allocation184_spill] sm:$0xff] }
 0x4b1   : > { %4750 = vmatprep.subr.msk.mxu1 %vm681_vm7, %v795_v44  ;;  %v1328_v61 = vsel %vm8427_vm0, %v8792_v58, %v8791_v54  ;;  %v8793_v44 = vld [vmem:[#allocation164_spill] sm:$0xff]  ;;  %v8802_v35 = vld [vmem:[#allocation166_spill] sm:$0xff] }
 0x4b2   : > { %4751 = vmatpush1.msk.msra.mxu1 %vm680_vm8, %v794_v16  ;;  %v1327_v16 = vsel %vm8427_vm0, %v8795_v56, %v8792_v58  ;;  %v8796_v48 = vld [vmem:[#allocation124_spill] sm:$0xff] }
 0x4b3   : > { %4752 = vmatprep.subr.msk.mxu1 %vm673_vm9, %v756_v15  ;;  %v1979_v59 = vpop.permute.xlu0 %1978  ;;  %v6817_v28 = vpop.permute.xlu1 %2431 }
 0x4b4   : > { %4753 = vmatpush1.msk.msra.mxu1 %vm672_vm11, %v755_v11  ;;  %v1986_v40 = vsel %vm8429_vm10, %v1979_v59, %v8782_v41  ;;  %v1985_v62 = vsel %vm8429_vm10, %v8783_v53, %v1979_v59  ;;  %v8797_v59 = vld [vmem:[#allocation98_spill] sm:$0xff]  ;;  %vm8432_vm10 = vcmask 515072  }
 0x4b5   : > { %4754 = vmatprep.subr.msk.mxu1 %vm673_vm9, %v754_v5  ;;  %3017 = vmatprep.subr.mxu0 %v1986_v40  ;;  %v1943_v37 = vsel %vm8428_vm13, %v8798_v29, %v8797_v59  ;;  %v8799_v5 = vld [vmem:[#allocation64_spill] sm:$0xff] }
 0x4b6   : > { %4755 = vmatpush1.msk.msra.mxu1 %vm672_vm11, %v753_v34  ;;  %3018 = vmatpush2.msra.mxu0 %v1985_v62  ;;  %v1942_v41 = vsel %vm8428_vm13, %v8799_v5, %v8798_v29  ;;  %v8800_v62 = vld [vmem:[#allocation59_spill] sm:$0xff] }
 0x4b7   : > { %4756 = vmatprep.subr.msk.mxu1 %vm665_vm12, %v6192_v6  ;;  %v6841_v23 = vpop.permute.xlu0 %2634  ;;  %3019 = vmatprep.subr.mxu0 %v1984_v42  ;;  %v1323_v43 = vpop.permute.xlu1 %1322  ;;  %v8789_v6 = vld [vmem:[#allocation122_spill] sm:$0xff]  ;;  %v1287_v34 = vsel %vm8430_vm2, %v8801_v21, %v8800_v62  ;;  %v8815_v29 = vld [vmem:[#allocation63_spill] sm:$0xff] }
 0x4b8   : > { %4757 = vmatpush1.msk.msra.mxu1 %vm664_vm14, %v6488_v25  ;;  %3020 = vmatpush2.msra.mxu0 %v1983_v1  ;;  %v1330_v38 = vsel %vm8427_vm0, %v1323_v43, %v8788_v18  ;;  %v1329_v57 = vsel %vm8427_vm0, %v8789_v6, %v1323_v43  ;;  %vm8431_vm0 = vcmask 867328   ;;  %v8803_v42 = vld [vmem:[#allocation42_spill] sm:$0xff]  ;;  %v8805_v6 = vld [vmem:[#allocation148_spill] sm:$0xff] }
 0x4b9   : > { %4758 = vmatprep.subr.msk.mxu1 %vm665_vm12, %v6166_v19  ;;  %v1286_v43 = vsel %vm8430_vm2, %v8803_v42, %v8801_v21  ;;  %v8818_v62 = vld [vmem:[#allocation46_spill] sm:$0xff] }
 0x4ba   : > { %4759 = vmatpush1.msk.msra.mxu1 %vm664_vm14, %v6156_v50 }
 0x4bb   : > { %4760 = vmatprep.subr.msk.mxu1 %vm673_vm9, %v1330_v38  ;;  %v1938_v25 = vpop.permute.xlu0 %1937  ;;  %v1282_v9 = vpop.permute.xlu1 %1281 }
 0x4bc   : > { %4761 = vmatpush2.msk.msra.mxu1 %vm672_vm11, %v1329_v57  ;;  %v1944_v19 = vsel %vm8428_vm13, %v8790_v45, %v1938_v25  ;;  %v1289_v50 = vsel %vm8430_vm2, %v1282_v9, %v8793_v44  ;;  %v1945_v15 = vsel %vm8428_vm13, %v1938_v25, %v8794_v39  ;;  %v1288_v11 = vsel %vm8430_vm2, %v8796_v48, %v1282_v9  ;;  %v8806_v25 = vld [vmem:[#allocation61_spill] sm:$0xff]  ;;  %v8807_v9 = vld [vmem:[#allocation82_spill] sm:$0xff] }
 0x4bd   : > { %4762 = vmatprep.subr.msk.mxu1 %vm673_vm9, %v1328_v61  ;;  %4816 = vmatprep.subr.msk.mxu0 %vm681_vm7, %v1945_v15  ;;  %vm8434_vm13 = vcmask 875520   ;;  %v1246_v45 = vsel %vm8431_vm0, %v8807_v9, %v8806_v25  ;;  %v8809_v61 = vld [vmem:[#allocation44_spill] sm:$0xff]  ;;  %v8812_v15 = vld [vmem:[#allocation123_spill] sm:$0xff]  ;;  %vm8435_vm2 = vcmask 883712  }
 0x4be   : > { %4763 = vmatpush2.msk.msra.mxu1 %vm672_vm11, %v1327_v16  ;;  %4817 = vmatpush2.msk.msra.mxu0 %vm680_vm8, %v1944_v19  ;;  %v8808_v19 = vld [vmem:[#allocation167_spill] sm:$0xff]  ;;  %v1245_v44 = vsel %vm8431_vm0, %v8809_v61, %v8807_v9  ;;  %v8813_v16 = vld [vmem:[#allocation66_spill] sm:$0xff]  ;;  %v8824_v9 = vld [vmem:[#allocation48_spill] sm:$0xff] }
 0x4bf   : > { %4764 = vmatprep.subr.msk.mxu1 %vm665_vm12, %v1289_v50  ;;  %v6893_v40 = vpop.permute.xlu0 %2593  ;;  %4818 = vmatprep.subr.msk.mxu0 %vm681_vm7, %v1943_v37  ;;  %v1241_v53 = vpop.permute.xlu1 %1240  ;;  %v8810_v50 = vld [vmem:[#allocation128_spill] sm:$0xff]  ;;  %v1901_v48 = vsel %vm8432_vm10, %v8813_v16, %v8812_v15 }
 0x4c0   : > { %4765 = vmatpush2.msk.msra.mxu1 %vm664_vm14, %v1288_v11  ;;  %4819 = vmatpush2.msk.msra.mxu0 %vm680_vm8, %v1942_v41  ;;  %v1248_v7 = vsel %vm8431_vm0, %v1241_v53, %v8802_v35  ;;  %v1247_v1 = vsel %vm8431_vm0, %v8804_v51, %v1241_v53  ;;  %vm8814_vm0 = vcmp.lt.s32.totalorder %v6596_v33, 16  ;;  %v8816_v37 = vld [vmem:[#allocation84_spill] sm:$0xff]  ;;  %v8817_v41 = vld [vmem:[#allocation169_spill] sm:$0xff] }
 0x4c1   : > { %4766 = vmatprep.subr.msk.mxu1 %vm665_vm12, %v1287_v34  ;;  %v1205_v5 = vsel %vm8434_vm13, %v8816_v37, %v8815_v29  ;;  %v1204_v21 = vsel %vm8434_vm13, %v8818_v62, %v8816_v37  ;;  %v8819_v34 = vld [vmem:[#allocation130_spill] sm:$0xff] }
 0x4c2   : > { %4767 = vmatpush2.msk.msra.mxu1 %vm664_vm14, %v1286_v43  ;;  %v8820_v43 = vld [vmem:[#allocation150_spill] sm:$0xff] }
 0x4c3   : > { %4768 = vmatprep.subr.msk.mxu1 %vm713_vm15, %v1248_v7  ;;  %v1897_v18 = vpop.permute.xlu0 %1896  ;;  %v1200_v38 = vpop.permute.xlu1 %1199  ;;  %v8832_v29 = vld [vmem:[#allocation134_spill] sm:$0xff] }
 0x4c4   : > { %4769 = vmatpush2.msk.msra.mxu1 %vm712_vm3, %v1247_v1  ;;  %v1903_v57 = vsel %vm8432_vm10, %v8805_v6, %v1897_v18  ;;  %v1207_v54 = vsel %vm8434_vm13, %v1200_v38, %v8808_v19  ;;  %v1904_v58 = vsel %vm8432_vm10, %v1897_v18, %v6479_v13  ;;  %v1206_v39 = vsel %vm8434_vm13, %v8810_v50, %v1200_v38  ;;  %v8811_v13 = vld [vmem:[#allocation101_spill] sm:$0xff]  ;;  %v8823_v6 = vld [vmem:[#allocation170_spill] sm:$0xff]  ;;  %v8825_v19 = vld [vmem:[#allocation132_spill] sm:$0xff] }
 0x4c5   : > { %4770 = vmatprep.subr.msk.mxu1 %vm713_vm15, %v1246_v45  ;;  %4820 = vmatprep.subr.msk.mxu0 %vm673_vm9, %v1904_v58  ;;  %v1902_v56 = vsel %vm8432_vm10, %v8812_v15, %v8811_v13  ;;  %vm8439_vm10 = vcmask 523264   ;;  %v8821_v1 = vld [vmem:[#allocation65_spill] sm:$0xff]  ;;  %v8827_v58 = vld [vmem:[#allocation127_spill] sm:$0xff]  ;;  %vm8438_vm13 = vcmask 908288  }
 0x4c6   : > { %4771 = vmatpush2.msk.msra.mxu1 %vm712_vm3, %v1245_v44  ;;  %4821 = vmatpush2.msk.msra.mxu0 %vm672_vm11, %v1903_v57  ;;  %v8822_v18 = vld [vmem:[#allocation85_spill] sm:$0xff]  ;;  %v8828_v44 = vld [vmem:[#allocation68_spill] sm:$0xff]  ;;  %v8829_v15 = vld [vmem:[#allocation67_spill] sm:$0xff] }
 0x4c7   : > { %4772 = vmatprep.subr.msk.mxu1 %vm705_vm4, %v1207_v54  ;;  %v6949_v11 = vpop.permute.xlu0 %2552  ;;  %4822 = vmatprep.subr.msk.mxu0 %vm673_vm9, %v1902_v56  ;;  %v1159_v59 = vpop.permute.xlu1 %1158  ;;  %v1164_v38 = vsel %vm8435_vm2, %v8822_v18, %v8821_v1  ;;  %v1163_v45 = vsel %vm8435_vm2, %v8824_v9, %v8822_v18  ;;  %v1860_v50 = vsel %vm8439_vm10, %v8828_v44, %v8827_v58  ;;  %v8830_v56 = vld [vmem:[#allocation87_spill] sm:$0xff]  ;;  %v8838_v18 = vld [vmem:[#allocation52_spill] sm:$0xff] }
 0x4c8   : > { %4773 = vmatpush2.msk.msra.mxu1 %vm8814_vm0, %v1206_v39  ;;  %4823 = vmatpush2.msk.msra.mxu0 %vm672_vm11, %v1901_v48  ;;  %v1166_v53 = vsel %vm8435_vm2, %v1159_v59, %v8817_v41  ;;  %v1165_v35 = vsel %vm8435_vm2, %v8819_v34, %v1159_v59  ;;  %v1123_v16 = vsel %vm8436_vm1, %v8830_v56, %v8829_v15  ;;  %v8831_v48 = vld [vmem:[#allocation173_spill] sm:$0xff]  ;;  %vm8448_vm2 = vcmask 605184   ;;  %v8841_v9 = vld [vmem:[#allocation131_spill] sm:$0xff] }
 0x4c9   : > { %4774 = vmatprep.subr.msk.mxu1 %vm705_vm4, %v1205_v5  ;;  %v8833_v5 = vld [vmem:[#allocation50_spill] sm:$0xff]  ;;  %v8844_v44 = vld [vmem:[#allocation91_spill] sm:$0xff]  ;;  %v8845_v15 = vld [vmem:[#allocation53_spill] sm:$0xff] }
 0x4ca   : > { %4775 = vmatpush2.msk.msra.mxu1 %vm8814_vm0, %v1204_v21  ;;  %vm8437_vm0 = vcmask 900096   ;;  %v1122_v41 = vsel %vm8436_vm1, %v8833_v5, %v8830_v56  ;;  %v8834_v21 = vld [vmem:[#allocation152_spill] sm:$0xff]  ;;  %v1040_v56 = vsel %vm8438_vm13, %v8845_v15, %v8844_v44  ;;  %v8863_v15 = vld [vmem:[#allocation139_spill] sm:$0xff] }
 0x4cb   : > { %4776 = vmatprep.subr.msk.mxu1 %vm8477_vm6, %v1166_v53  ;;  %v1856_v7 = vpop.permute.xlu0 %1855  ;;  %v1118_v42 = vpop.permute.xlu1 %1117 }
 0x4cc   : > { %4777 = vmatpush2.msk.msra.mxu1 %vm696_vm5, %v1165_v35  ;;  %v1862_v51 = vsel %vm8439_vm10, %v8820_v43, %v1856_v7  ;;  %v1125_v57 = vsel %vm8436_vm1, %v1118_v42, %v8823_v6  ;;  %v1863_v25 = vsel %vm8439_vm10, %v1856_v7, %v6521_v2  ;;  %v1124_v54 = vsel %vm8436_vm1, %v8825_v19, %v1118_v42  ;;  %v8826_v2 = vld [vmem:[#allocation104_spill] sm:$0xff]  ;;  %v8835_v35 = vld [vmem:[#allocation69_spill] sm:$0xff]  ;;  %v8837_v43 = vld [vmem:[#allocation174_spill] sm:$0xff] }
 0x4cd   : > { %4778 = vmatprep.subr.msk.mxu1 %vm8477_vm6, %v1164_v38  ;;  %4824 = vmatprep.subr.msk.mxu0 %vm665_vm12, %v1863_v25  ;;  %v1861_v61 = vsel %vm8439_vm10, %v8827_v58, %v8826_v2  ;;  %v8836_v7 = vld [vmem:[#allocation89_spill] sm:$0xff]  ;;  %v8839_v6 = vld [vmem:[#allocation136_spill] sm:$0xff]  ;;  %v8842_v19 = vld [vmem:[#allocation70_spill] sm:$0xff]  ;;  %vm8440_vm1 = vcmask 359424   ;;  %vm8854_vm10 = vcmp.lt.s32.totalorder %v6596_v33, 16 }
 0x4ce   : > { %4779 = vmatpush2.msk.msra.mxu1 %vm696_vm5, %v1163_v45  ;;  %4825 = vmatpush2.msk.msra.mxu0 %vm664_vm14, %v1862_v51  ;;  %v1082_v42 = vsel %vm8437_vm0, %v8836_v7, %v8835_v35  ;;  %v1081_v38 = vsel %vm8437_vm0, %v8838_v18, %v8836_v7  ;;  %v7041_v25 = vld [vmem:[#allocation8 + $0x10] sm:$0xff]  ;;  %v8852_v7 = vld [vmem:[#allocation29_spill] sm:$0xff] }
 0x4cf   : > { %2966 = vmatprep.subr.mxu1 %v1125_v57  ;;  %v7003_v39 = vpop.permute.xlu0 %2511  ;;  %4826 = vmatprep.subr.msk.mxu0 %vm665_vm12, %v1861_v61  ;;  %v1077_v13 = vpop.permute.xlu1 %1076  ;;  %v8843_v61 = vld [vmem:[#allocation71_spill] sm:$0xff] }
 0x4d0   : > { %2967 = vmatpush2.msra.mxu1 %v1124_v54  ;;  %4827 = vmatpush2.msk.msra.mxu0 %vm664_vm14, %v1860_v50  ;;  %v1084_v59 = vsel %vm8437_vm0, %v1077_v13, %v8831_v48  ;;  %v1083_v37 = vsel %vm8437_vm0, %v8832_v29, %v1077_v13  ;;  %v1819_v54 = vsel %vm8448_vm2, %v8842_v19, %v8841_v9  ;;  %vm8441_vm0 = vcmask 613376   ;;  %v8859_v19 = vld [vmem:[#allocation74_spill] sm:$0xff] }
 0x4d1   : > { %2968 = vmatprep.subr.mxu1 %v1123_v16  ;;  %v1041_v50 = vsel %vm8438_vm13, %v8844_v44, %v8843_v61  ;;  %v2908_v13 = vcombine.high %v7041_v25, %v7041_v25  ;;  %v8846_v16 = vld [vmem:[#allocation157_spill] sm:$0xff]  ;;  %v8861_v44 = vld [vmem:[#allocation30_spill] sm:$0xff] }
 0x4d2   : > { %2969 = vmatpush2.msra.mxu1 %v1122_v41  ;;  %v2314_v48 = vsel %vm8440_vm1, %v6457_v46, %v8846_v16 }
 0x4d3   : > { %4780 = vmatprep.subr.msk.mxu1 %vm681_vm7, %v1084_v59  ;;  %v1815_v53 = vpop.permute.xlu0 %1814  ;;  %v1036_v62 = vpop.permute.xlu1 %1035  ;;  %v8847_v59 = vld [vmem:[#allocation137_spill] sm:$0xff] }
 0x4d4   : > { %4781 = vmatpush2.msk.msra.mxu1 %vm680_vm8, %v1083_v37  ;;  %v1821_v34 = vsel %vm8448_vm2, %v8834_v21, %v1815_v53  ;;  %v1043_v51 = vsel %vm8438_vm13, %v1036_v62, %v8837_v43  ;;  %v1822_v1 = vsel %vm8448_vm2, %v1815_v53, %v6565_v12  ;;  %v1042_v57 = vsel %vm8438_vm13, %v8839_v6, %v1036_v62  ;;  %v8840_v12 = vld [vmem:[#allocation107_spill] sm:$0xff]  ;;  %v8848_v37 = vld [vmem:[#allocation172_spill] sm:$0xff]  ;;  %v8849_v53 = vld [vmem:[#allocation154_spill] sm:$0xff] }
 0x4d5   : > { %4782 = vmatprep.subr.msk.mxu1 %vm681_vm7, %v1082_v42  ;;  %4828 = vmatprep.subr.msk.mxu0 %vm713_vm15, %v1822_v1  ;;  %v1820_v45 = vsel %vm8448_vm2, %v8841_v9, %v8840_v12  ;;  %v2313_v29 = vsel %vm8440_vm1, %v8847_v59, %v6457_v46  ;;  %v8850_v21 = vld [vmem:[#allocation72_spill] sm:$0xff]  ;;  %vm8442_vm13 = vcmask 367616   ;;  %v8853_v43 = vld [vmem:[#allocation159_spill] sm:$0xff] }
 0x4d6   : > { %4783 = vmatpush2.msk.msra.mxu1 %vm680_vm8, %v1081_v38  ;;  %4829 = vmatpush2.msk.msra.mxu0 %vm712_vm3, %v1821_v34  ;;  %v8851_v34 = vld [vmem:[#allocation94_spill] sm:$0xff]  ;;  %v8856_v1 = vld [vmem:[#allocation135_spill] sm:$0xff]  ;;  %v8857_v38 = vld [vmem:[#allocation176_spill] sm:$0xff] }
 0x4d7   : > { %4784 = vmatprep.subr.msk.mxu1 %vm673_vm9, %v1043_v51  ;;  %v7055_v2 = vpop.permute.xlu0 %2470  ;;  %4830 = vmatprep.subr.msk.mxu0 %vm713_vm15, %v1820_v45  ;;  %v7059_v58 = vpop.permute.xlu1 %2427  ;;  %v2312_v35 = vsel %vm8440_vm1, %v8851_v34, %v8850_v21  ;;  %v2311_v42 = vsel %vm8440_vm1, %v8852_v7, %v8851_v34  ;;  %v2273_v51 = vsel %vm8442_vm13, %v6505_v0, %v8853_v43  ;;  %vm8445_vm1 = vcmask 375808   ;;  %v8864_v59 = vld [vmem:[#allocation180_spill] sm:$0xff]  ;;  %v8868_v34 = vld [vmem:[#allocation165_spill] sm:$0xff] }
 0x4d8   : > { %4785 = vmatpush2.msk.msra.mxu1 %vm672_vm11, %v1042_v57  ;;  %4831 = vmatpush2.msk.msra.mxu0 %vm712_vm3, %v1819_v54  ;;  %v1778_v6 = vsel %vm8441_vm0, %v8857_v38, %v8856_v1  ;;  %v8858_v57 = vld [vmem:[#allocation138_spill] sm:$0xff]  ;;  %v8860_v54 = vld [vmem:[#allocation97_spill] sm:$0xff]  ;;  %v8870_v43 = vld [vmem:[#allocation80_spill] sm:$0xff] }
 0x4d9   : > { %4786 = vmatprep.subr.msk.mxu1 %vm673_vm9, %v1041_v50  ;;  %v2272_v12 = vsel %vm8442_vm13, %v8858_v57, %v6505_v0  ;;  %v2271_v61 = vsel %vm8442_vm13, %v8860_v54, %v8859_v19  ;;  %v2270_v0 = vsel %vm8442_vm13, %v8861_v44, %v8860_v54  ;;  %v8862_v50 = vld [vmem:[#allocation162_spill] sm:$0xff]  ;;  %v8873_v38 = vld [vmem:[#allocation33_spill] sm:$0xff]  ;;  %vm8444_vm13 = vcmask 392192   ;;  %v8876_v44 = vld [vmem:[#allocation83_spill] sm:$0xff] }
 0x4da   : > { %4787 = vmatpush2.msk.msra.mxu1 %vm672_vm11, %v1040_v56  ;;  %v2231_v56 = vsel %vm8445_vm1, %v8863_v15, %v6549_v4  ;;  %v8878_v15 = vld [vmem:[#allocation35_spill] sm:$0xff] }
 0x4db   : > { %2979 = vmatmul.mubr.f32.vlgmr.msra.gmra.mxu1 %v8848_v37  ;;  %4840 = vmatprep.subr.msk.mxu1 %vm8477_vm6, %v2314_v48  ;;  %v1774_v5 = vpop.permute.xlu0 %1773  ;;  %v1735_v41 = vpop.permute.xlu1 %1734  ;;  %v8865_v37 = vld [vmem:[#allocation77_spill] sm:$0xff] }
 0x4dc   : > { %4841 = vmatpush1.msk.msra.mxu1 %vm696_vm5, %v2313_v29  ;;  %v1780_v62 = vsel %vm8441_vm0, %v8849_v53, %v1774_v5  ;;  %v1781_v46 = vsel %vm8441_vm0, %v1774_v5, %v6605_v63  ;;  %3120 = vmatprep.mubr.f32.mxu1 %v2908_v13  ;;  %v8855_v63 = vld [vmem:[#allocation110_spill] sm:$0xff]  ;;  %v2232_v13 = vsel %vm8445_vm1, %v6549_v4, %v8862_v50  ;;  %v8866_v5 = vld [vmem:[#allocation100_spill] sm:$0xff]  ;;  %v8867_v4 = vld [vmem:[#allocation31_spill] sm:$0xff] }
 0x4dd   : > { %4842 = vmatprep.subr.msk.mxu1 %vm8477_vm6, %v2312_v35  ;;  %4832 = vmatprep.subr.msk.mxu0 %vm705_vm4, %v1781_v46  ;;  %v1779_v18 = vsel %vm8441_vm0, %v8856_v1, %v8855_v63  ;;  %vm8447_vm0 = vcmask 621568   ;;  %v2230_v53 = vsel %vm8445_vm1, %v8866_v5, %v8865_v37  ;;  %v2229_v21 = vsel %vm8445_vm1, %v8867_v4, %v8866_v5  ;;  %v8872_v1 = vld [vmem:[#allocation182_spill] sm:$0xff] }
 0x4de   : > { %4843 = vmatpush1.msk.msra.mxu1 %vm696_vm5, %v2311_v42  ;;  %4833 = vmatpush2.msk.msra.mxu0 %vm8854_vm10, %v1780_v62  ;;  %v8881_v5 = vld [vmem:[#allocation86_spill] sm:$0xff]  ;;  %vm1695_vm1 = vcmask 629760  }
 0x4df   : > { %3060 = vmatprep.subr.mxu1 %v2273_v51  ;;  %v7118_v9 = vpop.permute.xlu0 %2429  ;;  %4834 = vmatprep.subr.msk.mxu0 %vm705_vm4, %v1779_v18  ;;  %v7122_v45 = vpop.permute.xlu1 %2425  ;;  %v8871_v51 = vld [vmem:[#allocation103_spill] sm:$0xff] }
 0x4e0   : > { %3061 = vmatpush1.msra.mxu1 %v2272_v12  ;;  %4835 = vmatpush2.msk.msra.mxu0 %vm8854_vm10, %v1778_v6  ;;  %vm8443_vm10 = vcmask 384000   ;;  %v8874_v6 = vld [vmem:[#allocation168_spill] sm:$0xff]  ;;  %v8875_v12 = vld [vmem:[#allocation141_spill] sm:$0xff] }
 0x4e1   : > { %3062 = vmatprep.subr.mxu1 %v2271_v61  ;;  %v2191_v35 = vsel %vm8443_vm10, %v6589_v32, %v8868_v34  ;;  %v2189_v63 = vsel %vm8443_vm10, %v8871_v51, %v8870_v43  ;;  %v2150_v57 = vsel %vm8444_vm13, %v6626_v36, %v8874_v6  ;;  %v2149_v19 = vsel %vm8444_vm13, %v8875_v12, %v6626_v36  ;;  %v8887_v43 = vld [vmem:[#allocation90_spill] sm:$0xff] }
 0x4e2   : > { %3063 = vmatpush1.msra.mxu1 %v2270_v0  ;;  %v8877_v0 = vld [vmem:[#allocation106_spill] sm:$0xff] }
 0x4e3   : > { %4844 = vmatprep.subr.msk.mxu1 %vm681_vm7, %v2232_v13  ;;  %v1733_v16 = vpop.permute.xlu0 %1732  ;;  %v7140_v48 = vpop.permute.xlu1 %2421  ;;  %v2148_v50 = vsel %vm8444_vm13, %v8877_v0, %v8876_v44  ;;  %v2147_v36 = vsel %vm8444_vm13, %v8878_v15, %v8877_v0  ;;  %vm8450_vm13 = vcmask 482304   ;;  %v8894_v44 = vld [vmem:[#allocation114_spill] sm:$0xff]  ;;  %v8895_v15 = vld [vmem:[#allocation41_spill] sm:$0xff] }
 0x4e4   : > { %4845 = vmatpush1.msk.msra.mxu1 %vm680_vm8, %v2231_v56  ;;  %v1739_v29 = vsel %vm8447_vm0, %v8864_v59, %v1733_v16  ;;  %v1740_v62 = vsel %vm8447_vm0, %v1733_v16, %v1735_v41  ;;  %v8869_v41 = vld [vmem:[#allocation140_spill] sm:$0xff]  ;;  %v8879_v56 = vld [vmem:[#allocation171_spill] sm:$0xff] }
 0x4e5   : > { %4846 = vmatprep.subr.msk.mxu1 %vm681_vm7, %v2230_v53  ;;  %4836 = vmatprep.subr.msk.mxu0 %vm8477_vm6, %v1740_v62  ;;  %v2190_v46 = vsel %vm8443_vm10, %v8869_v41, %v6589_v32  ;;  %v2188_v32 = vsel %vm8443_vm10, %v8873_v38, %v8871_v51  ;;  %vm8446_vm10 = vcmask 474112   ;;  %v8880_v59 = vld [vmem:[#allocation143_spill] sm:$0xff]  ;;  %v8882_v53 = vld [vmem:[#allocation109_spill] sm:$0xff]  ;;  %v8888_v51 = vld [vmem:[#allocation112_spill] sm:$0xff] }
 0x4e6   : > { %4847 = vmatpush1.msk.msra.mxu1 %vm680_vm8, %v2229_v21  ;;  %4837 = vmatpush2.msk.msra.mxu0 %vm696_vm5, %v1739_v29  ;;  %v2109_v16 = vsel %vm8446_vm10, %v6682_v27, %v8879_v56  ;;  %v2108_v29 = vsel %vm8446_vm10, %v8880_v59, %v6682_v27  ;;  %v2107_v62 = vsel %vm8446_vm10, %v8882_v53, %v8881_v5  ;;  %v8883_v21 = vld [vmem:[#allocation37_spill] sm:$0xff]  ;;  %v8884_v27 = vld [vmem:[#allocation175_spill] sm:$0xff] }
 0x4e7   : > { %4848 = vmatprep.subr.msk.mxu1 %vm673_vm9, %v2191_v35  ;;  %v7169_v7 = vpop.permute.xlu0 %2388  ;;  %v1729_v42 = vpop.permute.xlu1 %1728  ;;  %v2106_v34 = vsel %vm8446_vm10, %v8883_v21, %v8882_v53  ;;  %v2068_v35 = vsel %vm8450_vm13, %v6740_v30, %v8884_v27  ;;  %v8885_v41 = vld [vmem:[#allocation145_spill] sm:$0xff]  ;;  %vm8886_vm10 = vcmp.lt.s32.totalorder %v6596_v33, 16  ;;  %v8900_v21 = vld [vmem:[#allocation43_spill] sm:$0xff] }
 0x4e8   : > { %4849 = vmatpush1.msk.msra.mxu1 %vm672_vm11, %v2190_v46  ;;  %v1738_v18 = vsel %vm8447_vm0, %v8872_v1, %v1729_v42  ;;  %v2067_v46 = vsel %vm8450_vm13, %v8885_v41, %v6740_v30  ;;  %vm8890_vm2 = vmmov %vm8886_vm10  ;;  %v8899_v5 = vld [vmem:[#allocation117_spill] sm:$0xff]  ;;  %v8902_v27 = vld [vmem:[#allocation151_spill] sm:$0xff] }
 0x4e9   : > { %4850 = vmatprep.subr.msk.mxu1 %vm673_vm9, %v2189_v63  ;;  %4838 = vmatprep.subr.msk.mxu0 %vm8477_vm6, %v1738_v18  ;;  %v2066_v63 = vsel %vm8450_vm13, %v8888_v51, %v8887_v43  ;;  %v8889_v18 = vld [vmem:[#allocation39_spill] sm:$0xff]  ;;  %v8904_v43 = vld [vmem:[#allocation121_spill] sm:$0xff] }
 0x4ea   : > { %4851 = vmatpush1.msk.msra.mxu1 %vm672_vm11, %v2188_v32  ;;  %v2065_v38 = vsel %vm8450_vm13, %v8889_v18, %v8888_v51  ;;  %v8891_v32 = vld [vmem:[#allocation179_spill] sm:$0xff]  ;;  %vm8901_vm13 = vmmov %vm8886_vm10  ;;  %v8906_v18 = vld [vmem:[#allocation185_spill] sm:$0xff] }
 0x4eb   : > { %4852 = vmatprep.subr.msk.mxu1 %vm665_vm12, %v2150_v57  ;;  %v1725_v54 = vpop.permute.xlu0 %1724  ;;  %v8892_v57 = vld [vmem:[#allocation147_spill] sm:$0xff] }
 0x4ec   : > { %4853 = vmatpush1.msk.msra.mxu1 %vm664_vm14, %v2149_v19  ;;  %v1737_v61 = vsel %vm8447_vm0, %v1725_v54, %v8872_v1  ;;  %v7202_v13 = vpop.permute.xlu1 %2390  ;;  %vm8449_vm0 = vcmask 490496  }
 0x4ed   : > { %4854 = vmatprep.subr.msk.mxu1 %vm665_vm12, %v2148_v50  ;;  %4839 = vmatpush2.msk.msra.mxu0 %vm696_vm5, %v1737_v61  ;;  %v2027_v6 = vsel %vm8449_vm0, %v6793_v47, %v8891_v32  ;;  %v2026_v12 = vsel %vm8449_vm0, %v8892_v57, %v6793_v47  ;;  %v8893_v61 = vld [vmem:[#allocation93_spill] sm:$0xff]  ;;  %v8896_v47 = vld [vmem:[#allocation183_spill] sm:$0xff] }
 0x4ee   : > { %4855 = vmatpush1.msk.msra.mxu1 %vm664_vm14, %v2147_v36  ;;  %v2025_v0 = vsel %vm8449_vm0, %v8894_v44, %v8893_v61  ;;  %v2024_v36 = vsel %vm8449_vm0, %v8895_v15, %v8894_v44  ;;  %vm8452_vm0 = vcmask 228352   ;;  %v8910_v44 = vld [vmem:[#allocation47_spill] sm:$0xff]  ;;  %v8911_v15 = vld [vmem:[#allocation186_spill] sm:$0xff] }
 0x4ef   : > { %4856 = vmatprep.subr.msk.mxu1 %vm713_vm15, %v2109_v16  ;;  %v1692_v37 = vpop.permute.xlu0 %1691  ;;  %v8897_v16 = vld [vmem:[#allocation149_spill] sm:$0xff] }
 0x4f0   : > { %4857 = vmatpush1.msk.msra.mxu1 %vm712_vm3, %v2108_v29  ;;  %v7226_v4 = vpop.permute.xlu1 %2386 }
 0x4f1   : > { %4858 = vmatprep.subr.msk.mxu1 %vm713_vm15, %v2107_v62 }
 0x4f2   : > { %4859 = vmatpush1.msk.msra.mxu1 %vm712_vm3, %v2106_v34 }
 0x4f3   : > { %4860 = vmatprep.subr.msk.mxu1 %vm705_vm4, %v2068_v35  ;;  %v7243_v42 = vpop.permute.xlu0 %2382  ;;  %v2600_v35 = vsel %vm8452_vm0, %v8902_v27, %v6893_v40  ;;  %v8918_v27 = vld [vmem:[#allocation108_spill] sm:$0xff] }
 0x4f4   : > { %4861 = vmatpush1.msk.msra.mxu1 %vm8886_vm10, %v2067_v46  ;;  %v1694_v1 = vpop.permute.xlu1 %1693  ;;  %v8903_v46 = vld [vmem:[#allocation99_spill] sm:$0xff] }
 0x4f5   : > { %4862 = vmatprep.subr.msk.mxu1 %vm705_vm4, %v2066_v63  ;;  %v1699_v30 = vsel %vm1695_vm1, %v1692_v37, %v1694_v1  ;;  %v2599_v51 = vsel %vm8452_vm0, %v8904_v43, %v8903_v46  ;;  %v8905_v1 = vld [vmem:[#allocation45_spill] sm:$0xff] }
 0x4f6   : > { %4863 = vmatpush1.msk.msra.mxu1 %vm8890_vm2, %v2065_v38  ;;  %3045 = vmatprep.subr.mxu0 %v1699_v30  ;;  %vm8454_vm2 = vcmask 220160   ;;  %v8907_v30 = vld [vmem:[#allocation153_spill] sm:$0xff] }
 0x4f7   : > { %4864 = vmatprep.subr.msk.mxu1 %vm8477_vm6, %v2027_v6  ;;  %v1690_v19 = vpop.permute.xlu0 %1689  ;;  %v2642_v56 = vsel %vm8454_vm2, %v6841_v23, %v8896_v47  ;;  %v2641_v59 = vsel %vm8454_vm2, %v8897_v16, %v6841_v23  ;;  %v2639_v34 = vsel %vm8454_vm2, %v8900_v21, %v8899_v5  ;;  %v2601_v23 = vsel %vm8452_vm0, %v6893_v40, %v6462_v31  ;;  %v8917_v21 = vld [vmem:[#allocation156_spill] sm:$0xff] }
 0x4f8   : > { %4865 = vmatpush1.msk.msra.mxu1 %vm696_vm5, %v2026_v12  ;;  %v1698_v54 = vsel %vm1695_vm1, %v1690_v19, %v1692_v37  ;;  %v7272_v50 = vpop.permute.xlu1 %2384  ;;  %v8898_v37 = vld [vmem:[#allocation96_spill] sm:$0xff]  ;;  %v2598_v31 = vsel %vm8452_vm0, %v8905_v1, %v8904_v43  ;;  %v8908_v12 = vld [vmem:[#allocation102_spill] sm:$0xff]  ;;  %v8909_v19 = vld [vmem:[#allocation125_spill] sm:$0xff]  ;;  %v8913_v16 = vmov 0.0   ;;  %vm8456_vm0 = vcmask 261120  }
 0x4f9   : > { %4866 = vmatprep.subr.msk.mxu1 %vm8477_vm6, %v2025_v0  ;;  %3046 = vmatpush2.msra.mxu0 %v1698_v54  ;;  %v2640_v53 = vsel %vm8454_vm2, %v8899_v5, %v8898_v37  ;;  %v8916_v5 = vld [vmem:[#allocation49_spill] sm:$0xff]  ;;  %vm8457_vm2 = vcmask 343040  }
 0x4fa   : > { %4867 = vmatpush1.msk.msra.mxu1 %vm696_vm5, %v2024_v36  ;;  %v8912_v36 = vld [vmem:[#allocation155_spill] sm:$0xff] }
 0x4fb   : > { %4868 = vmatprep.subr.msk.mxu1 %vm705_vm4, %v2642_v56  ;;  %v1686_v29 = vpop.permute.xlu0 %1685 }
 0x4fc   : > { %4869 = vmatpush2.msk.msra.mxu1 %vm8886_vm10, %v2641_v59  ;;  %v7294_v62 = vpop.permute.xlu1 %2380  ;;  %vm8453_vm10 = vcmask 244736   ;;  %v8914_v59 = vld [vmem:[#allocation105_spill] sm:$0xff] }
 0x4fd   : > { %4870 = vmatprep.subr.msk.mxu1 %vm705_vm4, %v2640_v53  ;;  %v2518_v47 = vsel %vm8453_vm10, %v8912_v36, %v7003_v39 }
 0x4fe   : > { %4871 = vmatpush2.msk.msra.mxu1 %vm8901_vm13, %v2639_v34  ;;  %vm8451_vm13 = vcmask 236544  }
 0x4ff   : > { %4872 = vmatprep.subr.msk.mxu1 %vm8477_vm6, %v2601_v23  ;;  %v7311_v41 = vpop.permute.xlu0 %2347  ;;  %v2560_v38 = vsel %vm8451_vm13, %v6949_v11, %v8906_v18  ;;  %v2559_v32 = vsel %vm8451_vm13, %v8907_v30, %v6949_v11  ;;  %v2558_v54 = vsel %vm8451_vm13, %v8909_v19, %v8908_v12  ;;  %v2557_v0 = vsel %vm8451_vm13, %v8910_v44, %v8909_v19 }
 0x500   : > { %4873 = vmatpush2.msk.msra.mxu1 %vm696_vm5, %v2600_v35  ;;  %v1688_v63 = vpop.permute.xlu1 %1687  ;;  %v2519_v11 = vsel %vm8453_vm10, %v7003_v39, %v6553_v17  ;;  %vm8455_vm13 = vcmask 252928   ;;  %v8919_v35 = vld [vmem:[#allocation133_spill] sm:$0xff]  ;;  %v2393_v30 = vsel %vm8457_vm2, %v7294_v62, %v7243_v42 }
 0x501   : > { %4874 = vmatprep.subr.msk.mxu1 %vm8477_vm6, %v2599_v51  ;;  %v1697_v40 = vsel %vm1695_vm1, %v1686_v29, %v1688_v63  ;;  %v2478_v39 = vsel %vm8455_vm13, %v7055_v2, %v6593_v60  ;;  %v2477_v34 = vsel %vm8455_vm13, %v8917_v21, %v7055_v2  ;;  %v2476_v46 = vsel %vm8455_vm13, %v8919_v35, %v8918_v27  ;;  %v8920_v51 = vld [vmem:[#allocation51_spill] sm:$0xff] }
 0x502   : > { %4875 = vmatpush2.msk.msra.mxu1 %vm696_vm5, %v2598_v31  ;;  %3047 = vmatprep.subr.mxu0 %v1697_v40  ;;  %v2475_v60 = vsel %vm8455_vm13, %v8920_v51, %v8919_v35  ;;  %v2437_v2 = vsel %vm8456_vm0, %v7118_v9, %v6817_v28  ;;  %v2436_v63 = vsel %vm8456_vm0, %v7059_v58, %v7118_v9  ;;  %v8921_v31 = vld [vmem:[#allocation178_spill] sm:$0xff]  ;;  %vm8458_vm13 = vcmask 351232  }
 0x503   : > { %3096 = vmatprep.subr.mxu1 %v2560_v38  ;;  %v1684_v6 = vpop.permute.xlu0 %1683  ;;  %v2435_v40 = vsel %vm8456_vm0, %v8921_v31, %v7122_v45  ;;  %v2434_v28 = vsel %vm8456_vm0, %v7140_v48, %v8921_v31  ;;  %v2396_v9 = vsel %vm8457_vm2, %v7169_v7, %v7202_v13  ;;  %v2395_v45 = vsel %vm8457_vm2, %v7226_v4, %v7169_v7 }
 0x504   : > { %3097 = vmatpush2.msra.mxu1 %v2559_v32  ;;  %v1696_v57 = vsel %vm1695_vm1, %v1684_v6, %v1686_v29  ;;  %v2350_v61 = vpop.permute.xlu1 %2349  ;;  %v8915_v29 = vld [vmem:[#allocation129_spill] sm:$0xff]  ;;  %v2394_v48 = vsel %vm8457_vm2, %v7243_v42, %v7272_v50  ;;  %vm8922_vm0 = vcmp.lt.s32.totalorder %v6596_v33, 16 }
 0x505   : > { %3098 = vmatprep.subr.mxu1 %v2558_v54  ;;  %3048 = vmatpush2.msra.mxu0 %v1696_v57  ;;  %v2517_v37 = vsel %vm8453_vm10, %v8915_v29, %v8914_v59  ;;  %v2516_v53 = vsel %vm8453_vm10, %v8916_v5, %v8915_v29  ;;  %vm8476_vm10 = vcmask 211968   ;;  %v2355_v4 = vsel %vm8458_vm13, %v7311_v41, %v2350_v61  ;;  %vm8923_vm2 = vmmov %vm8922_vm0 }
 0x506   : > { %3099 = vmatpush2.msra.mxu1 %v2557_v0  ;;  %3050 = vmatmul.mubr.f32.vlgmr.msra.gmra.mxu0 %v8911_v15 }
 0x507   : > { %4876 = vmatprep.subr.msk.mxu1 %vm681_vm7, %v2519_v11  ;;  %v2342_v56 = vpop.permute.xlu0 %2341  ;;  %3191 = vmatprep.mubr.f32.mxu0 %v8913_v16 }
 0x508   : > { %4877 = vmatpush2.msk.msra.mxu1 %vm680_vm8, %v2518_v47  ;;  %v2346_v17 = vpop.permute.xlu1 %2345 }
 0x509   : > { %4878 = vmatprep.subr.msk.mxu1 %vm681_vm7, %v2517_v37  ;;  %v2354_v50 = vsel %vm8458_vm13, %v2346_v17, %v7311_v41  ;;  %v2699_v41 = vld [vmem:[#allocation8 + $0x18] sm:$0xf] }
 0x50a   : > { %4879 = vmatpush2.msk.msra.mxu1 %vm680_vm8, %v2516_v53 }
 0x50b   : > { %4880 = vmatprep.subr.msk.mxu1 %vm673_vm9, %v2478_v39  ;;  %v2676_v23 = vpop.permute.xlu0 %2675 }
 0x50c   : > { %4881 = vmatpush2.msk.msra.mxu1 %vm672_vm11, %v2477_v34  ;;  %v2344_v43 = vpop.permute.xlu1 %2343 }
 0x50d   : > { %4882 = vmatprep.subr.msk.mxu1 %vm673_vm9, %v2476_v46  ;;  %v2353_v42 = vsel %vm8458_vm13, %v2342_v56, %v2344_v43 }
 0x50e   : > { %4883 = vmatpush2.msk.msra.mxu1 %vm672_vm11, %v2475_v60 }
 0x50f   : > { %4884 = vmatprep.subr.msk.mxu1 %vm665_vm12, %v2437_v2  ;;  %v2340_v1 = vpop.permute.xlu0 %2339 }
 0x510   : > { %4885 = vmatpush2.msk.msra.mxu1 %vm664_vm14, %v2436_v63  ;;  %v2678_v18 = vpop.permute.xlu1 %2677  ;;  %v2352_v32 = vsel %vm8458_vm13, %v2340_v1, %v2342_v56  ;;  %vm8926_vm13 = vcmask 416768  }
 0x511   : > { %4886 = vmatprep.subr.msk.mxu1 %vm665_vm12, %v2435_v40  ;;  %v2683_v58 = vsel %vm8476_vm10, %v2676_v23, %v2678_v18 }
 0x512   : > { %4887 = vmatpush2.msk.msra.mxu1 %vm664_vm14, %v2434_v28  ;;  %4896 = vmatprep.subr.msk.mxu0 %vm713_vm15, %v2683_v58 }
 0x513   : > { %4888 = vmatprep.subr.msk.mxu1 %vm713_vm15, %v2396_v9 }
 0x514   : > { %4889 = vmatpush2.msk.msra.mxu1 %vm712_vm3, %v2395_v45  ;;  %v2670_v13 = vpop.permute.xlu0 %2669  ;;  %v2674_v38 = vpop.permute.xlu1 %2673 }
 0x515   : > { %4890 = vmatprep.subr.msk.mxu1 %vm713_vm15, %v2394_v48  ;;  %v2682_v7 = vsel %vm8476_vm10, %v2674_v38, %v2676_v23 }
 0x516   : > { %4891 = vmatpush2.msk.msra.mxu1 %vm712_vm3, %v2393_v30  ;;  %4897 = vmatpush1.msk.msra.mxu0 %vm712_vm3, %v2682_v7 }
 0x517   : > { %4892 = vmatprep.subr.msk.mxu1 %vm705_vm4, %v2355_v4 }
 0x518   : > { %4893 = vmatpush2.msk.msra.mxu1 %vm8922_vm0, %v2354_v50  ;;  %v2668_v62 = vpop.permute.xlu0 %2667  ;;  %vm8924_vm0 = vcmask 130048  }
 0x519   : > { %v2680_v6 = vsel %vm8476_vm10, %v2668_v62, %v2670_v13  ;;  %4894 = vmatprep.subr.msk.mxu1 %vm705_vm4, %v2353_v42  ;;  %v2672_v57 = vpop.permute.xlu1 %2671 }
 0x51a   : > { %v2681_v12 = vsel %vm8476_vm10, %v2670_v13, %v2672_v57  ;;  %4895 = vmatpush2.msk.msra.mxu1 %vm8923_vm2, %v2352_v32  ;;  %vm3210_vm2 = vcmask 1043864   ;;  %vm9028_vm10 = vcmask 637952  }
 0x51b   : > { %3121 = vmatmul.mubr.f32.vlgmr.msra.gmra.mxu1 %v7041_v25  ;;  %4898 = vmatprep.subr.msk.mxu0 %vm713_vm15, %v2681_v12 }
 0x51c   : > { %4899 = vmatpush1.msk.msra.mxu0 %vm712_vm3, %v2680_v6 }
 0x51d   : > { %4715 = vmatmul.mubr.msk.f32.vlgmr.msra.gmra.mxu0 %vm8924_vm0, %v2699_v41  ;;  %vm3213_vm0 = vcmask 412672  }
 0x526   : > { %v2900_v61 = vpop.permute.xlu1 %2899 }
 0x59b   : > { %v2980_v19 = vpop.f32.mrf.mxu1 }
 0x59c   : > { %v2981_v0 = vadd.f32 %v2980_v19, %v2900_v61 }
 0x59d   : > { %v2982_v44 = vpop.f32.mrf.mxu1 }
 0x59e   : > { %v2983_v15 = vadd.f32 %v2982_v44, %v2900_v61 }
 0x5c6   : > { %v3051_v54 = vpop.f32.mrf.mxu0 }
 0x5c7   : > { %v3052_v36 = vadd.f32 %v3051_v54, %v2981_v0 }
 0x5c8   : > { %v3053_v11 = vpop.f32.mrf.mxu0 }
 0x5c9   : > { %v3054_v56 = vadd.f32 %v3053_v11, %v2983_v15 }
 0x5db   : > { %v3122_v47 = vpop.f32.mrf.mxu1 }
 0x5dc   : > { %v3123_v59 = vadd.f32 %v3122_v47, %v3052_v36 }
 0x5dd   : > { %v3124_v25 = vpop.f32.mrf.mxu1  ;;  %v3193_v29 = vpop.f32.mrf.mxu0 }
 0x5de   : > { %v3125_v37 = vadd.f32 %v3124_v25, %v3054_v56  ;;  %v3194_v17 = vadd.f32 %v3193_v29, %v3123_v59 }
 0x5df   : > { %v3195_v5 = vpop.f32.mrf.mxu0 }
 0x5e0   : > { %v3198_v53 = vmax.f32 %v3194_v17, 0.0  ;;  %v3196_v39 = vadd.f32 %v3195_v5, %v3125_v37 }
 0x5e2   : > { %v3199_v21 = vmax.f32 %v3196_v39, 0.0  ;;  %3202 = vrot.lane.b32.xlu0 %v3198_v53, %s8925_s10 }
 0x5e4   : > { %3204 = vrot.lane.b32.xlu1 %v3199_v21, %s8925_s10  ;;  %s8929_s10 = smov 126  }
 0x654   : > { %v3203_v34 = vpop.permute.xlu0 %3202 }
 0x655   : > { %3211 = vst.msk [vmem:[#allocation2] sm:$0xf] %vm3210_vm2, %v3203_v34 }
 0x656   : > { %v3205_v23 = vpop.permute.xlu1 %3204 }
 0x657   : > { %v3206_v27 = vsel %vm8926_vm13, %v3203_v34, %v3205_v23  ;;  %3214 = vst.msk [vmem:[#allocation2 + $0x10] sm:$0xf] %vm3213_vm0, %v3205_v23  ;;  %vm9015_vm13 = vcmask 605184   ;;  %vm8475_vm0 = vcmask 556032  }
 0x658   : > { %3212 = vst [vmem:[#allocation2 + $0x8] sm:$0xf] %v3206_v27  ;;  %vm9016_vm2 = vmmov %vm9015_vm13 }
 0x65c   : > { %v3911_v35 = vld [vmem:[#allocation2] sm:$0xf] }
 0x65d   : > { %v3865_v46 = vld [vmem:[#allocation2] sm:$0xf]  ;;  %3917 = vrot.lane.b32.xlu0 %v3911_v35, %s8576_s1 }
 0x65e   : > { %3871 = vrot.lane.b32.xlu1 %v3865_v46, %s8583_s7  ;;  %v3891_v43 = vld [vmem:[#allocation2] sm:$0xf]  ;;  %v3913_v35 = vld [vmem:[#allocation2 + $0x10] sm:$0xf] }
 0x65f   : > { %v3819_v51 = vld [vmem:[#allocation2] sm:$0xf]  ;;  %v3216_v57 = vld [vmem:[#allocation2 + $0x8] sm:$0xf]  ;;  %v3821_v46 = vld [vmem:[#allocation2 + $0x10] sm:$0xf] }
 0x660   : > { %v3845_v60 = vld [vmem:[#allocation2] sm:$0xf]  ;;  %v3218_v41 = vsel %vm665_vm12, %v3216_v57, 0.0  ;;  %v3361_v57 = vld [vmem:[#allocation2 + $0x10] sm:$0xf] }
 0x661   : > { %3897 = vrot.lane.b32.xlu0 %v3891_v43, %s8579_s3  ;;  %v3773_v2 = vld [vmem:[#allocation2] sm:$0xf]  ;;  %3220 = vst [vmem:[#allocation4 + $0xd0] sm:$0xf] %v3218_v41  ;;  %v3867_v43 = vld [vmem:[#allocation2 + $0x10] sm:$0xf] }
 0x662   : > { %3825 = vrot.lane.b32.xlu1 %v3819_v51, %s8594_s11  ;;  %v3799_v63 = vld [vmem:[#allocation2] sm:$0xf]  ;;  %v3847_v51 = vld [vmem:[#allocation2 + $0x10] sm:$0xf]  ;;  %v3524_v16 = vld [vmem:[#allocation2 + $0x8] sm:$0xf] }
 0x663   : > { %v3727_v1 = vld [vmem:[#allocation2] sm:$0xf] }
 0x664   : > { %v3753_v31 = vld [vmem:[#allocation2] sm:$0xf] }
 0x665   : > { %3851 = vrot.lane.b32.xlu0 %v3845_v60, %s8588_s17  ;;  %v3681_v40 = vld [vmem:[#allocation2] sm:$0xf]  ;;  %v3893_v60 = vld [vmem:[#allocation2 + $0x10] sm:$0xf] }
 0x666   : > { %3779 = vrot.lane.b32.xlu1 %v3773_v2, %s8749_s20  ;;  %v3707_v18 = vld [vmem:[#allocation2] sm:$0xf]  ;;  %v3775_v2 = vld [vmem:[#allocation2 + $0x10] sm:$0xf] }
 0x667   : > { %v3635_v28 = vld [vmem:[#allocation2] sm:$0xf] }
 0x668   : > { %v3661_v58 = vld [vmem:[#allocation2] sm:$0xf] }
 0x669   : > { %3805 = vrot.lane.b32.xlu0 %v3799_v63, %s8622_s16  ;;  %v3615_v9 = vld [vmem:[#allocation2] sm:$0xf]  ;;  %v3755_v63 = vld [vmem:[#allocation2 + $0x10] sm:$0xf] }
 0x66a   : > { %3733 = vrot.lane.b32.xlu1 %v3727_v1, %s8627_s15  ;;  %v3589_v45 = vld [vmem:[#allocation2] sm:$0xf]  ;;  %v3801_v1 = vld [vmem:[#allocation2 + $0x10] sm:$0xf] }
 0x66b   : > { %v3543_v48 = vld [vmem:[#allocation2] sm:$0xf] }
 0x66c   : > { %v3569_v13 = vld [vmem:[#allocation2] sm:$0xf] }
 0x66d   : > { %3759 = vrot.lane.b32.xlu0 %v3753_v31, %s8927_s27  ;;  %v3497_v38 = vld [vmem:[#allocation2] sm:$0xf]  ;;  %v3683_v31 = vld [vmem:[#allocation2 + $0x10] sm:$0xf] }
 0x66e   : > { %3687 = vrot.lane.b32.xlu1 %v3681_v40, %s8544_s28  ;;  %v3523_v30 = vld [vmem:[#allocation2] sm:$0xf]  ;;  %v3729_v40 = vld [vmem:[#allocation2 + $0x10] sm:$0xf] }
 0x66f   : > { %v3451_v7 = vld [vmem:[#allocation2] sm:$0xf] }
 0x670   : > { %v3477_v4 = vld [vmem:[#allocation2] sm:$0xf] }
 0x671   : > { %3713 = vrot.lane.b32.xlu0 %v3707_v18, %s8626_s0  ;;  %v3405_v50 = vld [vmem:[#allocation2] sm:$0xf]  ;;  %v3709_v18 = vld [vmem:[#allocation2 + $0x10] sm:$0xf] }
 0x672   : > { %3641 = vrot.lane.b32.xlu1 %v3635_v28, %s8674_s25  ;;  %v3431_v42 = vld [vmem:[#allocation2] sm:$0xf] }
 0x673   : > { %v3359_v62 = vld [vmem:[#allocation2] sm:$0xf] }
 0x674   : > { %v3385_v32 = vld [vmem:[#allocation2] sm:$0xf] }
 0x675   : > { %3667 = vrot.lane.b32.xlu0 %v3661_v58, %s8667_s14  ;;  %v3313_v6 = vld [vmem:[#allocation2] sm:$0xf] }
 0x676   : > { %3621 = vrot.lane.b32.xlu1 %v3615_v9, %s8562_s21  ;;  %v3215_v12 = vld [vmem:[#allocation2] sm:$0xf]  ;;  %v3637_v9 = vld [vmem:[#allocation2 + $0x10] sm:$0xf] }
 0x677   : > { %v3217_v19 = vsel %vm664_vm14, %v3215_v12, 0.0  ;;  %v3339_v54 = vld [vmem:[#allocation2] sm:$0xf] }
 0x678   : > { %3219 = vst [vmem:[#allocation4 + $0xb0] sm:$0xf] %v3217_v19  ;;  %v3293_v61 = vld [vmem:[#allocation2] sm:$0xf]  ;;  %v3499_v19 = vld [vmem:[#allocation2 + $0x10] sm:$0xf] }
 0x679   : > { %3595 = vrot.lane.b32.xlu0 %v3589_v45, %s8568_s24  ;;  %v3267_v44 = vld [vmem:[#allocation2] sm:$0xf]  ;;  %v3545_v45 = vld [vmem:[#allocation2 + $0x10] sm:$0xf] }
 0x67a   : > { %3549 = vrot.lane.b32.xlu1 %v3543_v48, %s8726_s6  ;;  %v3221_v0 = vld [vmem:[#allocation2] sm:$0xf] }
 0x67b   : > { %v3247_v11 = vld [vmem:[#allocation2] sm:$0xf] }
 0x67c   : > { %v4279_v15 = vld [vmem:[#allocation2] sm:$0xf] }
 0x67d   : > { %3575 = vrot.lane.b32.xlu0 %v3569_v13, %s8573_s8  ;;  %v4305_v36 = vld [vmem:[#allocation2] sm:$0xf] }
 0x67e   : > { %3503 = vrot.lane.b32.xlu1 %v3497_v38, %s8731_s9  ;;  %v4259_v47 = vld [vmem:[#allocation2] sm:$0xf]  ;;  %v3663_v38 = vld [vmem:[#allocation2 + $0x10] sm:$0xf] }
 0x67f   : > { %v4233_v56 = vld [vmem:[#allocation2] sm:$0xf] }
 0x680   : > { %v4187_v59 = vld [vmem:[#allocation2] sm:$0xf] }
 0x681   : > { %3529 = vrot.lane.b32.xlu0 %v3523_v30, %s8729_s22  ;;  %v4213_v25 = vld [vmem:[#allocation2] sm:$0xf]  ;;  %v3571_v30 = vld [vmem:[#allocation2 + $0x10] sm:$0xf] }
 0x682   : > { %3457 = vrot.lane.b32.xlu1 %v3451_v7, %s8736_s4  ;;  %v4141_v29 = vld [vmem:[#allocation2] sm:$0xf]  ;;  %s8936_s4 = smov 42  }
 0x683   : > { %v4167_v37 = vld [vmem:[#allocation2] sm:$0xf] }
 0x684   : > { %v4095_v17 = vld [vmem:[#allocation2] sm:$0xf] }
 0x685   : > { %3483 = vrot.lane.b32.xlu0 %v3477_v4, %s8734_s2  ;;  %s8932_s2 = smov 28   ;;  %v4121_v5 = vld [vmem:[#allocation2] sm:$0xf] }
 0x686   : > { %3411 = vrot.lane.b32.xlu1 %v3405_v50, %s8741_s23  ;;  %s8931_s23 = smov 26   ;;  %v4049_v53 = vld [vmem:[#allocation2] sm:$0xf]  ;;  %v3617_v50 = vld [vmem:[#allocation2 + $0x10] sm:$0xf] }
 0x687   : > { %v4075_v39 = vld [vmem:[#allocation2] sm:$0xf] }
 0x688   : > { %v4003_v21 = vld [vmem:[#allocation2] sm:$0xf] }
 0x689   : > { %3437 = vrot.lane.b32.xlu0 %v3431_v42, %s8683_s12  ;;  %v4029_v34 = vld [vmem:[#allocation2] sm:$0xf]  ;;  %v3433_v42 = vld [vmem:[#allocation2 + $0x10] sm:$0xf] }
 0x68a   : > { %3365 = vrot.lane.b32.xlu1 %v3359_v62, %s8533_s26  ;;  %v3957_v23 = vld [vmem:[#allocation2] sm:$0xf] }
 0x68b   : > { %v3983_v27 = vld [vmem:[#allocation2] sm:$0xf] }
 0x68d   : > { %3391 = vrot.lane.b32.xlu0 %v3385_v32, %s8744_s13 }
 0x68e   : > { %3319 = vrot.lane.b32.xlu1 %v3313_v6, %s8713_s19  ;;  %s8930_s19 = smov 27   ;;  %v3591_v6 = vld [vmem:[#allocation2 + $0x10] sm:$0xf] }
 0x691   : > { %3345 = vrot.lane.b32.xlu0 %v3339_v54, %s8712_s5  ;;  %s8934_s5 = smov 31   ;;  %v3387_v54 = vld [vmem:[#allocation2 + $0x10] sm:$0xf] }
 0x692   : > { %3299 = vrot.lane.b32.xlu1 %v3293_v61, %s8715_s30  ;;  %s8933_s30 = smov 29  }
 0x695   : > { %3273 = vrot.lane.b32.xlu0 %v3267_v44, %s8716_s18  ;;  %s8935_s18 = smov 30  }
 0x696   : > { %3227 = vrot.lane.b32.xlu1 %v3221_v0, %s8928_s29  ;;  %v3525_v0 = vld [vmem:[#allocation2 + $0x10] sm:$0xf] }
 0x699   : > { %3253 = vrot.lane.b32.xlu0 %v3247_v11, %s8929_s10  ;;  %s8938_s10 = smov 44   ;;  %v3223_v11 = vld [vmem:[#allocation2 + $0x10] sm:$0xf] }
 0x69a   : > { %4285 = vrot.lane.b32.xlu1 %v4279_v15, %s8930_s19  ;;  %s8937_s19 = smov 32  }
 0x69d   : > { %4311 = vrot.lane.b32.xlu0 %v4305_v36, %s8931_s23  ;;  %s8940_s23 = smov 46  }
 0x69e   : > { %4265 = vrot.lane.b32.xlu1 %v4259_v47, %s8932_s2  ;;  %s8939_s2 = smov 43   ;;  %v3453_v47 = vld [vmem:[#allocation2 + $0x10] sm:$0xf] }
 0x6a1   : > { %4239 = vrot.lane.b32.xlu0 %v4233_v56, %s8933_s30  ;;  %s8941_s30 = smov 45   ;;  %v3249_v56 = vld [vmem:[#allocation2 + $0x10] sm:$0xf] }
 0x6a2   : > { %4193 = vrot.lane.b32.xlu1 %v4187_v59, %s8934_s5  ;;  %s8942_s5 = smov 48  }
 0x6a5   : > { %4219 = vrot.lane.b32.xlu0 %v4213_v25, %s8935_s18  ;;  %s8944_s18 = smov 59  }
 0x6a6   : > { %4147 = vrot.lane.b32.xlu1 %v4141_v29, %s8936_s4  ;;  %s8943_s4 = smov 47   ;;  %v3479_v29 = vld [vmem:[#allocation2 + $0x10] sm:$0xf] }
 0x6a9   : > { %4173 = vrot.lane.b32.xlu0 %v4167_v37, %s8937_s19  ;;  %v4189_v37 = vld [vmem:[#allocation2 + $0x10] sm:$0xf] }
 0x6aa   : > { %4101 = vrot.lane.b32.xlu1 %v4095_v17, %s8938_s10  ;;  %s8945_s10 = smov 58  }
 0x6ad   : > { %4127 = vrot.lane.b32.xlu0 %v4121_v5, %s8939_s2 }
 0x6ae   : > { %4055 = vrot.lane.b32.xlu1 %v4049_v53, %s8940_s23  ;;  %v3407_v53 = vld [vmem:[#allocation2 + $0x10] sm:$0xf] }
 0x6b1   : > { %4081 = vrot.lane.b32.xlu0 %v4075_v39, %s8941_s30  ;;  %v4215_v39 = vld [vmem:[#allocation2 + $0x10] sm:$0xf] }
 0x6b2   : > { %4009 = vrot.lane.b32.xlu1 %v4003_v21, %s8942_s5 }
 0x6b5   : > { %4035 = vrot.lane.b32.xlu0 %v4029_v34, %s8943_s4 }
 0x6b6   : > { %3963 = vrot.lane.b32.xlu1 %v3957_v23, %s8944_s18  ;;  %v3315_v23 = vld [vmem:[#allocation2 + $0x10] sm:$0xf] }
 0x6b9   : > { %3989 = vrot.lane.b32.xlu0 %v3983_v27, %s8945_s10  ;;  %v4077_v27 = vld [vmem:[#allocation2 + $0x10] sm:$0xf] }
 0x6ba   : > { %3921 = vrot.lane.b32.xlu1 %v3913_v35, %s8576_s1 }
 0x6bd   : > { %3829 = vrot.lane.b32.xlu0 %v3821_v46, %s8594_s11 }
 0x6be   : > { %3875 = vrot.lane.b32.xlu1 %v3867_v43, %s8583_s7  ;;  %v3341_v43 = vld [vmem:[#allocation2 + $0x10] sm:$0xf] }
 0x6c1   : > { %3855 = vrot.lane.b32.xlu0 %v3847_v51, %s8588_s17  ;;  %v4005_v51 = vld [vmem:[#allocation2 + $0x10] sm:$0xf] }
 0x6c2   : > { %3901 = vrot.lane.b32.xlu1 %v3893_v60, %s8579_s3 }
 0x6c5   : > { %3783 = vrot.lane.b32.xlu0 %v3775_v2, %s8749_s20 }
 0x6c6   : > { %3763 = vrot.lane.b32.xlu1 %v3755_v63, %s8927_s27  ;;  %v3295_v63 = vld [vmem:[#allocation2 + $0x10] sm:$0xf] }
 0x6c9   : > { %3809 = vrot.lane.b32.xlu0 %v3801_v1, %s8622_s16  ;;  %v4031_v1 = vld [vmem:[#allocation2 + $0x10] sm:$0xf] }
 0x6ca   : > { %3691 = vrot.lane.b32.xlu1 %v3683_v31, %s8544_s28 }
 0x6cd   : > { %3737 = vrot.lane.b32.xlu0 %v3729_v40, %s8627_s15 }
 0x6ce   : > { %3717 = vrot.lane.b32.xlu1 %v3709_v18, %s8626_s0  ;;  %v3269_v18 = vld [vmem:[#allocation2 + $0x10] sm:$0xf] }
 0x6cf   : > { %v7514_v28 = vpop.permute.xlu0 %3917 }
 0x6d0   : > { %v7516_v58 = vpop.permute.xlu1 %3871 }
 0x6d1   : > { %3645 = vrot.lane.b32.xlu0 %v3637_v9, %s8674_s25  ;;  %v3820_v9 = vld [vmem:[#allocation2 + $0x8] sm:$0xf] }
 0x6d2   : > { %3553 = vrot.lane.b32.xlu1 %v3545_v45, %s8726_s6  ;;  %s8954_s6 = smov 30  }
 0x6d3   : > { %v7520_v48 = vpop.permute.xlu0 %3897 }
 0x6d4   : > { %v7522_v13 = vpop.permute.xlu1 %3825 }
 0x6d5   : > { %3671 = vrot.lane.b32.xlu0 %v3663_v38, %s8667_s14 }
 0x6d6   : > { %3579 = vrot.lane.b32.xlu1 %v3571_v30, %s8573_s8  ;;  %s8951_s8 = smov 31   ;;  %v4281_v30 = vld [vmem:[#allocation2 + $0x10] sm:$0xf] }
 0x6d7   : > { %v7526_v7 = vpop.permute.xlu0 %3851 }
 0x6d8   : > { %v7528_v4 = vpop.permute.xlu1 %3779 }
 0x6d9   : > { %3625 = vrot.lane.b32.xlu0 %v3617_v50, %s8562_s21  ;;  %v3846_v50 = vld [vmem:[#allocation2 + $0x8] sm:$0xf] }
 0x6da   : > { %3441 = vrot.lane.b32.xlu1 %v3433_v42, %s8683_s12  ;;  %s8948_s12 = smov 126  }
 0x6db   : > { %v7532_v62 = vpop.permute.xlu0 %3805 }
 0x6dc   : > { %v7534_v32 = vpop.permute.xlu1 %3733 }
 0x6dd   : > { %3599 = vrot.lane.b32.xlu0 %v3591_v6, %s8568_s24 }
 0x6de   : > { %3369 = vrot.lane.b32.xlu1 %v3361_v57, %s8533_s26  ;;  %s8947_s26 = smov 108   ;;  %v4307_v57 = vld [vmem:[#allocation2 + $0x10] sm:$0xf] }
 0x6df   : > { %v7538_v12 = vpop.permute.xlu0 %3759 }
 0x6e0   : > { %v7540_v41 = vpop.permute.xlu1 %3687 }
 0x6e1   : > { %3507 = vrot.lane.b32.xlu0 %v3499_v19, %s8731_s9  ;;  %v3774_v19 = vld [vmem:[#allocation2 + $0x8] sm:$0xf] }
 0x6e2   : > { %3395 = vrot.lane.b32.xlu1 %v3387_v54, %s8744_s13  ;;  %s8950_s13 = smov 107  }
 0x6e3   : > { %v7544_v61 = vpop.permute.xlu0 %3713 }
 0x6e4   : > { %8946 = vst [vmem:[#allocation73_spill] sm:$0xff] %v7544_v61  ;;  %v7546_v44 = vpop.permute.xlu1 %3641  ;;  %v4004_v61 = vld [vmem:[#allocation2 + $0x8] sm:$0xf] }
 0x6e5   : > { %3533 = vrot.lane.b32.xlu0 %v3525_v0, %s8729_s22 }
 0x6e6   : > { %3231 = vrot.lane.b32.xlu1 %v3223_v11, %s8928_s29  ;;  %s8953_s29 = smov 110   ;;  %v4261_v11 = vld [vmem:[#allocation2 + $0x10] sm:$0xf] }
 0x6e7   : > { %v7550_v15 = vpop.permute.xlu0 %3667 }
 0x6e8   : > { %v7552_v36 = vpop.permute.xlu1 %3621 }
 0x6e9   : > { %3461 = vrot.lane.b32.xlu0 %v3453_v47, %s8947_s26  ;;  %v3800_v47 = vld [vmem:[#allocation2 + $0x8] sm:$0xf] }
 0x6ea   : > { %3257 = vrot.lane.b32.xlu1 %v3249_v56, %s8948_s12  ;;  %s8955_s12 = smov 123  }
 0x6eb   : > { %v7556_v59 = vpop.permute.xlu0 %3595 }
 0x6ec   : > { %v7558_v25 = vpop.permute.xlu1 %3549 }
 0x6ed   : > { %8949 = vst [vmem:[#allocation88_spill] sm:$0xff] %v7558_v25  ;;  %3487 = vrot.lane.b32.xlu0 %v3479_v29, %s8950_s13  ;;  %v4188_v25 = vld [vmem:[#allocation2 + $0x8] sm:$0xf] }
 0x6ee   : > { %4197 = vrot.lane.b32.xlu1 %v4189_v37, %s8951_s8  ;;  %s8956_s8 = smov 122   ;;  %v4235_v37 = vld [vmem:[#allocation2 + $0x10] sm:$0xf] }
 0x6ef   : > { %v7562_v17 = vpop.permute.xlu0 %3575 }
 0x6f0   : > { %8952 = vst [vmem:[#allocation111_spill] sm:$0xff] %v7562_v17  ;;  %v7564_v5 = vpop.permute.xlu1 %3503  ;;  %v4142_v17 = vld [vmem:[#allocation2 + $0x8] sm:$0xf] }
 0x6f1   : > { %3415 = vrot.lane.b32.xlu0 %v3407_v53, %s8953_s29  ;;  %v3728_v53 = vld [vmem:[#allocation2 + $0x8] sm:$0xf] }
 0x6f2   : > { %4223 = vrot.lane.b32.xlu1 %v4215_v39, %s8954_s6  ;;  %s8959_s6 = smov 124  }
 0x6f3   : > { %v7568_v21 = vpop.permute.xlu0 %3529 }
 0x6f4   : > { %v7570_v34 = vpop.permute.xlu1 %3457 }
 0x6f5   : > { %3323 = vrot.lane.b32.xlu0 %v3315_v23, %s8955_s12 }
 0x6f6   : > { %4085 = vrot.lane.b32.xlu1 %v4077_v27, %s8941_s30  ;;  %s8961_s30 = smov 125   ;;  %v4143_v27 = vld [vmem:[#allocation2 + $0x10] sm:$0xf] }
 0x6f7   : > { %v7574_v35 = vpop.permute.xlu0 %3483 }
 0x6f8   : > { %v7576_v46 = vpop.permute.xlu1 %3411 }
 0x6f9   : > { %3349 = vrot.lane.b32.xlu0 %v3341_v43, %s8956_s8  ;;  %v3636_v43 = vld [vmem:[#allocation2 + $0x8] sm:$0xf] }
 0x6fa   : > { %4013 = vrot.lane.b32.xlu1 %v4005_v51, %s8942_s5  ;;  %s8963_s5 = smov 27  }
 0x6fb   : > { %v7580_v60 = vpop.permute.xlu0 %3437 }
 0x6fc   : > { %8957 = vst [vmem:[#allocation158_spill] sm:$0xff] %v7580_v60  ;;  %v7582_v2 = vpop.permute.xlu1 %3365  ;;  %v3432_v60 = vld [vmem:[#allocation2 + $0x8] sm:$0xf] }
 0x6fd   : > { %8958 = vst [vmem:[#allocation32_spill] sm:$0xff] %v7582_v2  ;;  %3303 = vrot.lane.b32.xlu0 %v3295_v63, %s8959_s6  ;;  %v3570_v2 = vld [vmem:[#allocation2 + $0x8] sm:$0xf] }
 0x6fe   : > { %4039 = vrot.lane.b32.xlu1 %v4031_v1, %s8943_s4  ;;  %s8966_s4 = smov 26   ;;  %v4169_v1 = vld [vmem:[#allocation2 + $0x10] sm:$0xf] }
 0x6ff   : > { %v7586_v31 = vpop.permute.xlu0 %3391 }
 0x700   : > { %8960 = vst [vmem:[#allocation58_spill] sm:$0xff] %v7586_v31  ;;  %v7588_v40 = vpop.permute.xlu1 %3319  ;;  %v3544_v31 = vld [vmem:[#allocation2 + $0x8] sm:$0xf] }
 0x701   : > { %3277 = vrot.lane.b32.xlu0 %v3269_v18, %s8961_s30  ;;  %v3662_v18 = vld [vmem:[#allocation2 + $0x8] sm:$0xf] }
 0x702   : > { %3827 = vrot.lane.b32.xlu1 %v3820_v9, %s8594_s11  ;;  %s8969_s11 = smov 28  }
 0x703   : > { %v7592_v45 = vpop.permute.xlu0 %3345 }
 0x704   : > { %v7594_v38 = vpop.permute.xlu1 %3299 }
 0x705   : > { %8962 = vst [vmem:[#allocation116_spill] sm:$0xff] %v7594_v38  ;;  %4289 = vrot.lane.b32.xlu0 %v4281_v30, %s8963_s5  ;;  %v4030_v38 = vld [vmem:[#allocation2 + $0x8] sm:$0xf] }
 0x706   : > { %3853 = vrot.lane.b32.xlu1 %v3846_v50, %s8588_s17  ;;  %s8972_s17 = smov 29   ;;  %v4097_v50 = vld [vmem:[#allocation2 + $0x10] sm:$0xf] }
 0x707   : > { %v7598_v42 = vpop.permute.xlu0 %3273 }
 0x708   : > { %8964 = vst [vmem:[#allocation142_spill] sm:$0xff] %v7598_v42  ;;  %v7600_v6 = vpop.permute.xlu1 %3227  ;;  %v4214_v42 = vld [vmem:[#allocation2 + $0x8] sm:$0xf] }
 0x709   : > { %8965 = vst [vmem:[#allocation54_spill] sm:$0xff] %v7600_v6  ;;  %4315 = vrot.lane.b32.xlu0 %v4307_v57, %s8966_s4  ;;  %v3616_v57 = vld [vmem:[#allocation2 + $0x8] sm:$0xf] }
 0x70a   : > { %3781 = vrot.lane.b32.xlu1 %v3774_v19, %s8749_s20  ;;  %s8975_s20 = smov 42   ;;  %v3294_v6 = vld [vmem:[#allocation2 + $0x8] sm:$0xf] }
 0x70b   : > { %v7604_v54 = vpop.permute.xlu0 %3253 }
 0x70c   : > { %8967 = vst [vmem:[#allocation75_spill] sm:$0xff] %v7604_v54  ;;  %v7606_v0 = vpop.permute.xlu1 %4285  ;;  %v3340_v54 = vld [vmem:[#allocation2 + $0x8] sm:$0xf] }
 0x70d   : > { %8968 = vst [vmem:[#allocation160_spill] sm:$0xff] %v7606_v0  ;;  %4269 = vrot.lane.b32.xlu0 %v4261_v11, %s8969_s11  ;;  %v3222_v0 = vld [vmem:[#allocation2 + $0x8] sm:$0xf] }
 0x70e   : > { %3807 = vrot.lane.b32.xlu1 %v3800_v47, %s8622_s16  ;;  %s8980_s16 = smov 44   ;;  %v4123_v47 = vld [vmem:[#allocation2 + $0x10] sm:$0xf] }
 0x70f   : > { %v7610_v56 = vpop.permute.xlu0 %4311 }
 0x710   : > { %8970 = vst [vmem:[#allocation177_spill] sm:$0xff] %v7610_v56  ;;  %v7612_v29 = vpop.permute.xlu1 %4265  ;;  %v4260_v56 = vld [vmem:[#allocation2 + $0x8] sm:$0xf] }
 0x711   : > { %8971 = vst [vmem:[#allocation118_spill] sm:$0xff] %v7612_v29  ;;  %4243 = vrot.lane.b32.xlu0 %v4235_v37, %s8972_s17  ;;  %v3590_v37 = vld [vmem:[#allocation2 + $0x8] sm:$0xf] }
 0x712   : > { %3735 = vrot.lane.b32.xlu1 %v3728_v53, %s8627_s15  ;;  %v4306_v29 = vld [vmem:[#allocation2 + $0x8] sm:$0xf]  ;;  %s9170_s15 = sld [smem:[#allocation24_spill]] }
 0x713   : > { %v7616_v39 = vpop.permute.xlu0 %4239 }
 0x714   : > { %8973 = vst [vmem:[#allocation34_spill] sm:$0xff] %v7616_v39  ;;  %v7618_v23 = vpop.permute.xlu1 %4193  ;;  %v4280_v39 = vld [vmem:[#allocation2 + $0x8] sm:$0xf] }
 0x715   : > { %8974 = vst [vmem:[#allocation92_spill] sm:$0xff] %v7618_v23  ;;  %4151 = vrot.lane.b32.xlu0 %v4143_v27, %s8975_s20  ;;  %v3314_v23 = vld [vmem:[#allocation2 + $0x8] sm:$0xf] }
 0x716   : > { %3643 = vrot.lane.b32.xlu1 %v3636_v43, %s8674_s25  ;;  %v4051_v43 = vld [vmem:[#allocation2 + $0x10] sm:$0xf] }
 0x717   : > { %v7622_v51 = vpop.permute.xlu0 %4219 }
 0x718   : > { %8976 = vst [vmem:[#allocation113_spill] sm:$0xff] %v7622_v51  ;;  %v7624_v63 = vpop.permute.xlu1 %4147  ;;  %v3406_v51 = vld [vmem:[#allocation2 + $0x8] sm:$0xf] }
 0x719   : > { %8977 = vst [vmem:[#allocation60_spill] sm:$0xff] %v7624_v63  ;;  %4177 = vrot.lane.b32.xlu0 %v4169_v1, %s8937_s19  ;;  %v3498_v1 = vld [vmem:[#allocation2 + $0x8] sm:$0xf] }
 0x71a   : > { %3669 = vrot.lane.b32.xlu1 %v3662_v18, %s8667_s14  ;;  %v3268_v63 = vld [vmem:[#allocation2 + $0x8] sm:$0xf]  ;;  %s9024_s14 = sld [smem:[#allocation197_spill]] }
 0x71b   : > { %v7628_v9 = vpop.permute.xlu0 %4173 }
 0x71c   : > { %8978 = vst [vmem:[#allocation55_spill] sm:$0xff] %v7628_v9  ;;  %v7630_v30 = vpop.permute.xlu1 %4101  ;;  %v3708_v9 = vld [vmem:[#allocation2 + $0x8] sm:$0xf] }
 0x71d   : > { %8979 = vst [vmem:[#allocation76_spill] sm:$0xff] %v7630_v30  ;;  %4105 = vrot.lane.b32.xlu0 %v4097_v50, %s8980_s16  ;;  %v3682_v30 = vld [vmem:[#allocation2 + $0x8] sm:$0xf] }
 0x71e   : > { %3623 = vrot.lane.b32.xlu1 %v3616_v57, %s8562_s21  ;;  %v3959_v57 = vld [vmem:[#allocation2 + $0x10] sm:$0xf]  ;;  %s9018_s21 = smov 47  }
 0x71f   : > { %v7634_v19 = vpop.permute.xlu0 %4127 }
 0x720   : > { %8981 = vst [vmem:[#allocation161_spill] sm:$0xff] %v7634_v19  ;;  %v7636_v11 = vpop.permute.xlu1 %4055  ;;  %v3754_v19 = vld [vmem:[#allocation2 + $0x8] sm:$0xf] }
 0x721   : > { %8982 = vst [vmem:[#allocation36_spill] sm:$0xff] %v7636_v11  ;;  %4131 = vrot.lane.b32.xlu0 %v4123_v47, %s8939_s2  ;;  %v3892_v11 = vld [vmem:[#allocation2 + $0x8] sm:$0xf] }
 0x722   : > { %3597 = vrot.lane.b32.xlu1 %v3590_v37, %s8568_s24 }
 0x723   : > { %v7640_v53 = vpop.permute.xlu0 %4081 }
 0x724   : > { %8983 = vst [vmem:[#allocation120_spill] sm:$0xff] %v7640_v53  ;;  %v7642_v27 = vpop.permute.xlu1 %4009  ;;  %v3452_v53 = vld [vmem:[#allocation2 + $0x8] sm:$0xf] }
 0x725   : > { %8984 = vst [vmem:[#allocation56_spill] sm:$0xff] %v7642_v27  ;;  %4059 = vrot.lane.b32.xlu0 %v4051_v43, %s8940_s23  ;;  %v3985_v27 = vld [vmem:[#allocation2 + $0x10] sm:$0xf] }
 0x726   : > { %3505 = vrot.lane.b32.xlu1 %v3498_v1, %s8731_s9  ;;  %s9008_s9 = smov 30  }
 0x727   : > { %v7646_v18 = vpop.permute.xlu0 %4035 }
 0x728   : > { %8985 = vst [vmem:[#allocation78_spill] sm:$0xff] %v7646_v18  ;;  %v7648_v50 = vpop.permute.xlu1 %3963  ;;  %v3912_v18 = vld [vmem:[#allocation2 + $0x8] sm:$0xf] }
 0x729   : > { %8986 = vst [vmem:[#allocation181_spill] sm:$0xff] %v7648_v50  ;;  %3967 = vrot.lane.b32.xlu0 %v3959_v57, %s8944_s18  ;;  %v3478_v50 = vld [vmem:[#allocation2 + $0x8] sm:$0xf] }
 0x72a   : > { %3531 = vrot.lane.b32.xlu1 %v3524_v16, %s8729_s22  ;;  %s9174_s22 = sld [smem:[#allocation16_spill]] }
 0x72b   : > { %v7652_v47 = vpop.permute.xlu0 %3989 }
 0x72c   : > { %8987 = vst [vmem:[#allocation144_spill] sm:$0xff] %v7652_v47  ;;  %v7654_v37 = vpop.permute.xlu1 %3921  ;;  %v3866_v47 = vld [vmem:[#allocation2 + $0x8] sm:$0xf] }
 0x72d   : > { %3993 = vrot.lane.b32.xlu0 %v3985_v27, %s8945_s10 }
 0x72e   : > { %3459 = vrot.lane.b32.xlu1 %v3452_v53, %s8947_s26 }
 0x72f   : > { %v7658_v43 = vpop.permute.xlu0 %3829  ;;  %v9161_v55 = vld [vmem:[#allocation78_spill] sm:$0xff] }
 0x730   : > { %v7660_v1 = vpop.permute.xlu1 %3875 }
 0x731   : > { %3919 = vrot.lane.b32.xlu0 %v3912_v18, %s8576_s1  ;;  %s8992_s1 = smov 95  }
 0x732   : > { %3485 = vrot.lane.b32.xlu1 %v3478_v50, %s8950_s13 }
 0x733   : > { %v7664_v16 = vpop.permute.xlu0 %3855 }
 0x734   : > { %v7666_v57 = vpop.permute.xlu1 %3901 }
 0x735   : > { %3873 = vrot.lane.b32.xlu0 %v3866_v47, %s8583_s7  ;;  %s9004_s7 = smov 126  }
 0x736   : > { %3413 = vrot.lane.b32.xlu1 %v3406_v51, %s8953_s29 }
 0x737   : > { %v7670_v53 = vpop.permute.xlu0 %3783 }
 0x738   : > { %v7672_v27 = vpop.permute.xlu1 %3763 }
 0x739   : > { %3899 = vrot.lane.b32.xlu0 %v3892_v11, %s8579_s3  ;;  %s8994_s3 = smov 94  }
 0x73a   : > { %3321 = vrot.lane.b32.xlu1 %v3314_v23, %s8955_s12  ;;  %s9176_s12 = sld [smem:[#allocation19_spill]] }
 0x73b   : > { %v7676_v18 = vpop.permute.xlu0 %3809 }
 0x73c   : > { %v7678_v50 = vpop.permute.xlu1 %3691 }
 0x73d   : > { %8988 = vst [vmem:[#allocation38_spill] sm:$0xff] %v7678_v50  ;;  %3761 = vrot.lane.b32.xlu0 %v3754_v19, %s8927_s27  ;;  %v4326_v50 = vld [vmem:[#allocation10 + $0x8] sm:$0xff] }
 0x73e   : > { %3347 = vrot.lane.b32.xlu1 %v3340_v54, %s8956_s8  ;;  %s9006_s8 = smov 31   ;;  %4718 = vmatprep.mubr.msk.f32.mxu0 %vm8475_vm0, %v4326_v50  ;;  %vm9027_vm0 = vcmp.lt.s32.totalorder %v6596_v33, 16 }
 0x73f   : > { %v7682_v51 = vpop.permute.xlu0 %3737 }
 0x740   : > { %v7684_v47 = vpop.permute.xlu1 %3717 }
 0x741   : > { %8989 = vst [vmem:[#allocation95_spill] sm:$0xff] %v7684_v47  ;;  %3689 = vrot.lane.b32.xlu0 %v3682_v30, %s8544_s28  ;;  %v4076_v47 = vld [vmem:[#allocation2 + $0x8] sm:$0xf]  ;;  %s9021_s28 = sld [smem:[#allocation195_spill]] }
 0x742   : > { %3301 = vrot.lane.b32.xlu1 %v3294_v6, %s8959_s6  ;;  %s9002_s6 = smov 127  }
 0x743   : > { %v7688_v23 = vpop.permute.xlu0 %3645 }
 0x744   : > { %v7690_v11 = vpop.permute.xlu1 %3553 }
 0x745   : > { %8990 = vst [vmem:[#allocation115_spill] sm:$0xff] %v7690_v11  ;;  %3715 = vrot.lane.b32.xlu0 %v3708_v9, %s8626_s0  ;;  %s8996_s0 = smov 109   ;;  %v3248_v11 = vld [vmem:[#allocation2 + $0x8] sm:$0xf] }
 0x746   : > { %3275 = vrot.lane.b32.xlu1 %v3268_v63, %s8961_s30 }
 0x747   : > { %v7694_v54 = vpop.permute.xlu0 %3671 }
 0x748   : > { %v7696_v19 = vpop.permute.xlu1 %3579 }
 0x749   : > { %8991 = vst [vmem:[#allocation62_spill] sm:$0xff] %v7696_v19  ;;  %3551 = vrot.lane.b32.xlu0 %v3544_v31, %s8992_s1  ;;  %v4234_v19 = vld [vmem:[#allocation2 + $0x8] sm:$0xf] }
 0x74a   : > { %4287 = vrot.lane.b32.xlu1 %v4280_v39, %s8963_s5  ;;  %s8998_s5 = smov 112  }
 0x74b   : > { %v7700_v6 = vpop.permute.xlu0 %3625 }
 0x74c   : > { %v7702_v30 = vpop.permute.xlu1 %3441 }
 0x74d   : > { %8993 = vst [vmem:[#allocation163_spill] sm:$0xff] %v7702_v30  ;;  %3577 = vrot.lane.b32.xlu0 %v3570_v2, %s8994_s3  ;;  %v3360_v30 = vld [vmem:[#allocation2 + $0x8] sm:$0xf] }
 0x74e   : > { %4313 = vrot.lane.b32.xlu1 %v4306_v29, %s8966_s4  ;;  %s9000_s4 = smov 111  }
 0x74f   : > { %v7706_v63 = vpop.permute.xlu0 %3599 }
 0x750   : > { %v7708_v9 = vpop.permute.xlu1 %3369 }
 0x751   : > { %8995 = vst [vmem:[#allocation122_spill] sm:$0xff] %v7708_v9  ;;  %3439 = vrot.lane.b32.xlu0 %v3432_v60, %s8996_s0  ;;  %v3386_v9 = vld [vmem:[#allocation2 + $0x8] sm:$0xf] }
 0x752   : > { %4267 = vrot.lane.b32.xlu1 %v4260_v56, %s8969_s11  ;;  %s417_s11 = sand.u32 1, %s9174_s22  }
 0x753   : > { %v7712_v31 = vpop.permute.xlu0 %3507 }
 0x754   : > { %v7714_v39 = vpop.permute.xlu1 %3395 }
 0x755   : > { %8997 = vst [vmem:[#allocation146_spill] sm:$0xff] %v7714_v39  ;;  %3367 = vrot.lane.b32.xlu0 %v3360_v30, %s8998_s5  ;;  %v4168_v39 = vld [vmem:[#allocation2 + $0x8] sm:$0xf] }
 0x756   : > { %4241 = vrot.lane.b32.xlu1 %v4234_v19, %s8972_s17  ;;  %s4707_s17 = sshll.u32 %s417_s11, 4 }
 0x757   : > { %v7718_v2 = vpop.permute.xlu0 %3533  ;;  %s419_s1 = scalar_lea.vmem [#allocation11], %s4707_s17 }
 0x758   : > { %v7720_v29 = vpop.permute.xlu1 %3231  ;;  %s4607_s3 = sshll.u32 %s419_s1, 4  ;;  %s4608_s3 = int_to_ptr.vmem [resolvable:$true] %s4607_s3 }
 0x759   : > { %8999 = vst [vmem:[#allocation57_spill] sm:$0xff] %v7720_v29  ;;  %3393 = vrot.lane.b32.xlu0 %v3386_v9, %s9000_s4  ;;  %v4096_v29 = vld [vmem:[#allocation2 + $0x8] sm:$0xf]  ;;  %s9180_s4 = sld [smem:[#allocation198_spill]] }
 0x75a   : > { %4149 = vrot.lane.b32.xlu1 %v4142_v17, %s8975_s20  ;;  %s9179_s20 = sld [smem:[#allocation22_spill]] }
 0x75b   : > { %v7724_v60 = vpop.permute.xlu0 %3461 }
 0x75c   : > { %v7726_v56 = vpop.permute.xlu1 %3257 }
 0x75d   : > { %9001 = vst [vmem:[#allocation79_spill] sm:$0xff] %v7726_v56  ;;  %3229 = vrot.lane.b32.xlu0 %v3222_v0, %s9002_s6  ;;  %v4122_v56 = vld [vmem:[#allocation2 + $0x8] sm:$0xf] }
 0x75e   : > { %4175 = vrot.lane.b32.xlu1 %v4168_v39, %s8937_s19  ;;  %s9013_s19 = smov 48  }
 0x75f   : > { %v7730_v19 = vpop.permute.xlu0 %3487 }
 0x760   : > { %v7732_v30 = vpop.permute.xlu1 %4197  ;;  %p9181_p2 = scmp.ne.s32.totalorder %s9179_s20, 0 }
 0x761   : > { %9003 = vst [vmem:[#allocation164_spill] sm:$0xff] %v7732_v30  ;;  %3255 = vrot.lane.b32.xlu0 %v3248_v11, %s9004_s7  ;;  %v4050_v30 = vld [vmem:[#allocation2 + $0x8] sm:$0xf]  ;;  %s4593_s7 = scalar_lea.sflag [#allocation7], %s417_s11 }
 0x762   : > { %4103 = vrot.lane.b32.xlu1 %v4096_v29, %s8980_s16  ;;  %s4731_s16 = sshll.u32 %s9176_s12, 8 }
 0x763   : > { %v7736_v17 = vpop.permute.xlu0 %3415  ;;  %s4605_s6 = scalar_lea.hbm %s9180_s4, %s4731_s16 }
 0x764   : > { %v7738_v9 = vpop.permute.xlu1 %4223 }
 0x765   : > { %9005 = vst [vmem:[#allocation184_spill] sm:$0xff] %v7738_v9  ;;  %4195 = vrot.lane.b32.xlu0 %v4188_v25, %s9006_s8  ;;  %v3958_v9 = vld [vmem:[#allocation2 + $0x8] sm:$0xf]  ;;  %s5126_s8 = scalar_lea.vmem %s4608_s3, 256 }
 0x766   : > { %4129 = vrot.lane.b32.xlu1 %v4122_v56, %s8939_s2  ;;  %s9010_s2 = smov 45   ;;  %p5127_p12 = scmp.ne.s32.totalorder %s4608_s3, %s5126_s8 }
 0x767   : > { %v7742_v0 = vpop.permute.xlu0 %3323 }
 0x768   : > { %v7744_v39 = vpop.permute.xlu1 %4085  ;;  %p5128_p9 = pnand %p5127_p12, %p9181_p2 }
 0x769   : > { %9007 = vst [vmem:[#allocation40_spill] sm:$0xff] %v7744_v39  ;;  %4221 = vrot.lane.b32.xlu0 %v4214_v42, %s9008_s9  ;;  %v3984_v39 = vld [vmem:[#allocation2 + $0x8] sm:$0xf]  ;;  %s5252_s9 = smov [#allocation11]  }
 0x76a   : > { %4057 = vrot.lane.b32.xlu1 %v4050_v30, %s8940_s23  ;;  %p5129_p3 = pneg %p5128_p9 }
 0x76b   : > { %v7748_v11 = vpop.permute.xlu0 %3349 }
 0x76c   : > { %v7750_v29 = vpop.permute.xlu1 %4013 }
 0x76d   : > { %9009 = vst [vmem:[#allocation124_spill] sm:$0xff] %v7750_v29  ;;  %4083 = vrot.lane.b32.xlu0 %v4076_v47, %s9010_s2  ;;  %v3938_v47 = vld [vmem:[#allocation2 + $0x8] sm:$0xf]  ;;  %s5130_s2 = sshll.u32 %s5252_s9, 4  ;;  %s5131_s2 = int_to_ptr.vmem [resolvable:$false] %s5130_s2 }
 0x76e   : > { %3965 = vrot.lane.b32.xlu1 %v3958_v9, %s8944_s18  ;;  %s9017_s18 = smov 60   ;;  %p5133_p4 = scmp.lt.s32.totalorder %s4608_s3, %s5131_s2 }
 0x76f   : > { %v7754_v25 = vpop.permute.xlu0 %3303 }
 0x770   : > { %9011 = vst [vmem:[#allocation98_spill] sm:$0xff] %v7754_v25  ;;  %v7756_v56 = vpop.permute.xlu1 %4039 }
 0x771   : > { %9012 = vst [vmem:[#allocation119_spill] sm:$0xff] %v7756_v56  ;;  %4011 = vrot.lane.b32.xlu0 %v4004_v61, %s9013_s19  ;;  %s5132_s19 = scalar_lea.vmem %s5131_s2, 512 }
 0x772   : > { %3991 = vrot.lane.b32.xlu1 %v3984_v39, %s8945_s10  ;;  %s9177_s10 = sld [smem:[#allocation196_spill]]  ;;  %p5134_p5 = scmp.lt.s32.totalorder %s5132_s19, %s5126_s8 }
 0x773   : > { %v7760_v42 = vpop.permute.xlu0 %3277 }
 0x774   : > { %9014 = vst [vmem:[#allocation64_spill] sm:$0xff] %v7760_v42  ;;  %v3828_v30 = vpop.permute.xlu1 %3827  ;;  %p5135_p6 = por %p5134_p5, %p5133_p4 }
 0x775   : > { %v3831_v29 = vsel %vm9015_vm13, %v7522_v13, %v3828_v30  ;;  %v3832_v9 = vsel %vm9016_vm2, %v3828_v30, %v7658_v43  ;;  %4037 = vrot.lane.b32.xlu0 %v4030_v38, %s9018_s21  ;;  %vm9019_vm13 = vcmask 523264   ;;  %v3937_v30 = vld [vmem:[#allocation2] sm:$0xf] }
 0x776   : > { %v3835_v56 = vsel %vm712_vm3, %v3831_v29, 0.0  ;;  %v3836_v25 = vsel %vm713_vm15, %v3832_v9, 0.0  ;;  %3945 = vrot.lane.b32.xlu1 %v3938_v47, %s9017_s18  ;;  %vm9020_vm2 = vmmov %vm9019_vm13  ;;  %v3939_v9 = vld [vmem:[#allocation2 + $0x10] sm:$0xf]  ;;  %p5136_p10 = pnand %p5135_p6, %p5129_p3 }
 0x777   : > { %v3839_v61 = vrot.slane %v3835_v56, 4  ;;  %v3840_v39 = vrot.slane %v3836_v25, 4  ;;  %v7772_v42 = vpop.permute.xlu0 %4289 }
 0x778   : > { %v3854_v13 = vpop.permute.xlu1 %3853 }
 0x779   : > { %3843 = vst [vmem:[#allocation4 + $0x20] sm:$0xf0] %v3839_v61  ;;  %3844 = vst [vmem:[#allocation4 + $0x88] sm:$0xf0] %v3840_v39  ;;  %v3857_v43 = vsel %vm9019_vm13, %v7526_v7, %v3854_v13  ;;  %v3858_v29 = vsel %vm9020_vm2, %v3854_v13, %v7664_v16  ;;  %3947 = vrot.lane.b32.xlu0 %v3939_v9, %s9017_s18  ;;  %v4379_v7 = vld [vmem:[%s9021_s28] sm:$0xff]  ;;  %v4380_v16 = vld [vmem:[%s9021_s28 + $0x8] sm:$0xff] }
 0x77a   : > { %v3861_v38 = vsel %vm664_vm14, %v3857_v43, 0.0  ;;  %v3862_v25 = vsel %vm665_vm12, %v3858_v29, 0.0  ;;  %3943 = vrot.lane.b32.xlu1 %v3937_v30, %s9017_s18  ;;  %vm9022_vm13 = vcmask 621568   ;;  %v4510_v30 = vld [vmem:[%s9024_s14] sm:$0xff] }
 0x77b   : > { %3863 = vst [vmem:[#allocation4 + $0xa0] sm:$0xf] %v3861_v38  ;;  %3864 = vst [vmem:[#allocation4 + $0x170] sm:$0xf] %v3862_v25  ;;  %v7791_v50 = vpop.permute.xlu0 %4315 }
 0x77c   : > { %v3782_v56 = vpop.permute.xlu1 %3781  ;;  %vm9023_vm2 = vmmov %vm9022_vm13 }
 0x77d   : > { %v3785_v47 = vsel %vm9022_vm13, %v7528_v4, %v3782_v56  ;;  %v3786_v61 = vsel %vm9023_vm2, %v3782_v56, %v7670_v53  ;;  %4388 = vperm.xlu0 %5023, %v4380_v16   ;;  %vm9025_vm13 = vcmask 613376  }
 0x77e   : > { %v3789_v39 = vsel %vm696_vm5, %v3785_v47, 0.0  ;;  %v3790_v13 = vsel %vm8477_vm6, %v3786_v61, 0.0  ;;  %4383 = vperm.xlu1 %5024, %v4379_v7   ;;  %vm9026_vm2 = vmmov %vm9025_vm13 }
 0x77f   : > { %v3793_v43 = vrot.slane %v3789_v39, 4  ;;  %v3794_v29 = vrot.slane %v3790_v13, 4  ;;  %v7804_v9 = vpop.permute.xlu0 %4269 }
 0x780   : > { %v3808_v4 = vpop.permute.xlu1 %3807 }
 0x781   : > { %3797 = vst [vmem:[#allocation4 + $0xe8] sm:$0xf0] %v3793_v43  ;;  %3798 = vst [vmem:[#allocation4 + $0xf8] sm:$0xf0] %v3794_v29  ;;  %v3811_v53 = vsel %vm9025_vm13, %v7532_v62, %v3808_v4  ;;  %v3812_v38 = vsel %vm9026_vm2, %v3808_v4, %v7676_v18  ;;  %4513 = vperm.xlu0 %5023, %v4510_v30   ;;  %vm9032_vm2 = vcmp.lt.s32.totalorder %v6596_v33, 16 }
 0x782   : > { %v3815_v25 = vsel %vm9027_vm0, %v3811_v53, 0.0  ;;  %v3816_v7 = vsel %vm705_vm4, %v3812_v38, 0.0  ;;  %vm9029_vm13 = vmmov %vm9028_vm10  ;;  %vm9030_vm0 = vcmask 744448  }
 0x783   : > { %3817 = vst [vmem:[#allocation4 + $0x20] sm:$0xf] %v3815_v25  ;;  %3818 = vst [vmem:[#allocation4 + $0x88] sm:$0xf] %v3816_v7  ;;  %v7814_v16 = vpop.permute.xlu0 %4243 }
 0x784   : > { %v3736_v56 = vpop.permute.xlu1 %3735 }
 0x785   : > { %v3739_v47 = vsel %vm9028_vm10, %v7534_v32, %v3736_v56  ;;  %v3740_v62 = vsel %vm9029_vm13, %v3736_v56, %v7682_v51  ;;  %vm9031_vm10 = vmmov %vm9030_vm0  ;;  %vm9033_vm13 = vcmask 736256  }
 0x786   : > { %v3743_v18 = vsel %vm680_vm8, %v3739_v47, 0.0  ;;  %v3744_v61 = vsel %vm681_vm7, %v3740_v62, 0.0 }
 0x787   : > { %v3747_v39 = vrot.slane %v3743_v18, 4  ;;  %v3748_v13 = vrot.slane %v3744_v61, 4  ;;  %v7824_v43 = vpop.permute.xlu0 %4151 }
 0x788   : > { %v3644_v29 = vpop.permute.xlu1 %3643 }
 0x789   : > { %3751 = vst [vmem:[#allocation4 + $0xb8] sm:$0xf0] %v3747_v39  ;;  %3752 = vst [vmem:[#allocation4 + $0x168] sm:$0xf0] %v3748_v13  ;;  %v3647_v30 = vsel %vm9030_vm0, %v7546_v44, %v3644_v29  ;;  %v3648_v32 = vsel %vm9031_vm10, %v3644_v29, %v7688_v23  ;;  %vm9035_vm10 = vcmask 752640  }
 0x78a   : > { %v3651_v51 = vsel %vm9032_vm2, %v3647_v30, 0.0  ;;  %v3652_v4 = vsel %vm705_vm4, %v3648_v32, 0.0  ;;  %vm9034_vm0 = vmmov %vm9033_vm13 }
 0x78b   : > { %v3655_v53 = vrot.slane %v3651_v51, 4  ;;  %v3656_v38 = vrot.slane %v3652_v4, 4  ;;  %v7834_v25 = vpop.permute.xlu0 %4177  ;;  %vm9036_vm2 = vmmov %vm9035_vm10 }
 0x78c   : > { %v3670_v7 = vpop.permute.xlu1 %3669 }
 0x78d   : > { %3659 = vst [vmem:[#allocation4 + $0x138] sm:$0xf0] %v3655_v53  ;;  %3660 = vst [vmem:[#allocation4 + $0x120] sm:$0xf0] %v3656_v38  ;;  %v3673_v56 = vsel %vm9033_vm13, %v7550_v15, %v3670_v7  ;;  %v3674_v44 = vsel %vm9034_vm0, %v3670_v7, %v7694_v54  ;;  %vm9037_vm13 = vcmask 760832  }
 0x78e   : > { %v3677_v23 = vsel %vm712_vm3, %v3673_v56, 0.0  ;;  %v3678_v47 = vsel %vm713_vm15, %v3674_v44, 0.0  ;;  %vm9038_vm0 = vmmov %vm9037_vm13 }
 0x78f   : > { %3679 = vst [vmem:[#allocation4 + $0xe0] sm:$0xf] %v3677_v23  ;;  %3680 = vst [vmem:[#allocation4 + $0xa8] sm:$0xf] %v3678_v47  ;;  %v7844_v62 = vpop.permute.xlu0 %4105 }
 0x790   : > { %v3624_v18 = vpop.permute.xlu1 %3623 }
 0x791   : > { %v3627_v61 = vsel %vm9035_vm10, %v7552_v36, %v3624_v18  ;;  %v3628_v15 = vsel %vm9036_vm2, %v3624_v18, %v7700_v6  ;;  %vm9039_vm10 = vcmask 867328  }
 0x792   : > { %v3631_v54 = vsel %vm696_vm5, %v3627_v61, 0.0  ;;  %v3632_v39 = vsel %vm8477_vm6, %v3628_v15, 0.0  ;;  %vm9040_vm2 = vmmov %vm9039_vm10 }
 0x793   : > { %3633 = vst [vmem:[#allocation4 + $0x138] sm:$0xf] %v3631_v54  ;;  %3634 = vst [vmem:[#allocation4 + $0x120] sm:$0xf] %v3632_v39  ;;  %v7854_v13 = vpop.permute.xlu0 %4131 }
 0x794   : > { %v3598_v29 = vpop.permute.xlu1 %3597 }
 0x795   : > { %v3601_v30 = vsel %vm9037_vm13, %v7556_v59, %v3598_v29  ;;  %v3602_v36 = vsel %vm9038_vm0, %v3598_v29, %v7706_v63  ;;  %vm9041_vm13 = vcmask 785408  }
 0x796   : > { %v3609_v32 = vrot.slane %v3601_v30, 4  ;;  %v3610_v51 = vrot.slane %v3602_v36, 4  ;;  %vm9042_vm0 = vmmov %vm9041_vm13 }
 0x797   : > { %v7860_v6 = vpop.permute.xlu0 %4059 }
 0x798   : > { %3613 = vst [vmem:[#allocation4 + $0x180] sm:$0xf0] %v3609_v32  ;;  %3614 = vst [vmem:[#allocation4 + $0x130] sm:$0xf0] %v3610_v51  ;;  %v3506_v4 = vpop.permute.xlu1 %3505 }
 0x799   : > { %v3509_v53 = vsel %vm9039_vm10, %v7564_v5, %v3506_v4  ;;  %v3510_v38 = vsel %vm9040_vm2, %v3506_v4, %v7712_v31  ;;  %vm9043_vm10 = vcmask 883712  }
 0x79a   : > { %v3513_v7 = vsel %vm712_vm3, %v3509_v53, 0.0  ;;  %v3514_v59 = vsel %vm713_vm15, %v3510_v38, 0.0  ;;  %vm9044_vm2 = vmmov %vm9043_vm10 }
 0x79b   : > { %v3517_v63 = vrot.slane %v3513_v7, 4  ;;  %v3518_v56 = vrot.slane %v3514_v59, 4  ;;  %v7870_v44 = vpop.permute.xlu0 %3967 }
 0x79c   : > { %v3532_v23 = vpop.permute.xlu1 %3531 }
 0x79d   : > { %3521 = vst [vmem:[#allocation4 + $0x148] sm:$0xf0] %v3517_v63  ;;  %3522 = vst [vmem:[#allocation4 + $0x100] sm:$0xf0] %v3518_v56  ;;  %v3535_v47 = vsel %vm9041_vm13, %v7568_v21, %v3532_v23  ;;  %v3536_v5 = vsel %vm9042_vm0, %v3532_v23, %v7718_v2  ;;  %vm9045_vm13 = vcmask 498688  }
 0x79e   : > { %v3539_v31 = vsel %vm664_vm14, %v3535_v47, 0.0  ;;  %v3540_v18 = vsel %vm665_vm12, %v3536_v5, 0.0  ;;  %vm9046_vm0 = vmmov %vm9045_vm13 }
 0x79f   : > { %3541 = vst [vmem:[#allocation4 + $0x58] sm:$0xf] %v3539_v31  ;;  %3542 = vst [vmem:[#allocation4 + $0xd8] sm:$0xf] %v3540_v18  ;;  %v7880_v61 = vpop.permute.xlu0 %3993 }
 0x7a0   : > { %v3460_v15 = vpop.permute.xlu1 %3459 }
 0x7a1   : > { %v3463_v54 = vsel %vm9043_vm10, %v7570_v34, %v3460_v15  ;;  %v3464_v21 = vsel %vm9044_vm2, %v3460_v15, %v7724_v60  ;;  %vm9047_vm10 = vcmask 875520  }
 0x7a2   : > { %v3467_v2 = vsel %vm696_vm5, %v3463_v54, 0.0  ;;  %v3468_v39 = vsel %vm8477_vm6, %v3464_v21, 0.0  ;;  %vm9048_vm2 = vmmov %vm9047_vm10  ;;  %vm9049_vm6 = vcmp.lt.s32.totalorder %v6596_v33, 16 }
 0x7a3   : > { %v3471_v29 = vrot.slane %v3467_v2, 4  ;;  %v3472_v30 = vrot.slane %v3468_v39, 4  ;;  %v3920_v36 = vpop.permute.xlu0 %3919 }
 0x7a4   : > { %v3486_v32 = vpop.permute.xlu1 %3485  ;;  %v3923_v51 = vsel %vm9045_vm13, %v7514_v28, %v3920_v36  ;;  %v3924_v34 = vsel %vm9046_vm0, %v3920_v36, %v7654_v37  ;;  %vm9050_vm13 = vcmask 515072  }
 0x7a5   : > { %3475 = vst [vmem:[#allocation4 + $0x90] sm:$0xf0] %v3471_v29  ;;  %3476 = vst [vmem:[#allocation4 + $0x118] sm:$0xf0] %v3472_v30  ;;  %v3489_v60 = vsel %vm9047_vm10, %v7574_v35, %v3486_v32  ;;  %v3490_v4 = vsel %vm9048_vm2, %v3486_v32, %v7730_v19  ;;  %v3931_v53 = vrot.slane %v3923_v51, 4  ;;  %v3932_v38 = vrot.slane %v3924_v34, 4 }
 0x7a6   : > { %v3493_v7 = vsel %vm9049_vm6, %v3489_v60, 0.0  ;;  %v3494_v59 = vsel %vm705_vm4, %v3490_v4, 0.0  ;;  %vm9051_vm0 = vmmov %vm9050_vm13  ;;  %vm9052_vm10 = vcmask 900096   ;;  %vm9054_vm2 = vcmask 506880  }
 0x7a7   : > { %3495 = vst [vmem:[#allocation4 + $0x148] sm:$0xf] %v3493_v7  ;;  %3496 = vst [vmem:[#allocation4 + $0x100] sm:$0xf] %v3494_v59  ;;  %v3874_v28 = vpop.permute.xlu0 %3873  ;;  %v9062_v59 = vld [vmem:[#allocation38_spill] sm:$0xff] }
 0x7a8   : > { %3935 = vst [vmem:[#allocation4 + $0xf0] sm:$0xf0] %v3931_v53  ;;  %3936 = vst [vmem:[#allocation4 + $0x140] sm:$0xf0] %v3932_v38  ;;  %v3414_v37 = vpop.permute.xlu1 %3413  ;;  %v3877_v35 = vsel %vm9050_vm13, %v7516_v58, %v3874_v28  ;;  %v3878_v19 = vsel %vm9051_vm0, %v3874_v28, %v7660_v1  ;;  %vm9056_vm0 = vcmask 1006592   ;;  %v9064_v28 = vld [vmem:[#allocation116_spill] sm:$0xff] }
 0x7a9   : > { %v3417_v63 = vsel %vm9052_vm10, %v7576_v46, %v3414_v37  ;;  %vm9053_vm6 = vmmov %vm9052_vm10  ;;  %v3881_v23 = vsel %vm672_vm11, %v3877_v35, 0.0  ;;  %v3882_v47 = vsel %vm673_vm9, %v3878_v19, 0.0 }
 0x7aa   : > { %v3418_v56 = vsel %vm9053_vm6, %v3414_v37, %v7736_v17  ;;  %v3421_v5 = vsel %vm680_vm8, %v3417_v63, 0.0  ;;  %v3885_v31 = vrot.slane %v3881_v23, 4  ;;  %v3886_v1 = vrot.slane %v3882_v47, 4  ;;  %vm9055_vm13 = vmmov %vm9054_vm2  ;;  %v9066_v37 = vld [vmem:[#allocation98_spill] sm:$0xff] }
 0x7ab   : > { %v3422_v58 = vsel %vm681_vm7, %v3418_v56, 0.0  ;;  %v3425_v18 = vrot.slane %v3421_v5, 4  ;;  %v3900_v46 = vpop.permute.xlu0 %3899  ;;  %vm9057_vm10 = vmmov %vm9056_vm0  ;;  %vm9058_vm6 = vcmp.lt.s32.totalorder %v6596_v33, 16 }
 0x7ac   : > { %v3426_v15 = vrot.slane %v3422_v58, 4  ;;  %v3322_v54 = vpop.permute.xlu1 %3321  ;;  %3889 = vst [vmem:[#allocation4 + $0xa0] sm:$0xf0] %v3885_v31  ;;  %3890 = vst [vmem:[#allocation4 + $0x170] sm:$0xf0] %v3886_v1  ;;  %v3903_v17 = vsel %vm9054_vm2, %v7520_v48, %v3900_v46  ;;  %v3904_v21 = vsel %vm9055_vm13, %v3900_v46, %v7666_v57  ;;  %vm9059_vm2 = vcmask 998400  }
 0x7ad   : > { %3429 = vst [vmem:[#allocation4 + $0x108] sm:$0xf0] %v3425_v18  ;;  %v3325_v2 = vsel %vm9056_vm0, %v7588_v40, %v3322_v54  ;;  %v3326_v39 = vsel %vm9057_vm10, %v3322_v54, %v7742_v0  ;;  %v3907_v29 = vsel %vm680_vm8, %v3903_v17, 0.0  ;;  %v3908_v30 = vsel %vm681_vm7, %v3904_v21, 0.0  ;;  %vm9060_vm13 = vmmov %vm9059_vm2  ;;  %v9071_v54 = vld [vmem:[#allocation95_spill] sm:$0xff]  ;;  %v9073_v21 = vld [vmem:[#allocation142_spill] sm:$0xff] }
 0x7ae   : > { %3430 = vst [vmem:[#allocation4 + $0x110] sm:$0xf0] %v3426_v15  ;;  %v3329_v36 = vsel %vm9058_vm6, %v3325_v2, 0.0  ;;  %v3330_v48 = vsel %vm705_vm4, %v3326_v39, 0.0  ;;  %3909 = vst [vmem:[#allocation4 + $0xf0] sm:$0xf] %v3907_v29 }
 0x7af   : > { %3910 = vst [vmem:[#allocation4 + $0x140] sm:$0xf] %v3908_v30  ;;  %v3333_v57 = vrot.slane %v3329_v36, 4  ;;  %v3334_v32 = vrot.slane %v3330_v48, 4  ;;  %v3762_v40 = vpop.permute.xlu0 %3761  ;;  %vm9065_vm10 = vcmask 1014784   ;;  %v9069_v15 = vld [vmem:[#allocation73_spill] sm:$0xff] }
 0x7b0   : > { %v3348_v51 = vpop.permute.xlu1 %3347  ;;  %v3765_v0 = vsel %vm1695_vm1, %v7538_v12, %v3762_v40  ;;  %v3766_v34 = vsel %vm1695_vm1, %v3762_v40, %v7672_v27  ;;  %vm9061_vm1 = vcmask 654336   ;;  %vm9067_vm6 = vmmov %vm9065_vm10  ;;  %v9075_v39 = vld [vmem:[#allocation64_spill] sm:$0xff] }
 0x7b1   : > { %3337 = vst [vmem:[#allocation4 + $0x160] sm:$0xf0] %v3333_v57  ;;  %3338 = vst [vmem:[#allocation4 + $0x128] sm:$0xf0] %v3334_v32  ;;  %v3351_v60 = vsel %vm9059_vm2, %v7592_v45, %v3348_v51  ;;  %v3352_v4 = vsel %vm9060_vm13, %v3348_v51, %v7748_v11  ;;  %vm9068_vm2 = vcmp.lt.s32.totalorder %v6631_v52, 16  ;;  %vm9070_vm13 = vcmask 646144  }
 0x7b2   : > { %3771 = vst [vmem:[#allocation4 + $0xe8] sm:$0xf] %v3765_v0  ;;  %3772 = vst [vmem:[#allocation4 + $0xf8] sm:$0xf] %v3766_v34  ;;  %v3355_v53 = vsel %vm712_vm3, %v3351_v60, 0.0  ;;  %v3356_v38 = vsel %vm713_vm15, %v3352_v4, 0.0 }
 0x7b3   : > { %3357 = vst [vmem:[#allocation4 + $0x40] sm:$0xf] %v3355_v53  ;;  %3358 = vst [vmem:[#allocation4 + $0x178] sm:$0xf] %v3356_v38  ;;  %v3690_v12 = vpop.permute.xlu0 %3689  ;;  %v4358_v18 = vld [vmem:[#allocation4 + $0x170] sm:$0xff]  ;;  %v4357_v30 = vld [vmem:[#allocation4 + $0xa0] sm:$0xff] }
 0x7b4   : > { %v3302_v7 = vpop.permute.xlu1 %3301  ;;  %v3693_v27 = vsel %vm9061_vm1, %v7540_v41, %v3690_v12  ;;  %vm9063_vm0 = vmmov %vm9061_vm1  ;;  %v4356_v40 = vld [vmem:[#allocation4 + $0x88] sm:$0xff]  ;;  %v4355_v51 = vld [vmem:[#allocation4 + $0x20] sm:$0xff] }
 0x7b5   : > { %v3694_v45 = vsel %vm9063_vm0, %v3690_v12, %v9062_v59  ;;  %v3305_v11 = vsel %vm9065_vm10, %v9064_v28, %v3302_v7  ;;  %v3306_v35 = vsel %vm9067_vm6, %v3302_v7, %v9066_v37  ;;  %v3697_v19 = vsel %vm664_vm14, %v3693_v27, 0.0  ;;  %v4359_v47 = vld [vmem:[#allocation4 + $0xf0] sm:$0xff]  ;;  %vm9072_vm1 = vmmov %vm9070_vm13  ;;  %v9077_v4 = vld [vmem:[#allocation88_spill] sm:$0xff] }
 0x7b6   : > { %v3698_v63 = vsel %vm665_vm12, %v3694_v45, 0.0  ;;  %v3309_v56 = vsel %vm696_vm5, %v3305_v11, 0.0  ;;  %v3310_v41 = vsel %vm9068_vm2, %v3306_v35, 0.0  ;;  %v4360_v23 = vld [vmem:[#allocation4 + $0x140] sm:$0xff]  ;;  %v3701_v5 = vrot.slane %v3697_v19, 4  ;;  %v9081_v7 = vld [vmem:[#allocation160_spill] sm:$0xff] }
 0x7b7   : > { %v3702_v58 = vrot.slane %v3698_v63, 4  ;;  %3311 = vst [vmem:[#allocation4 + $0x160] sm:$0xf] %v3309_v56  ;;  %3312 = vst [vmem:[#allocation4 + $0x128] sm:$0xf] %v3310_v41  ;;  %4404 = vmatprep.subr.mxu0 %v4360_v23  ;;  %v3716_v31 = vpop.permute.xlu0 %3715  ;;  %vm9074_vm0 = vcmask 1022976  }
 0x7b8   : > { %4405 = vmatpush1.msra.mxu0 %v4359_v47  ;;  %v3276_v1 = vpop.permute.xlu1 %3275  ;;  %3705 = vst [vmem:[#allocation4 + $0xe0] sm:$0xf0] %v3701_v5  ;;  %v3719_v46 = vsel %vm9070_vm13, %v9069_v15, %v3716_v31  ;;  %v3720_v17 = vsel %vm9072_vm1, %v3716_v31, %v9071_v54  ;;  %vm9076_vm10 = vmmov %vm9074_vm0  ;;  %vm9078_vm6 = vcmask 777216   ;;  %v9079_v38 = vld [vmem:[#allocation115_spill] sm:$0xff]  ;;  %vm9082_vm13 = vcmask 220160  }
 0x7b9   : > { %3706 = vst [vmem:[#allocation4 + $0xa8] sm:$0xf0] %v3702_v58  ;;  %v3279_v2 = vsel %vm9074_vm0, %v9073_v21, %v3276_v1  ;;  %v3280_v29 = vsel %vm9076_vm10, %v3276_v1, %v9075_v39  ;;  %4406 = vmatprep.subr.mxu0 %v4358_v18  ;;  %v3723_v36 = vsel %vm672_vm11, %v3719_v46, 0.0  ;;  %v3724_v48 = vsel %vm673_vm9, %v3720_v17, 0.0  ;;  %v4354_v60 = vld [vmem:[#allocation4 + $0xf8] sm:$0xff]  ;;  %vm9080_vm2 = vmmov %vm9078_vm6  ;;  %v4353_v45 = vld [vmem:[#allocation4 + $0xe8] sm:$0xff] }
 0x7ba   : > { %v3287_v57 = vrot.slane %v3279_v2, 4  ;;  %v3288_v32 = vrot.slane %v3280_v29, 4  ;;  %4407 = vmatpush1.msra.mxu0 %v4357_v30  ;;  %3725 = vst [vmem:[#allocation4 + $0xb8] sm:$0xf] %v3723_v36  ;;  %3726 = vst [vmem:[#allocation4 + $0x168] sm:$0xf] %v3724_v48 }
 0x7bb   : > { %4408 = vmatprep.subr.mxu0 %v4356_v40  ;;  %v3552_v0 = vpop.permute.xlu0 %3551  ;;  %vm9083_vm1 = vmmov %vm9082_vm13  ;;  %vm9084_vm0 = vcmp.lt.s32.totalorder %v6596_v33, 16  ;;  %v9085_v47 = vld [vmem:[#allocation111_spill] sm:$0xff]  ;;  %vm9086_vm10 = vcmask 769024   ;;  %v9087_v58 = vld [vmem:[#allocation62_spill] sm:$0xff] }
 0x7bc   : > { %3291 = vst [vmem:[#allocation4 + $0x10] sm:$0xf0] %v3287_v57  ;;  %3292 = vst [vmem:[#allocation4 + $0x48] sm:$0xf0] %v3288_v32  ;;  %4409 = vmatpush1.msra.mxu0 %v4355_v51  ;;  %v4288_v34 = vpop.permute.xlu1 %4287  ;;  %v3555_v53 = vsel %vm9078_vm6, %v9077_v4, %v3552_v0  ;;  %v3556_v12 = vsel %vm9080_vm2, %v3552_v0, %v9079_v38  ;;  %v9089_v1 = vld [vmem:[#allocation177_spill] sm:$0xff]  ;;  %vm9090_vm2 = vcmask 211968  }
 0x7bd   : > { %v4291_v27 = vsel %vm9082_vm13, %v9081_v7, %v4288_v34  ;;  %v4292_v59 = vsel %vm9083_vm1, %v4288_v34, %v7772_v42  ;;  %4410 = vmatprep.subr.mxu0 %v4354_v60  ;;  %v3559_v28 = vsel %vm672_vm11, %v3555_v53, 0.0  ;;  %v3560_v11 = vsel %vm673_vm9, %v3556_v12, 0.0  ;;  %vm9088_vm6 = vmmov %vm9086_vm10  ;;  %v9092_v36 = vld [vmem:[#allocation158_spill] sm:$0xff]  ;;  %v9094_v57 = vld [vmem:[#allocation163_spill] sm:$0xff] }
 0x7be   : > { %v4295_v37 = vsel %vm9084_vm0, %v4291_v27, 0.0  ;;  %v4296_v35 = vsel %vm705_vm4, %v4292_v59, 0.0  ;;  %4411 = vmatpush1.msra.mxu0 %v4353_v45  ;;  %v3563_v19 = vrot.slane %v3559_v28, 4  ;;  %v3564_v63 = vrot.slane %v3560_v11, 4  ;;  %vm9091_vm13 = vmmov %vm9090_vm2  ;;  %v9096_v40 = vld [vmem:[#allocation118_spill] sm:$0xff]  ;;  %v4348_v53 = vld [vmem:[#allocation4 + $0x120] sm:$0xff] }
 0x7bf   : > { %v4299_v56 = vrot.slane %v4295_v37, 4  ;;  %v4300_v41 = vrot.slane %v4296_v35, 4  ;;  %v3578_v42 = vpop.permute.xlu0 %3577  ;;  %vm9093_vm1 = vcmask 891904   ;;  %v4349_v34 = vld [vmem:[#allocation4 + $0xe0] sm:$0xff]  ;;  %v4347_v38 = vld [vmem:[#allocation4 + $0x138] sm:$0xff] }
 0x7c0   : > { %v4314_v23 = vpop.permute.xlu1 %4313  ;;  %3567 = vst [vmem:[#allocation4 + $0x58] sm:$0xf0] %v3563_v19  ;;  %3568 = vst [vmem:[#allocation4 + $0xd8] sm:$0xf0] %v3564_v63  ;;  %v3581_v5 = vsel %vm9086_vm10, %v9085_v47, %v3578_v42  ;;  %v3582_v31 = vsel %vm9088_vm6, %v3578_v42, %v9087_v58  ;;  %v4350_v30 = vld [vmem:[#allocation4 + $0xa8] sm:$0xff]  ;;  %vm9097_vm10 = vcmask 228352  }
 0x7c1   : > { %4303 = vst [vmem:[#allocation4 + $0xc8] sm:$0xf0] %v4299_v56  ;;  %4304 = vst [vmem:[#allocation4 + $0x60] sm:$0xf0] %v4300_v41  ;;  %v4317_v18 = vsel %vm9090_vm2, %v9089_v1, %v4314_v23  ;;  %v4318_v15 = vsel %vm9091_vm13, %v4314_v23, %v7791_v50  ;;  %v3585_v46 = vsel %vm680_vm8, %v3581_v5, 0.0  ;;  %v3586_v54 = vsel %vm681_vm7, %v3582_v31, 0.0 }
 0x7c2   : > { %v4321_v17 = vsel %vm712_vm3, %v4317_v18, 0.0  ;;  %v4322_v21 = vsel %vm713_vm15, %v4318_v15, 0.0  ;;  %v4352_v2 = vld [vmem:[#allocation4 + $0x168] sm:$0xff]  ;;  %v4351_v39 = vld [vmem:[#allocation4 + $0xb8] sm:$0xff]  ;;  %3587 = vst [vmem:[#allocation4 + $0x180] sm:$0xf] %v3585_v46  ;;  %vm9095_vm0 = vmmov %vm9093_vm1 }
 0x7c3   : > { %3588 = vst [vmem:[#allocation4 + $0x130] sm:$0xf] %v3586_v54  ;;  %4323 = vst [vmem:[#allocation4 + $0x78] sm:$0xf] %v4321_v17  ;;  %4412 = vmatprep.subr.mxu0 %v4352_v2  ;;  %v3440_v50 = vpop.permute.xlu0 %3439  ;;  %vm9099_vm2 = vcmp.lt.s32.totalorder %v6631_v52, 16  ;;  %vm9101_vm13 = vcmask 916480  }
 0x7c4   : > { %4324 = vst [vmem:[#allocation4 + $0x150] sm:$0xf] %v4322_v21  ;;  %4413 = vmatpush1.msra.mxu0 %v4351_v39  ;;  %v4268_v29 = vpop.permute.xlu1 %4267  ;;  %v3443_v48 = vsel %vm9093_vm1, %v9092_v36, %v3440_v50  ;;  %v3444_v32 = vsel %vm9095_vm0, %v3440_v50, %v9094_v57  ;;  %vm9098_vm6 = vmmov %vm9097_vm10  ;;  %v9102_v59 = vld [vmem:[#allocation122_spill] sm:$0xff]  ;;  %vm9105_vm0 = vcmask 236544   ;;  %v9111_v46 = vld [vmem:[#allocation60_spill] sm:$0xff] }
 0x7c5   : > { %v4271_v51 = vsel %vm9097_vm10, %v9096_v40, %v4268_v29  ;;  %v4272_v0 = vsel %vm9098_vm6, %v4268_v29, %v7804_v9  ;;  %4414 = vmatprep.subr.mxu0 %v4350_v30  ;;  %3449 = vst [vmem:[#allocation4 + $0x90] sm:$0xf] %v3443_v48  ;;  %3450 = vst [vmem:[#allocation4 + $0x118] sm:$0xf] %v3444_v32  ;;  %v9100_v9 = vld [vmem:[#allocation32_spill] sm:$0xff]  ;;  %v9104_v28 = vld [vmem:[#allocation34_spill] sm:$0xff] }
 0x7c6   : > { %v4275_v60 = vsel %vm696_vm5, %v4271_v51, 0.0  ;;  %v4276_v4 = vsel %vm9099_vm2, %v4272_v0, 0.0  ;;  %4415 = vmatpush1.msra.mxu0 %v4349_v34  ;;  %vm9103_vm1 = vmmov %vm9101_vm13  ;;  %vm9108_vm6 = vcmask 908288   ;;  %v9109_v18 = vld [vmem:[#allocation146_spill] sm:$0xff]  ;;  %v4342_v30 = vld [vmem:[#allocation4 + $0x100] sm:$0xff] }
 0x7c7   : > { %4277 = vst [vmem:[#allocation4 + $0xc8] sm:$0xf] %v4275_v60  ;;  %4278 = vst [vmem:[#allocation4 + $0x60] sm:$0xf] %v4276_v4  ;;  %4416 = vmatprep.subr.mxu0 %v4348_v53  ;;  %v3368_v12 = vpop.permute.xlu0 %3367  ;;  %v4344_v31 = vld [vmem:[#allocation4 + $0xd8] sm:$0xff]  ;;  %v4341_v48 = vld [vmem:[#allocation4 + $0x148] sm:$0xff] }
 0x7c8   : > { %4417 = vmatpush1.msra.mxu0 %v4347_v38  ;;  %v4242_v7 = vpop.permute.xlu1 %4241  ;;  %v3371_v27 = vsel %vm9101_vm13, %v9100_v9, %v3368_v12  ;;  %v3372_v45 = vsel %vm9103_vm1, %v3368_v12, %v9102_v59  ;;  %vm9106_vm10 = vmmov %vm9105_vm0  ;;  %vm9112_vm13 = vcmask 343040   ;;  %v4343_v21 = vld [vmem:[#allocation4 + $0x58] sm:$0xff]  ;;  %v9114_v51 = vld [vmem:[#allocation55_spill] sm:$0xff] }
 0x7c9   : > { %v4245_v11 = vsel %vm9105_vm0, %v9104_v28, %v4242_v7  ;;  %v4246_v37 = vsel %vm9106_vm10, %v4242_v7, %v7814_v16  ;;  %v3375_v35 = vsel %vm664_vm14, %v3371_v27, 0.0  ;;  %v3376_v19 = vsel %vm665_vm12, %v3372_v45, 0.0  ;;  %v4345_v42 = vld [vmem:[#allocation4 + $0x180] sm:$0xff]  ;;  %v9107_v16 = vld [vmem:[#allocation58_spill] sm:$0xff]  ;;  %vm9110_vm2 = vmmov %vm9108_vm6 }
 0x7ca   : > { %v4253_v63 = vrot.slane %v4245_v11, 4  ;;  %v4254_v56 = vrot.slane %v4246_v37, 4  ;;  %v4346_v41 = vld [vmem:[#allocation4 + $0x130] sm:$0xff]  ;;  %v3379_v23 = vrot.slane %v3375_v35, 4  ;;  %v3380_v47 = vrot.slane %v3376_v19, 4  ;;  %vm9113_vm1 = vmmov %vm9112_vm13  ;;  %v9117_v60 = vld [vmem:[#allocation54_spill] sm:$0xff] }
 0x7cb   : > { %4418 = vmatprep.subr.mxu0 %v4346_v41  ;;  %v3394_v5 = vpop.permute.xlu0 %3393  ;;  %vm9115_vm0 = vcmask 261120   ;;  %v9119_v53 = vld [vmem:[#allocation57_spill] sm:$0xff]  ;;  %v9121_v37 = vld [vmem:[#allocation76_spill] sm:$0xff]  ;;  %v9126_v41 = vld [vmem:[#allocation79_spill] sm:$0xff] }
 0x7cc   : > { %4257 = vst [vmem:[#allocation4 + $0x68] sm:$0xf0] %v4253_v63  ;;  %4258 = vst [vmem:[#allocation4 + $0x80] sm:$0xf0] %v4254_v56  ;;  %4419 = vmatpush1.msra.mxu0 %v4345_v42  ;;  %v4150_v58 = vpop.permute.xlu1 %4149  ;;  %v3397_v1 = vsel %vm9108_vm6, %v9107_v16, %v3394_v5  ;;  %v3398_v15 = vsel %vm9110_vm2, %v3394_v5, %v9109_v18  ;;  %v4340_v40 = vld [vmem:[#allocation4 + $0x118] sm:$0xff]  ;;  %vm9118_vm6 = vcmask 1039360  }
 0x7cd   : > { %3383 = vst [vmem:[#allocation4 + $0x40] sm:$0xf0] %v3379_v23  ;;  %3384 = vst [vmem:[#allocation4 + $0x178] sm:$0xf0] %v3380_v47  ;;  %v4153_v54 = vsel %vm9112_vm13, %v9111_v46, %v4150_v58  ;;  %v4154_v17 = vsel %vm9113_vm1, %v4150_v58, %v7824_v43  ;;  %4420 = vmatprep.subr.mxu0 %v4344_v31  ;;  %v3401_v2 = vsel %vm672_vm11, %v3397_v1, 0.0  ;;  %v3402_v39 = vsel %vm673_vm9, %v3398_v15, 0.0 }
 0x7ce   : > { %v4157_v50 = vsel %vm712_vm3, %v4153_v54, 0.0  ;;  %v4158_v29 = vsel %vm713_vm15, %v4154_v17, 0.0  ;;  %4421 = vmatpush1.msra.mxu0 %v4343_v21  ;;  %3403 = vst [vmem:[#allocation4 + $0x108] sm:$0xf] %v3401_v2  ;;  %3404 = vst [vmem:[#allocation4 + $0x110] sm:$0xf] %v3402_v39 }
 0x7cf   : > { %v4161_v36 = vrot.slane %v4157_v50, 4  ;;  %v4162_v43 = vrot.slane %v4158_v29, 4  ;;  %4422 = vmatprep.subr.mxu0 %v4342_v30  ;;  %v3230_v32 = vpop.permute.xlu0 %3229  ;;  %vm9116_vm10 = vmmov %vm9115_vm0  ;;  %v4339_v12 = vld [vmem:[#allocation4 + $0x90] sm:$0xff]  ;;  %vm9122_vm13 = vcmask 359424   ;;  %v9124_v63 = vld [vmem:[#allocation75_spill] sm:$0xff] }
 0x7d0   : > { %4423 = vmatpush1.msra.mxu0 %v4341_v48  ;;  %v4176_v57 = vpop.permute.xlu1 %4175  ;;  %v3233_v4 = vsel %vm9118_vm6, %v9117_v60, %v3230_v32  ;;  %vm9120_vm2 = vmmov %vm9118_vm6  ;;  %vm9128_vm6 = vcmp.lt.s32.totalorder %v6631_v52, 16  ;;  %v9129_v54 = vld [vmem:[#allocation161_spill] sm:$0xff]  ;;  %v9132_v2 = vld [vmem:[#allocation92_spill] sm:$0xff] }
 0x7d1   : > { %4165 = vst [vmem:[#allocation4 + $0x28] sm:$0xf0] %v4161_v36  ;;  %4166 = vst [vmem:[#allocation4 + $0x158] sm:$0xf0] %v4162_v43  ;;  %v4179_v0 = vsel %vm9115_vm0, %v9114_v51, %v4176_v57  ;;  %v4180_v34 = vsel %vm9116_vm10, %v4176_v57, %v7834_v25  ;;  %v3234_v38 = vsel %vm9120_vm2, %v3230_v32, %v9119_v53  ;;  %4424 = vmatprep.subr.mxu0 %v4340_v40  ;;  %vm9125_vm0 = vcmask 1031168   ;;  %v9134_v50 = vld [vmem:[#allocation164_spill] sm:$0xff] }
 0x7d2   : > { %v4183_v7 = vsel %vm664_vm14, %v4179_v0, 0.0  ;;  %v4184_v9 = vsel %vm665_vm12, %v4180_v34, 0.0  ;;  %v3237_v27 = vsel %vm672_vm11, %v3233_v4, 0.0  ;;  %v3238_v25 = vsel %vm673_vm9, %v3234_v38, 0.0  ;;  %4425 = vmatpush1.msra.mxu0 %v4339_v12  ;;  %vm9123_vm1 = vmmov %vm9122_vm13  ;;  %v4334_v57 = vld [vmem:[#allocation4 + $0x128] sm:$0xff]  ;;  %v4333_v51 = vld [vmem:[#allocation4 + $0x160] sm:$0xff] }
 0x7d3   : > { %4185 = vst [vmem:[#allocation4 + $0x38] sm:$0xf] %v4183_v7  ;;  %4186 = vst [vmem:[#allocation4 + $0x70] sm:$0xf] %v4184_v9  ;;  %v3241_v59 = vrot.slane %v3237_v27, 4  ;;  %v3242_v45 = vrot.slane %v3238_v25, 4  ;;  %v3256_v11 = vpop.permute.xlu0 %3255 }
 0x7d4   : > { %v4104_v28 = vpop.permute.xlu1 %4103  ;;  %v3259_v56 = vsel %vm9125_vm0, %v9124_v63, %v3256_v11  ;;  %vm9127_vm10 = vmmov %vm9125_vm0  ;;  %v4336_v46 = vld [vmem:[#allocation4 + $0x178] sm:$0xff]  ;;  %vm9130_vm2 = vcmask 351232   ;;  %v4335_v30 = vld [vmem:[#allocation4 + $0x40] sm:$0xff] }
 0x7d5   : > { %3245 = vst [vmem:[#allocation4 + $0xb0] sm:$0xf0] %v3241_v59  ;;  %3246 = vst [vmem:[#allocation4 + $0xd0] sm:$0xf0] %v3242_v45  ;;  %v4107_v35 = vsel %vm9122_vm13, %v9121_v37, %v4104_v28  ;;  %v4108_v19 = vsel %vm9123_vm1, %v4104_v28, %v7844_v62  ;;  %v3260_v42 = vsel %vm9127_vm10, %v3256_v11, %v9126_v41  ;;  %v3263_v5 = vsel %vm680_vm8, %v3259_v56, 0.0  ;;  %v4338_v31 = vld [vmem:[#allocation4 + $0x110] sm:$0xff] }
 0x7d6   : > { %v4111_v23 = vsel %vm696_vm5, %v4107_v35, 0.0  ;;  %v4112_v47 = vsel %vm9128_vm6, %v4108_v19, 0.0  ;;  %v3264_v58 = vsel %vm681_vm7, %v3260_v42, 0.0  ;;  %v4337_v62 = vld [vmem:[#allocation4 + $0x108] sm:$0xff]  ;;  %3265 = vst [vmem:[#allocation4 + $0x10] sm:$0xf] %v3263_v5  ;;  %4426 = vmatprep.subr.mxu0 %v4338_v31  ;;  %vm9131_vm13 = vmmov %vm9130_vm2 }
 0x7d7   : > { %v4115_v16 = vrot.slane %v4111_v23, 4  ;;  %v4116_v1 = vrot.slane %v4112_v47, 4  ;;  %3266 = vst [vmem:[#allocation4 + $0x48] sm:$0xf] %v3264_v58  ;;  %4427 = vmatpush1.msra.mxu0 %v4337_v62  ;;  %v4196_v15 = vpop.permute.xlu0 %4195  ;;  %vm9133_vm1 = vcmask 252928   ;;  %vm9136_vm10 = vcmp.lt.s32.totalorder %v6596_v33, 16 }
 0x7d8   : > { %v4130_v18 = vpop.permute.xlu1 %4129  ;;  %v4199_v39 = vsel %vm9133_vm1, %v9132_v2, %v4196_v15  ;;  %vm9135_vm0 = vmmov %vm9133_vm1  ;;  %4428 = vmatprep.subr.mxu0 %v4336_v46  ;;  %v9137_v60 = vld [vmem:[#allocation36_spill] sm:$0xff]  ;;  %vm9138_vm6 = vcmask 375808   ;;  %v9140_v38 = vld [vmem:[#allocation113_spill] sm:$0xff] }
 0x7d9   : > { %4119 = vst [vmem:[#allocation4 + $0x188] sm:$0xf0] %v4115_v16  ;;  %4120 = vst [vmem:[#allocation4 + $0x18] sm:$0xf0] %v4116_v1  ;;  %v4133_v17 = vsel %vm9130_vm2, %v9129_v54, %v4130_v18  ;;  %v4134_v21 = vsel %vm9131_vm13, %v4130_v18, %v7854_v13  ;;  %v4200_v29 = vsel %vm9135_vm0, %v4196_v15, %v9134_v50  ;;  %v4203_v48 = vsel %vm672_vm11, %v4199_v39, 0.0  ;;  %v9142_v7 = vld [vmem:[#allocation184_spill] sm:$0xff] }
 0x7da   : > { %v4137_v36 = vsel %vm9136_vm10, %v4133_v17, 0.0  ;;  %v4138_v43 = vsel %vm705_vm4, %v4134_v21, 0.0  ;;  %v4204_v13 = vsel %vm673_vm9, %v4200_v29, 0.0  ;;  %4429 = vmatpush1.msra.mxu0 %v4335_v30  ;;  %v4207_v32 = vrot.slane %v4203_v48, 4  ;;  %vm9139_vm2 = vmmov %vm9138_vm6  ;;  %v9144_v56 = vld [vmem:[#allocation181_spill] sm:$0xff]  ;;  %v9147_v41 = vld [vmem:[#allocation120_spill] sm:$0xff] }
 0x7db   : > { %4139 = vst [vmem:[#allocation4 + $0x28] sm:$0xf] %v4137_v36  ;;  %4140 = vst [vmem:[#allocation4 + $0x158] sm:$0xf] %v4138_v43  ;;  %v4208_v40 = vrot.slane %v4204_v13, 4  ;;  %4430 = vmatprep.subr.mxu0 %v4334_v57  ;;  %v4222_v34 = vpop.permute.xlu0 %4221  ;;  %vm9141_vm13 = vcmask 244736  }
 0x7dc   : > { %4431 = vmatpush1.msra.mxu0 %v4333_v51  ;;  %v4058_v0 = vpop.permute.xlu1 %4057  ;;  %4211 = vst [vmem:[#allocation4 + $0x38] sm:$0xf0] %v4207_v32  ;;  %v4225_v12 = vsel %vm9141_vm13, %v9140_v38, %v4222_v34  ;;  %vm9143_vm1 = vmmov %vm9141_vm13  ;;  %v4330_v63 = vld [vmem:[#allocation4 + $0xd0] sm:$0xff]  ;;  %vm9145_vm0 = vcmask 482304   ;;  %v9149_v23 = vld [vmem:[#allocation40_spill] sm:$0xff] }
 0x7dd   : > { %4212 = vst [vmem:[#allocation4 + $0x70] sm:$0xf0] %v4208_v40  ;;  %v4061_v4 = vsel %vm9138_vm6, %v9137_v60, %v4058_v0  ;;  %v4062_v53 = vsel %vm9139_vm2, %v4058_v0, %v7860_v6  ;;  %v4226_v9 = vsel %vm9143_vm1, %v4222_v34, %v9142_v7  ;;  %v4229_v59 = vsel %vm680_vm8, %v4225_v12, 0.0  ;;  %v4331_v6 = vld [vmem:[#allocation4 + $0x10] sm:$0xff]  ;;  %v4377_v1 = vld [vmem:[#allocation4 + $0x78] sm:$0xf] }
 0x7de   : > { %v4065_v27 = vsel %vm680_vm8, %v4061_v4, 0.0  ;;  %v4066_v25 = vsel %vm681_vm7, %v4062_v53, 0.0  ;;  %v4230_v45 = vsel %vm681_vm7, %v4226_v9, 0.0  ;;  %v4332_v28 = vld [vmem:[#allocation4 + $0x48] sm:$0xff]  ;;  %4231 = vst [vmem:[#allocation4 + $0x68] sm:$0xf] %v4229_v59  ;;  %vm9146_vm8 = vmmov %vm9145_vm0 }
 0x7df   : > { %v4069_v11 = vrot.slane %v4065_v27, 4  ;;  %v4070_v37 = vrot.slane %v4066_v25, 4  ;;  %4232 = vst [vmem:[#allocation4 + $0x80] sm:$0xf] %v4230_v45  ;;  %4432 = vmatprep.subr.mxu0 %v4332_v28  ;;  %v4084_v19 = vpop.permute.xlu0 %4083  ;;  %vm9148_vm7 = vcmask 367616   ;;  %v4329_v5 = vld [vmem:[#allocation4 + $0xb0] sm:$0xff] }
 0x7e0   : > { %v3966_v35 = vpop.permute.xlu1 %3965  ;;  %4433 = vmatpush1.msra.mxu0 %v4331_v6  ;;  %v4087_v42 = vsel %vm9148_vm7, %v9147_v41, %v4084_v19  ;;  %vm9150_vm10 = vmmov %vm9148_vm7  ;;  %vm9151_vm6 = vcmp.lt.s32.totalorder %v6596_v33, 16  ;;  %v4378_v62 = vld [vmem:[#allocation4 + $0x150] sm:$0xf]  ;;  %vm9152_vm2 = vcmask 1043456   ;;  %v4376_v46 = vld [vmem:[#allocation4 + $0x60] sm:$0xff]  ;;  %vm9155_vm1 = vcmask 474112  }
 0x7e1   : > { %4073 = vst [vmem:[#allocation4 + $0x98] sm:$0xf0] %v4069_v11  ;;  %4074 = vst [vmem:[#allocation4 + $0x30] sm:$0xf0] %v4070_v37  ;;  %v3969_v26 = vsel %vm9145_vm0, %v9144_v56, %v3966_v35  ;;  %v3970_v20 = vsel %vm9146_vm8, %v3966_v35, %v7870_v44  ;;  %v4088_v47 = vsel %vm9150_vm10, %v4084_v19, %v9149_v23  ;;  %4434 = vmatprep.subr.mxu0 %v4330_v63  ;;  %v9154_v33 = vld [vmem:[#allocation144_spill] sm:$0xff]  ;;  %vm9158_vm0 = vcmask 392192  }
 0x7e2   : > { %v3973_v58 = vsel %vm9151_vm6, %v3969_v26, 0.0  ;;  %v3974_v31 = vsel %vm705_vm4, %v3970_v20, 0.0  ;;  %4093 = vst [vmem:[#allocation4 + $0x188] sm:$0xf] %v4087_v42  ;;  %4094 = vst [vmem:[#allocation4 + $0x18] sm:$0xf] %v4088_v47  ;;  %4435 = vmatpush1.msra.mxu0 %v4329_v5 }
 0x7e3   : > { %v3977_v16 = vrot.slane %v3973_v58, 4  ;;  %v3978_v44 = vrot.slane %v3974_v31, 4  ;;  %4716 = vmatprep.subr.msk.mxu0 %vm9152_vm2, %v4378_v62  ;;  %v4012_v15 = vpop.permute.xlu0 %4011  ;;  %vm9153_vm13 = vmmov %vm9152_vm2  ;;  %v9157_v17 = vld [vmem:[#allocation56_spill] sm:$0xff]  ;;  %v9163_v51 = vld [vmem:[#allocation119_spill] sm:$0xff]  ;;  %v9169_v19 = vmov 0.0  }
 0x7e4   : > { %v3992_v18 = vpop.permute.xlu1 %3991  ;;  %4717 = vmatpush2.msk.msra.mxu0 %vm9153_vm13, %v4377_v1  ;;  %vm9156_vm4 = vmmov %vm9155_vm1  ;;  %v4015_v21 = vsel %vm9158_vm0, %v9157_v17, %v4012_v15  ;;  %v9159_v2 = vld [vmem:[#allocation124_spill] sm:$0xff]  ;;  %v4372_v40 = vld [vmem:[#allocation4 + $0x70] sm:$0xff] }
 0x7e5   : > { %3981 = vst [vmem:[#allocation4 + $0x50] sm:$0xf0] %v3977_v16  ;;  %3982 = vst [vmem:[#allocation4] sm:$0xf0] %v3978_v44  ;;  %v3995_v49 = vsel %vm9155_vm1, %v9154_v33, %v3992_v18  ;;  %v3996_v54 = vsel %vm9156_vm4, %v3992_v18, %v7880_v61  ;;  %4452 = vmatprep.subr.mxu0 %v4376_v46  ;;  %v4375_v50 = vld [vmem:[#allocation4 + $0xc8] sm:$0xff]  ;;  %v4019_v36 = vsel %vm664_vm14, %v4015_v21, 0.0 }
 0x7e6   : > { %vm9160_vm8 = vmmov %vm9158_vm0  ;;  %v3999_v29 = vsel %vm712_vm3, %v3995_v49, 0.0  ;;  %v4000_v30 = vsel %vm713_vm15, %v3996_v54, 0.0  ;;  %4453 = vmatpush2.msra.mxu0 %v4375_v50  ;;  %v4374_v43 = vld [vmem:[#allocation4 + $0x80] sm:$0xff]  ;;  %v4373_v48 = vld [vmem:[#allocation4 + $0x68] sm:$0xff]  ;;  %v4023_v13 = vrot.slane %v4019_v36, 4  ;;  %vm9162_vm15 = vcmask 384000  }
 0x7e7   : > { %v4016_v39 = vsel %vm9160_vm8, %v4012_v15, %v9159_v2  ;;  %4001 = vst [vmem:[#allocation4 + $0x8] sm:$0xf] %v3999_v29  ;;  %4002 = vst [vmem:[#allocation4 + $0xc0] sm:$0xf] %v4000_v30  ;;  %4454 = vmatprep.subr.mxu0 %v4374_v43  ;;  %v4038_v10 = vpop.permute.xlu0 %4037  ;;  %v4371_v0 = vld [vmem:[#allocation4 + $0x38] sm:$0xff]  ;;  %v4369_v53 = vld [vmem:[#allocation4 + $0x28] sm:$0xff] }
 0x7e8   : > { %v4020_v61 = vsel %vm665_vm12, %v4016_v39, 0.0  ;;  %v3946_v32 = vpop.permute.xlu1 %3945  ;;  %4455 = vmatpush2.msra.mxu0 %v4373_v48  ;;  %4027 = vst [vmem:[#allocation4 + $0x8] sm:$0xf0] %v4023_v13  ;;  %v4041_v8 = vsel %vm9162_vm15, %v9161_v55, %v4038_v10  ;;  %vm9164_vm14 = vmmov %vm9162_vm15  ;;  %v4370_v4 = vld [vmem:[#allocation4 + $0x158] sm:$0xff]  ;;  %vm9165_vm12 = vcmask 490496   ;;  %v4325_v35 = vld [vmem:[#allocation10] sm:$0xff] }
 0x7e9   : > { %v4024_v57 = vrot.slane %v4020_v61, 4  ;;  %v4042_v22 = vsel %vm9164_vm14, %v4038_v10, %v9163_v51  ;;  %4456 = vmatprep.subr.mxu0 %v4372_v40  ;;  %v4045_v34 = vsel %vm672_vm11, %v4041_v8, 0.0  ;;  %v4368_v7 = vld [vmem:[#allocation4 + $0x18] sm:$0xff]  ;;  %vm9166_vm3 = vmmov %vm9165_vm12  ;;  %v4367_v3 = vld [vmem:[#allocation4 + $0x188] sm:$0xff]  ;;  %vm9178_vm11 = vcmask 261120  }
 0x7ea   : > { %v4046_v60 = vsel %vm673_vm9, %v4042_v22, 0.0  ;;  %4457 = vmatpush2.msra.mxu0 %v4371_v0  ;;  %4047 = vst [vmem:[#allocation4 + $0x98] sm:$0xf] %v4045_v34  ;;  %vm9167_vm9 = vcmp.lt.s32.totalorder %v6631_v52, 16  ;;  %v4327_v52 = vld [vmem:[#allocation10 + $0x10] sm:$0xff]  ;;  %v9171_v29 = vld [vmem:[#allocation28_spill] sm:$0xff] }
 0x7eb   : > { %4028 = vst [vmem:[#allocation4 + $0xc0] sm:$0xf0] %v4024_v57  ;;  %4048 = vst [vmem:[#allocation4 + $0x30] sm:$0xf] %v4046_v60  ;;  %4458 = vmatprep.subr.mxu0 %v4370_v4  ;;  %v3948_v12 = vpop.permute.xlu0 %3947  ;;  %v9172_v36 = vld [vmem:[#allocation27_spill] sm:$0xff]  ;;  %v9173_v43 = vld [vmem:[#allocation26_spill] sm:$0xff] }
 0x7ec   : > { %v3944_v38 = vpop.permute.xlu1 %3943  ;;  %4459 = vmatpush2.msra.mxu0 %v4369_v53  ;;  %v3950_v27 = vsel %vm9166_vm3, %v3946_v32, %v3948_v12  ;;  %v9175_v13 = vld [vmem:[#allocation25_spill] sm:$0xff]  ;;  %v5045_v10 = vld [vmem:[%s9170_s15 + $0x10] sm:$0xff]  ;;  %v5046_v55 = vld [vmem:[%s9170_s15 + $0x8] sm:$0xff] }
 0x7ed   : > { %v3949_v9 = vsel %vm9165_vm12, %v3944_v38, %v3946_v32  ;;  %4460 = vmatprep.subr.mxu0 %v4368_v7  ;;  %v3954_v25 = vsel %vm9167_vm9, %v3950_v27, 0.0  ;;  %v5044_v32 = vld [vmem:[%s9170_s15 + $0x18] sm:$0xff]  ;;  %v4509_v40 = vld [vmem:[%s9177_s10] sm:$0xff] }
 0x7ee   : > { %v3953_v24 = vsel %vm696_vm5, %v3949_v9, 0.0  ;;  %4461 = vmatpush2.msra.mxu0 %v4367_v3  ;;  %3956 = vst [vmem:[#allocation4] sm:$0xf] %v3954_v25  ;;  %vm9168_vm5 = vcmask 556032   ;;  %v5047_v8 = vld [vmem:[%s9170_s15] sm:$0xff] }
 0x7ef   : > { %3955 = vst [vmem:[#allocation4 + $0x50] sm:$0xf] %v3953_v24  ;;  %v4363_v6 = vld [vmem:[#allocation4 + $0x8] sm:$0xff] }
 0x7f1   : > { %v4365_v45 = vld [vmem:[#allocation4 + $0x98] sm:$0xff] }
 0x7f2   : > { %v4366_v59 = vld [vmem:[#allocation4 + $0x30] sm:$0xff]  ;;  %v4364_v28 = vld [vmem:[#allocation4 + $0xc0] sm:$0xff] }
 0x7f3   : > { %4462 = vmatprep.subr.mxu0 %v4366_v59 }
 0x7f4   : > { %4463 = vmatpush2.msra.mxu0 %v4365_v45 }
 0x7f5   : > { %4464 = vmatprep.subr.mxu0 %v4364_v28  ;;  %v4362_v11 = vld [vmem:[#allocation4] sm:$0xff] }
 0x7f6   : > { %4465 = vmatpush2.msra.mxu0 %v4363_v6  ;;  %v4361_v37 = vld [vmem:[#allocation4 + $0x50] sm:$0xff] }
 0x7f7   : > { %4466 = vmatprep.subr.mxu0 %v4362_v11 }
 0x7f8   : > { %4467 = vmatpush2.msra.mxu0 %v4361_v37  ;;  %v4389_v42 = vpop.permute.xlu0 %4388 }
 0x7f9   : > { %4469 = vmatmul.mubr.f32.vlgmr.msra.gmra.mxu0 %v4325_v35  ;;  %v4384_v63 = vpop.permute.xlu1 %4383 }
 0x7fa   : > { %4719 = vmatprep.mubr.msk.f32.mxu0 %vm9168_vm5, %v4328_v14 }
 0x7fc   : > { %v4514_v51 = vpop.permute.xlu0 %4513 }
 0x7fd   : > { %4475 = vmatmul.mubr.f32.gmra.mxu0 %v4327_v52 }
 0x7fe   : > { %4583 = vmatprep.mubr.f32.mxu0 %v9169_v19 }
 0x8b9   : > { %v4470_v56 = vpop.f32.mrf.mxu0 }
 0x8ba   : > { %v4471_v26 = vadd.f32 %v4470_v56, %v4384_v63 }
 0x8bb   : > { %v4472_v20 = vpop.f32.mrf.mxu0 }
 0x8bc   : > { %v4473_v41 = vadd.f32 %v4472_v20, %v4384_v63  ;;  %v4720_v23 = vmul.f32 -1.442695, %v4471_v26 }
 0x8bd   : > { %v4476_v47 = vpop.f32.mrf.mxu0 }
 0x8be   : > { %v4721_v5 = vmul.f32 -1.442695, %v4473_v41  ;;  %v4477_v58 = vadd.f32 %v4476_v47, %v4389_v42 }
 0x8bf   : > { %v4478_v31 = vpop.f32.mrf.mxu0 }
 0x8c0   : > { %5028 = vpow2.f32 %v4721_v5  ;;  %v4722_v62 = vmul.f32 -1.442695, %v4477_v58  ;;  %v4479_v16 = vadd.f32 %v4478_v31, %v4389_v42 }
 0x8c1   : > { %5030 = vpow2.f32 %v4720_v23 }
 0x8c2   : > { %5032 = vpow2.f32 %v4722_v62  ;;  %v4723_v44 = vmul.f32 -1.442695, %v4479_v16 }
 0x8c4   : > { %5034 = vpow2.f32 %v4723_v44 }
 0x8cd   : > { %v5029_v1 = vpop.eup %5028 }
 0x8ce   : > { %v5031_v18 = vpop.eup %5030  ;;  %v4494_v15 = vadd.f32 1.0, %v5029_v1 }
 0x8cf   : > { %v5033_v46 = vpop.eup %5032  ;;  %v4493_v54 = vadd.f32 1.0, %v5031_v18 }
 0x8d0   : > { %v4495_v33 = vadd.f32 1.0, %v5033_v46  ;;  %5036 = vrcp.f32 %v4494_v15 }
 0x8d1   : > { %v5035_v49 = vpop.eup %5034 }
 0x8d2   : > { %v4496_v17 = vadd.f32 1.0, %v5035_v49  ;;  %5038 = vrcp.f32 %v4495_v33 }
 0x8d4   : > { %5040 = vrcp.f32 %v4496_v17 }
 0x8d5   : > { %5042 = vrcp.f32 %v4493_v54 }
 0x8dd   : > { %v5037_v21 = vpop.eup %5036 }
 0x8de   : > { %v4506_v48 = vmul.f32 %v5037_v21, %v9173_v43 }
 0x8df   : > { %v5039_v2 = vpop.eup %5038 }
 0x8e0   : > { %v4507_v61 = vmul.f32 %v5039_v2, %v9172_v36 }
 0x8e1   : > { %v5041_v39 = vpop.eup %5040 }
 0x8e2   : > { %v5043_v50 = vpop.eup %5042  ;;  %v4508_v30 = vmul.f32 %v5041_v39, %v9171_v29 }
 0x8e3   : > { %v4505_v57 = vmul.f32 %v5043_v50, %v9175_v13 }
 0x8e4   : > { %4543 = vmatprep.subr.mxu0 %v4508_v30 }
 0x8e5   : > { %4544 = vmatpush1.msra.mxu0 %v4507_v61 }
 0x8e6   : > { %4545 = vmatprep.subr.mxu0 %v4506_v48 }
 0x8e7   : > { %4546 = vmatpush1.msra.mxu0 %v4505_v57 }
 0x8e8   : > { %4547 = vmatprep.subr.mxu0 %v5044_v32 }
 0x8e9   : > { %4548 = vmatpush1.msra.mxu0 %v5045_v10 }
 0x8ea   : > { %4549 = vmatprep.subr.mxu0 %v5046_v55 }
 0x8eb   : > { %4550 = vmatpush1.msra.mxu0 %v5047_v8 }
 0x8ec   : > { %4724 = vmatmul.mubr.msk.f32.vlgmr.msra.gmra.mxu0 %vm9178_vm11, %v4509_v40 }
 0x9ac   : > { %v4585_v22 = vpop.f32.mrf.mxu0 }
 0x9ad   : > { %v4586_v0 = vadd.f32 %v4585_v22, %v4514_v51 }
 0x9ae   : > { %v4587_v34 = vpop.f32.mrf.mxu0 }
 0x9af   : > { %4590 = vst [vmem:[%s419_s1] sm:$0xff] %v4586_v0  ;;  %v4588_v60 = vadd.f32 %v4587_v34, %v4514_v51 }
 0x9b1   : > { %4591 = vst [vmem:[%s419_s1 + $0x8] sm:$0xff] %v4588_v60 }
 0x9b2   : > { %5139 = shalt.err (!%p5136_p10)
}
 0x9b3   : > { %s5140_s18 = scalar_lea.hbm %s4605_s6, 256  ;;  %s5144_s26 = scalar_lea.hbm %s9180_s4, 512 }
 0x9b4   : > { %p5141_p7 = scmp.ne.s32.totalorder %s4605_s6, %s5140_s18  ;;  %p5145_p11 = scmp.lt.s32.totalorder %s4605_s6, %s9180_s4 }
 0x9b5   : > { %p5146_p0 = scmp.lt.s32.totalorder %s5144_s26, %s5140_s18 }
 0x9b6   : > { %p5142_p13 = pnand %p5141_p7, %p9181_p2 }
 0x9b7   : > { %p5147_p1 = por %p5146_p0, %p5145_p11 }
 0x9b8   : > { %p5143_p8 = pneg %p5142_p13 }
 0x9ba   : > { %p5148_p12 = pnand %p5147_p1, %p5143_p8 }
 0x9bc   : > { %5151 = shalt.err (!%p5148_p12)
}
 0x9bd   : > { %4912 = dma.vmem_to_hbm [thread:$0]  (%p9181_p2), %s4608_s3, 256, %s4605_s6, %s4593_s7  }
 0x9be PF: > { %s9182_s30 = sld [smem:[#allocation18_spill]] }
 0x9bf   : > { %s9183_s13 = sld [smem:[#allocation15_spill]] }
 0x9c0   : > { %s9184_s14 = sld [smem:[#allocation23_spill]] }
 0x9c4   : > { %p4934_p9 = scmp.ge.s32.totalorder %s9182_s30, 2 }
 0x9c5   : > { %s4619_s15 = sand.u32 1, %s9183_s13  }
 0x9c6   : > { %p9185_p3 = scmp.ne.s32.totalorder %s9184_s14, 0  ;;  %s4620_s22 = scalar_lea.sflag [#allocation7], %s4619_s15 }
 0x9c8   : > { %p4925_p4 = pnand %p4934_p9, %p9185_p3 }
 0x9ca   : > { %p4926_p5 = pneg %p4925_p4 }
 0x9cc   : > { %5177 = dma.done.wait (%p4926_p5), %s4620_s22, 256  }
 0x9cd   : > { %5179 = vsyncadd (%p4926_p5), %s4620_s22, 4294967040  ;;  %s9186_s20 = sld [smem:[#allocation20_spill]] }
 0x9ce   : > { %s9187_s17 = sld [smem:[#allocation16_spill]] }
 0x9cf   : > { %s9188_s18 = sld [smem:[#allocation17_spill]] }
 0x9d0   : > { %s9189_s19 = sld [smem:[#allocation21_spill]] }
 0x9d3   : > { %p23_p6 = scmp.ge.s32.totalorder %s9186_s20, 4  }
 0x9d5   :  { %25 = sbr.rel (!%p23_p6) target bundleno = 18 (0x12), region = 112 }
 0x9da   :  { %4625 = vsyncpa [#allocation6], 1 }
 0x9db   :  { %4627 = vsyncpa [#allocation6 + $0x1], 1 }
 0x9dc   :  { %4628 = vsyncpa [#allocation9], 1 }
 0x9dd   :  { %4629 = vsyncpa [#allocation7], 1 }
 0x9de   :  { %4631 = vsyncpa [#allocation7 + $0x1], 1 }

</bundles_post_ra>
